<compile_context>
chip_gen: v5e
topology: v5e:2x2
jax: 0.10.0
libtpu: 0.0.40
codegen_flags: <defaults>
</compile_context>

<pallas_src>
import functools

import jax
import jax.numpy as jnp
from jax.experimental import pallas as pl
from jax.experimental.pallas import tpu as pltpu

PACK = 4                              # residues packed per 128-lane row (c_m = c_z = 32)
ROW_TILE = 512                        # max (packed) rows per grid step
ACT_DTYPE = jnp.bfloat16              # activation dtype between kernels
MIB = 1024 * 1024


def _vmem_capacity_bytes():
    try:
        return int(pltpu.get_tpu_info().vmem_capacity_bytes)
    except Exception:
        return 64 * MIB               # conservative fallback (v7x-sized)


_VMEM_CAP = _vmem_capacity_bytes()
VMEM_LIMIT = max(32 * MIB, min(_VMEM_CAP - 16 * MIB, 96 * MIB))


# ------------------------------- helpers ----------------------------------- #

def _round_up(x, m):
    return ((x + m - 1) // m) * m


def _cdiv(a, b):
    return -(-a // b)


def _ln_f32(x, g, b):
    mu = jnp.mean(x, axis=-1, keepdims=True)
    var = jnp.mean((x - mu) ** 2, axis=-1, keepdims=True)
    return (x - mu) * jax.lax.rsqrt(var + 1e-5) * g + b


def _seg_avg_matrix(c, g):
    """(g*c, g*c) matrix: x @ S = per-32-lane-segment mean broadcast back."""
    return jnp.kron(jnp.eye(g, dtype=jnp.float32), jnp.ones((c, c), jnp.float32) / c)


def _seg_ln(x, seg, g, b):
    """Segmented LayerNorm over 32-lane groups of a packed (TM, 128) slab (f32 math)."""
    mu = jnp.dot(x, seg, preferred_element_type=jnp.float32)
    xc = x - mu
    var = jnp.dot(xc * xc, seg, preferred_element_type=jnp.float32)
    return xc * jax.lax.rsqrt(var + 1e-5) * g + b


# ----------------------------- Pallas kernels ------------------------------ #

def _ln_kernel(x_ref, g_ref, b_ref, o_ref):
    o_ref[...] = _ln_f32(x_ref[...].astype(jnp.float32),
                         g_ref[...], b_ref[...]).astype(o_ref.dtype)


def _packed_ln_mlp_kernel(x_ref, seg_ref, g_ref, b_ref, w1_ref, b1_ref,
                          w2_ref, b2_ref, o_ref):
    """o = x + W2 @ relu(W1 @ LN(x)) on 4-residue-packed rows (block-diag weights)."""
    x = x_ref[...].astype(jnp.float32)
    xn = _seg_ln(x, seg_ref[...], g_ref[...], b_ref[...])
    h = jnp.dot(xn.astype(jnp.bfloat16), w1_ref[...],
                preferred_element_type=jnp.float32) + b1_ref[...]
    h = jnp.maximum(h, 0.0)
    y = jnp.dot(h.astype(jnp.bfloat16), w2_ref[...],
                preferred_element_type=jnp.float32) + b2_ref[...]
    o_ref[...] = (x + y).astype(o_ref.dtype)


def _packed_msa_opm_kernel(x_ref, seg_ref, g1_ref, bt1_ref, w1_ref, bb1_ref,
                           w2_ref, bb2_ref, g2_ref, bt2_ref, wab_ref, bab_ref,
                           m_ref, ab_ref):
    """Fused MSA transition + OPM a/b projection (Wo pre-folded into the b half)."""
    x = x_ref[...].astype(jnp.float32)
    seg = seg_ref[...]
    xn = _seg_ln(x, seg, g1_ref[...], bt1_ref[...])
    h = jnp.dot(xn.astype(jnp.bfloat16), w1_ref[...],
                preferred_element_type=jnp.float32) + bb1_ref[...]
    h = jnp.maximum(h, 0.0)
    m_new = x + jnp.dot(h.astype(jnp.bfloat16), w2_ref[...],
                        preferred_element_type=jnp.float32) + bb2_ref[...]
    m_ref[...] = m_new.astype(m_ref.dtype)
    mn = _seg_ln(m_new, seg, g2_ref[...], bt2_ref[...])
    ab = jnp.dot(mn.astype(jnp.bfloat16), wab_ref[...],
                 preferred_element_type=jnp.float32) + bab_ref[...]
    ab_ref[...] = ab.astype(ab_ref.dtype)


def _packed_ln_linear_kernel(x_ref, seg_ref, g_ref, b_ref, w_ref, wb_ref, o_ref):
    x = x_ref[...].astype(jnp.float32)
    xn = _seg_ln(x, seg_ref[...], g_ref[...], b_ref[...])
    y = jnp.dot(xn.astype(jnp.bfloat16), w_ref[...],
                preferred_element_type=jnp.float32) + wb_ref[...]
    o_ref[...] = y.astype(o_ref.dtype)


def _packed_recycle_kernel(zc_ref, zp_ref, e_ref, seg_ref, g_ref, b_ref, o_ref):
    """o = z_cur + LN(z_prev) + distogram_embedding on packed rows."""
    zp = zp_ref[...].astype(jnp.float32)
    zn = _seg_ln(zp, seg_ref[...], g_ref[...], b_ref[...])
    o_ref[...] = (zc_ref[...].astype(jnp.float32) + zn +
                  e_ref[...].astype(jnp.float32)).astype(o_ref.dtype)


def _sm_plddt_kernel(x_ref, g_ref, b_ref, w1_ref, b1_ref, w2_ref, b2_ref,
                     wc_ref, bc_ref, wp1_ref, bp1_ref, wp2_ref, bp2_ref,
                     cent_ref, mask_ref, s_ref, aux_ref):
    """Fused structure-module transition + coord head + pLDDT head."""
    x = x_ref[...].astype(jnp.float32)
    xn = _ln_f32(x, g_ref[...], b_ref[...])
    h = jnp.dot(xn.astype(jnp.bfloat16), w1_ref[...],
                preferred_element_type=jnp.float32) + b1_ref[...]
    h = jnp.maximum(h, 0.0)
    s = x + jnp.dot(h.astype(jnp.bfloat16), w2_ref[...],
                    preferred_element_type=jnp.float32) + b2_ref[...]
    sb = s.astype(jnp.bfloat16)
    coords = jnp.dot(sb, wc_ref[...], preferred_element_type=jnp.float32) + bc_ref[...]
    hp = jnp.dot(sb, wp1_ref[...], preferred_element_type=jnp.float32) + bp1_ref[...]
    hp = jnp.maximum(hp, 0.0)
    logits = jnp.dot(hp.astype(jnp.bfloat16), wp2_ref[...],
                     preferred_element_type=jnp.float32) + bp2_ref[...]
    logits = logits - jnp.max(logits, axis=-1, keepdims=True)
    p = jnp.exp(logits)
    p = p / jnp.sum(p, axis=-1, keepdims=True)
    plddt = jnp.sum(p * cent_ref[...], axis=-1, keepdims=True)        # [TM, 1]
    s_ref[...] = s.astype(s_ref.dtype)
    # pack lane-padded coords (cols 0:3) and plddt (col 3) into one 8-wide output
    aux_ref[...] = (coords + plddt * mask_ref[...]).astype(aux_ref.dtype)


def _opm_kernel(a_ref, c_ref, bias_ref, z_ref, o_ref, *, inv_d):
    """z[i, (j,c)] += (1/D) * A2[i, (d,p)] @ C3[(d,p), (j,c)] + bias[(j,c)]."""
    acc = jnp.dot(a_ref[...], c_ref[...], preferred_element_type=jnp.float32)
    o_ref[...] = (z_ref[...].astype(jnp.float32) + acc * inv_d +
                  bias_ref[...]).astype(o_ref.dtype)


# ----------------------------- row-wise wrappers ---------------------------- #

def _choose_tm(m_rows):
    """Pick a row tile that divides the row count (no pad copy) and leaves >=2 grid
    steps when possible (keeps both v7x TensorCores busy)."""
    mp = _round_up(m_rows, 8)
    cap = min(ROW_TILE, mp)
    if mp >= 16:
        cap = min(cap, _round_up(_cdiv(mp, 2), 8))
    best = 0
    for t in range(8, cap + 1, 8):
        if mp % t == 0:
            best = t
    if best >= min(128, cap):
        return best, mp
    # no decent dividing tile: fall back to a large tile with a padded tail
    return cap, _round_up(mp, cap)


def _row_call(kernel, row_inputs, params, out_widths, out_dtypes, io_alias=None):
    """Run `kernel` over [M, K_i] row slabs; `params` broadcast to every tile."""
    M = row_inputs[0].shape[0]
    TM, Mp = _choose_tm(M)
    if Mp != M:
        row_inputs = [jnp.pad(x, ((0, Mp - M), (0, 0))) for x in row_inputs]

    in_specs = [pl.BlockSpec((TM, x.shape[1]), lambda i: (i, 0)) for x in row_inputs]
    in_specs += [pl.BlockSpec(p.shape, lambda i: (0, 0)) for p in params]

    out_shape = tuple(jax.ShapeDtypeStruct((Mp, n), dt)
                      for n, dt in zip(out_widths, out_dtypes))
    out_specs = tuple(pl.BlockSpec((TM, n), lambda i: (i, 0)) for n in out_widths)
    single = len(out_widths) == 1
    if single:
        out_shape, out_specs = out_shape[0], out_specs[0]

    aliases = {}
    if io_alias:
        for i_in, i_out in io_alias.items():
            x = row_inputs[i_in]
            if x.shape == (Mp, out_widths[i_out]) and x.dtype == out_dtypes[i_out]:
                aliases[i_in] = i_out

    res = pl.pallas_call(
        kernel,
        out_shape=out_shape,
        grid=(Mp // TM,),
        in_specs=in_specs,
        out_specs=out_specs,
        input_output_aliases=aliases,
        compiler_params=pltpu.CompilerParams(
            dimension_semantics=("parallel",),
            vmem_limit_bytes=VMEM_LIMIT),
    )(*row_inputs, *params)
    if single:
        res = (res,)
    return tuple(r[:M] for r in res)


def _packed_call(kernel, row_inputs, params, out_widths, out_dtypes, io_alias=None):
    """Pack PACK residues per 128-lane row, run, unpack (lane-dense loads/stores)."""
    M = row_inputs[0].shape[0]
    G = PACK
    Mg = _cdiv(M, G)
    packed = []
    for x in row_inputs:
        C = x.shape[1]
        if Mg * G != M:
            x = jnp.pad(x, ((0, Mg * G - M), (0, 0)))
        packed.append(x.reshape(Mg, G * C))
    outs = _row_call(kernel, packed, params, [G * w for w in out_widths],
                     out_dtypes, io_alias)
    return tuple(o.reshape(Mg * G, w)[:M] for o, w in zip(outs, out_widths))


def pallas_layernorm(x, g, b, out_dtype=None):
    K = x.shape[-1]
    (out,) = _row_call(_ln_kernel, [x.reshape(-1, K)],
                       [g.reshape(1, K), b.reshape(1, K)],
                       [K], [out_dtype or x.dtype])
    return out.reshape(x.shape)


def fused_ln_mlp_packed(x, seg, g, b, w1, b1, w2, b2):
    C = x.shape[-1]
    (out,) = _packed_call(_packed_ln_mlp_kernel, [x.reshape(-1, C)],
                          [seg, g, b, w1, b1, w2, b2], [C], [x.dtype],
                          io_alias={0: 0})
    return out.reshape(x.shape)


def fused_msa_opm(m, blk, seg):
    B, D, L, c_m = m.shape
    n_ab = blk['ab_w'].shape[1] // PACK
    m_new, ab = _packed_call(
        _packed_msa_opm_kernel, [m.reshape(-1, c_m)],
        [seg, blk['msa_g'], blk['msa_b'], blk['msa_w1'], blk['msa_b1'],
         blk['msa_w2'], blk['msa_b2'], blk['opm_g'], blk['opm_b'],
         blk['ab_w'], blk['ab_b']],
        [c_m, n_ab], [m.dtype, jnp.bfloat16], io_alias={0: 0})
    return m_new.reshape(B, D, L, c_m), ab.reshape(B, D, L, n_ab)


def fused_ln_linear_packed(x, seg, g, b, w, wb, n_out, out_dtype):
    C = x.shape[-1]
    (out,) = _packed_call(_packed_ln_linear_kernel, [x.reshape(-1, C)],
                          [seg, g, b, w, wb], [n_out], [out_dtype])
    return out.reshape(*x.shape[:-1], n_out)


def fused_recycle_pair_packed(z_cur, z_prev, emb, seg, g, b):
    C = z_cur.shape[-1]
    (out,) = _packed_call(_packed_recycle_kernel,
                          [z_cur.reshape(-1, C), z_prev.reshape(-1, C),
                           emb.reshape(-1, C)],
                          [seg, g, b], [C], [z_cur.dtype], io_alias={0: 0})
    return out.reshape(z_cur.shape)


# --------------------- outer-product-mean (restructured) -------------------- #

def opm_update(z, a, c, b_o, c_h, c_z):
    """z[b,i,j,:] += (1/D) sum_{d,p} a[b,d,i,p] * C[b,d,j,p,:] + b_o  (Wo pre-folded)."""
    B, D, L, _ = a.shape
    # TODO(synk): the j<->p relayout below is still an XLA transpose of the folded C
    # tensor; consuming C in its natural [b,d,j,(p c)] layout would need a D-reduction
    # grid axis with an in-kernel relayout and is left as future work.
    c3 = (c.reshape(B, D, L, c_h, c_z).transpose(0, 1, 3, 2, 4)
           .reshape(B, D * c_h, L * c_z))
    a2 = a.transpose(0, 2, 1, 3).reshape(B, L, D * c_h)
    z_flat = z.reshape(B, L, L * c_z)
    K, N = D * c_h, L * c_z
    bias = jnp.tile(b_o.astype(jnp.float32), (L,)).reshape(1, N)

    Lp = _round_up(L, 8)
    if Lp != L:
        a2 = jnp.pad(a2, ((0, 0), (0, Lp - L), (0, 0)))
        z_flat = jnp.pad(z_flat, ((0, 0), (0, Lp - L), (0, 0)))

    # tile selection: account for all per-step buffers + 2x double buffering,
    # budget derived from the real VMEM capacity (64 MiB v7x / 128 MiB v5e,v6e)
    budget = int(0.8 * VMEM_LIMIT)
    ti_opts = [t for t in range(min(512, Lp), 0, -8) if Lp % t == 0]
    TI, n_j, TJC = ti_opts[-1], 1, N
    done = False
    for nj in range(1, L + 1):
        if L % nj:
            continue
        tjc = (L // nj) * c_z
        if nj > 1 and tjc % 128:
            continue
        for ti in ti_opts:
            need = (2 * ti * K * 2          # a2 tile (bf16)
                    + 2 * K * tjc * 2       # c3 tile (bf16, resident across i)
                    + 2 * tjc * 4           # bias (f32)
                    + 4 * ti * tjc * 2      # z-in + out tiles (bf16)
                    + ti * tjc * 4)         # f32 accumulator
            if need <= budget:
                TI, n_j, TJC, done = ti, nj, tjc, True
                break
        if done:
            break

    out = pl.pallas_call(
        functools.partial(_opm_kernel, inv_d=1.0 / D),
        out_shape=jax.ShapeDtypeStruct((B, Lp, N), z.dtype),
        grid=(B, n_j, Lp // TI),           # i innermost: c3 block fetched once per j
        in_specs=[
            pl.BlockSpec((None, TI, K), lambda bq, j, i: (bq, i, 0)),
            pl.BlockSpec((None, K, TJC), lambda bq, j, i: (bq, 0, j)),
            pl.BlockSpec((1, TJC), lambda bq, j, i: (0, j)),
            pl.BlockSpec((None, TI, TJC), lambda bq, j, i: (bq, i, j)),
        ],
        out_specs=pl.BlockSpec((None, TI, TJC), lambda bq, j, i: (bq, i, j)),
        input_output_aliases={3: 0},        # update the pair buffer in place
        compiler_params=pltpu.CompilerParams(
            dimension_semantics=("parallel", "parallel", "parallel"),
            vmem_limit_bytes=VMEM_LIMIT),
    )(a2, c3, bias, z_flat)
    return out[:, :L].reshape(B, L, L, c_z)


# ----------------------------- parameters ----------------------------------- #

def make_params(cfg, key):
    keys = iter(jax.random.split(key, 64))

    def lin(kin, kout, scale=0.05):
        w = jax.random.normal(next(keys), (kin, kout), jnp.float32) * scale
        b = jnp.zeros((kout,), jnp.float32)
        return {'w': w, 'b': b}

    def ln(dim):
        return {'g': jnp.ones((dim,), jnp.float32), 'b': jnp.zeros((dim,), jnp.float32)}

    V, c_m, c_z, c_s, c_h = cfg['vocab'], cfg['c_m'], cfg['c_z'], cfg['c_s'], cfg['c_hidden_opm']
    p = {}
    # MSAEmbedder
    p['msa_emb'] = lin(V, c_m)
    p['rnafm_emb'] = lin(V, c_m)
    p['pair_left'] = lin(V, c_z)
    p['pair_right'] = lin(V, c_z)
    # RecyclingEmbedder
    p['rec_ln_m'] = ln(c_m)
    p['rec_ln_z'] = ln(c_z)
    p['rec_dgram'] = lin(cfg['rec_bins'], c_z)
    # E2EformerStack
    blocks = []
    for _ in range(cfg['n_blocks']):
        blocks.append({
            'msa_ln': ln(c_m), 'msa_t1': lin(c_m, 4 * c_m), 'msa_t2': lin(4 * c_m, c_m),
            'opm_ln': ln(c_m), 'opm_a': lin(c_m, c_h), 'opm_b': lin(c_m, c_h),
            'opm_o': lin(c_h * c_h, c_z),
            'pair_ln': ln(c_z), 'pair_t1': lin(c_z, 4 * c_z), 'pair_t2': lin(4 * c_z, c_z),
        })
    p['blocks'] = blocks
    p['single_ln'] = ln(c_m)
    p['single_proj'] = lin(c_m, c_s)
    # StructureModule (simplified)
    p['sm_ln'] = ln(c_s)
    p['sm_t1'] = lin(c_s, c_s)
    p['sm_t2'] = lin(c_s, c_s)
    p['sm_coord'] = lin(c_s, 3)
    # heads
    p['plddt_1'] = lin(c_s, c_s)
    p['plddt_2'] = lin(c_s, cfg['plddt_bins'])
    p['heads_ln'] = ln(c_z)
    p['ss_head'] = lin(c_z, 1)
    p['dist_p'] = lin(c_z, cfg['dist_bins'])
    p['dist_c4'] = lin(c_z, cfg['dist_bins'])
    p['dist_n'] = lin(c_z, cfg['dist_bins'])
    return p


def prepare_params(params, cfg):
    """One-time host-side derivation: Wo fold, block-diag packing, lane tiling."""
    G = PACK
    c_m, c_z, c_s, c_h = cfg['c_m'], cfg['c_z'], cfg['c_s'], cfg['c_hidden_opm']
    nd = cfg['dist_bins']
    bf = jnp.bfloat16

    def bd(w):                      # block-diagonal repeat for packed rows
        return jnp.kron(jnp.eye(G, dtype=jnp.float32), w)

    def tile(v):                    # repeat a bias/scale across the packed lanes
        return jnp.tile(jnp.asarray(v, jnp.float32).reshape(1, -1), (1, G))

    pp = dict(params)
    pp['seg_m'] = _seg_avg_matrix(c_m, G)
    pp['seg_z'] = _seg_avg_matrix(c_z, G)

    pblocks = []
    for blk in params['blocks']:
        # fold Wo into the b-projection:  C = LN(m) @ (Wb @ Wo_t) + (bb @ Wo_t)
        wo_t = (blk['opm_o']['w'].reshape(c_h, c_h, c_z)
                .transpose(1, 0, 2).reshape(c_h, c_h * c_z))
        w_c = blk['opm_b']['w'] @ wo_t
        b_c = blk['opm_b']['b'] @ wo_t
        w_ab = jnp.concatenate([blk['opm_a']['w'], w_c], axis=1)       # (c_m, c_h+c_h*c_z)
        b_ab = jnp.concatenate([blk['opm_a']['b'], b_c], axis=0)
        pblocks.append({
            'msa_g': tile(blk['msa_ln']['g']), 'msa_b': tile(blk['msa_ln']['b']),
            'msa_w1': bd(blk['msa_t1']['w']).astype(bf), 'msa_b1': tile(blk['msa_t1']['b']),
            'msa_w2': bd(blk['msa_t2']['w']).astype(bf), 'msa_b2': tile(blk['msa_t2']['b']),
            'opm_g': tile(blk['opm_ln']['g']), 'opm_b': tile(blk['opm_ln']['b']),
            'ab_w': bd(w_ab).astype(bf), 'ab_b': tile(b_ab),
            'opm_bo': blk['opm_o']['b'],
            'pair_g': tile(blk['pair_ln']['g']), 'pair_b': tile(blk['pair_ln']['b']),
            'pair_w1': bd(blk['pair_t1']['w']).astype(bf), 'pair_b1': tile(blk['pair_t1']['b']),
            'pair_w2': bd(blk['pair_t2']['w']).astype(bf), 'pair_b2': tile(blk['pair_t2']['b']),
        })
    pp['pblocks'] = pblocks

    pp['rec_z_g'] = tile(params['rec_ln_z']['g'])
    pp['rec_z_b'] = tile(params['rec_ln_z']['b'])

    pp['single_g'] = tile(params['single_ln']['g'])
    pp['single_b'] = tile(params['single_ln']['b'])
    pp['single_w'] = bd(params['single_proj']['w']).astype(bf)
    pp['single_wb'] = tile(params['single_proj']['b'])

    # heads: concat ss + 3 dist heads, pad to a lane-dense 128-wide output
    n_real = 1 + 3 * nd
    n_pad = _round_up(n_real, 128)
    hw = jnp.concatenate([params['ss_head']['w'], params['dist_p']['w'],
                          params['dist_c4']['w'], params['dist_n']['w']], axis=1)
    hb = jnp.concatenate([params['ss_head']['b'], params['dist_p']['b'],
                          params['dist_c4']['b'], params['dist_n']['b']], axis=0)
    hw = jnp.pad(hw, ((0, 0), (0, n_pad - n_real)))
    hb = jnp.pad(hb, ((0, n_pad - n_real),))
    pp['heads_g'] = tile(params['heads_ln']['g'])
    pp['heads_b'] = tile(params['heads_ln']['b'])
    pp['heads_w'] = bd(hw).astype(bf)
    pp['heads_wb'] = tile(hb)
    pp['heads_npad'] = n_pad
    return pp


# ----------------------------- sub-modules ---------------------------------- #

def msa_embedder(pp, cfg, msa_tokens, rna_fm_tokens):
    # TODO(synk): real MSAEmbedder uses a pretrained RNA-FM encoder; a learned token
    # embedding stands in.  one_hot(V) @ W is replaced by an embedding gather.
    msa_fea = pp['msa_emb']['w'][msa_tokens] + pp['msa_emb']['b']              # [B,D,L,c_m]
    fm_fea = pp['rnafm_emb']['w'][rna_fm_tokens] + pp['rnafm_emb']['b']
    msa_fea = msa_fea.at[:, 0].add(fm_fea)                                     # rna-fm on row 0
    seq_tok = msa_tokens[:, 0]
    left = pp['pair_left']['w'][seq_tok] + pp['pair_left']['b']
    right = pp['pair_right']['w'][seq_tok] + pp['pair_right']['b']
    pair_fea = left[:, :, None, :] + right[:, None, :, :]                      # [B,L,L,c_z]
    return msa_fea.astype(ACT_DTYPE), pair_fea.astype(ACT_DTYPE)


def recycling_embedder(pp, cfg, pair_fea, single_prev, pair_prev, cords_prev):
    m_up = pallas_layernorm(single_prev, pp['rec_ln_m']['g'], pp['rec_ln_m']['b'],
                            out_dtype=ACT_DTYPE)
    d = jnp.sqrt(jnp.sum((cords_prev[:, :, None, :] - cords_prev[:, None, :, :]) ** 2,
                         axis=-1) + 1e-8)                                       # [B,L,L]
    edges = jnp.linspace(2.0, 22.0, cfg['rec_bins'] - 1)
    idx = jnp.sum(d[..., None] > edges, axis=-1).astype(jnp.int32)
    # one_hot(idx) @ W == W[idx]  (gather instead of a [B,L,L,bins] one-hot matmul)
    dgram_emb = (pp['rec_dgram']['w'][idx] + pp['rec_dgram']['b']).astype(ACT_DTYPE)
    pair_new = fused_recycle_pair_packed(pair_fea, pair_prev, dgram_emb,
                                         pp['seg_z'], pp['rec_z_g'], pp['rec_z_b'])
    return m_up, pair_new


def e2eformer(pp, cfg, m, z):
    # TODO(synk): full row/column MSA attention + triangle updates are not in the
    # reference; the stack keeps MSA/pair transitions + outer-product-mean coupling.
    c_h, c_z = cfg['c_hidden_opm'], cfg['c_z']
    for blk in pp['pblocks']:
        m, ab = fused_msa_opm(m, blk, pp['seg_m'])
        a = ab[..., :c_h]                     # OPM a-activation
        c = ab[..., c_h:]                     # Wo-folded b-activation
        z = opm_update(z, a, c, blk['opm_bo'], c_h, c_z)
        z = fused_ln_mlp_packed(z, pp['seg_z'], blk['pair_g'], blk['pair_b'],
                                blk['pair_w1'], blk['pair_b1'],
                                blk['pair_w2'], blk['pair_b2'])
    s = fused_ln_linear_packed(m[:, 0], pp['seg_m'], pp['single_g'], pp['single_b'],
                               pp['single_w'], pp['single_wb'], cfg['c_s'], ACT_DTYPE)
    return m, z, s


def structure_and_plddt(pp, cfg, single_fea):
    # TODO(synk): IPA/frame-based structure module + PDB converter are not translatable;
    # simplified residual MLP + coord projection + pLDDT head, fused into one kernel.
    c_s, nb = cfg['c_s'], cfg['plddt_bins']
    B, L, _ = single_fea.shape
    wc = jnp.zeros((c_s, 8), jnp.float32).at[:, :3].set(pp['sm_coord']['w'])
    bc = jnp.zeros((1, 8), jnp.float32).at[0, :3].set(pp['sm_coord']['b'])
    centers = ((jnp.arange(nb, dtype=jnp.float32) + 0.5) / nb).reshape(1, nb)
    col_mask = jnp.zeros((1, 8), jnp.float32).at[0, 3].set(1.0)
    prm = [pp['sm_ln']['g'].reshape(1, c_s), pp['sm_ln']['b'].reshape(1, c_s),
           pp['sm_t1']['w'].astype(jnp.bfloat16), pp['sm_t1']['b'].reshape(1, c_s),
           pp['sm_t2']['w'].astype(jnp.bfloat16), pp['sm_t2']['b'].reshape(1, c_s),
           wc.astype(jnp.bfloat16), bc,
           pp['plddt_1']['w'].astype(jnp.bfloat16), pp['plddt_1']['b'].reshape(1, c_s),
           pp['plddt_2']['w'].astype(jnp.bfloat16), pp['plddt_2']['b'].reshape(1, nb),
           centers, col_mask]
    s_out, aux = _row_call(_sm_plddt_kernel, [single_fea.reshape(-1, c_s)], prm,
                           [c_s, 8], [jnp.float32, jnp.float32])
    s_out = s_out.reshape(B, L, c_s)
    aux = aux.reshape(B, L, 8)
    return s_out, aux[..., :3], aux[..., 3]


def forward_heads(pp, cfg, pair_fea):
    nd = cfg['dist_bins']
    out = fused_ln_linear_packed(pair_fea, pp['seg_z'], pp['heads_g'], pp['heads_b'],
                                 pp['heads_w'], pp['heads_wb'], pp['heads_npad'],
                                 jnp.float32)
    out = 0.5 * (out + jnp.swapaxes(out, 1, 2))          # symmetrize once
    return {'ss': out[..., 0:1],
            'p': out[..., 1:1 + nd],
            'c4_': out[..., 1 + nd:1 + 2 * nd],
            'n': out[..., 1 + 2 * nd:1 + 3 * nd]}


# ----------------------------- RhoFold forward ------------------------------ #

def forward_one_cycle(pp, cfg, tokens, rna_fm_tokens, recycling_inputs, seq):
    msa_tokens = tokens[:, :cfg['msa_depth']]
    msa_fea, pair_fea = msa_embedder(pp, cfg, msa_tokens, rna_fm_tokens)
    if recycling_inputs is not None:
        m_up, pair_fea = recycling_embedder(pp, cfg, pair_fea,
                                            recycling_inputs['single_fea'],
                                            recycling_inputs['pair_fea'],
                                            recycling_inputs["cords_c1'"])
        msa_fea = msa_fea.at[:, 0].add(m_up)          # msa_fea[..., 0, :, :] += msa_fea_up
    msa_fea, pair_fea, single_fea = e2eformer(pp, cfg, msa_fea, pair_fea)
    s_out, coords, plddt = structure_and_plddt(pp, cfg, single_fea)
    output = {'single': [s_out], "cords_c1'": [coords], 'cord_tns_pred': [coords],
              'plddt': plddt}
    output.update(forward_heads(pp, cfg, pair_fea))
    recycling_outputs = {
        'single_fea': msa_fea[:, 0],
        'pair_fea': pair_fea,
        "cords_c1'": coords,
    }
    return output, recycling_outputs


def rhofold_forward(pp, cfg, tokens, rna_fm_tokens, seq):
    recycling_inputs = None
    outputs = []
    for _r in range(cfg['recycles']):
        output, recycling_inputs = forward_one_cycle(
            pp, cfg, tokens, rna_fm_tokens, recycling_inputs, seq)
        outputs.append(output)
    return outputs


# ----------------------------------- main ------------------------------------ #

if __name__ == "__main__":
    cfg = dict(vocab=16, c_m=32, c_z=32, c_s=32, c_hidden_opm=8, n_blocks=2,
               msa_depth=4, rec_bins=16, plddt_bins=50, dist_bins=40, recycles=2)

    key = jax.random.PRNGKey(0)
    pkey, tkey, fkey = jax.random.split(key, 3)
    params = make_params(cfg, pkey)
    pp = prepare_params(params, cfg)          # one-time Wo fold + block-diag packing

    B, L, msa_total = 1, 8, 6
    tokens = jax.random.randint(tkey, (B, msa_total, L), 0, cfg['vocab'], dtype=jnp.int32)
    rna_fm_tokens = jax.random.randint(fkey, (B, L), 0, cfg['vocab'], dtype=jnp.int32)
    seq = "AUGCAUGC"  # carried through like the PyTorch module; not used numerically

    fwd = jax.jit(lambda t, r: rhofold_forward(pp, cfg, t, r, seq))
    outputs = fwd(tokens, rna_fm_tokens)

    final = outputs[-1]
    jax.block_until_ready(final['plddt'])
    jax.block_until_ready(final['p'])
    jax.block_until_ready(final['ss'])
    jax.block_until_ready(final["cords_c1'"][-1])

    assert final['plddt'].shape == (B, L)
    assert final['p'].shape == (B, L, L, cfg['dist_bins'])
    assert final['ss'].shape == (B, L, L, 1)
    assert final["cords_c1'"][-1].shape == (B, L, 3)
    print("KERNEL_OK")
</pallas_src>

<mosaic_0001>
module attributes {stable_mosaic.version = 11 : i64} {
  func.func @_packed_msa_opm_kernel(%arg0: i32, %arg1: memref<8x128xbf16, #tpu.memory_space<vmem>>, %arg2: memref<128x128xf32, #tpu.memory_space<vmem>>, %arg3: memref<1x128xf32, #tpu.memory_space<vmem>>, %arg4: memref<1x128xf32, #tpu.memory_space<vmem>>, %arg5: memref<128x512xbf16, #tpu.memory_space<vmem>>, %arg6: memref<1x512xf32, #tpu.memory_space<vmem>>, %arg7: memref<512x128xbf16, #tpu.memory_space<vmem>>, %arg8: memref<1x128xf32, #tpu.memory_space<vmem>>, %arg9: memref<1x128xf32, #tpu.memory_space<vmem>>, %arg10: memref<1x128xf32, #tpu.memory_space<vmem>>, %arg11: memref<128x1056xbf16, #tpu.memory_space<vmem>>, %arg12: memref<1x1056xf32, #tpu.memory_space<vmem>>, %arg13: memref<8x128xbf16, #tpu.memory_space<vmem>>, %arg14: memref<8x1056xbf16, #tpu.memory_space<vmem>>) attributes {dimension_semantics = [#tpu.dimension_semantics<parallel>], iteration_bounds = array<i64: 1>, scalar_prefetch = 0 : i64, scratch_operands = 0 : i64, tpu.core_type = #tpu.core_type<tc>, window_params = [{transform_indices = @transform_0, window_bounds = array<i64: 8, 128>}, {pipeline_mode = #tpu.pipeline_mode<synchronous>, transform_indices = @transform_1, window_bounds = array<i64: 128, 128>}, {pipeline_mode = #tpu.pipeline_mode<synchronous>, transform_indices = @transform_2, window_bounds = array<i64: 1, 128>}, {pipeline_mode = #tpu.pipeline_mode<synchronous>, transform_indices = @transform_3, window_bounds = array<i64: 1, 128>}, {pipeline_mode = #tpu.pipeline_mode<synchronous>, transform_indices = @transform_4, window_bounds = array<i64: 128, 512>}, {pipeline_mode = #tpu.pipeline_mode<synchronous>, transform_indices = @transform_5, window_bounds = array<i64: 1, 512>}, {pipeline_mode = #tpu.pipeline_mode<synchronous>, transform_indices = @transform_6, window_bounds = array<i64: 512, 128>}, {pipeline_mode = #tpu.pipeline_mode<synchronous>, transform_indices = @transform_7, window_bounds = array<i64: 1, 128>}, {pipeline_mode = #tpu.pipeline_mode<synchronous>, transform_indices = @transform_8, window_bounds = array<i64: 1, 128>}, {pipeline_mode = #tpu.pipeline_mode<synchronous>, transform_indices = @transform_9, window_bounds = array<i64: 1, 128>}, {pipeline_mode = #tpu.pipeline_mode<synchronous>, transform_indices = @transform_10, window_bounds = array<i64: 128, 1056>}, {pipeline_mode = #tpu.pipeline_mode<synchronous>, transform_indices = @transform_11, window_bounds = array<i64: 1, 1056>}, {transform_indices = @transform_12, window_bounds = array<i64: 8, 128>}, {transform_indices = @transform_13, window_bounds = array<i64: 8, 1056>}]} {
    %c0 = arith.constant 0 : index
    %c0_0 = arith.constant 0 : index
    %0 = vector.load %arg1[%c0, %c0_0] : memref<8x128xbf16, #tpu.memory_space<vmem>>, vector<8x128xbf16>
    %1 = arith.extf %0 : vector<8x128xbf16> to vector<8x128xf32>
    %c0_1 = arith.constant 0 : index
    %c0_2 = arith.constant 0 : index
    %2 = vector.load %arg2[%c0_1, %c0_2] : memref<128x128xf32, #tpu.memory_space<vmem>>, vector<128x128xf32>
    %c0_3 = arith.constant 0 : index
    %c0_4 = arith.constant 0 : index
    %3 = vector.load %arg3[%c0_3, %c0_4] : memref<1x128xf32, #tpu.memory_space<vmem>>, vector<1x128xf32>
    %c0_5 = arith.constant 0 : index
    %c0_6 = arith.constant 0 : index
    %4 = vector.load %arg4[%c0_5, %c0_6] : memref<1x128xf32, #tpu.memory_space<vmem>>, vector<1x128xf32>
    %cst = arith.constant dense<0.000000e+00> : vector<8x128xf32>
    %5 = tpu.matmul %1, %2, %cst {dimension_numbers = #tpu.dot_dimension_numbers<[1], [0], [0], [1], [0, 0, 1, 1], [], []>} : vector<8x128xf32>, vector<128x128xf32>, vector<8x128xf32> -> vector<8x128xf32>
    %6 = arith.subf %1, %5 : vector<8x128xf32>
    %7 = arith.mulf %6, %6 : vector<8x128xf32>
    %cst_7 = arith.constant dense<0.000000e+00> : vector<8x128xf32>
    %8 = tpu.matmul %7, %2, %cst_7 {dimension_numbers = #tpu.dot_dimension_numbers<[1], [0], [0], [1], [0, 0, 1, 1], [], []>} : vector<8x128xf32>, vector<128x128xf32>, vector<8x128xf32> -> vector<8x128xf32>
    %cst_8 = arith.constant 9.99999974E-6 : f32
    %9 = vector.broadcast %cst_8 : f32 to vector<8x128xf32>
    %10 = arith.addf %8, %9 : vector<8x128xf32>
    %11 = math.rsqrt %10 : vector<8x128xf32>
    %12 = arith.mulf %6, %11 : vector<8x128xf32>
    %13 = vector.broadcast %3 : vector<1x128xf32> to vector<8x128xf32>
    %14 = arith.mulf %12, %13 : vector<8x128xf32>
    %15 = vector.broadcast %4 : vector<1x128xf32> to vector<8x128xf32>
    %16 = arith.addf %14, %15 : vector<8x128xf32>
    %17 = arith.truncf %16 : vector<8x128xf32> to vector<8x128xbf16>
    %c0_9 = arith.constant 0 : index
    %c0_10 = arith.constant 0 : index
    %18 = vector.load %arg5[%c0_9, %c0_10] : memref<128x512xbf16, #tpu.memory_space<vmem>>, vector<128x512xbf16>
    %cst_11 = arith.constant dense<0.000000e+00> : vector<8x512xf32>
    %19 = tpu.matmul %17, %18, %cst_11 {dimension_numbers = #tpu.dot_dimension_numbers<[1], [0], [0], [1], [0, 0, 1, 1], [], []>} : vector<8x128xbf16>, vector<128x512xbf16>, vector<8x512xf32> -> vector<8x512xf32>
    %c0_12 = arith.constant 0 : index
    %c0_13 = arith.constant 0 : index
    %20 = vector.load %arg6[%c0_12, %c0_13] : memref<1x512xf32, #tpu.memory_space<vmem>>, vector<1x512xf32>
    %21 = vector.broadcast %20 : vector<1x512xf32> to vector<8x512xf32>
    %22 = arith.addf %19, %21 : vector<8x512xf32>
    %cst_14 = arith.constant 0.000000e+00 : f32
    %23 = vector.broadcast %cst_14 : f32 to vector<8x512xf32>
    %24 = arith.maximumf %22, %23 : vector<8x512xf32>
    %25 = arith.truncf %24 : vector<8x512xf32> to vector<8x512xbf16>
    %c0_15 = arith.constant 0 : index
    %c0_16 = arith.constant 0 : index
    %26 = vector.load %arg7[%c0_15, %c0_16] : memref<512x128xbf16, #tpu.memory_space<vmem>>, vector<512x128xbf16>
    %cst_17 = arith.constant dense<0.000000e+00> : vector<8x128xf32>
    %27 = tpu.matmul %25, %26, %cst_17 {dimension_numbers = #tpu.dot_dimension_numbers<[1], [0], [0], [1], [0, 0, 1, 1], [], []>} : vector<8x512xbf16>, vector<512x128xbf16>, vector<8x128xf32> -> vector<8x128xf32>
    %28 = arith.addf %1, %27 : vector<8x128xf32>
    %c0_18 = arith.constant 0 : index
    %c0_19 = arith.constant 0 : index
    %29 = vector.load %arg8[%c0_18, %c0_19] : memref<1x128xf32, #tpu.memory_space<vmem>>, vector<1x128xf32>
    %30 = vector.broadcast %29 : vector<1x128xf32> to vector<8x128xf32>
    %31 = arith.addf %28, %30 : vector<8x128xf32>
    %32 = arith.truncf %31 : vector<8x128xf32> to vector<8x128xbf16>
    %c0_20 = arith.constant 0 : index
    %c0_21 = arith.constant 0 : index
    %33 = vector.load %arg13[%c0_20, %c0_21] : memref<8x128xbf16, #tpu.memory_space<vmem>>, vector<8x128xbf16>
    tpu.vector_store %arg13[%c0_20, %c0_21], %32 {strides = array<i32>} : memref<8x128xbf16, #tpu.memory_space<vmem>>, vector<8x128xbf16>,
    %c0_22 = arith.constant 0 : index
    %c0_23 = arith.constant 0 : index
    %34 = vector.load %arg9[%c0_22, %c0_23] : memref<1x128xf32, #tpu.memory_space<vmem>>, vector<1x128xf32>
    %c0_24 = arith.constant 0 : index
    %c0_25 = arith.constant 0 : index
    %35 = vector.load %arg10[%c0_24, %c0_25] : memref<1x128xf32, #tpu.memory_space<vmem>>, vector<1x128xf32>
    %cst_26 = arith.constant dense<0.000000e+00> : vector<8x128xf32>
    %36 = tpu.matmul %31, %2, %cst_26 {dimension_numbers = #tpu.dot_dimension_numbers<[1], [0], [0], [1], [0, 0, 1, 1], [], []>} : vector<8x128xf32>, vector<128x128xf32>, vector<8x128xf32> -> vector<8x128xf32>
    %37 = arith.subf %31, %36 : vector<8x128xf32>
    %38 = arith.mulf %37, %37 : vector<8x128xf32>
    %cst_27 = arith.constant dense<0.000000e+00> : vector<8x128xf32>
    %39 = tpu.matmul %38, %2, %cst_27 {dimension_numbers = #tpu.dot_dimension_numbers<[1], [0], [0], [1], [0, 0, 1, 1], [], []>} : vector<8x128xf32>, vector<128x128xf32>, vector<8x128xf32> -> vector<8x128xf32>
    %cst_28 = arith.constant 9.99999974E-6 : f32
    %40 = vector.broadcast %cst_28 : f32 to vector<8x128xf32>
    %41 = arith.addf %39, %40 : vector<8x128xf32>
    %42 = math.rsqrt %41 : vector<8x128xf32>
    %43 = arith.mulf %37, %42 : vector<8x128xf32>
    %44 = vector.broadcast %34 : vector<1x128xf32> to vector<8x128xf32>
    %45 = arith.mulf %43, %44 : vector<8x128xf32>
    %46 = vector.broadcast %35 : vector<1x128xf32> to vector<8x128xf32>
    %47 = arith.addf %45, %46 : vector<8x128xf32>
    %48 = arith.truncf %47 : vector<8x128xf32> to vector<8x128xbf16>
    %c0_29 = arith.constant 0 : index
    %c0_30 = arith.constant 0 : index
    %49 = vector.load %arg11[%c0_29, %c0_30] : memref<128x1056xbf16, #tpu.memory_space<vmem>>, vector<128x1056xbf16>
    %cst_31 = arith.constant dense<0.000000e+00> : vector<8x1056xf32>
    %50 = tpu.matmul %48, %49, %cst_31 {dimension_numbers = #tpu.dot_dimension_numbers<[1], [0], [0], [1], [0, 0, 1, 1], [], []>} : vector<8x128xbf16>, vector<128x1056xbf16>, vector<8x1056xf32> -> vector<8x1056xf32>
    %c0_32 = arith.constant 0 : index
    %c0_33 = arith.constant 0 : index
    %51 = vector.load %arg12[%c0_32, %c0_33] : memref<1x1056xf32, #tpu.memory_space<vmem>>, vector<1x1056xf32>
    %52 = vector.broadcast %51 : vector<1x1056xf32> to vector<8x1056xf32>
    %53 = arith.addf %50, %52 : vector<8x1056xf32>
    %54 = arith.truncf %53 : vector<8x1056xf32> to vector<8x1056xbf16>
    %c0_34 = arith.constant 0 : index
    %c0_35 = arith.constant 0 : index
    %55 = vector.load %arg14[%c0_34, %c0_35] : memref<8x1056xbf16, #tpu.memory_space<vmem>>, vector<8x1056xbf16>
    tpu.vector_store %arg14[%c0_34, %c0_35], %54 {strides = array<i32>} : memref<8x1056xbf16, #tpu.memory_space<vmem>>, vector<8x1056xbf16>,
    return
  }
  func.func @transform_0(%arg0: i32) -> (i32, i32) {
    %c0_i32 = arith.constant 0 : i32
    %c0_i32_0 = arith.constant 0 : i32
    return %arg0, %c0_i32 : i32, i32
  }
  func.func @transform_1(%arg0: i32) -> (i32, i32) {
    %c0_i32 = arith.constant 0 : i32
    %c0_i32_0 = arith.constant 0 : i32
    %c0_i32_1 = arith.constant 0 : i32
    return %c0_i32, %c0_i32_0 : i32, i32
  }
  func.func @transform_2(%arg0: i32) -> (i32, i32) {
    %c0_i32 = arith.constant 0 : i32
    %c0_i32_0 = arith.constant 0 : i32
    %c0_i32_1 = arith.constant 0 : i32
    return %c0_i32, %c0_i32_0 : i32, i32
  }
  func.func @transform_3(%arg0: i32) -> (i32, i32) {
    %c0_i32 = arith.constant 0 : i32
    %c0_i32_0 = arith.constant 0 : i32
    %c0_i32_1 = arith.constant 0 : i32
    return %c0_i32, %c0_i32_0 : i32, i32
  }
  func.func @transform_4(%arg0: i32) -> (i32, i32) {
    %c0_i32 = arith.constant 0 : i32
    %c0_i32_0 = arith.constant 0 : i32
    %c0_i32_1 = arith.constant 0 : i32
    return %c0_i32, %c0_i32_0 : i32, i32
  }
  func.func @transform_5(%arg0: i32) -> (i32, i32) {
    %c0_i32 = arith.constant 0 : i32
    %c0_i32_0 = arith.constant 0 : i32
    %c0_i32_1 = arith.constant 0 : i32
    return %c0_i32, %c0_i32_0 : i32, i32
  }
  func.func @transform_6(%arg0: i32) -> (i32, i32) {
    %c0_i32 = arith.constant 0 : i32
    %c0_i32_0 = arith.constant 0 : i32
    %c0_i32_1 = arith.constant 0 : i32
    return %c0_i32, %c0_i32_0 : i32, i32
  }
  func.func @transform_7(%arg0: i32) -> (i32, i32) {
    %c0_i32 = arith.constant 0 : i32
    %c0_i32_0 = arith.constant 0 : i32
    %c0_i32_1 = arith.constant 0 : i32
    return %c0_i32, %c0_i32_0 : i32, i32
  }
  func.func @transform_8(%arg0: i32) -> (i32, i32) {
    %c0_i32 = arith.constant 0 : i32
    %c0_i32_0 = arith.constant 0 : i32
    %c0_i32_1 = arith.constant 0 : i32
    return %c0_i32, %c0_i32_0 : i32, i32
  }
  func.func @transform_9(%arg0: i32) -> (i32, i32) {
    %c0_i32 = arith.constant 0 : i32
    %c0_i32_0 = arith.constant 0 : i32
    %c0_i32_1 = arith.constant 0 : i32
    return %c0_i32, %c0_i32_0 : i32, i32
  }
  func.func @transform_10(%arg0: i32) -> (i32, i32) {
    %c0_i32 = arith.constant 0 : i32
    %c0_i32_0 = arith.constant 0 : i32
    %c0_i32_1 = arith.constant 0 : i32
    return %c0_i32, %c0_i32_0 : i32, i32
  }
  func.func @transform_11(%arg0: i32) -> (i32, i32) {
    %c0_i32 = arith.constant 0 : i32
    %c0_i32_0 = arith.constant 0 : i32
    %c0_i32_1 = arith.constant 0 : i32
    return %c0_i32, %c0_i32_0 : i32, i32
  }
  func.func @transform_12(%arg0: i32) -> (i32, i32) {
    %c0_i32 = arith.constant 0 : i32
    %c0_i32_0 = arith.constant 0 : i32
    return %arg0, %c0_i32 : i32, i32
  }
  func.func @transform_13(%arg0: i32) -> (i32, i32) {
    %c0_i32 = arith.constant 0 : i32
    %c0_i32_0 = arith.constant 0 : i32
    return %arg0, %c0_i32 : i32, i32
  }
}

module attributes {stable_mosaic.version = 11 : i64} {
  func.func @_packed_msa_opm_kernel(%arg0: i32, %arg1: memref<8x128xbf16, #tpu.memory_space<vmem>>, %arg2: memref<128x128xf32, #tpu.memory_space<vmem>>, %arg3: memref<1x128xf32, #tpu.memory_space<vmem>>, %arg4: memref<1x128xf32, #tpu.memory_space<vmem>>, %arg5: memref<128x512xbf16, #tpu.memory_space<vmem>>, %arg6: memref<1x512xf32, #tpu.memory_space<vmem>>, %arg7: memref<512x128xbf16, #tpu.memory_space<vmem>>, %arg8: memref<1x128xf32, #tpu.memory_space<vmem>>, %arg9: memref<1x128xf32, #tpu.memory_space<vmem>>, %arg10: memref<1x128xf32, #tpu.memory_space<vmem>>, %arg11: memref<128x1056xbf16, #tpu.memory_space<vmem>>, %arg12: memref<1x1056xf32, #tpu.memory_space<vmem>>, %arg13: memref<8x128xbf16, #tpu.memory_space<vmem>>, %arg14: memref<8x1056xbf16, #tpu.memory_space<vmem>>) attributes {dimension_semantics = [#tpu.dimension_semantics<parallel>], iteration_bounds = array<i64: 1>, scalar_prefetch = 0 : i64, scratch_operands = 0 : i64, tpu.core_type = #tpu.core_type<tc>, window_params = [{transform_indices = @transform_0, window_bounds = array<i64: 8, 128>}, {pipeline_mode = #tpu.pipeline_mode<synchronous>, transform_indices = @transform_1, window_bounds = array<i64: 128, 128>}, {pipeline_mode = #tpu.pipeline_mode<synchronous>, transform_indices = @transform_2, window_bounds = array<i64: 1, 128>}, {pipeline_mode = #tpu.pipeline_mode<synchronous>, transform_indices = @transform_3, window_bounds = array<i64: 1, 128>}, {pipeline_mode = #tpu.pipeline_mode<synchronous>, transform_indices = @transform_4, window_bounds = array<i64: 128, 512>}, {pipeline_mode = #tpu.pipeline_mode<synchronous>, transform_indices = @transform_5, window_bounds = array<i64: 1, 512>}, {pipeline_mode = #tpu.pipeline_mode<synchronous>, transform_indices = @transform_6, window_bounds = array<i64: 512, 128>}, {pipeline_mode = #tpu.pipeline_mode<synchronous>, transform_indices = @transform_7, window_bounds = array<i64: 1, 128>}, {pipeline_mode = #tpu.pipeline_mode<synchronous>, transform_indices = @transform_8, window_bounds = array<i64: 1, 128>}, {pipeline_mode = #tpu.pipeline_mode<synchronous>, transform_indices = @transform_9, window_bounds = array<i64: 1, 128>}, {pipeline_mode = #tpu.pipeline_mode<synchronous>, transform_indices = @transform_10, window_bounds = array<i64: 128, 1056>}, {pipeline_mode = #tpu.pipeline_mode<synchronous>, transform_indices = @transform_11, window_bounds = array<i64: 1, 1056>}, {transform_indices = @transform_12, window_bounds = array<i64: 8, 128>}, {transform_indices = @transform_13, window_bounds = array<i64: 8, 1056>}]} {
    %c0 = arith.constant 0 : index
    %c0_0 = arith.constant 0 : index
    %0 = vector.load %arg1[%c0, %c0_0] : memref<8x128xbf16, #tpu.memory_space<vmem>>, vector<8x128xbf16>
    %1 = arith.extf %0 : vector<8x128xbf16> to vector<8x128xf32>
    %c0_1 = arith.constant 0 : index
    %c0_2 = arith.constant 0 : index
    %2 = vector.load %arg2[%c0_1, %c0_2] : memref<128x128xf32, #tpu.memory_space<vmem>>, vector<128x128xf32>
    %c0_3 = arith.constant 0 : index
    %c0_4 = arith.constant 0 : index
    %3 = vector.load %arg3[%c0_3, %c0_4] : memref<1x128xf32, #tpu.memory_space<vmem>>, vector<1x128xf32>
    %c0_5 = arith.constant 0 : index
    %c0_6 = arith.constant 0 : index
    %4 = vector.load %arg4[%c0_5, %c0_6] : memref<1x128xf32, #tpu.memory_space<vmem>>, vector<1x128xf32>
    %cst = arith.constant dense<0.000000e+00> : vector<8x128xf32>
    %5 = tpu.matmul %1, %2, %cst {dimension_numbers = #tpu.dot_dimension_numbers<[1], [0], [0], [1], [0, 0, 1, 1], [], []>} : vector<8x128xf32>, vector<128x128xf32>, vector<8x128xf32> -> vector<8x128xf32>
    %6 = arith.subf %1, %5 : vector<8x128xf32>
    %7 = arith.mulf %6, %6 : vector<8x128xf32>
    %cst_7 = arith.constant dense<0.000000e+00> : vector<8x128xf32>
    %8 = tpu.matmul %7, %2, %cst_7 {dimension_numbers = #tpu.dot_dimension_numbers<[1], [0], [0], [1], [0, 0, 1, 1], [], []>} : vector<8x128xf32>, vector<128x128xf32>, vector<8x128xf32> -> vector<8x128xf32>
    %cst_8 = arith.constant 9.99999974E-6 : f32
    %9 = vector.broadcast %cst_8 : f32 to vector<8x128xf32>
    %10 = arith.addf %8, %9 : vector<8x128xf32>
    %11 = math.rsqrt %10 : vector<8x128xf32>
    %12 = arith.mulf %6, %11 : vector<8x128xf32>
    %13 = vector.broadcast %3 : vector<1x128xf32> to vector<8x128xf32>
    %14 = arith.mulf %12, %13 : vector<8x128xf32>
    %15 = vector.broadcast %4 : vector<1x128xf32> to vector<8x128xf32>
    %16 = arith.addf %14, %15 : vector<8x128xf32>
    %17 = arith.truncf %16 : vector<8x128xf32> to vector<8x128xbf16>
    %c0_9 = arith.constant 0 : index
    %c0_10 = arith.constant 0 : index
    %18 = vector.load %arg5[%c0_9, %c0_10] : memref<128x512xbf16, #tpu.memory_space<vmem>>, vector<128x512xbf16>
    %cst_11 = arith.constant dense<0.000000e+00> : vector<8x512xf32>
    %19 = tpu.matmul %17, %18, %cst_11 {dimension_numbers = #tpu.dot_dimension_numbers<[1], [0], [0], [1], [0, 0, 1, 1], [], []>} : vector<8x128xbf16>, vector<128x512xbf16>, vector<8x512xf32> -> vector<8x512xf32>
    %c0_12 = arith.constant 0 : index
    %c0_13 = arith.constant 0 : index
    %20 = vector.load %arg6[%c0_12, %c0_13] : memref<1x512xf32, #tpu.memory_space<vmem>>, vector<1x512xf32>
    %21 = vector.broadcast %20 : vector<1x512xf32> to vector<8x512xf32>
    %22 = arith.addf %19, %21 : vector<8x512xf32>
    %cst_14 = arith.constant 0.000000e+00 : f32
    %23 = vector.broadcast %cst_14 : f32 to vector<8x512xf32>
    %24 = arith.maximumf %22, %23 : vector<8x512xf32>
    %25 = arith.truncf %24 : vector<8x512xf32> to vector<8x512xbf16>
    %c0_15 = arith.constant 0 : index
    %c0_16 = arith.constant 0 : index
    %26 = vector.load %arg7[%c0_15, %c0_16] : memref<512x128xbf16, #tpu.memory_space<vmem>>, vector<512x128xbf16>
    %cst_17 = arith.constant dense<0.000000e+00> : vector<8x128xf32>
    %27 = tpu.matmul %25, %26, %cst_17 {dimension_numbers = #tpu.dot_dimension_numbers<[1], [0], [0], [1], [0, 0, 1, 1], [], []>} : vector<8x512xbf16>, vector<512x128xbf16>, vector<8x128xf32> -> vector<8x128xf32>
    %28 = arith.addf %1, %27 : vector<8x128xf32>
    %c0_18 = arith.constant 0 : index
    %c0_19 = arith.constant 0 : index
    %29 = vector.load %arg8[%c0_18, %c0_19] : memref<1x128xf32, #tpu.memory_space<vmem>>, vector<1x128xf32>
    %30 = vector.broadcast %29 : vector<1x128xf32> to vector<8x128xf32>
    %31 = arith.addf %28, %30 : vector<8x128xf32>
    %32 = arith.truncf %31 : vector<8x128xf32> to vector<8x128xbf16>
    %c0_20 = arith.constant 0 : index
    %c0_21 = arith.constant 0 : index
    %33 = vector.load %arg13[%c0_20, %c0_21] : memref<8x128xbf16, #tpu.memory_space<vmem>>, vector<8x128xbf16>
    tpu.vector_store %arg13[%c0_20, %c0_21], %32 {strides = array<i32>} : memref<8x128xbf16, #tpu.memory_space<vmem>>, vector<8x128xbf16>,
    %c0_22 = arith.constant 0 : index
    %c0_23 = arith.constant 0 : index
    %34 = vector.load %arg9[%c0_22, %c0_23] : memref<1x128xf32, #tpu.memory_space<vmem>>, vector<1x128xf32>
    %c0_24 = arith.constant 0 : index
    %c0_25 = arith.constant 0 : index
    %35 = vector.load %arg10[%c0_24, %c0_25] : memref<1x128xf32, #tpu.memory_space<vmem>>, vector<1x128xf32>
    %cst_26 = arith.constant dense<0.000000e+00> : vector<8x128xf32>
    %36 = tpu.matmul %31, %2, %cst_26 {dimension_numbers = #tpu.dot_dimension_numbers<[1], [0], [0], [1], [0, 0, 1, 1], [], []>} : vector<8x128xf32>, vector<128x128xf32>, vector<8x128xf32> -> vector<8x128xf32>
    %37 = arith.subf %31, %36 : vector<8x128xf32>
    %38 = arith.mulf %37, %37 : vector<8x128xf32>
    %cst_27 = arith.constant dense<0.000000e+00> : vector<8x128xf32>
    %39 = tpu.matmul %38, %2, %cst_27 {dimension_numbers = #tpu.dot_dimension_numbers<[1], [0], [0], [1], [0, 0, 1, 1], [], []>} : vector<8x128xf32>, vector<128x128xf32>, vector<8x128xf32> -> vector<8x128xf32>
    %cst_28 = arith.constant 9.99999974E-6 : f32
    %40 = vector.broadcast %cst_28 : f32 to vector<8x128xf32>
    %41 = arith.addf %39, %40 : vector<8x128xf32>
    %42 = math.rsqrt %41 : vector<8x128xf32>
    %43 = arith.mulf %37, %42 : vector<8x128xf32>
    %44 = vector.broadcast %34 : vector<1x128xf32> to vector<8x128xf32>
    %45 = arith.mulf %43, %44 : vector<8x128xf32>
    %46 = vector.broadcast %35 : vector<1x128xf32> to vector<8x128xf32>
    %47 = arith.addf %45, %46 : vector<8x128xf32>
    %48 = arith.truncf %47 : vector<8x128xf32> to vector<8x128xbf16>
    %c0_29 = arith.constant 0 : index
    %c0_30 = arith.constant 0 : index
    %49 = vector.load %arg11[%c0_29, %c0_30] : memref<128x1056xbf16, #tpu.memory_space<vmem>>, vector<128x1056xbf16>
    %cst_31 = arith.constant dense<0.000000e+00> : vector<8x1056xf32>
    %50 = tpu.matmul %48, %49, %cst_31 {dimension_numbers = #tpu.dot_dimension_numbers<[1], [0], [0], [1], [0, 0, 1, 1], [], []>} : vector<8x128xbf16>, vector<128x1056xbf16>, vector<8x1056xf32> -> vector<8x1056xf32>
    %c0_32 = arith.constant 0 : index
    %c0_33 = arith.constant 0 : index
    %51 = vector.load %arg12[%c0_32, %c0_33] : memref<1x1056xf32, #tpu.memory_space<vmem>>, vector<1x1056xf32>
    %52 = vector.broadcast %51 : vector<1x1056xf32> to vector<8x1056xf32>
    %53 = arith.addf %50, %52 : vector<8x1056xf32>
    %54 = arith.truncf %53 : vector<8x1056xf32> to vector<8x1056xbf16>
    %c0_34 = arith.constant 0 : index
    %c0_35 = arith.constant 0 : index
    %55 = vector.load %arg14[%c0_34, %c0_35] : memref<8x1056xbf16, #tpu.memory_space<vmem>>, vector<8x1056xbf16>
    tpu.vector_store %arg14[%c0_34, %c0_35], %54 {strides = array<i32>} : memref<8x1056xbf16, #tpu.memory_space<vmem>>, vector<8x1056xbf16>,
    return
  }
  func.func @transform_0(%arg0: i32) -> (i32, i32) {
    %c0_i32 = arith.constant 0 : i32
    %c0_i32_0 = arith.constant 0 : i32
    return %arg0, %c0_i32 : i32, i32
  }
  func.func @transform_1(%arg0: i32) -> (i32, i32) {
    %c0_i32 = arith.constant 0 : i32
    %c0_i32_0 = arith.constant 0 : i32
    %c0_i32_1 = arith.constant 0 : i32
    return %c0_i32, %c0_i32_0 : i32, i32
  }
  func.func @transform_2(%arg0: i32) -> (i32, i32) {
    %c0_i32 = arith.constant 0 : i32
    %c0_i32_0 = arith.constant 0 : i32
    %c0_i32_1 = arith.constant 0 : i32
    return %c0_i32, %c0_i32_0 : i32, i32
  }
  func.func @transform_3(%arg0: i32) -> (i32, i32) {
    %c0_i32 = arith.constant 0 : i32
    %c0_i32_0 = arith.constant 0 : i32
    %c0_i32_1 = arith.constant 0 : i32
    return %c0_i32, %c0_i32_0 : i32, i32
  }
  func.func @transform_4(%arg0: i32) -> (i32, i32) {
    %c0_i32 = arith.constant 0 : i32
    %c0_i32_0 = arith.constant 0 : i32
    %c0_i32_1 = arith.constant 0 : i32
    return %c0_i32, %c0_i32_0 : i32, i32
  }
  func.func @transform_5(%arg0: i32) -> (i32, i32) {
    %c0_i32 = arith.constant 0 : i32
    %c0_i32_0 = arith.constant 0 : i32
    %c0_i32_1 = arith.constant 0 : i32
    return %c0_i32, %c0_i32_0 : i32, i32
  }
  func.func @transform_6(%arg0: i32) -> (i32, i32) {
    %c0_i32 = arith.constant 0 : i32
    %c0_i32_0 = arith.constant 0 : i32
    %c0_i32_1 = arith.constant 0 : i32
    return %c0_i32, %c0_i32_0 : i32, i32
  }
  func.func @transform_7(%arg0: i32) -> (i32, i32) {
    %c0_i32 = arith.constant 0 : i32
    %c0_i32_0 = arith.constant 0 : i32
    %c0_i32_1 = arith.constant 0 : i32
    return %c0_i32, %c0_i32_0 : i32, i32
  }
  func.func @transform_8(%arg0: i32) -> (i32, i32) {
    %c0_i32 = arith.constant 0 : i32
    %c0_i32_0 = arith.constant 0 : i32
    %c0_i32_1 = arith.constant 0 : i32
    return %c0_i32, %c0_i32_0 : i32, i32
  }
  func.func @transform_9(%arg0: i32) -> (i32, i32) {
    %c0_i32 = arith.constant 0 : i32
    %c0_i32_0 = arith.constant 0 : i32
    %c0_i32_1 = arith.constant 0 : i32
    return %c0_i32, %c0_i32_0 : i32, i32
  }
  func.func @transform_10(%arg0: i32) -> (i32, i32) {
    %c0_i32 = arith.constant 0 : i32
    %c0_i32_0 = arith.constant 0 : i32
    %c0_i32_1 = arith.constant 0 : i32
    return %c0_i32, %c0_i32_0 : i32, i32
  }
  func.func @transform_11(%arg0: i32) -> (i32, i32) {
    %c0_i32 = arith.constant 0 : i32
    %c0_i32_0 = arith.constant 0 : i32
    %c0_i32_1 = arith.constant 0 : i32
    return %c0_i32, %c0_i32_0 : i32, i32
  }
  func.func @transform_12(%arg0: i32) -> (i32, i32) {
    %c0_i32 = arith.constant 0 : i32
    %c0_i32_0 = arith.constant 0 : i32
    return %arg0, %c0_i32 : i32, i32
  }
  func.func @transform_13(%arg0: i32) -> (i32, i32) {
    %c0_i32 = arith.constant 0 : i32
    %c0_i32_0 = arith.constant 0 : i32
    return %arg0, %c0_i32 : i32, i32
  }
}

module attributes {stable_mosaic.version = 11 : i64} {
  func.func @_packed_ln_linear_kernel(%arg0: i32, %arg1: memref<8x128xbf16, #tpu.memory_space<vmem>>, %arg2: memref<128x128xf32, #tpu.memory_space<vmem>>, %arg3: memref<1x128xf32, #tpu.memory_space<vmem>>, %arg4: memref<1x128xf32, #tpu.memory_space<vmem>>, %arg5: memref<128x128xbf16, #tpu.memory_space<vmem>>, %arg6: memref<1x128xf32, #tpu.memory_space<vmem>>, %arg7: memref<8x128xbf16, #tpu.memory_space<vmem>>) attributes {dimension_semantics = [#tpu.dimension_semantics<parallel>], iteration_bounds = array<i64: 1>, scalar_prefetch = 0 : i64, scratch_operands = 0 : i64, tpu.core_type = #tpu.core_type<tc>, window_params = [{transform_indices = @transform_0, window_bounds = array<i64: 8, 128>}, {pipeline_mode = #tpu.pipeline_mode<synchronous>, transform_indices = @transform_1, window_bounds = array<i64: 128, 128>}, {pipeline_mode = #tpu.pipeline_mode<synchronous>, transform_indices = @transform_2, window_bounds = array<i64: 1, 128>}, {pipeline_mode = #tpu.pipeline_mode<synchronous>, transform_indices = @transform_3, window_bounds = array<i64: 1, 128>}, {pipeline_mode = #tpu.pipeline_mode<synchronous>, transform_indices = @transform_4, window_bounds = array<i64: 128, 128>}, {pipeline_mode = #tpu.pipeline_mode<synchronous>, transform_indices = @transform_5, window_bounds = array<i64: 1, 128>}, {transform_indices = @transform_6, window_bounds = array<i64: 8, 128>}]} {
    %c0 = arith.constant 0 : index
    %c0_0 = arith.constant 0 : index
    %0 = vector.load %arg1[%c0, %c0_0] : memref<8x128xbf16, #tpu.memory_space<vmem>>, vector<8x128xbf16>
    %1 = arith.extf %0 : vector<8x128xbf16> to vector<8x128xf32>
    %c0_1 = arith.constant 0 : index
    %c0_2 = arith.constant 0 : index
    %2 = vector.load %arg2[%c0_1, %c0_2] : memref<128x128xf32, #tpu.memory_space<vmem>>, vector<128x128xf32>
    %c0_3 = arith.constant 0 : index
    %c0_4 = arith.constant 0 : index
    %3 = vector.load %arg3[%c0_3, %c0_4] : memref<1x128xf32, #tpu.memory_space<vmem>>, vector<1x128xf32>
    %c0_5 = arith.constant 0 : index
    %c0_6 = arith.constant 0 : index
    %4 = vector.load %arg4[%c0_5, %c0_6] : memref<1x128xf32, #tpu.memory_space<vmem>>, vector<1x128xf32>
    %cst = arith.constant dense<0.000000e+00> : vector<8x128xf32>
    %5 = tpu.matmul %1, %2, %cst {dimension_numbers = #tpu.dot_dimension_numbers<[1], [0], [0], [1], [0, 0, 1, 1], [], []>} : vector<8x128xf32>, vector<128x128xf32>, vector<8x128xf32> -> vector<8x128xf32>
    %6 = arith.subf %1, %5 : vector<8x128xf32>
    %7 = arith.mulf %6, %6 : vector<8x128xf32>
    %cst_7 = arith.constant dense<0.000000e+00> : vector<8x128xf32>
    %8 = tpu.matmul %7, %2, %cst_7 {dimension_numbers = #tpu.dot_dimension_numbers<[1], [0], [0], [1], [0, 0, 1, 1], [], []>} : vector<8x128xf32>, vector<128x128xf32>, vector<8x128xf32> -> vector<8x128xf32>
    %cst_8 = arith.constant 9.99999974E-6 : f32
    %9 = vector.broadcast %cst_8 : f32 to vector<8x128xf32>
    %10 = arith.addf %8, %9 : vector<8x128xf32>
    %11 = math.rsqrt %10 : vector<8x128xf32>
    %12 = arith.mulf %6, %11 : vector<8x128xf32>
    %13 = vector.broadcast %3 : vector<1x128xf32> to vector<8x128xf32>
    %14 = arith.mulf %12, %13 : vector<8x128xf32>
    %15 = vector.broadcast %4 : vector<1x128xf32> to vector<8x128xf32>
    %16 = arith.addf %14, %15 : vector<8x128xf32>
    %17 = arith.truncf %16 : vector<8x128xf32> to vector<8x128xbf16>
    %c0_9 = arith.constant 0 : index
    %c0_10 = arith.constant 0 : index
    %18 = vector.load %arg5[%c0_9, %c0_10] : memref<128x128xbf16, #tpu.memory_space<vmem>>, vector<128x128xbf16>
    %cst_11 = arith.constant dense<0.000000e+00> : vector<8x128xf32>
    %19 = tpu.matmul %17, %18, %cst_11 {dimension_numbers = #tpu.dot_dimension_numbers<[1], [0], [0], [1], [0, 0, 1, 1], [], []>} : vector<8x128xbf16>, vector<128x128xbf16>, vector<8x128xf32> -> vector<8x128xf32>
    %c0_12 = arith.constant 0 : index
    %c0_13 = arith.constant 0 : index
    %20 = vector.load %arg6[%c0_12, %c0_13] : memref<1x128xf32, #tpu.memory_space<vmem>>, vector<1x128xf32>
    %21 = vector.broadcast %20 : vector<1x128xf32> to vector<8x128xf32>
    %22 = arith.addf %19, %21 : vector<8x128xf32>
    %23 = arith.truncf %22 : vector<8x128xf32> to vector<8x128xbf16>
    %c0_14 = arith.constant 0 : index
    %c0_15 = arith.constant 0 : index
    %24 = vector.load %arg7[%c0_14, %c0_15] : memref<8x128xbf16, #tpu.memory_space<vmem>>, vector<8x128xbf16>
    tpu.vector_store %arg7[%c0_14, %c0_15], %23 {strides = array<i32>} : memref<8x128xbf16, #tpu.memory_space<vmem>>, vector<8x128xbf16>,
    return
  }
  func.func @transform_0(%arg0: i32) -> (i32, i32) {
    %c0_i32 = arith.constant 0 : i32
    %c0_i32_0 = arith.constant 0 : i32
    return %arg0, %c0_i32 : i32, i32
  }
  func.func @transform_1(%arg0: i32) -> (i32, i32) {
    %c0_i32 = arith.constant 0 : i32
    %c0_i32_0 = arith.constant 0 : i32
    %c0_i32_1 = arith.constant 0 : i32
    return %c0_i32, %c0_i32_0 : i32, i32
  }
  func.func @transform_2(%arg0: i32) -> (i32, i32) {
    %c0_i32 = arith.constant 0 : i32
    %c0_i32_0 = arith.constant 0 : i32
    %c0_i32_1 = arith.constant 0 : i32
    return %c0_i32, %c0_i32_0 : i32, i32
  }
  func.func @transform_3(%arg0: i32) -> (i32, i32) {
    %c0_i32 = arith.constant 0 : i32
    %c0_i32_0 = arith.constant 0 : i32
    %c0_i32_1 = arith.constant 0 : i32
    return %c0_i32, %c0_i32_0 : i32, i32
  }
  func.func @transform_4(%arg0: i32) -> (i32, i32) {
    %c0_i32 = arith.constant 0 : i32
    %c0_i32_0 = arith.constant 0 : i32
    %c0_i32_1 = arith.constant 0 : i32
    return %c0_i32, %c0_i32_0 : i32, i32
  }
  func.func @transform_5(%arg0: i32) -> (i32, i32) {
    %c0_i32 = arith.constant 0 : i32
    %c0_i32_0 = arith.constant 0 : i32
    %c0_i32_1 = arith.constant 0 : i32
    return %c0_i32, %c0_i32_0 : i32, i32
  }
  func.func @transform_6(%arg0: i32) -> (i32, i32) {
    %c0_i32 = arith.constant 0 : i32
    %c0_i32_0 = arith.constant 0 : i32
    return %arg0, %c0_i32 : i32, i32
  }
}

module attributes {stable_mosaic.version = 11 : i64} {
  func.func @_ln_kernel(%arg0: i32, %arg1: memref<8x32xbf16, #tpu.memory_space<vmem>>, %arg2: memref<1x32xf32, #tpu.memory_space<vmem>>, %arg3: memref<1x32xf32, #tpu.memory_space<vmem>>, %arg4: memref<8x32xbf16, #tpu.memory_space<vmem>>) attributes {dimension_semantics = [#tpu.dimension_semantics<parallel>], iteration_bounds = array<i64: 1>, scalar_prefetch = 0 : i64, scratch_operands = 0 : i64, tpu.core_type = #tpu.core_type<tc>, window_params = [{transform_indices = @transform_0, window_bounds = array<i64: 8, 32>}, {pipeline_mode = #tpu.pipeline_mode<synchronous>, transform_indices = @transform_1, window_bounds = array<i64: 1, 32>}, {pipeline_mode = #tpu.pipeline_mode<synchronous>, transform_indices = @transform_2, window_bounds = array<i64: 1, 32>}, {transform_indices = @transform_3, window_bounds = array<i64: 8, 32>}]} {
    %c0 = arith.constant 0 : index
    %c0_0 = arith.constant 0 : index
    %0 = vector.load %arg1[%c0, %c0_0] : memref<8x32xbf16, #tpu.memory_space<vmem>>, vector<8x32xbf16>
    %1 = arith.extf %0 : vector<8x32xbf16> to vector<8x32xf32>
    %c0_1 = arith.constant 0 : index
    %c0_2 = arith.constant 0 : index
    %2 = vector.load %arg2[%c0_1, %c0_2] : memref<1x32xf32, #tpu.memory_space<vmem>>, vector<1x32xf32>
    %c0_3 = arith.constant 0 : index
    %c0_4 = arith.constant 0 : index
    %3 = vector.load %arg3[%c0_3, %c0_4] : memref<1x32xf32, #tpu.memory_space<vmem>>, vector<1x32xf32>
    %cst = arith.constant dense<0.000000e+00> : vector<8xf32>
    %4 = vector.multi_reduction <add>, %1, %cst [1] : vector<8x32xf32> to vector<8xf32>
    %5 = vector.shape_cast %4 : vector<8xf32> to vector<8x1xf32>
    %cst_5 = arith.constant 3.200000e+01 : f32
    %6 = vector.broadcast %cst_5 : f32 to vector<8x1xf32>
    %7 = arith.divf %5, %6 : vector<8x1xf32>
    %8 = vector.broadcast %7 : vector<8x1xf32> to vector<8x32xf32>
    %9 = arith.subf %1, %8 : vector<8x32xf32>
    %10 = arith.mulf %9, %9 : vector<8x32xf32>
    %cst_6 = arith.constant dense<0.000000e+00> : vector<8xf32>
    %11 = vector.multi_reduction <add>, %10, %cst_6 [1] : vector<8x32xf32> to vector<8xf32>
    %12 = vector.shape_cast %11 : vector<8xf32> to vector<8x1xf32>
    %cst_7 = arith.constant 3.200000e+01 : f32
    %13 = vector.broadcast %cst_7 : f32 to vector<8x1xf32>
    %14 = arith.divf %12, %13 : vector<8x1xf32>
    %15 = vector.broadcast %7 : vector<8x1xf32> to vector<8x32xf32>
    %16 = arith.subf %1, %15 : vector<8x32xf32>
    %cst_8 = arith.constant 9.99999974E-6 : f32
    %17 = vector.broadcast %cst_8 : f32 to vector<8x1xf32>
    %18 = arith.addf %14, %17 : vector<8x1xf32>
    %19 = math.rsqrt %18 : vector<8x1xf32>
    %20 = vector.broadcast %19 : vector<8x1xf32> to vector<8x32xf32>
    %21 = arith.mulf %16, %20 : vector<8x32xf32>
    %22 = vector.broadcast %2 : vector<1x32xf32> to vector<8x32xf32>
    %23 = arith.mulf %21, %22 : vector<8x32xf32>
    %24 = vector.broadcast %3 : vector<1x32xf32> to vector<8x32xf32>
    %25 = arith.addf %23, %24 : vector<8x32xf32>
    %26 = arith.truncf %25 : vector<8x32xf32> to vector<8x32xbf16>
    %c0_9 = arith.constant 0 : index
    %c0_10 = arith.constant 0 : index
    %27 = vector.load %arg4[%c0_9, %c0_10] : memref<8x32xbf16, #tpu.memory_space<vmem>>, vector<8x32xbf16>
    tpu.vector_store %arg4[%c0_9, %c0_10], %26 {strides = array<i32>} : memref<8x32xbf16, #tpu.memory_space<vmem>>, vector<8x32xbf16>,
    return
  }
  func.func @transform_0(%arg0: i32) -> (i32, i32) {
    %c0_i32 = arith.constant 0 : i32
    %c0_i32_0 = arith.constant 0 : i32
    return %arg0, %c0_i32 : i32, i32
  }
  func.func @transform_1(%arg0: i32) -> (i32, i32) {
    %c0_i32 = arith.constant 0 : i32
    %c0_i32_0 = arith.constant 0 : i32
    %c0_i32_1 = arith.constant 0 : i32
    return %c0_i32, %c0_i32_0 : i32, i32
  }
  func.func @transform_2(%arg0: i32) -> (i32, i32) {
    %c0_i32 = arith.constant 0 : i32
    %c0_i32_0 = arith.constant 0 : i32
    %c0_i32_1 = arith.constant 0 : i32
    return %c0_i32, %c0_i32_0 : i32, i32
  }
  func.func @transform_3(%arg0: i32) -> (i32, i32) {
    %c0_i32 = arith.constant 0 : i32
    %c0_i32_0 = arith.constant 0 : i32
    return %arg0, %c0_i32 : i32, i32
  }
}

module attributes {stable_mosaic.version = 11 : i64} {
  func.func @_sm_plddt_kernel(%arg0: i32, %arg1: memref<8x32xbf16, #tpu.memory_space<vmem>>, %arg2: memref<1x32xf32, #tpu.memory_space<vmem>>, %arg3: memref<1x32xf32, #tpu.memory_space<vmem>>, %arg4: memref<32x32xbf16, #tpu.memory_space<vmem>>, %arg5: memref<1x32xf32, #tpu.memory_space<vmem>>, %arg6: memref<32x32xbf16, #tpu.memory_space<vmem>>, %arg7: memref<1x32xf32, #tpu.memory_space<vmem>>, %arg8: memref<32x8xbf16, #tpu.memory_space<vmem>>, %arg9: memref<1x8xf32, #tpu.memory_space<vmem>>, %arg10: memref<32x32xbf16, #tpu.memory_space<vmem>>, %arg11: memref<1x32xf32, #tpu.memory_space<vmem>>, %arg12: memref<32x50xbf16, #tpu.memory_space<vmem>>, %arg13: memref<1x50xf32, #tpu.memory_space<vmem>>, %arg14: memref<1x50xf32, #tpu.memory_space<vmem>>, %arg15: memref<1x8xf32, #tpu.memory_space<vmem>>, %arg16: memref<8x32xf32, #tpu.memory_space<vmem>>, %arg17: memref<8x8xf32, #tpu.memory_space<vmem>>) attributes {dimension_semantics = [#tpu.dimension_semantics<parallel>], iteration_bounds = array<i64: 1>, scalar_prefetch = 0 : i64, scratch_operands = 0 : i64, tpu.core_type = #tpu.core_type<tc>, window_params = [{transform_indices = @transform_0, window_bounds = array<i64: 8, 32>}, {pipeline_mode = #tpu.pipeline_mode<synchronous>, transform_indices = @transform_1, window_bounds = array<i64: 1, 32>}, {pipeline_mode = #tpu.pipeline_mode<synchronous>, transform_indices = @transform_2, window_bounds = array<i64: 1, 32>}, {pipeline_mode = #tpu.pipeline_mode<synchronous>, transform_indices = @transform_3, window_bounds = array<i64: 32, 32>}, {pipeline_mode = #tpu.pipeline_mode<synchronous>, transform_indices = @transform_4, window_bounds = array<i64: 1, 32>}, {pipeline_mode = #tpu.pipeline_mode<synchronous>, transform_indices = @transform_5, window_bounds = array<i64: 32, 32>}, {pipeline_mode = #tpu.pipeline_mode<synchronous>, transform_indices = @transform_6, window_bounds = array<i64: 1, 32>}, {pipeline_mode = #tpu.pipeline_mode<synchronous>, transform_indices = @transform_7, window_bounds = array<i64: 32, 8>}, {pipeline_mode = #tpu.pipeline_mode<synchronous>, transform_indices = @transform_8, window_bounds = array<i64: 1, 8>}, {pipeline_mode = #tpu.pipeline_mode<synchronous>, transform_indices = @transform_9, window_bounds = array<i64: 32, 32>}, {pipeline_mode = #tpu.pipeline_mode<synchronous>, transform_indices = @transform_10, window_bounds = array<i64: 1, 32>}, {pipeline_mode = #tpu.pipeline_mode<synchronous>, transform_indices = @transform_11, window_bounds = array<i64: 32, 50>}, {pipeline_mode = #tpu.pipeline_mode<synchronous>, transform_indices = @transform_12, window_bounds = array<i64: 1, 50>}, {pipeline_mode = #tpu.pipeline_mode<synchronous>, transform_indices = @transform_13, window_bounds = array<i64: 1, 50>}, {pipeline_mode = #tpu.pipeline_mode<synchronous>, transform_indices = @transform_14, window_bounds = array<i64: 1, 8>}, {transform_indices = @transform_15, window_bounds = array<i64: 8, 32>}, {transform_indices = @transform_16, window_bounds = array<i64: 8, 8>}]} {
    %c0 = arith.constant 0 : index
    %c0_0 = arith.constant 0 : index
    %0 = vector.load %arg1[%c0, %c0_0] : memref<8x32xbf16, #tpu.memory_space<vmem>>, vector<8x32xbf16>
    %1 = arith.extf %0 : vector<8x32xbf16> to vector<8x32xf32>
    %c0_1 = arith.constant 0 : index
    %c0_2 = arith.constant 0 : index
    %2 = vector.load %arg2[%c0_1, %c0_2] : memref<1x32xf32, #tpu.memory_space<vmem>>, vector<1x32xf32>
    %c0_3 = arith.constant 0 : index
    %c0_4 = arith.constant 0 : index
    %3 = vector.load %arg3[%c0_3, %c0_4] : memref<1x32xf32, #tpu.memory_space<vmem>>, vector<1x32xf32>
    %cst = arith.constant dense<0.000000e+00> : vector<8xf32>
    %4 = vector.multi_reduction <add>, %1, %cst [1] : vector<8x32xf32> to vector<8xf32>
    %5 = vector.shape_cast %4 : vector<8xf32> to vector<8x1xf32>
    %cst_5 = arith.constant 3.200000e+01 : f32
    %6 = vector.broadcast %cst_5 : f32 to vector<8x1xf32>
    %7 = arith.divf %5, %6 : vector<8x1xf32>
    %8 = vector.broadcast %7 : vector<8x1xf32> to vector<8x32xf32>
    %9 = arith.subf %1, %8 : vector<8x32xf32>
    %10 = arith.mulf %9, %9 : vector<8x32xf32>
    %cst_6 = arith.constant dense<0.000000e+00> : vector<8xf32>
    %11 = vector.multi_reduction <add>, %10, %cst_6 [1] : vector<8x32xf32> to vector<8xf32>
    %12 = vector.shape_cast %11 : vector<8xf32> to vector<8x1xf32>
    %cst_7 = arith.constant 3.200000e+01 : f32
    %13 = vector.broadcast %cst_7 : f32 to vector<8x1xf32>
    %14 = arith.divf %12, %13 : vector<8x1xf32>
    %15 = vector.broadcast %7 : vector<8x1xf32> to vector<8x32xf32>
    %16 = arith.subf %1, %15 : vector<8x32xf32>
    %cst_8 = arith.constant 9.99999974E-6 : f32
    %17 = vector.broadcast %cst_8 : f32 to vector<8x1xf32>
    %18 = arith.addf %14, %17 : vector<8x1xf32>
    %19 = math.rsqrt %18 : vector<8x1xf32>
    %20 = vector.broadcast %19 : vector<8x1xf32> to vector<8x32xf32>
    %21 = arith.mulf %16, %20 : vector<8x32xf32>
    %22 = vector.broadcast %2 : vector<1x32xf32> to vector<8x32xf32>
    %23 = arith.mulf %21, %22 : vector<8x32xf32>
    %24 = vector.broadcast %3 : vector<1x32xf32> to vector<8x32xf32>
    %25 = arith.addf %23, %24 : vector<8x32xf32>
    %26 = arith.truncf %25 : vector<8x32xf32> to vector<8x32xbf16>
    %c0_9 = arith.constant 0 : index
    %c0_10 = arith.constant 0 : index
    %27 = vector.load %arg4[%c0_9, %c0_10] : memref<32x32xbf16, #tpu.memory_space<vmem>>, vector<32x32xbf16>
    %cst_11 = arith.constant dense<0.000000e+00> : vector<8x32xf32>
    %28 = tpu.matmul %26, %27, %cst_11 {dimension_numbers = #tpu.dot_dimension_numbers<[1], [0], [0], [1], [0, 0, 1, 1], [], []>} : vector<8x32xbf16>, vector<32x32xbf16>, vector<8x32xf32> -> vector<8x32xf32>
    %c0_12 = arith.constant 0 : index
    %c0_13 = arith.constant 0 : index
    %29 = vector.load %arg5[%c0_12, %c0_13] : memref<1x32xf32, #tpu.memory_space<vmem>>, vector<1x32xf32>
    %30 = vector.broadcast %29 : vector<1x32xf32> to vector<8x32xf32>
    %31 = arith.addf %28, %30 : vector<8x32xf32>
    %cst_14 = arith.constant 0.000000e+00 : f32
    %32 = vector.broadcast %cst_14 : f32 to vector<8x32xf32>
    %33 = arith.maximumf %31, %32 : vector<8x32xf32>
    %34 = arith.truncf %33 : vector<8x32xf32> to vector<8x32xbf16>
    %c0_15 = arith.constant 0 : index
    %c0_16 = arith.constant 0 : index
    %35 = vector.load %arg6[%c0_15, %c0_16] : memref<32x32xbf16, #tpu.memory_space<vmem>>, vector<32x32xbf16>
    %cst_17 = arith.constant dense<0.000000e+00> : vector<8x32xf32>
    %36 = tpu.matmul %34, %35, %cst_17 {dimension_numbers = #tpu.dot_dimension_numbers<[1], [0], [0], [1], [0, 0, 1, 1], [], []>} : vector<8x32xbf16>, vector<32x32xbf16>, vector<8x32xf32> -> vector<8x32xf32>
    %37 = arith.addf %1, %36 : vector<8x32xf32>
    %c0_18 = arith.constant 0 : index
    %c0_19 = arith.constant 0 : index
    %38 = vector.load %arg7[%c0_18, %c0_19] : memref<1x32xf32, #tpu.memory_space<vmem>>, vector<1x32xf32>
    %39 = vector.broadcast %38 : vector<1x32xf32> to vector<8x32xf32>
    %40 = arith.addf %37, %39 : vector<8x32xf32>
    %41 = arith.truncf %40 : vector<8x32xf32> to vector<8x32xbf16>
    %c0_20 = arith.constant 0 : index
    %c0_21 = arith.constant 0 : index
    %42 = vector.load %arg8[%c0_20, %c0_21] : memref<32x8xbf16, #tpu.memory_space<vmem>>, vector<32x8xbf16>
    %cst_22 = arith.constant dense<0.000000e+00> : vector<8x8xf32>
    %43 = tpu.matmul %41, %42, %cst_22 {dimension_numbers = #tpu.dot_dimension_numbers<[1], [0], [0], [1], [0, 0, 1, 1], [], []>} : vector<8x32xbf16>, vector<32x8xbf16>, vector<8x8xf32> -> vector<8x8xf32>
    %c0_23 = arith.constant 0 : index
    %c0_24 = arith.constant 0 : index
    %44 = vector.load %arg9[%c0_23, %c0_24] : memref<1x8xf32, #tpu.memory_space<vmem>>, vector<1x8xf32>
    %45 = vector.broadcast %44 : vector<1x8xf32> to vector<8x8xf32>
    %46 = arith.addf %43, %45 : vector<8x8xf32>
    %c0_25 = arith.constant 0 : index
    %c0_26 = arith.constant 0 : index
    %47 = vector.load %arg10[%c0_25, %c0_26] : memref<32x32xbf16, #tpu.memory_space<vmem>>, vector<32x32xbf16>
    %cst_27 = arith.constant dense<0.000000e+00> : vector<8x32xf32>
    %48 = tpu.matmul %41, %47, %cst_27 {dimension_numbers = #tpu.dot_dimension_numbers<[1], [0], [0], [1], [0, 0, 1, 1], [], []>} : vector<8x32xbf16>, vector<32x32xbf16>, vector<8x32xf32> -> vector<8x32xf32>
    %c0_28 = arith.constant 0 : index
    %c0_29 = arith.constant 0 : index
    %49 = vector.load %arg11[%c0_28, %c0_29] : memref<1x32xf32, #tpu.memory_space<vmem>>, vector<1x32xf32>
    %50 = vector.broadcast %49 : vector<1x32xf32> to vector<8x32xf32>
    %51 = arith.addf %48, %50 : vector<8x32xf32>
    %cst_30 = arith.constant 0.000000e+00 : f32
    %52 = vector.broadcast %cst_30 : f32 to vector<8x32xf32>
    %53 = arith.maximumf %51, %52 : vector<8x32xf32>
    %54 = arith.truncf %53 : vector<8x32xf32> to vector<8x32xbf16>
    %c0_31 = arith.constant 0 : index
    %c0_32 = arith.constant 0 : index
    %55 = vector.load %arg12[%c0_31, %c0_32] : memref<32x50xbf16, #tpu.memory_space<vmem>>, vector<32x50xbf16>
    %cst_33 = arith.constant dense<0.000000e+00> : vector<8x50xf32>
    %56 = tpu.matmul %54, %55, %cst_33 {dimension_numbers = #tpu.dot_dimension_numbers<[1], [0], [0], [1], [0, 0, 1, 1], [], []>} : vector<8x32xbf16>, vector<32x50xbf16>, vector<8x50xf32> -> vector<8x50xf32>
    %c0_34 = arith.constant 0 : index
    %c0_35 = arith.constant 0 : index
    %57 = vector.load %arg13[%c0_34, %c0_35] : memref<1x50xf32, #tpu.memory_space<vmem>>, vector<1x50xf32>
    %58 = vector.broadcast %57 : vector<1x50xf32> to vector<8x50xf32>
    %59 = arith.addf %56, %58 : vector<8x50xf32>
    %cst_36 = arith.constant dense<0xFF800000> : vector<8xf32>
    %60 = vector.multi_reduction <maximumf>, %59, %cst_36 [1] : vector<8x50xf32> to vector<8xf32>
    %61 = vector.shape_cast %60 : vector<8xf32> to vector<8x1xf32>
    %62 = vector.broadcast %61 : vector<8x1xf32> to vector<8x50xf32>
    %63 = arith.subf %59, %62 : vector<8x50xf32>
    %64 = math.exp %63 : vector<8x50xf32>
    %cst_37 = arith.constant dense<0.000000e+00> : vector<8xf32>
    %65 = vector.multi_reduction <add>, %64, %cst_37 [1] : vector<8x50xf32> to vector<8xf32>
    %66 = vector.shape_cast %65 : vector<8xf32> to vector<8x1xf32>
    %67 = vector.broadcast %66 : vector<8x1xf32> to vector<8x50xf32>
    %68 = arith.divf %64, %67 : vector<8x50xf32>
    %c0_38 = arith.constant 0 : index
    %c0_39 = arith.constant 0 : index
    %69 = vector.load %arg14[%c0_38, %c0_39] : memref<1x50xf32, #tpu.memory_space<vmem>>, vector<1x50xf32>
    %70 = vector.broadcast %69 : vector<1x50xf32> to vector<8x50xf32>
    %71 = arith.mulf %68, %70 : vector<8x50xf32>
    %cst_40 = arith.constant dense<0.000000e+00> : vector<8xf32>
    %72 = vector.multi_reduction <add>, %71, %cst_40 [1] : vector<8x50xf32> to vector<8xf32>
    %73 = vector.shape_cast %72 : vector<8xf32> to vector<8x1xf32>
    %c0_41 = arith.constant 0 : index
    %c0_42 = arith.constant 0 : index
    %74 = vector.load %arg16[%c0_41, %c0_42] : memref<8x32xf32, #tpu.memory_space<vmem>>, vector<8x32xf32>
    tpu.vector_store %arg16[%c0_41, %c0_42], %40 {strides = array<i32>} : memref<8x32xf32, #tpu.memory_space<vmem>>, vector<8x32xf32>,
    %c0_43 = arith.constant 0 : index
    %c0_44 = arith.constant 0 : index
    %75 = vector.load %arg15[%c0_43, %c0_44] : memref<1x8xf32, #tpu.memory_space<vmem>>, vector<1x8xf32>
    %76 = vector.broadcast %73 : vector<8x1xf32> to vector<8x8xf32>
    %77 = vector.broadcast %75 : vector<1x8xf32> to vector<8x8xf32>
    %78 = arith.mulf %76, %77 : vector<8x8xf32>
    %79 = arith.addf %46, %78 : vector<8x8xf32>
    %c0_45 = arith.constant 0 : index
    %c0_46 = arith.constant 0 : index
    %80 = vector.load %arg17[%c0_45, %c0_46] : memref<8x8xf32, #tpu.memory_space<vmem>>, vector<8x8xf32>
    tpu.vector_store %arg17[%c0_45, %c0_46], %79 {strides = array<i32>} : memref<8x8xf32, #tpu.memory_space<vmem>>, vector<8x8xf32>,
    return
  }
  func.func @transform_0(%arg0: i32) -> (i32, i32) {
    %c0_i32 = arith.constant 0 : i32
    %c0_i32_0 = arith.constant 0 : i32
    return %arg0, %c0_i32 : i32, i32
  }
  func.func @transform_1(%arg0: i32) -> (i32, i32) {
    %c0_i32 = arith.constant 0 : i32
    %c0_i32_0 = arith.constant 0 : i32
    %c0_i32_1 = arith.constant 0 : i32
    return %c0_i32, %c0_i32_0 : i32, i32
  }
  func.func @transform_2(%arg0: i32) -> (i32, i32) {
    %c0_i32 = arith.constant 0 : i32
    %c0_i32_0 = arith.constant 0 : i32
    %c0_i32_1 = arith.constant 0 : i32
    return %c0_i32, %c0_i32_0 : i32, i32
  }
  func.func @transform_3(%arg0: i32) -> (i32, i32) {
    %c0_i32 = arith.constant 0 : i32
    %c0_i32_0 = arith.constant 0 : i32
    %c0_i32_1 = arith.constant 0 : i32
    return %c0_i32, %c0_i32_0 : i32, i32
  }
  func.func @transform_4(%arg0: i32) -> (i32, i32) {
    %c0_i32 = arith.constant 0 : i32
    %c0_i32_0 = arith.constant 0 : i32
    %c0_i32_1 = arith.constant 0 : i32
    return %c0_i32, %c0_i32_0 : i32, i32
  }
  func.func @transform_5(%arg0: i32) -> (i32, i32) {
    %c0_i32 = arith.constant 0 : i32
    %c0_i32_0 = arith.constant 0 : i32
    %c0_i32_1 = arith.constant 0 : i32
    return %c0_i32, %c0_i32_0 : i32, i32
  }
  func.func @transform_6(%arg0: i32) -> (i32, i32) {
    %c0_i32 = arith.constant 0 : i32
    %c0_i32_0 = arith.constant 0 : i32
    %c0_i32_1 = arith.constant 0 : i32
    return %c0_i32, %c0_i32_0 : i32, i32
  }
  func.func @transform_7(%arg0: i32) -> (i32, i32) {
    %c0_i32 = arith.constant 0 : i32
    %c0_i32_0 = arith.constant 0 : i32
    %c0_i32_1 = arith.constant 0 : i32
    return %c0_i32, %c0_i32_0 : i32, i32
  }
  func.func @transform_8(%arg0: i32) -> (i32, i32) {
    %c0_i32 = arith.constant 0 : i32
    %c0_i32_0 = arith.constant 0 : i32
    %c0_i32_1 = arith.constant 0 : i32
    return %c0_i32, %c0_i32_0 : i32, i32
  }
  func.func @transform_9(%arg0: i32) -> (i32, i32) {
    %c0_i32 = arith.constant 0 : i32
    %c0_i32_0 = arith.constant 0 : i32
    %c0_i32_1 = arith.constant 0 : i32
    return %c0_i32, %c0_i32_0 : i32, i32
  }
  func.func @transform_10(%arg0: i32) -> (i32, i32) {
    %c0_i32 = arith.constant 0 : i32
    %c0_i32_0 = arith.constant 0 : i32
    %c0_i32_1 = arith.constant 0 : i32
    return %c0_i32, %c0_i32_0 : i32, i32
  }
  func.func @transform_11(%arg0: i32) -> (i32, i32) {
    %c0_i32 = arith.constant 0 : i32
    %c0_i32_0 = arith.constant 0 : i32
    %c0_i32_1 = arith.constant 0 : i32
    return %c0_i32, %c0_i32_0 : i32, i32
  }
  func.func @transform_12(%arg0: i32) -> (i32, i32) {
    %c0_i32 = arith.constant 0 : i32
    %c0_i32_0 = arith.constant 0 : i32
    %c0_i32_1 = arith.constant 0 : i32
    return %c0_i32, %c0_i32_0 : i32, i32
  }
  func.func @transform_13(%arg0: i32) -> (i32, i32) {
    %c0_i32 = arith.constant 0 : i32
    %c0_i32_0 = arith.constant 0 : i32
    %c0_i32_1 = arith.constant 0 : i32
    return %c0_i32, %c0_i32_0 : i32, i32
  }
  func.func @transform_14(%arg0: i32) -> (i32, i32) {
    %c0_i32 = arith.constant 0 : i32
    %c0_i32_0 = arith.constant 0 : i32
    %c0_i32_1 = arith.constant 0 : i32
    return %c0_i32, %c0_i32_0 : i32, i32
  }
  func.func @transform_15(%arg0: i32) -> (i32, i32) {
    %c0_i32 = arith.constant 0 : i32
    %c0_i32_0 = arith.constant 0 : i32
    return %arg0, %c0_i32 : i32, i32
  }
  func.func @transform_16(%arg0: i32) -> (i32, i32) {
    %c0_i32 = arith.constant 0 : i32
    %c0_i32_0 = arith.constant 0 : i32
    return %arg0, %c0_i32 : i32, i32
  }
}

module attributes {stable_mosaic.version = 11 : i64} {
  func.func @_packed_msa_opm_kernel(%arg0: i32, %arg1: memref<8x128xbf16, #tpu.memory_space<vmem>>, %arg2: memref<128x128xf32, #tpu.memory_space<vmem>>, %arg3: memref<1x128xf32, #tpu.memory_space<vmem>>, %arg4: memref<1x128xf32, #tpu.memory_space<vmem>>, %arg5: memref<128x512xbf16, #tpu.memory_space<vmem>>, %arg6: memref<1x512xf32, #tpu.memory_space<vmem>>, %arg7: memref<512x128xbf16, #tpu.memory_space<vmem>>, %arg8: memref<1x128xf32, #tpu.memory_space<vmem>>, %arg9: memref<1x128xf32, #tpu.memory_space<vmem>>, %arg10: memref<1x128xf32, #tpu.memory_space<vmem>>, %arg11: memref<128x1056xbf16, #tpu.memory_space<vmem>>, %arg12: memref<1x1056xf32, #tpu.memory_space<vmem>>, %arg13: memref<8x128xbf16, #tpu.memory_space<vmem>>, %arg14: memref<8x1056xbf16, #tpu.memory_space<vmem>>) attributes {dimension_semantics = [#tpu.dimension_semantics<parallel>], iteration_bounds = array<i64: 1>, scalar_prefetch = 0 : i64, scratch_operands = 0 : i64, tpu.core_type = #tpu.core_type<tc>, window_params = [{transform_indices = @transform_0, window_bounds = array<i64: 8, 128>}, {pipeline_mode = #tpu.pipeline_mode<synchronous>, transform_indices = @transform_1, window_bounds = array<i64: 128, 128>}, {pipeline_mode = #tpu.pipeline_mode<synchronous>, transform_indices = @transform_2, window_bounds = array<i64: 1, 128>}, {pipeline_mode = #tpu.pipeline_mode<synchronous>, transform_indices = @transform_3, window_bounds = array<i64: 1, 128>}, {pipeline_mode = #tpu.pipeline_mode<synchronous>, transform_indices = @transform_4, window_bounds = array<i64: 128, 512>}, {pipeline_mode = #tpu.pipeline_mode<synchronous>, transform_indices = @transform_5, window_bounds = array<i64: 1, 512>}, {pipeline_mode = #tpu.pipeline_mode<synchronous>, transform_indices = @transform_6, window_bounds = array<i64: 512, 128>}, {pipeline_mode = #tpu.pipeline_mode<synchronous>, transform_indices = @transform_7, window_bounds = array<i64: 1, 128>}, {pipeline_mode = #tpu.pipeline_mode<synchronous>, transform_indices = @transform_8, window_bounds = array<i64: 1, 128>}, {pipeline_mode = #tpu.pipeline_mode<synchronous>, transform_indices = @transform_9, window_bounds = array<i64: 1, 128>}, {pipeline_mode = #tpu.pipeline_mode<synchronous>, transform_indices = @transform_10, window_bounds = array<i64: 128, 1056>}, {pipeline_mode = #tpu.pipeline_mode<synchronous>, transform_indices = @transform_11, window_bounds = array<i64: 1, 1056>}, {transform_indices = @transform_12, window_bounds = array<i64: 8, 128>}, {transform_indices = @transform_13, window_bounds = array<i64: 8, 1056>}]} {
    %c0 = arith.constant 0 : index
    %c0_0 = arith.constant 0 : index
    %0 = vector.load %arg1[%c0, %c0_0] : memref<8x128xbf16, #tpu.memory_space<vmem>>, vector<8x128xbf16>
    %1 = arith.extf %0 : vector<8x128xbf16> to vector<8x128xf32>
    %c0_1 = arith.constant 0 : index
    %c0_2 = arith.constant 0 : index
    %2 = vector.load %arg2[%c0_1, %c0_2] : memref<128x128xf32, #tpu.memory_space<vmem>>, vector<128x128xf32>
    %c0_3 = arith.constant 0 : index
    %c0_4 = arith.constant 0 : index
    %3 = vector.load %arg3[%c0_3, %c0_4] : memref<1x128xf32, #tpu.memory_space<vmem>>, vector<1x128xf32>
    %c0_5 = arith.constant 0 : index
    %c0_6 = arith.constant 0 : index
    %4 = vector.load %arg4[%c0_5, %c0_6] : memref<1x128xf32, #tpu.memory_space<vmem>>, vector<1x128xf32>
    %cst = arith.constant dense<0.000000e+00> : vector<8x128xf32>
    %5 = tpu.matmul %1, %2, %cst {dimension_numbers = #tpu.dot_dimension_numbers<[1], [0], [0], [1], [0, 0, 1, 1], [], []>} : vector<8x128xf32>, vector<128x128xf32>, vector<8x128xf32> -> vector<8x128xf32>
    %6 = arith.subf %1, %5 : vector<8x128xf32>
    %7 = arith.mulf %6, %6 : vector<8x128xf32>
    %cst_7 = arith.constant dense<0.000000e+00> : vector<8x128xf32>
    %8 = tpu.matmul %7, %2, %cst_7 {dimension_numbers = #tpu.dot_dimension_numbers<[1], [0], [0], [1], [0, 0, 1, 1], [], []>} : vector<8x128xf32>, vector<128x128xf32>, vector<8x128xf32> -> vector<8x128xf32>
    %cst_8 = arith.constant 9.99999974E-6 : f32
    %9 = vector.broadcast %cst_8 : f32 to vector<8x128xf32>
    %10 = arith.addf %8, %9 : vector<8x128xf32>
    %11 = math.rsqrt %10 : vector<8x128xf32>
    %12 = arith.mulf %6, %11 : vector<8x128xf32>
    %13 = vector.broadcast %3 : vector<1x128xf32> to vector<8x128xf32>
    %14 = arith.mulf %12, %13 : vector<8x128xf32>
    %15 = vector.broadcast %4 : vector<1x128xf32> to vector<8x128xf32>
    %16 = arith.addf %14, %15 : vector<8x128xf32>
    %17 = arith.truncf %16 : vector<8x128xf32> to vector<8x128xbf16>
    %c0_9 = arith.constant 0 : index
    %c0_10 = arith.constant 0 : index
    %18 = vector.load %arg5[%c0_9, %c0_10] : memref<128x512xbf16, #tpu.memory_space<vmem>>, vector<128x512xbf16>
    %cst_11 = arith.constant dense<0.000000e+00> : vector<8x512xf32>
    %19 = tpu.matmul %17, %18, %cst_11 {dimension_numbers = #tpu.dot_dimension_numbers<[1], [0], [0], [1], [0, 0, 1, 1], [], []>} : vector<8x128xbf16>, vector<128x512xbf16>, vector<8x512xf32> -> vector<8x512xf32>
    %c0_12 = arith.constant 0 : index
    %c0_13 = arith.constant 0 : index
    %20 = vector.load %arg6[%c0_12, %c0_13] : memref<1x512xf32, #tpu.memory_space<vmem>>, vector<1x512xf32>
    %21 = vector.broadcast %20 : vector<1x512xf32> to vector<8x512xf32>
    %22 = arith.addf %19, %21 : vector<8x512xf32>
    %cst_14 = arith.constant 0.000000e+00 : f32
    %23 = vector.broadcast %cst_14 : f32 to vector<8x512xf32>
    %24 = arith.maximumf %22, %23 : vector<8x512xf32>
    %25 = arith.truncf %24 : vector<8x512xf32> to vector<8x512xbf16>
    %c0_15 = arith.constant 0 : index
    %c0_16 = arith.constant 0 : index
    %26 = vector.load %arg7[%c0_15, %c0_16] : memref<512x128xbf16, #tpu.memory_space<vmem>>, vector<512x128xbf16>
    %cst_17 = arith.constant dense<0.000000e+00> : vector<8x128xf32>
    %27 = tpu.matmul %25, %26, %cst_17 {dimension_numbers = #tpu.dot_dimension_numbers<[1], [0], [0], [1], [0, 0, 1, 1], [], []>} : vector<8x512xbf16>, vector<512x128xbf16>, vector<8x128xf32> -> vector<8x128xf32>
    %28 = arith.addf %1, %27 : vector<8x128xf32>
    %c0_18 = arith.constant 0 : index
    %c0_19 = arith.constant 0 : index
    %29 = vector.load %arg8[%c0_18, %c0_19] : memref<1x128xf32, #tpu.memory_space<vmem>>, vector<1x128xf32>
    %30 = vector.broadcast %29 : vector<1x128xf32> to vector<8x128xf32>
    %31 = arith.addf %28, %30 : vector<8x128xf32>
    %32 = arith.truncf %31 : vector<8x128xf32> to vector<8x128xbf16>
    %c0_20 = arith.constant 0 : index
    %c0_21 = arith.constant 0 : index
    %33 = vector.load %arg13[%c0_20, %c0_21] : memref<8x128xbf16, #tpu.memory_space<vmem>>, vector<8x128xbf16>
    tpu.vector_store %arg13[%c0_20, %c0_21], %32 {strides = array<i32>} : memref<8x128xbf16, #tpu.memory_space<vmem>>, vector<8x128xbf16>,
    %c0_22 = arith.constant 0 : index
    %c0_23 = arith.constant 0 : index
    %34 = vector.load %arg9[%c0_22, %c0_23] : memref<1x128xf32, #tpu.memory_space<vmem>>, vector<1x128xf32>
    %c0_24 = arith.constant 0 : index
    %c0_25 = arith.constant 0 : index
    %35 = vector.load %arg10[%c0_24, %c0_25] : memref<1x128xf32, #tpu.memory_space<vmem>>, vector<1x128xf32>
    %cst_26 = arith.constant dense<0.000000e+00> : vector<8x128xf32>
    %36 = tpu.matmul %31, %2, %cst_26 {dimension_numbers = #tpu.dot_dimension_numbers<[1], [0], [0], [1], [0, 0, 1, 1], [], []>} : vector<8x128xf32>, vector<128x128xf32>, vector<8x128xf32> -> vector<8x128xf32>
    %37 = arith.subf %31, %36 : vector<8x128xf32>
    %38 = arith.mulf %37, %37 : vector<8x128xf32>
    %cst_27 = arith.constant dense<0.000000e+00> : vector<8x128xf32>
    %39 = tpu.matmul %38, %2, %cst_27 {dimension_numbers = #tpu.dot_dimension_numbers<[1], [0], [0], [1], [0, 0, 1, 1], [], []>} : vector<8x128xf32>, vector<128x128xf32>, vector<8x128xf32> -> vector<8x128xf32>
    %cst_28 = arith.constant 9.99999974E-6 : f32
    %40 = vector.broadcast %cst_28 : f32 to vector<8x128xf32>
    %41 = arith.addf %39, %40 : vector<8x128xf32>
    %42 = math.rsqrt %41 : vector<8x128xf32>
    %43 = arith.mulf %37, %42 : vector<8x128xf32>
    %44 = vector.broadcast %34 : vector<1x128xf32> to vector<8x128xf32>
    %45 = arith.mulf %43, %44 : vector<8x128xf32>
    %46 = vector.broadcast %35 : vector<1x128xf32> to vector<8x128xf32>
    %47 = arith.addf %45, %46 : vector<8x128xf32>
    %48 = arith.truncf %47 : vector<8x128xf32> to vector<8x128xbf16>
    %c0_29 = arith.constant 0 : index
    %c0_30 = arith.constant 0 : index
    %49 = vector.load %arg11[%c0_29, %c0_30] : memref<128x1056xbf16, #tpu.memory_space<vmem>>, vector<128x1056xbf16>
    %cst_31 = arith.constant dense<0.000000e+00> : vector<8x1056xf32>
    %50 = tpu.matmul %48, %49, %cst_31 {dimension_numbers = #tpu.dot_dimension_numbers<[1], [0], [0], [1], [0, 0, 1, 1], [], []>} : vector<8x128xbf16>, vector<128x1056xbf16>, vector<8x1056xf32> -> vector<8x1056xf32>
    %c0_32 = arith.constant 0 : index
    %c0_33 = arith.constant 0 : index
    %51 = vector.load %arg12[%c0_32, %c0_33] : memref<1x1056xf32, #tpu.memory_space<vmem>>, vector<1x1056xf32>
    %52 = vector.broadcast %51 : vector<1x1056xf32> to vector<8x1056xf32>
    %53 = arith.addf %50, %52 : vector<8x1056xf32>
    %54 = arith.truncf %53 : vector<8x1056xf32> to vector<8x1056xbf16>
    %c0_34 = arith.constant 0 : index
    %c0_35 = arith.constant 0 : index
    %55 = vector.load %arg14[%c0_34, %c0_35] : memref<8x1056xbf16, #tpu.memory_space<vmem>>, vector<8x1056xbf16>
    tpu.vector_store %arg14[%c0_34, %c0_35], %54 {strides = array<i32>} : memref<8x1056xbf16, #tpu.memory_space<vmem>>, vector<8x1056xbf16>,
    return
  }
  func.func @transform_0(%arg0: i32) -> (i32, i32) {
    %c0_i32 = arith.constant 0 : i32
    %c0_i32_0 = arith.constant 0 : i32
    return %arg0, %c0_i32 : i32, i32
  }
  func.func @transform_1(%arg0: i32) -> (i32, i32) {
    %c0_i32 = arith.constant 0 : i32
    %c0_i32_0 = arith.constant 0 : i32
    %c0_i32_1 = arith.constant 0 : i32
    return %c0_i32, %c0_i32_0 : i32, i32
  }
  func.func @transform_2(%arg0: i32) -> (i32, i32) {
    %c0_i32 = arith.constant 0 : i32
    %c0_i32_0 = arith.constant 0 : i32
    %c0_i32_1 = arith.constant 0 : i32
    return %c0_i32, %c0_i32_0 : i32, i32
  }
  func.func @transform_3(%arg0: i32) -> (i32, i32) {
    %c0_i32 = arith.constant 0 : i32
    %c0_i32_0 = arith.constant 0 : i32
    %c0_i32_1 = arith.constant 0 : i32
    return %c0_i32, %c0_i32_0 : i32, i32
  }
  func.func @transform_4(%arg0: i32) -> (i32, i32) {
    %c0_i32 = arith.constant 0 : i32
    %c0_i32_0 = arith.constant 0 : i32
    %c0_i32_1 = arith.constant 0 : i32
    return %c0_i32, %c0_i32_0 : i32, i32
  }
  func.func @transform_5(%arg0: i32) -> (i32, i32) {
    %c0_i32 = arith.constant 0 : i32
    %c0_i32_0 = arith.constant 0 : i32
    %c0_i32_1 = arith.constant 0 : i32
    return %c0_i32, %c0_i32_0 : i32, i32
  }
  func.func @transform_6(%arg0: i32) -> (i32, i32) {
    %c0_i32 = arith.constant 0 : i32
    %c0_i32_0 = arith.constant 0 : i32
    %c0_i32_1 = arith.constant 0 : i32
    return %c0_i32, %c0_i32_0 : i32, i32
  }
  func.func @transform_7(%arg0: i32) -> (i32, i32) {
    %c0_i32 = arith.constant 0 : i32
    %c0_i32_0 = arith.constant 0 : i32
    %c0_i32_1 = arith.constant 0 : i32
    return %c0_i32, %c0_i32_0 : i32, i32
  }
  func.func @transform_8(%arg0: i32) -> (i32, i32) {
    %c0_i32 = arith.constant 0 : i32
    %c0_i32_0 = arith.constant 0 : i32
    %c0_i32_1 = arith.constant 0 : i32
    return %c0_i32, %c0_i32_0 : i32, i32
  }
  func.func @transform_9(%arg0: i32) -> (i32, i32) {
    %c0_i32 = arith.constant 0 : i32
    %c0_i32_0 = arith.constant 0 : i32
    %c0_i32_1 = arith.constant 0 : i32
    return %c0_i32, %c0_i32_0 : i32, i32
  }
  func.func @transform_10(%arg0: i32) -> (i32, i32) {
    %c0_i32 = arith.constant 0 : i32
    %c0_i32_0 = arith.constant 0 : i32
    %c0_i32_1 = arith.constant 0 : i32
    return %c0_i32, %c0_i32_0 : i32, i32
  }
  func.func @transform_11(%arg0: i32) -> (i32, i32) {
    %c0_i32 = arith.constant 0 : i32
    %c0_i32_0 = arith.constant 0 : i32
    %c0_i32_1 = arith.constant 0 : i32
    return %c0_i32, %c0_i32_0 : i32, i32
  }
  func.func @transform_12(%arg0: i32) -> (i32, i32) {
    %c0_i32 = arith.constant 0 : i32
    %c0_i32_0 = arith.constant 0 : i32
    return %arg0, %c0_i32 : i32, i32
  }
  func.func @transform_13(%arg0: i32) -> (i32, i32) {
    %c0_i32 = arith.constant 0 : i32
    %c0_i32_0 = arith.constant 0 : i32
    return %arg0, %c0_i32 : i32, i32
  }
}

module attributes {stable_mosaic.version = 11 : i64} {
  func.func @_opm_kernel(%arg0: i32, %arg1: i32, %arg2: i32, %arg3: memref<1x8x32xbf16, #tpu.memory_space<vmem>>, %arg4: memref<1x32x256xbf16, #tpu.memory_space<vmem>>, %arg5: memref<1x256xf32, #tpu.memory_space<vmem>>, %arg6: memref<1x8x256xbf16, #tpu.memory_space<vmem>>, %arg7: memref<1x8x256xbf16, #tpu.memory_space<vmem>>) attributes {dimension_semantics = [#tpu.dimension_semantics<parallel>, #tpu.dimension_semantics<parallel>, #tpu.dimension_semantics<parallel>], iteration_bounds = array<i64: 1, 1, 1>, scalar_prefetch = 0 : i64, scratch_operands = 0 : i64, tpu.core_type = #tpu.core_type<tc>, window_params = [{transform_indices = @transform_0, window_bounds = array<i64: 1, 8, 32>}, {transform_indices = @transform_1, window_bounds = array<i64: 1, 32, 256>}, {transform_indices = @transform_2, window_bounds = array<i64: 1, 256>}, {transform_indices = @transform_3, window_bounds = array<i64: 1, 8, 256>}, {transform_indices = @transform_4, window_bounds = array<i64: 1, 8, 256>}]} {
    %c0 = arith.constant 0 : index
    %c0_0 = arith.constant 0 : index
    %c0_1 = arith.constant 0 : index
    %0 = vector.load %arg3[%c0, %c0_0, %c0_1] : memref<1x8x32xbf16, #tpu.memory_space<vmem>>, vector<1x8x32xbf16>
    %1 = vector.shape_cast %0 : vector<1x8x32xbf16> to vector<8x32xbf16>
    %c0_2 = arith.constant 0 : index
    %c0_3 = arith.constant 0 : index
    %c0_4 = arith.constant 0 : index
    %2 = vector.load %arg4[%c0_2, %c0_3, %c0_4] : memref<1x32x256xbf16, #tpu.memory_space<vmem>>, vector<1x32x256xbf16>
    %3 = vector.shape_cast %2 : vector<1x32x256xbf16> to vector<32x256xbf16>
    %cst = arith.constant dense<0.000000e+00> : vector<8x256xf32>
    %4 = tpu.matmul %1, %3, %cst {dimension_numbers = #tpu.dot_dimension_numbers<[1], [0], [0], [1], [0, 0, 1, 1], [], []>} : vector<8x32xbf16>, vector<32x256xbf16>, vector<8x256xf32> -> vector<8x256xf32>
    %c0_5 = arith.constant 0 : index
    %c0_6 = arith.constant 0 : index
    %c0_7 = arith.constant 0 : index
    %5 = vector.load %arg6[%c0_5, %c0_6, %c0_7] : memref<1x8x256xbf16, #tpu.memory_space<vmem>>, vector<1x8x256xbf16>
    %6 = vector.shape_cast %5 : vector<1x8x256xbf16> to vector<8x256xbf16>
    %7 = arith.extf %6 : vector<8x256xbf16> to vector<8x256xf32>
    %cst_8 = arith.constant 2.500000e-01 : f32
    %8 = vector.broadcast %cst_8 : f32 to vector<8x256xf32>
    %9 = arith.mulf %4, %8 : vector<8x256xf32>
    %10 = arith.addf %7, %9 : vector<8x256xf32>
    %c0_9 = arith.constant 0 : index
    %c0_10 = arith.constant 0 : index
    %11 = vector.load %arg5[%c0_9, %c0_10] : memref<1x256xf32, #tpu.memory_space<vmem>>, vector<1x256xf32>
    %12 = vector.broadcast %11 : vector<1x256xf32> to vector<8x256xf32>
    %13 = arith.addf %10, %12 : vector<8x256xf32>
    %14 = arith.truncf %13 : vector<8x256xf32> to vector<8x256xbf16>
    %c0_11 = arith.constant 0 : index
    %c0_12 = arith.constant 0 : index
    %c0_13 = arith.constant 0 : index
    %15 = vector.load %arg7[%c0_11, %c0_12, %c0_13] : memref<1x8x256xbf16, #tpu.memory_space<vmem>>, vector<1x8x256xbf16>
    %16 = vector.shape_cast %15 : vector<1x8x256xbf16> to vector<8x256xbf16>
    %17 = vector.shape_cast %14 : vector<8x256xbf16> to vector<1x8x256xbf16>
    tpu.vector_store %arg7[%c0_11, %c0_12, %c0_13], %17 {strides = array<i32>} : memref<1x8x256xbf16, #tpu.memory_space<vmem>>, vector<1x8x256xbf16>,
    return
  }
  func.func @transform_0(%arg0: i32, %arg1: i32, %arg2: i32) -> (i32, i32, i32) {
    %c0_i32 = arith.constant 0 : i32
    %c0_i32_0 = arith.constant 0 : i32
    return %arg0, %arg2, %c0_i32 : i32, i32, i32
  }
  func.func @transform_1(%arg0: i32, %arg1: i32, %arg2: i32) -> (i32, i32, i32) {
    %c0_i32 = arith.constant 0 : i32
    %c0_i32_0 = arith.constant 0 : i32
    return %arg0, %c0_i32, %arg1 : i32, i32, i32
  }
  func.func @transform_2(%arg0: i32, %arg1: i32, %arg2: i32) -> (i32, i32) {
    %c0_i32 = arith.constant 0 : i32
    %c0_i32_0 = arith.constant 0 : i32
    return %c0_i32, %arg1 : i32, i32
  }
  func.func @transform_3(%arg0: i32, %arg1: i32, %arg2: i32) -> (i32, i32, i32) {
    %c0_i32 = arith.constant 0 : i32
    return %arg0, %arg2, %arg1 : i32, i32, i32
  }
  func.func @transform_4(%arg0: i32, %arg1: i32, %arg2: i32) -> (i32, i32, i32) {
    %c0_i32 = arith.constant 0 : i32
    return %arg0, %arg2, %arg1 : i32, i32, i32
  }
}

module attributes {stable_mosaic.version = 11 : i64} {
  func.func @_packed_ln_mlp_kernel(%arg0: i32, %arg1: memref<8x128xbf16, #tpu.memory_space<vmem>>, %arg2: memref<128x128xf32, #tpu.memory_space<vmem>>, %arg3: memref<1x128xf32, #tpu.memory_space<vmem>>, %arg4: memref<1x128xf32, #tpu.memory_space<vmem>>, %arg5: memref<128x512xbf16, #tpu.memory_space<vmem>>, %arg6: memref<1x512xf32, #tpu.memory_space<vmem>>, %arg7: memref<512x128xbf16, #tpu.memory_space<vmem>>, %arg8: memref<1x128xf32, #tpu.memory_space<vmem>>, %arg9: memref<8x128xbf16, #tpu.memory_space<vmem>>) attributes {dimension_semantics = [#tpu.dimension_semantics<parallel>], iteration_bounds = array<i64: 2>, scalar_prefetch = 0 : i64, scratch_operands = 0 : i64, tpu.core_type = #tpu.core_type<tc>, window_params = [{transform_indices = @transform_0, window_bounds = array<i64: 8, 128>}, {pipeline_mode = #tpu.pipeline_mode<synchronous>, transform_indices = @transform_1, window_bounds = array<i64: 128, 128>}, {pipeline_mode = #tpu.pipeline_mode<synchronous>, transform_indices = @transform_2, window_bounds = array<i64: 1, 128>}, {pipeline_mode = #tpu.pipeline_mode<synchronous>, transform_indices = @transform_3, window_bounds = array<i64: 1, 128>}, {pipeline_mode = #tpu.pipeline_mode<synchronous>, transform_indices = @transform_4, window_bounds = array<i64: 128, 512>}, {pipeline_mode = #tpu.pipeline_mode<synchronous>, transform_indices = @transform_5, window_bounds = array<i64: 1, 512>}, {pipeline_mode = #tpu.pipeline_mode<synchronous>, transform_indices = @transform_6, window_bounds = array<i64: 512, 128>}, {pipeline_mode = #tpu.pipeline_mode<synchronous>, transform_indices = @transform_7, window_bounds = array<i64: 1, 128>}, {transform_indices = @transform_8, window_bounds = array<i64: 8, 128>}]} {
    %c0 = arith.constant 0 : index
    %c0_0 = arith.constant 0 : index
    %0 = vector.load %arg1[%c0, %c0_0] : memref<8x128xbf16, #tpu.memory_space<vmem>>, vector<8x128xbf16>
    %1 = arith.extf %0 : vector<8x128xbf16> to vector<8x128xf32>
    %c0_1 = arith.constant 0 : index
    %c0_2 = arith.constant 0 : index
    %2 = vector.load %arg2[%c0_1, %c0_2] : memref<128x128xf32, #tpu.memory_space<vmem>>, vector<128x128xf32>
    %c0_3 = arith.constant 0 : index
    %c0_4 = arith.constant 0 : index
    %3 = vector.load %arg3[%c0_3, %c0_4] : memref<1x128xf32, #tpu.memory_space<vmem>>, vector<1x128xf32>
    %c0_5 = arith.constant 0 : index
    %c0_6 = arith.constant 0 : index
    %4 = vector.load %arg4[%c0_5, %c0_6] : memref<1x128xf32, #tpu.memory_space<vmem>>, vector<1x128xf32>
    %cst = arith.constant dense<0.000000e+00> : vector<8x128xf32>
    %5 = tpu.matmul %1, %2, %cst {dimension_numbers = #tpu.dot_dimension_numbers<[1], [0], [0], [1], [0, 0, 1, 1], [], []>} : vector<8x128xf32>, vector<128x128xf32>, vector<8x128xf32> -> vector<8x128xf32>
    %6 = arith.subf %1, %5 : vector<8x128xf32>
    %7 = arith.mulf %6, %6 : vector<8x128xf32>
    %cst_7 = arith.constant dense<0.000000e+00> : vector<8x128xf32>
    %8 = tpu.matmul %7, %2, %cst_7 {dimension_numbers = #tpu.dot_dimension_numbers<[1], [0], [0], [1], [0, 0, 1, 1], [], []>} : vector<8x128xf32>, vector<128x128xf32>, vector<8x128xf32> -> vector<8x128xf32>
    %cst_8 = arith.constant 9.99999974E-6 : f32
    %9 = vector.broadcast %cst_8 : f32 to vector<8x128xf32>
    %10 = arith.addf %8, %9 : vector<8x128xf32>
    %11 = math.rsqrt %10 : vector<8x128xf32>
    %12 = arith.mulf %6, %11 : vector<8x128xf32>
    %13 = vector.broadcast %3 : vector<1x128xf32> to vector<8x128xf32>
    %14 = arith.mulf %12, %13 : vector<8x128xf32>
    %15 = vector.broadcast %4 : vector<1x128xf32> to vector<8x128xf32>
    %16 = arith.addf %14, %15 : vector<8x128xf32>
    %17 = arith.truncf %16 : vector<8x128xf32> to vector<8x128xbf16>
    %c0_9 = arith.constant 0 : index
    %c0_10 = arith.constant 0 : index
    %18 = vector.load %arg5[%c0_9, %c0_10] : memref<128x512xbf16, #tpu.memory_space<vmem>>, vector<128x512xbf16>
    %cst_11 = arith.constant dense<0.000000e+00> : vector<8x512xf32>
    %19 = tpu.matmul %17, %18, %cst_11 {dimension_numbers = #tpu.dot_dimension_numbers<[1], [0], [0], [1], [0, 0, 1, 1], [], []>} : vector<8x128xbf16>, vector<128x512xbf16>, vector<8x512xf32> -> vector<8x512xf32>
    %c0_12 = arith.constant 0 : index
    %c0_13 = arith.constant 0 : index
    %20 = vector.load %arg6[%c0_12, %c0_13] : memref<1x512xf32, #tpu.memory_space<vmem>>, vector<1x512xf32>
    %21 = vector.broadcast %20 : vector<1x512xf32> to vector<8x512xf32>
    %22 = arith.addf %19, %21 : vector<8x512xf32>
    %cst_14 = arith.constant 0.000000e+00 : f32
    %23 = vector.broadcast %cst_14 : f32 to vector<8x512xf32>
    %24 = arith.maximumf %22, %23 : vector<8x512xf32>
    %25 = arith.truncf %24 : vector<8x512xf32> to vector<8x512xbf16>
    %c0_15 = arith.constant 0 : index
    %c0_16 = arith.constant 0 : index
    %26 = vector.load %arg7[%c0_15, %c0_16] : memref<512x128xbf16, #tpu.memory_space<vmem>>, vector<512x128xbf16>
    %cst_17 = arith.constant dense<0.000000e+00> : vector<8x128xf32>
    %27 = tpu.matmul %25, %26, %cst_17 {dimension_numbers = #tpu.dot_dimension_numbers<[1], [0], [0], [1], [0, 0, 1, 1], [], []>} : vector<8x512xbf16>, vector<512x128xbf16>, vector<8x128xf32> -> vector<8x128xf32>
    %c0_18 = arith.constant 0 : index
    %c0_19 = arith.constant 0 : index
    %28 = vector.load %arg8[%c0_18, %c0_19] : memref<1x128xf32, #tpu.memory_space<vmem>>, vector<1x128xf32>
    %29 = vector.broadcast %28 : vector<1x128xf32> to vector<8x128xf32>
    %30 = arith.addf %27, %29 : vector<8x128xf32>
    %31 = arith.addf %1, %30 : vector<8x128xf32>
    %32 = arith.truncf %31 : vector<8x128xf32> to vector<8x128xbf16>
    %c0_20 = arith.constant 0 : index
    %c0_21 = arith.constant 0 : index
    %33 = vector.load %arg9[%c0_20, %c0_21] : memref<8x128xbf16, #tpu.memory_space<vmem>>, vector<8x128xbf16>
    tpu.vector_store %arg9[%c0_20, %c0_21], %32 {strides = array<i32>} : memref<8x128xbf16, #tpu.memory_space<vmem>>, vector<8x128xbf16>,
    return
  }
  func.func @transform_0(%arg0: i32) -> (i32, i32) {
    %c0_i32 = arith.constant 0 : i32
    %c0_i32_0 = arith.constant 0 : i32
    return %arg0, %c0_i32 : i32, i32
  }
  func.func @transform_1(%arg0: i32) -> (i32, i32) {
    %c0_i32 = arith.constant 0 : i32
    %c0_i32_0 = arith.constant 0 : i32
    %c0_i32_1 = arith.constant 0 : i32
    return %c0_i32, %c0_i32_0 : i32, i32
  }
  func.func @transform_2(%arg0: i32) -> (i32, i32) {
    %c0_i32 = arith.constant 0 : i32
    %c0_i32_0 = arith.constant 0 : i32
    %c0_i32_1 = arith.constant 0 : i32
    return %c0_i32, %c0_i32_0 : i32, i32
  }
  func.func @transform_3(%arg0: i32) -> (i32, i32) {
    %c0_i32 = arith.constant 0 : i32
    %c0_i32_0 = arith.constant 0 : i32
    %c0_i32_1 = arith.constant 0 : i32
    return %c0_i32, %c0_i32_0 : i32, i32
  }
  func.func @transform_4(%arg0: i32) -> (i32, i32) {
    %c0_i32 = arith.constant 0 : i32
    %c0_i32_0 = arith.constant 0 : i32
    %c0_i32_1 = arith.constant 0 : i32
    return %c0_i32, %c0_i32_0 : i32, i32
  }
  func.func @transform_5(%arg0: i32) -> (i32, i32) {
    %c0_i32 = arith.constant 0 : i32
    %c0_i32_0 = arith.constant 0 : i32
    %c0_i32_1 = arith.constant 0 : i32
    return %c0_i32, %c0_i32_0 : i32, i32
  }
  func.func @transform_6(%arg0: i32) -> (i32, i32) {
    %c0_i32 = arith.constant 0 : i32
    %c0_i32_0 = arith.constant 0 : i32
    %c0_i32_1 = arith.constant 0 : i32
    return %c0_i32, %c0_i32_0 : i32, i32
  }
  func.func @transform_7(%arg0: i32) -> (i32, i32) {
    %c0_i32 = arith.constant 0 : i32
    %c0_i32_0 = arith.constant 0 : i32
    %c0_i32_1 = arith.constant 0 : i32
    return %c0_i32, %c0_i32_0 : i32, i32
  }
  func.func @transform_8(%arg0: i32) -> (i32, i32) {
    %c0_i32 = arith.constant 0 : i32
    %c0_i32_0 = arith.constant 0 : i32
    return %arg0, %c0_i32 : i32, i32
  }
}

module attributes {stable_mosaic.version = 11 : i64} {
  func.func @_packed_recycle_kernel(%arg0: i32, %arg1: memref<8x128xbf16, #tpu.memory_space<vmem>>, %arg2: memref<8x128xbf16, #tpu.memory_space<vmem>>, %arg3: memref<8x128xbf16, #tpu.memory_space<vmem>>, %arg4: memref<128x128xf32, #tpu.memory_space<vmem>>, %arg5: memref<1x128xf32, #tpu.memory_space<vmem>>, %arg6: memref<1x128xf32, #tpu.memory_space<vmem>>, %arg7: memref<8x128xbf16, #tpu.memory_space<vmem>>) attributes {dimension_semantics = [#tpu.dimension_semantics<parallel>], iteration_bounds = array<i64: 2>, scalar_prefetch = 0 : i64, scratch_operands = 0 : i64, tpu.core_type = #tpu.core_type<tc>, window_params = [{transform_indices = @transform_0, window_bounds = array<i64: 8, 128>}, {transform_indices = @transform_1, window_bounds = array<i64: 8, 128>}, {transform_indices = @transform_2, window_bounds = array<i64: 8, 128>}, {pipeline_mode = #tpu.pipeline_mode<synchronous>, transform_indices = @transform_3, window_bounds = array<i64: 128, 128>}, {pipeline_mode = #tpu.pipeline_mode<synchronous>, transform_indices = @transform_4, window_bounds = array<i64: 1, 128>}, {pipeline_mode = #tpu.pipeline_mode<synchronous>, transform_indices = @transform_5, window_bounds = array<i64: 1, 128>}, {transform_indices = @transform_6, window_bounds = array<i64: 8, 128>}]} {
    %c0 = arith.constant 0 : index
    %c0_0 = arith.constant 0 : index
    %0 = vector.load %arg2[%c0, %c0_0] : memref<8x128xbf16, #tpu.memory_space<vmem>>, vector<8x128xbf16>
    %1 = arith.extf %0 : vector<8x128xbf16> to vector<8x128xf32>
    %c0_1 = arith.constant 0 : index
    %c0_2 = arith.constant 0 : index
    %2 = vector.load %arg4[%c0_1, %c0_2] : memref<128x128xf32, #tpu.memory_space<vmem>>, vector<128x128xf32>
    %c0_3 = arith.constant 0 : index
    %c0_4 = arith.constant 0 : index
    %3 = vector.load %arg5[%c0_3, %c0_4] : memref<1x128xf32, #tpu.memory_space<vmem>>, vector<1x128xf32>
    %c0_5 = arith.constant 0 : index
    %c0_6 = arith.constant 0 : index
    %4 = vector.load %arg6[%c0_5, %c0_6] : memref<1x128xf32, #tpu.memory_space<vmem>>, vector<1x128xf32>
    %cst = arith.constant dense<0.000000e+00> : vector<8x128xf32>
    %5 = tpu.matmul %1, %2, %cst {dimension_numbers = #tpu.dot_dimension_numbers<[1], [0], [0], [1], [0, 0, 1, 1], [], []>} : vector<8x128xf32>, vector<128x128xf32>, vector<8x128xf32> -> vector<8x128xf32>
    %6 = arith.subf %1, %5 : vector<8x128xf32>
    %7 = arith.mulf %6, %6 : vector<8x128xf32>
    %cst_7 = arith.constant dense<0.000000e+00> : vector<8x128xf32>
    %8 = tpu.matmul %7, %2, %cst_7 {dimension_numbers = #tpu.dot_dimension_numbers<[1], [0], [0], [1], [0, 0, 1, 1], [], []>} : vector<8x128xf32>, vector<128x128xf32>, vector<8x128xf32> -> vector<8x128xf32>
    %cst_8 = arith.constant 9.99999974E-6 : f32
    %9 = vector.broadcast %cst_8 : f32 to vector<8x128xf32>
    %10 = arith.addf %8, %9 : vector<8x128xf32>
    %11 = math.rsqrt %10 : vector<8x128xf32>
    %12 = arith.mulf %6, %11 : vector<8x128xf32>
    %13 = vector.broadcast %3 : vector<1x128xf32> to vector<8x128xf32>
    %14 = arith.mulf %12, %13 : vector<8x128xf32>
    %15 = vector.broadcast %4 : vector<1x128xf32> to vector<8x128xf32>
    %16 = arith.addf %14, %15 : vector<8x128xf32>
    %c0_9 = arith.constant 0 : index
    %c0_10 = arith.constant 0 : index
    %17 = vector.load %arg1[%c0_9, %c0_10] : memref<8x128xbf16, #tpu.memory_space<vmem>>, vector<8x128xbf16>
    %18 = arith.extf %17 : vector<8x128xbf16> to vector<8x128xf32>
    %19 = arith.addf %18, %16 : vector<8x128xf32>
    %c0_11 = arith.constant 0 : index
    %c0_12 = arith.constant 0 : index
    %20 = vector.load %arg3[%c0_11, %c0_12] : memref<8x128xbf16, #tpu.memory_space<vmem>>, vector<8x128xbf16>
    %21 = arith.extf %20 : vector<8x128xbf16> to vector<8x128xf32>
    %22 = arith.addf %19, %21 : vector<8x128xf32>
    %23 = arith.truncf %22 : vector<8x128xf32> to vector<8x128xbf16>
    %c0_13 = arith.constant 0 : index
    %c0_14 = arith.constant 0 : index
    %24 = vector.load %arg7[%c0_13, %c0_14] : memref<8x128xbf16, #tpu.memory_space<vmem>>, vector<8x128xbf16>
    tpu.vector_store %arg7[%c0_13, %c0_14], %23 {strides = array<i32>} : memref<8x128xbf16, #tpu.memory_space<vmem>>, vector<8x128xbf16>,
    return
  }
  func.func @transform_0(%arg0: i32) -> (i32, i32) {
    %c0_i32 = arith.constant 0 : i32
    %c0_i32_0 = arith.constant 0 : i32
    return %arg0, %c0_i32 : i32, i32
  }
  func.func @transform_1(%arg0: i32) -> (i32, i32) {
    %c0_i32 = arith.constant 0 : i32
    %c0_i32_0 = arith.constant 0 : i32
    return %arg0, %c0_i32 : i32, i32
  }
  func.func @transform_2(%arg0: i32) -> (i32, i32) {
    %c0_i32 = arith.constant 0 : i32
    %c0_i32_0 = arith.constant 0 : i32
    return %arg0, %c0_i32 : i32, i32
  }
  func.func @transform_3(%arg0: i32) -> (i32, i32) {
    %c0_i32 = arith.constant 0 : i32
    %c0_i32_0 = arith.constant 0 : i32
    %c0_i32_1 = arith.constant 0 : i32
    return %c0_i32, %c0_i32_0 : i32, i32
  }
  func.func @transform_4(%arg0: i32) -> (i32, i32) {
    %c0_i32 = arith.constant 0 : i32
    %c0_i32_0 = arith.constant 0 : i32
    %c0_i32_1 = arith.constant 0 : i32
    return %c0_i32, %c0_i32_0 : i32, i32
  }
  func.func @transform_5(%arg0: i32) -> (i32, i32) {
    %c0_i32 = arith.constant 0 : i32
    %c0_i32_0 = arith.constant 0 : i32
    %c0_i32_1 = arith.constant 0 : i32
    return %c0_i32, %c0_i32_0 : i32, i32
  }
  func.func @transform_6(%arg0: i32) -> (i32, i32) {
    %c0_i32 = arith.constant 0 : i32
    %c0_i32_0 = arith.constant 0 : i32
    return %arg0, %c0_i32 : i32, i32
  }
}

module attributes {stable_mosaic.version = 11 : i64} {
  func.func @_packed_ln_linear_kernel(%arg0: i32, %arg1: memref<8x128xbf16, #tpu.memory_space<vmem>>, %arg2: memref<128x128xf32, #tpu.memory_space<vmem>>, %arg3: memref<1x128xf32, #tpu.memory_space<vmem>>, %arg4: memref<1x128xf32, #tpu.memory_space<vmem>>, %arg5: memref<128x512xbf16, #tpu.memory_space<vmem>>, %arg6: memref<1x512xf32, #tpu.memory_space<vmem>>, %arg7: memref<8x512xf32, #tpu.memory_space<vmem>>) attributes {dimension_semantics = [#tpu.dimension_semantics<parallel>], iteration_bounds = array<i64: 2>, scalar_prefetch = 0 : i64, scratch_operands = 0 : i64, tpu.core_type = #tpu.core_type<tc>, window_params = [{transform_indices = @transform_0, window_bounds = array<i64: 8, 128>}, {pipeline_mode = #tpu.pipeline_mode<synchronous>, transform_indices = @transform_1, window_bounds = array<i64: 128, 128>}, {pipeline_mode = #tpu.pipeline_mode<synchronous>, transform_indices = @transform_2, window_bounds = array<i64: 1, 128>}, {pipeline_mode = #tpu.pipeline_mode<synchronous>, transform_indices = @transform_3, window_bounds = array<i64: 1, 128>}, {pipeline_mode = #tpu.pipeline_mode<synchronous>, transform_indices = @transform_4, window_bounds = array<i64: 128, 512>}, {pipeline_mode = #tpu.pipeline_mode<synchronous>, transform_indices = @transform_5, window_bounds = array<i64: 1, 512>}, {transform_indices = @transform_6, window_bounds = array<i64: 8, 512>}]} {
    %c0 = arith.constant 0 : index
    %c0_0 = arith.constant 0 : index
    %0 = vector.load %arg1[%c0, %c0_0] : memref<8x128xbf16, #tpu.memory_space<vmem>>, vector<8x128xbf16>
    %1 = arith.extf %0 : vector<8x128xbf16> to vector<8x128xf32>
    %c0_1 = arith.constant 0 : index
    %c0_2 = arith.constant 0 : index
    %2 = vector.load %arg2[%c0_1, %c0_2] : memref<128x128xf32, #tpu.memory_space<vmem>>, vector<128x128xf32>
    %c0_3 = arith.constant 0 : index
    %c0_4 = arith.constant 0 : index
    %3 = vector.load %arg3[%c0_3, %c0_4] : memref<1x128xf32, #tpu.memory_space<vmem>>, vector<1x128xf32>
    %c0_5 = arith.constant 0 : index
    %c0_6 = arith.constant 0 : index
    %4 = vector.load %arg4[%c0_5, %c0_6] : memref<1x128xf32, #tpu.memory_space<vmem>>, vector<1x128xf32>
    %cst = arith.constant dense<0.000000e+00> : vector<8x128xf32>
    %5 = tpu.matmul %1, %2, %cst {dimension_numbers = #tpu.dot_dimension_numbers<[1], [0], [0], [1], [0, 0, 1, 1], [], []>} : vector<8x128xf32>, vector<128x128xf32>, vector<8x128xf32> -> vector<8x128xf32>
    %6 = arith.subf %1, %5 : vector<8x128xf32>
    %7 = arith.mulf %6, %6 : vector<8x128xf32>
    %cst_7 = arith.constant dense<0.000000e+00> : vector<8x128xf32>
    %8 = tpu.matmul %7, %2, %cst_7 {dimension_numbers = #tpu.dot_dimension_numbers<[1], [0], [0], [1], [0, 0, 1, 1], [], []>} : vector<8x128xf32>, vector<128x128xf32>, vector<8x128xf32> -> vector<8x128xf32>
    %cst_8 = arith.constant 9.99999974E-6 : f32
    %9 = vector.broadcast %cst_8 : f32 to vector<8x128xf32>
    %10 = arith.addf %8, %9 : vector<8x128xf32>
    %11 = math.rsqrt %10 : vector<8x128xf32>
    %12 = arith.mulf %6, %11 : vector<8x128xf32>
    %13 = vector.broadcast %3 : vector<1x128xf32> to vector<8x128xf32>
    %14 = arith.mulf %12, %13 : vector<8x128xf32>
    %15 = vector.broadcast %4 : vector<1x128xf32> to vector<8x128xf32>
    %16 = arith.addf %14, %15 : vector<8x128xf32>
    %17 = arith.truncf %16 : vector<8x128xf32> to vector<8x128xbf16>
    %c0_9 = arith.constant 0 : index
    %c0_10 = arith.constant 0 : index
    %18 = vector.load %arg5[%c0_9, %c0_10] : memref<128x512xbf16, #tpu.memory_space<vmem>>, vector<128x512xbf16>
    %cst_11 = arith.constant dense<0.000000e+00> : vector<8x512xf32>
    %19 = tpu.matmul %17, %18, %cst_11 {dimension_numbers = #tpu.dot_dimension_numbers<[1], [0], [0], [1], [0, 0, 1, 1], [], []>} : vector<8x128xbf16>, vector<128x512xbf16>, vector<8x512xf32> -> vector<8x512xf32>
    %c0_12 = arith.constant 0 : index
    %c0_13 = arith.constant 0 : index
    %20 = vector.load %arg6[%c0_12, %c0_13] : memref<1x512xf32, #tpu.memory_space<vmem>>, vector<1x512xf32>
    %21 = vector.broadcast %20 : vector<1x512xf32> to vector<8x512xf32>
    %22 = arith.addf %19, %21 : vector<8x512xf32>
    %c0_14 = arith.constant 0 : index
    %c0_15 = arith.constant 0 : index
    %23 = vector.load %arg7[%c0_14, %c0_15] : memref<8x512xf32, #tpu.memory_space<vmem>>, vector<8x512xf32>
    tpu.vector_store %arg7[%c0_14, %c0_15], %22 {strides = array<i32>} : memref<8x512xf32, #tpu.memory_space<vmem>>, vector<8x512xf32>,
    return
  }
  func.func @transform_0(%arg0: i32) -> (i32, i32) {
    %c0_i32 = arith.constant 0 : i32
    %c0_i32_0 = arith.constant 0 : i32
    return %arg0, %c0_i32 : i32, i32
  }
  func.func @transform_1(%arg0: i32) -> (i32, i32) {
    %c0_i32 = arith.constant 0 : i32
    %c0_i32_0 = arith.constant 0 : i32
    %c0_i32_1 = arith.constant 0 : i32
    return %c0_i32, %c0_i32_0 : i32, i32
  }
  func.func @transform_2(%arg0: i32) -> (i32, i32) {
    %c0_i32 = arith.constant 0 : i32
    %c0_i32_0 = arith.constant 0 : i32
    %c0_i32_1 = arith.constant 0 : i32
    return %c0_i32, %c0_i32_0 : i32, i32
  }
  func.func @transform_3(%arg0: i32) -> (i32, i32) {
    %c0_i32 = arith.constant 0 : i32
    %c0_i32_0 = arith.constant 0 : i32
    %c0_i32_1 = arith.constant 0 : i32
    return %c0_i32, %c0_i32_0 : i32, i32
  }
  func.func @transform_4(%arg0: i32) -> (i32, i32) {
    %c0_i32 = arith.constant 0 : i32
    %c0_i32_0 = arith.constant 0 : i32
    %c0_i32_1 = arith.constant 0 : i32
    return %c0_i32, %c0_i32_0 : i32, i32
  }
  func.func @transform_5(%arg0: i32) -> (i32, i32) {
    %c0_i32 = arith.constant 0 : i32
    %c0_i32_0 = arith.constant 0 : i32
    %c0_i32_1 = arith.constant 0 : i32
    return %c0_i32, %c0_i32_0 : i32, i32
  }
  func.func @transform_6(%arg0: i32) -> (i32, i32) {
    %c0_i32 = arith.constant 0 : i32
    %c0_i32_0 = arith.constant 0 : i32
    return %arg0, %c0_i32 : i32, i32
  }
}

</mosaic_0001>

<bundles_post_ra>
// kernel: squeeze.8
= control target key start
LH: loop header
LB: loop body
LE: loop exit
PB: predicated region body
PF: predicated region fallthrough
CT: control target
= control target key end

     0   :  { %s36_s8 = smov 3  ;;  %s52_s9 = smov 96   ;;  %vm19_vm0 = vcmask 261120   ;;  %vm26_vm1 = vcmask 1048320   ;;  %vm33_vm2 = vcmask 785920   ;;  %vm40_vm3 = vcmask 523520   ;;  %s71_s0 = inlined_call_operand.vmem [shape: bf16[1,1,8,32], index: 0, kind: input, shape index: {}]   ;;  %s72_s1 = inlined_call_operand.vmem [shape: bf16[2,128], index: 1, kind: output, shape index: {}]  }
   0x1   :  { %v13_v0 = vld [vmem:[%s71_s0] sm:$0xf]  ;;  %s22_s0 = smov 3  ;;  %s53_s10 = smov 32  }
   0x2   :  { %v14_v1 = vunpack.c.l.bf16 %v13_v0  ;;  %s29_s11 = smov 3  ;;  %s54_s12 = smov 64  }
   0x3   :  { %s17_s13 = smov 3 }
   0x4   :  { %16 = vst [vmem:[#allocation1] sm:$0xff] %v14_v1 }
   0xb   :  { %v23_v2 = vld [vmem:[#allocation1 + $0x3] ss:$4 sm:%s22_s0]   ;;  %v37_v3 = vld [vmem:[#allocation1 + $0x1] ss:$4 sm:%s36_s8]   ;;  %v30_v4 = vld [vmem:[#allocation1 + $0x2] ss:$4 sm:%s29_s11]  }
   0xc   :  { %24 = vrot.lane.b32.xlu0 %v23_v2, %s52_s9  ;;  %38 = vrot.lane.b32.xlu1 %v37_v3, %s53_s10  ;;  %v18_v5 = vld [vmem:[#allocation1] ss:$4 sm:%s17_s13]  }
   0xd   :  { %20 = vst.msk [vmem:[#allocation0] sm:$0x3] %vm19_vm0, %v18_v5  }
  0x14   :  { %31 = vrot.lane.b32.xlu0 %v30_v4, %s54_s12 }
  0x7e   :  { %v25_v6 = vpop.permute.xlu0 %24   ;;  %v39_v7 = vpop.permute.xlu1 %38  }
  0x7f   :  { %27 = vst.msk [vmem:[#allocation0] sm:$0x3] %vm26_vm1, %v25_v6  }
  0x86   :  { %v32_v8 = vpop.permute.xlu0 %31  }
  0x87   :  { %34 = vst.msk [vmem:[#allocation0] sm:$0x3] %vm33_vm2, %v32_v8  }
  0x88   :  { %41 = vst.msk [vmem:[#allocation0] sm:$0x3] %vm40_vm3, %v39_v7  }
  0x8f   :  { %v44_v9 = vld [vmem:[#allocation0] sm:$0x3] }
  0x90   :  { %v45_v10 = vpack.c.bf16 0.0, %v44_v9 }
  0x92   :  { %48 = vst [vmem:[%s72_s1] sm:$0x1] %v45_v10 }

// kernel: _lambda_.29
= control target key start
LH: loop header
LB: loop body
LE: loop exit
PB: predicated region body
PF: predicated region fallthrough
CT: control target
= control target key end

     0   :  { %vm18_vm0 = vcmask 261120   ;;  %v70_v3 = vmov 32.0   ;;  %vm57_vm5 = vcmask 257024   ;;  %s105_s0 = inlined_call_operand.vmem [shape: bf16[8,32], index: 0, kind: input, shape index: {}]   ;;  %s106_s1 = inlined_call_operand.vmem [shape: f32[1,32], index: 1, kind: input, shape index: {}]   ;;  %s107_s2 = inlined_call_operand.vmem [shape: f32[1,32], index: 2, kind: input, shape index: {}]   ;;  %s108_s3 = inlined_call_operand.vmem [shape: bf16[8,32], index: 3, kind: output, shape index: {}]  }
   0x1   :  { %v14_v0 = vld [vmem:[%s105_s0] sm:$0xf]  ;;  %66 = vrcp.f32 %v70_v3 }
   0x2   :  { %v15_v1 = vunpack.c.l.bf16 %v14_v0  ;;  %v64_v24 = vld [vmem:[%s106_s1] ss:$0 sm:$0xff] }
   0x3   :  { %v65_v26 = vld [vmem:[%s107_s2] ss:$0 sm:$0xff] }
   0x4   :  { %v19_v2 = vsel %vm18_vm0, %v15_v1, 0.0 }
   0x5   :  { %20 = vadd.xlane.f32.xlu0 %v19_v2 }
   0x7   :  { %v67_v4 = vpop.eup %66 }
   0x8   :  { %v23_v5 = vmul.f32 32.0, %v67_v4  ;;  %vm27_vm1 = vweird.f32 %v67_v4 }
   0xa   :  { %v24_v6 = vsub.f32 1.0, %v23_v5 }
   0xc   :  { %v25_v7 = vmul.f32 %v67_v4, %v24_v6 }
   0xe   :  { %v26_v8 = vadd.f32 %v67_v4, %v25_v7 }
  0x10   :  { %v28_v9 = vsel %vm27_vm1, %v67_v4, %v26_v8 }
  0x78   :  { %v21_v10 = vpop.xlane.xlu0 %20 }
  0x79   :  { %v29_v11 = vmul.f32 %v28_v9, %v21_v10 }
  0x7b   :  { %v30_v12 = vsub.f32 %v15_v1, %v29_v11 }
  0x7d   :  { %v31_v13 = vmul.f32 %v30_v12, %v30_v12 }
  0x7f   :  { %v32_v14 = vsel %vm18_vm0, %v31_v13, 0.0 }
  0x80   :  { %33 = vadd.xlane.f32.xlu0 %v32_v14 }
  0xf3   :  { %v34_v15 = vpop.xlane.xlu0 %33 }
  0xf4   :  { %v35_v16 = vmul.f32 %v34_v15, %v28_v9 }
  0xf6   :  { %v36_v17 = vadd.f32 1e-05, %v35_v16 }
  0xf8   :  { %68 = vrsqrt.f32 %v36_v17  ;;  %vm43_vm3 = vweird.f32 %v36_v17 }
  0xfe   :  { %v69_v18 = vpop.eup %68 }
  0xff   :  { %v38_v19 = vmul.f32 %v69_v18, %v36_v17  ;;  %vm44_vm2 = vweird.f32 %v69_v18 }
 0x100   :  { %vm45_vm4 = vmor %vm43_vm3, %vm44_vm2 }
 0x101   :  { %v39_v20 = vmul.f32 %v69_v18, %v38_v19 }
 0x103   :  { %v40_v21 = vmul.f32 0.5, %v39_v20 }
 0x105   :  { %v41_v22 = vsub.f32 1.5, %v40_v21 }
 0x107   :  { %v42_v23 = vmul.f32 %v69_v18, %v41_v22 }
 0x109   :  { %v46_v25 = vsel %vm45_vm4, %v69_v18, %v42_v23 }
 0x10a   :  { %v47_v27 = vmul.f32 %v46_v25, %v30_v12 }
 0x10c   :  { %v51_v28 = vmul.f32 %v64_v24, %v47_v27 }
 0x10e   :  { %v55_v29 = vadd.f32 %v65_v26, %v51_v28 }
 0x110   :  { %v56_v30 = vpack.c.bf16 %v55_v29, %v55_v29 }
 0x112   :  { %58 = vst.msk [vmem:[%s108_s3] sm:$0xf] %vm57_vm5, %v56_v30 }

// kernel: _lambda_.26
= control target key start
LH: loop header
LB: loop body
LE: loop exit
PB: predicated region body
PF: predicated region fallthrough
CT: control target
= control target key end

     0   :  { %s359_s1 = inlined_call_operand.vmem [shape: f32[128,128], index: 1, kind: input, shape index: {}]   ;;  %s360_s0 = inlined_call_operand.vmem [shape: bf16[8,128], index: 0, kind: input, shape index: {}]   ;;  %s361_s4 = inlined_call_operand.vmem [shape: bf16[128,128], index: 4, kind: input, shape index: {}]   ;;  %s362_s2 = inlined_call_operand.vmem [shape: f32[1,128], index: 2, kind: input, shape index: {}]   ;;  %s363_s3 = inlined_call_operand.vmem [shape: f32[1,128], index: 3, kind: input, shape index: {}, may-alias: {3,5}]   ;;  %s364_s5 = inlined_call_operand.vmem [shape: f32[1,128], index: 5, kind: input, shape index: {}, may-alias: {3,5}]   ;;  %s365_s6 = inlined_call_operand.vmem [shape: bf16[8,128], index: 6, kind: output, shape index: {}]  }
   0x1   :  { %v40_v0 = vld [vmem:[%s359_s1 + $0x78] sm:$0xff]  ;;  %v39_v1 = vld [vmem:[%s359_s1 + $0x70] sm:$0xff]  ;;  %v38_v2 = vld [vmem:[%s359_s1 + $0x68] sm:$0xff] }
   0x2   :  { %43 = vmatpush.msra.mxu0 %v40_v0  ;;  %65 = vmatpush.msra.mxu1 %v40_v0  ;;  %v37_v3 = vld [vmem:[%s359_s1 + $0x60] sm:$0xff]  ;;  %v36_v4 = vld [vmem:[%s359_s1 + $0x58] sm:$0xff]  ;;  %v35_v5 = vld [vmem:[%s359_s1 + $0x50] sm:$0xff] }
   0x3   :  { %v34_v6 = vld [vmem:[%s359_s1 + $0x48] sm:$0xff]  ;;  %v33_v7 = vld [vmem:[%s359_s1 + $0x40] sm:$0xff]  ;;  %v32_v8 = vld [vmem:[%s359_s1 + $0x38] sm:$0xff] }
   0x4   :  { %44 = vmatpush.msra.mxu0 %v39_v1  ;;  %66 = vmatpush.msra.mxu1 %v39_v1  ;;  %v31_v9 = vld [vmem:[%s359_s1 + $0x30] sm:$0xff]  ;;  %v30_v10 = vld [vmem:[%s359_s1 + $0x28] sm:$0xff]  ;;  %v29_v11 = vld [vmem:[%s359_s1 + $0x20] sm:$0xff] }
   0x5   :  { %v28_v12 = vld [vmem:[%s359_s1 + $0x18] sm:$0xff]  ;;  %v27_v13 = vld [vmem:[%s359_s1 + $0x10] sm:$0xff]  ;;  %v23_v14 = vld [vmem:[%s360_s0] sm:$0xf] }
   0x6   :  { %45 = vmatpush.msra.mxu0 %v38_v2  ;;  %67 = vmatpush.msra.mxu1 %v38_v2  ;;  %v26_v15 = vld [vmem:[%s359_s1 + $0x8] sm:$0xff]  ;;  %v25_v16 = vld [vmem:[%s359_s1] sm:$0xff]  ;;  %v24_v17 = vunpack.c.l.bf16 %v23_v14  ;;  %v231_v18 = vld [vmem:[%s361_s4 + $0x38] sm:$0xff] }
   0x7   :  { %173 = vmatpush.bf16.msra.mxu2 %v231_v18  ;;  %v230_v22 = vld [vmem:[%s361_s4 + $0x30] sm:$0xff]  ;;  %v229_v23 = vld [vmem:[%s361_s4 + $0x28] sm:$0xff]  ;;  %v228_v24 = vld [vmem:[%s361_s4 + $0x20] sm:$0xff] }
   0x8   :  { %46 = vmatpush.msra.mxu0 %v37_v3  ;;  %68 = vmatpush.msra.mxu1 %v37_v3  ;;  %v227_v25 = vld [vmem:[%s361_s4 + $0x18] sm:$0xff]  ;;  %v226_v26 = vld [vmem:[%s361_s4 + $0x10] sm:$0xff]  ;;  %v225_v27 = vld [vmem:[%s361_s4 + $0x8] sm:$0xff] }
   0x9   :  { %v224_v28 = vld [vmem:[%s361_s4] sm:$0xff] }
   0xa   :  { %47 = vmatpush.msra.mxu0 %v36_v4  ;;  %69 = vmatpush.msra.mxu1 %v36_v4  ;;  %v232_v37 = vld [vmem:[%s362_s2] ss:$0 sm:$0xff] }
   0xb   :  { %174 = vmatpush.bf16.msra.mxu2 %v230_v22  ;;  %v233_v40 = vld [vmem:[%s363_s3] ss:$0 sm:$0xff] }
   0xc   :  { %48 = vmatpush.msra.mxu0 %v35_v5  ;;  %70 = vmatpush.msra.mxu1 %v35_v5  ;;  %v234_v44 = vld [vmem:[%s364_s5] ss:$0 sm:$0xff] }
   0xe   :  { %49 = vmatpush.msra.mxu0 %v34_v6  ;;  %71 = vmatpush.msra.mxu1 %v34_v6 }
   0xf   :  { %175 = vmatpush.bf16.msra.mxu2 %v229_v23 }
  0x10   :  { %50 = vmatpush.msra.mxu0 %v33_v7  ;;  %72 = vmatpush.msra.mxu1 %v33_v7 }
  0x12   :  { %51 = vmatpush.msra.mxu0 %v32_v8  ;;  %73 = vmatpush.msra.mxu1 %v32_v8 }
  0x13   :  { %176 = vmatpush.bf16.msra.mxu2 %v228_v24 }
  0x14   :  { %52 = vmatpush.msra.mxu0 %v31_v9  ;;  %74 = vmatpush.msra.mxu1 %v31_v9 }
  0x16   :  { %53 = vmatpush.msra.mxu0 %v30_v10  ;;  %75 = vmatpush.msra.mxu1 %v30_v10 }
  0x17   :  { %177 = vmatpush.bf16.msra.mxu2 %v227_v25 }
  0x18   :  { %54 = vmatpush.msra.mxu0 %v29_v11  ;;  %76 = vmatpush.msra.mxu1 %v29_v11 }
  0x1a   :  { %55 = vmatpush.msra.mxu0 %v28_v12  ;;  %77 = vmatpush.msra.mxu1 %v28_v12 }
  0x1b   :  { %178 = vmatpush.bf16.msra.mxu2 %v226_v26 }
  0x1c   :  { %56 = vmatpush.msra.mxu0 %v27_v13  ;;  %78 = vmatpush.msra.mxu1 %v27_v13 }
  0x1e   :  { %57 = vmatpush.msra.mxu0 %v26_v15  ;;  %79 = vmatpush.msra.mxu1 %v26_v15 }
  0x1f   :  { %179 = vmatpush.bf16.msra.mxu2 %v225_v27 }
  0x20   :  { %58 = vmatpush.msra.mxu0 %v25_v16  ;;  %80 = vmatpush.msra.mxu1 %v25_v16 }
  0x21   :  { %59 = vmatmul.f32.vlgmr.msra.gmra.mxu0 %v24_v17 }
  0x23   :  { %180 = vmatpush.bf16.msra.mxu2 %v224_v28 }
  0x9e   :  { %v60_v19 = vpop.f32.mrf.mxu0 }
  0x9f   :  { %v63_v20 = vsub.f32 %v24_v17, %v60_v19 }
  0xa1   :  { %v64_v21 = vmul.f32 %v63_v20, %v63_v20 }
  0xa3   :  { %81 = vmatmul.f32.vlgmr.msra.gmra.mxu1 %v64_v21 }
 0x120   :  { %v82_v29 = vpop.f32.mrf.mxu1 }
 0x121   :  { %v83_v30 = vadd.f32 1e-05, %v82_v29 }
 0x123   :  { %235 = vrsqrt.f32 %v83_v30  ;;  %vm91_vm1 = vweird.f32 %v83_v30 }
 0x129   :  { %v236_v31 = vpop.eup %235 }
 0x12a   :  { %v86_v32 = vmul.f32 %v236_v31, %v83_v30  ;;  %vm92_vm0 = vweird.f32 %v236_v31 }
 0x12b   :  { %vm93_vm2 = vmor %vm91_vm1, %vm92_vm0 }
 0x12c   :  { %v87_v33 = vmul.f32 %v236_v31, %v86_v32 }
 0x12e   :  { %v88_v34 = vmul.f32 0.5, %v87_v33 }
 0x130   :  { %v89_v35 = vsub.f32 1.5, %v88_v34 }
 0x132   :  { %v90_v36 = vmul.f32 %v236_v31, %v89_v35 }
 0x134   :  { %v94_v38 = vsel %vm93_vm2, %v236_v31, %v90_v36 }
 0x135   :  { %v95_v39 = vmul.f32 %v94_v38, %v63_v20 }
 0x137   :  { %v99_v41 = vmul.f32 %v232_v37, %v95_v39 }
 0x139   :  { %v103_v42 = vadd.f32 %v233_v40, %v99_v41 }
 0x13b   :  { %v104_v43 = vpack.c.bf16 %v103_v42, %v103_v42 }
 0x13d   :  { %181 = vmatmul.bf16.vlgmr.msra.gmra.mxu2 %v104_v43 }
 0x1c0   :  { %v182_v45 = vpop.f32.mrf.mxu2 }
 0x1c1   :  { %v183_v46 = vadd.f32 %v234_v44, %v182_v45 }
 0x1c3   :  { %v186_v47 = vpack.c.bf16 %v183_v46, %v183_v46 }
 0x1c5   :  { %187 = vst [vmem:[%s365_s6] sm:$0xf] %v186_v47 }
 0x1c8   :  { %v184_v48 = vpop.f32.mrf.mxu2 }

// kernel: _lambda_.20
= control target key start
LH: loop header
LB: loop body
LE: loop exit
PB: predicated region body
PF: predicated region fallthrough
CT: control target
= control target key end

     0   :  { %19 = vsyncpa [#allocation3], 0  ;;  %s2495_s0 = inlined_call_operand.vmem [shape: bf16[8,128], index: 0, kind: input, shape index: {}, may-alias: {0,12}]   ;;  %s2496_s1 = inlined_call_operand.vmem [shape: f32[128,128], index: 1, kind: input, shape index: {}]   ;;  %s2497_s2 = inlined_call_operand.vmem [shape: f32[1,128], index: 2, kind: input, shape index: {}, may-alias: {2,8}]   ;;  %s2498_s3 = inlined_call_operand.vmem [shape: f32[1,128], index: 3, kind: input, shape index: {}, may-alias: {3,7,9}]   ;;  %s2499_s4 = inlined_call_operand.hbm [shape: bf16[128,512], index: 4, kind: input, shape index: {}]   ;;  %s2500_s5 = inlined_call_operand.vmem [shape: f32[1,512], index: 5, kind: input, shape index: {}]   ;;  %s2501_s6 = inlined_call_operand.hbm [shape: bf16[512,128], index: 6, kind: input, shape index: {}]   ;;  %s2502_s7 = inlined_call_operand.vmem [shape: f32[1,128], index: 7, kind: input, shape index: {}, may-alias: {3,7,9}]   ;;  %s2503_s8 = inlined_call_operand.vmem [shape: f32[1,128], index: 8, kind: input, shape index: {}, may-alias: {2,8}]   ;;  %s2504_s9 = inlined_call_operand.vmem [shape: f32[1,128], index: 9, kind: input, shape index: {}, may-alias: {3,7,9}]   ;;  %s2505_s10 = inlined_call_operand.hbm [shape: bf16[128,1056], index: 10, kind: input, shape index: {}]   ;;  %s2506_s11 = inlined_call_operand.vmem [shape: f32[1,1056], index: 11, kind: input, shape index: {}]   ;;  %s2507_s12 = inlined_call_operand.vmem [shape: bf16[8,128], index: 12, kind: output, shape index: {0}, may-alias: {0,12}]   ;;  %s2508_s13 = inlined_call_operand.vmem [shape: bf16[8,1056], index: 13, kind: output, shape index: {1}]  }
   0x1   :  { %20 = vsyncpa [#allocation5], 0  ;;  %s48_s27 = sshll.u32 %s2501_s6, 4  ;;  %s2197_s28 = smov [#allocation4]   ;;  %s49_s27 = int_to_ptr.hbm [resolvable:$true] %s48_s27 }
   0x2   :  { %s50_s29 = sshll.u32 %s2197_s28, 4  ;;  %s33_s15 = sshll.u32 %s2499_s4, 4  ;;  %s51_s29 = int_to_ptr.vmem [resolvable:$true] %s50_s29  ;;  %s34_s15 = int_to_ptr.hbm [resolvable:$true] %s33_s15 }
   0x3   :  { %s2198_s16 = smov 64   ;;  %s2199_s17 = smov 4  }
   0x4   :  { %56 = dma.hbm_to_vmem [thread:$0]  %s49_s27, 4096, %s51_s29, [#allocation5], %s2198_s16, %s2198_s16, %s2199_s17  }
   0x5   :  { %s2200_s18 = smov [#allocation2]   ;;  %s2201_s20 = smov 256  }
   0x6   :  { %s35_s19 = sshll.u32 %s2200_s18, 4  ;;  %s2202_s21 = smov 16   ;;  %s36_s19 = int_to_ptr.vmem [resolvable:$true] %s35_s19 }
   0x7   :  { %41 = dma.hbm_to_vmem [thread:$0]  %s34_s15, 4096, %s36_s19, [#allocation3], %s2201_s20, %s2201_s20, %s2202_s21  }
   0x8   :  { %s67_s23 = sshll.u32 %s2505_s10, 4  ;;  %s2203_s24 = smov [#allocation6]   ;;  %s68_s23 = int_to_ptr.hbm [resolvable:$true] %s67_s23 }
   0x9   :  { %s69_s25 = sshll.u32 %s2203_s24, 4  ;;  %s2204_s26 = smov 576   ;;  %s70_s25 = int_to_ptr.vmem [resolvable:$true] %s69_s25 }
   0xa   :  { %s2205_s4 = smov 36  }
   0xb   :  { %75 = dma.hbm_to_vmem [thread:$0]  %s68_s23, 9216, %s70_s25, [#allocation5], %s2204_s26, %s2204_s26, %s2205_s4  }
   0xc   :  { %2193 = dma.done.wait [#allocation3], 4096  }
   0xd   :  { %2194 = vsyncadd [#allocation3], 4294963200 }
   0xe   :  { %2195 = dma.done.wait [#allocation5], 13312  }
   0xf   :  { %2196 = vsyncadd [#allocation5], 4294953984  ;;  %v2288_v0 = vld [vmem:[%s2496_s1 + $0x78] sm:$0xff]  ;;  %v2293_v1 = vld [vmem:[%s2496_s1 + $0x70] sm:$0xff]  ;;  %vm1410_vm6 = vcmask 257024  }
  0x10   :  { %110 = vmatpush.msra.mxu0 %v2288_v0  ;;  %132 = vmatpush.msra.mxu1 %v2288_v0  ;;  %v2300_v2 = vld [vmem:[%s2496_s1 + $0x68] sm:$0xff]  ;;  %v2307_v3 = vld [vmem:[%s2496_s1 + $0x60] sm:$0xff]  ;;  %v2313_v4 = vld [vmem:[%s2496_s1 + $0x58] sm:$0xff] }
  0x11   :  { %v2321_v5 = vld [vmem:[%s2496_s1 + $0x50] sm:$0xff]  ;;  %v2328_v6 = vld [vmem:[%s2496_s1 + $0x48] sm:$0xff]  ;;  %v2335_v7 = vld [vmem:[%s2496_s1 + $0x40] sm:$0xff] }
  0x12   :  { %111 = vmatpush.msra.mxu0 %v2293_v1  ;;  %133 = vmatpush.msra.mxu1 %v2293_v1  ;;  %v2342_v8 = vld [vmem:[%s2496_s1 + $0x38] sm:$0xff]  ;;  %v2349_v9 = vld [vmem:[%s2496_s1 + $0x30] sm:$0xff]  ;;  %v2356_v10 = vld [vmem:[%s2496_s1 + $0x28] sm:$0xff] }
  0x13   :  { %v2363_v11 = vld [vmem:[%s2496_s1 + $0x20] sm:$0xff]  ;;  %v2370_v12 = vld [vmem:[%s2496_s1 + $0x18] sm:$0xff]  ;;  %v2377_v13 = vld [vmem:[%s2496_s1 + $0x10] sm:$0xff] }
  0x14   :  { %112 = vmatpush.msra.mxu0 %v2300_v2  ;;  %134 = vmatpush.msra.mxu1 %v2300_v2  ;;  %v90_v14 = vld [vmem:[%s2495_s0] sm:$0xf]  ;;  %v2387_v15 = vld [vmem:[%s2496_s1 + $0x8] sm:$0xff]  ;;  %v1996_v19 = vld [vmem:[#allocation2 + $0xec] sm:$0xf0] }
  0x15   :  { %v2394_v16 = vld [vmem:[%s2496_s1] sm:$0xff]  ;;  %v2396_v17 = vunpack.c.l.bf16 %v90_v14  ;;  %v1538_v22 = vld [vmem:[#allocation2 + $0xf0] sm:$0xf0]  ;;  %v1544_v23 = vld [vmem:[#allocation2 + $0xe8] sm:$0xf] }
  0x16   :  { %113 = vmatpush.msra.mxu0 %v2307_v3  ;;  %135 = vmatpush.msra.mxu1 %v2307_v3  ;;  %v1536_v18 = vld [vmem:[#allocation2 + $0xe0] sm:$0xf]  ;;  %v1994_v20 = vld [vmem:[#allocation2 + $0xe4] sm:$0xf]  ;;  %v1997_v24 = vld [vmem:[#allocation2 + $0xf4] sm:$0xf0] }
  0x17   :  { %v1537_v21 = vor.u32 %v1996_v19, %v1536_v18  ;;  %v1541_v25 = vor.u32 %v1994_v20, %v1538_v22  ;;  %v1545_v26 = vor.u32 %v1997_v24, %v1544_v23  ;;  %v1995_v27 = vld [vmem:[#allocation2 + $0xec] sm:$0xf]  ;;  %v1546_v28 = vld [vmem:[#allocation2 + $0xf8] sm:$0xf0]  ;;  %v1520_v33 = vld [vmem:[#allocation2 + $0xc0] sm:$0xf] }
  0x18   :  { %114 = vmatpush.msra.mxu0 %v2313_v4  ;;  %136 = vmatpush.msra.mxu1 %v2313_v4  ;;  %v1549_v29 = vor.u32 %v1995_v27, %v1546_v28  ;;  %v1992_v34 = vld [vmem:[#allocation2 + $0xcc] sm:$0xf0]  ;;  %v1990_v35 = vld [vmem:[#allocation2 + $0xc4] sm:$0xf]  ;;  %v1522_v37 = vld [vmem:[#allocation2 + $0xd0] sm:$0xf0] }
  0x19   :  { %374 = vmatpush.bf16.msra.mxu2 %v1537_v21  ;;  %387 = vmatpush.bf16.msra.mxu3 %v1541_v25  ;;  %v1521_v36 = vor.u32 %v1992_v34, %v1520_v33  ;;  %v1528_v38 = vld [vmem:[#allocation2 + $0xc8] sm:$0xf]  ;;  %v1993_v39 = vld [vmem:[#allocation2 + $0xd4] sm:$0xf0]  ;;  %v1525_v40 = vor.u32 %v1990_v35, %v1522_v37  ;;  %v1991_v42 = vld [vmem:[#allocation2 + $0xcc] sm:$0xf] }
  0x1a   :  { %115 = vmatpush.msra.mxu0 %v2321_v5  ;;  %137 = vmatpush.msra.mxu1 %v2321_v5  ;;  %v1529_v41 = vor.u32 %v1993_v39, %v1528_v38  ;;  %v1530_v43 = vld [vmem:[#allocation2 + $0xd8] sm:$0xf0]  ;;  %v1504_v45 = vld [vmem:[#allocation2 + $0xa0] sm:$0xf]  ;;  %v1988_v46 = vld [vmem:[#allocation2 + $0xac] sm:$0xf0] }
  0x1b   :  { %v1533_v44 = vor.u32 %v1991_v42, %v1530_v43  ;;  %v1986_v47 = vld [vmem:[#allocation2 + $0xa4] sm:$0xf]  ;;  %v1505_v48 = vor.u32 %v1988_v46, %v1504_v45  ;;  %v1506_v49 = vld [vmem:[#allocation2 + $0xb0] sm:$0xf0]  ;;  %v1512_v50 = vld [vmem:[#allocation2 + $0xa8] sm:$0xf] }
  0x1c   :  { %116 = vmatpush.msra.mxu0 %v2328_v6  ;;  %138 = vmatpush.msra.mxu1 %v2328_v6  ;;  %v1989_v51 = vld [vmem:[#allocation2 + $0xb4] sm:$0xf0]  ;;  %v1509_v52 = vor.u32 %v1986_v47, %v1506_v49  ;;  %v1987_v54 = vld [vmem:[#allocation2 + $0xac] sm:$0xf]  ;;  %v1514_v55 = vld [vmem:[#allocation2 + $0xb8] sm:$0xf0] }
  0x1d   :  { %375 = vmatpush.bf16.msra.mxu2 %v1521_v36  ;;  %388 = vmatpush.bf16.msra.mxu3 %v1525_v40  ;;  %v1513_v53 = vor.u32 %v1989_v51, %v1512_v50  ;;  %v1517_v56 = vor.u32 %v1987_v54, %v1514_v55  ;;  %v1488_v57 = vld [vmem:[#allocation2 + $0x80] sm:$0xf]  ;;  %v1984_v58 = vld [vmem:[#allocation2 + $0x8c] sm:$0xf0]  ;;  %v1982_v59 = vld [vmem:[#allocation2 + $0x84] sm:$0xf] }
  0x1e   :  { %117 = vmatpush.msra.mxu0 %v2335_v7  ;;  %139 = vmatpush.msra.mxu1 %v2335_v7  ;;  %v1489_v60 = vor.u32 %v1984_v58, %v1488_v57  ;;  %v1490_v61 = vld [vmem:[#allocation2 + $0x90] sm:$0xf0]  ;;  %v1496_v62 = vld [vmem:[#allocation2 + $0x88] sm:$0xf]  ;;  %v1985_v63 = vld [vmem:[#allocation2 + $0x94] sm:$0xf0] }
  0x1f   :  { %v1493_v14 = vor.u32 %v1982_v59, %v1490_v61  ;;  %v1497_v18 = vor.u32 %v1985_v63, %v1496_v62  ;;  %v1983_v19 = vld [vmem:[#allocation2 + $0x8c] sm:$0xf]  ;;  %v1498_v20 = vld [vmem:[#allocation2 + $0x98] sm:$0xf0]  ;;  %v1472_v22 = vld [vmem:[#allocation2 + $0x60] sm:$0xf] }
  0x20   :  { %118 = vmatpush.msra.mxu0 %v2342_v8  ;;  %140 = vmatpush.msra.mxu1 %v2342_v8  ;;  %v1501_v21 = vor.u32 %v1983_v19, %v1498_v20  ;;  %v1980_v23 = vld [vmem:[#allocation2 + $0x6c] sm:$0xf0]  ;;  %v1978_v24 = vld [vmem:[#allocation2 + $0x64] sm:$0xf]  ;;  %v1480_v27 = vld [vmem:[#allocation2 + $0x68] sm:$0xf] }
  0x21   :  { %376 = vmatpush.bf16.msra.mxu2 %v1505_v48  ;;  %389 = vmatpush.bf16.msra.mxu3 %v1509_v52  ;;  %v1473_v25 = vor.u32 %v1980_v23, %v1472_v22  ;;  %v1981_v28 = vld [vmem:[#allocation2 + $0x74] sm:$0xf0]  ;;  %v1482_v33 = vld [vmem:[#allocation2 + $0x78] sm:$0xf0]  ;;  %v1456_v35 = vld [vmem:[#allocation2 + $0x40] sm:$0xf] }
  0x22   :  { %119 = vmatpush.msra.mxu0 %v2349_v9  ;;  %141 = vmatpush.msra.mxu1 %v2349_v9  ;;  %v1976_v36 = vld [vmem:[#allocation2 + $0x4c] sm:$0xf0]  ;;  %v1974_v37 = vld [vmem:[#allocation2 + $0x44] sm:$0xf]  ;;  %v1458_v39 = vld [vmem:[#allocation2 + $0x50] sm:$0xf0] }
  0x23   :  { %v1457_v38 = vor.u32 %v1976_v36, %v1456_v35  ;;  %v1464_v40 = vld [vmem:[#allocation2 + $0x48] sm:$0xf]  ;;  %v1461_v42 = vor.u32 %v1974_v37, %v1458_v39  ;;  %v1466_v45 = vld [vmem:[#allocation2 + $0x58] sm:$0xf0]  ;;  %v1440_v47 = vld [vmem:[#allocation2 + $0x20] sm:$0xf] }
  0x24   :  { %120 = vmatpush.msra.mxu0 %v2356_v10  ;;  %142 = vmatpush.msra.mxu1 %v2356_v10  ;;  %v1972_v48 = vld [vmem:[#allocation2 + $0x2c] sm:$0xf0]  ;;  %v1970_v49 = vld [vmem:[#allocation2 + $0x24] sm:$0xf]  ;;  %v1442_v51 = vld [vmem:[#allocation2 + $0x30] sm:$0xf0] }
  0x25   :  { %377 = vmatpush.bf16.msra.mxu2 %v1489_v60  ;;  %390 = vmatpush.bf16.msra.mxu3 %v1493_v14  ;;  %v1441_v50 = vor.u32 %v1972_v48, %v1440_v47  ;;  %v1448_v52 = vld [vmem:[#allocation2 + $0x28] sm:$0xf]  ;;  %v1445_v54 = vor.u32 %v1970_v49, %v1442_v51  ;;  %v1450_v57 = vld [vmem:[#allocation2 + $0x38] sm:$0xf0]  ;;  %v1424_v58 = vld [vmem:[#allocation2] sm:$0xf] }
  0x26   :  { %121 = vmatpush.msra.mxu0 %v2363_v11  ;;  %143 = vmatpush.msra.mxu1 %v2363_v11  ;;  %v1968_v60 = vld [vmem:[#allocation2 + $0xc] sm:$0xf0]  ;;  %v1966_v61 = vld [vmem:[#allocation2 + $0x4] sm:$0xf]  ;;  %v1426_v62 = vld [vmem:[#allocation2 + $0x10] sm:$0xf0] }
  0x27   :  { %v1425_v63 = vor.u32 %v1968_v60, %v1424_v58  ;;  %v1429_v14 = vor.u32 %v1966_v61, %v1426_v62  ;;  %v1969_v19 = vld [vmem:[#allocation2 + $0x14] sm:$0xf0]  ;;  %v1967_v20 = vld [vmem:[#allocation2 + $0xc] sm:$0xf]  ;;  %v1434_v22 = vld [vmem:[#allocation2 + $0x18] sm:$0xf0] }
  0x28   :  { %122 = vmatpush.msra.mxu0 %v2370_v12  ;;  %144 = vmatpush.msra.mxu1 %v2370_v12  ;;  %v1437_v23 = vor.u32 %v1967_v20, %v1434_v22  ;;  %v2019_v35 = vld [vmem:[#allocation4 + $0xa8] sm:$0xff]  ;;  %v2018_v39 = vld [vmem:[#allocation4 + $0xa0] sm:$0xff]  ;;  %v2025_v47 = vld [vmem:[#allocation4 + $0xd8] sm:$0xff] }
  0x29   :  { %378 = vmatpush.bf16.msra.mxu2 %v1473_v25  ;;  %v2029_v25 = vld [vmem:[#allocation4 + $0xf8] sm:$0xff]  ;;  %v2027_v36 = vld [vmem:[#allocation4 + $0xe8] sm:$0xff]  ;;  %v2112_v58 = vld [vmem:[%s2498_s3] ss:$0 sm:$0xff] }
  0x2a   :  { %123 = vmatpush.msra.mxu0 %v2377_v13  ;;  %145 = vmatpush.msra.mxu1 %v2377_v13  ;;  %v2003_v37 = vld [vmem:[#allocation4 + $0x28] sm:$0xff]  ;;  %v2001_v48 = vld [vmem:[#allocation4 + $0x18] sm:$0xff]  ;;  %v1998_v22 = vld [vmem:[#allocation4] sm:$0xff] }
  0x2b   :  { %v2009_v49 = vld [vmem:[#allocation4 + $0x58] sm:$0xff]  ;;  %v2015_v62 = vld [vmem:[#allocation4 + $0x88] sm:$0xff] }
  0x2c   :  { %124 = vmatpush.msra.mxu0 %v2387_v15  ;;  %146 = vmatpush.msra.mxu1 %v2387_v15  ;;  %v1999_v20 = vld [vmem:[#allocation4 + $0x8] sm:$0xff] }
  0x2d   :  { %379 = vmatpush.bf16.msra.mxu2 %v1457_v38  ;;  %v2011_v38 = vld [vmem:[#allocation4 + $0x68] sm:$0xff] }
  0x2e   :  { %125 = vmatpush.msra.mxu0 %v2394_v16  ;;  %147 = vmatpush.msra.mxu1 %v2394_v16 }
  0x2f   :  { %126 = vmatmul.f32.vlgmr.msra.gmra.mxu0 %v2396_v17 }
  0x30   :  { %400 = vmatpush.bf16.msrb.mxu0 %v1545_v26  ;;  %413 = vmatpush.bf16.msrb.mxu1 %v1549_v29  ;;  %v1474_v26 = vld [vmem:[#allocation2 + $0x70] sm:$0xf0] }
  0x31   :  { %v1477_v29 = vor.u32 %v1978_v24, %v1474_v26  ;;  %380 = vmatpush.bf16.msra.mxu2 %v1441_v50  ;;  %v2021_v24 = vld [vmem:[#allocation4 + $0xb8] sm:$0xff] }
  0x32   :  { %v2005_v26 = vld [vmem:[#allocation4 + $0x38] sm:$0xff] }
  0x33   :  { %391 = vmatpush.bf16.msra.mxu3 %v1477_v29  ;;  %v2020_v29 = vld [vmem:[#allocation4 + $0xb0] sm:$0xff] }
  0x34   :  { %401 = vmatpush.bf16.msrb.mxu0 %v1529_v41  ;;  %414 = vmatpush.bf16.msrb.mxu1 %v1533_v44  ;;  %v1977_v41 = vld [vmem:[#allocation2 + $0x54] sm:$0xf0]  ;;  %v1975_v44 = vld [vmem:[#allocation2 + $0x4c] sm:$0xf] }
  0x35   :  { %v1465_v43 = vor.u32 %v1977_v41, %v1464_v40  ;;  %v1469_v46 = vor.u32 %v1975_v44, %v1466_v45  ;;  %381 = vmatpush.bf16.msra.mxu2 %v1425_v63  ;;  %v2026_v40 = vld [vmem:[#allocation4 + $0xe0] sm:$0xff]  ;;  %v2023_v63 = vld [vmem:[#allocation4 + $0xc8] sm:$0xff] }
  0x37   :  { %392 = vmatpush.bf16.msra.mxu3 %v1461_v42  ;;  %v2002_v42 = vld [vmem:[#allocation4 + $0x20] sm:$0xff] }
  0x38   :  { %402 = vmatpush.bf16.msrb.mxu0 %v1513_v53  ;;  %415 = vmatpush.bf16.msrb.mxu1 %v1517_v56  ;;  %v1973_v53 = vld [vmem:[#allocation2 + $0x34] sm:$0xf0]  ;;  %v1971_v56 = vld [vmem:[#allocation2 + $0x2c] sm:$0xf] }
  0x39   :  { %v1449_v55 = vor.u32 %v1973_v53, %v1448_v52  ;;  %v1453_v59 = vor.u32 %v1971_v56, %v1450_v57  ;;  %690 = vmatpush.bf16.msrb.mxu2 %v2005_v26  ;;  %v2016_v52 = vld [vmem:[#allocation4 + $0x90] sm:$0xff] }
  0x3a   :  { %v2024_v53 = vld [vmem:[#allocation4 + $0xd0] sm:$0xff] }
  0x3b   :  { %393 = vmatpush.bf16.msra.mxu3 %v1445_v54 }
  0x3c   :  { %403 = vmatpush.bf16.msrb.mxu0 %v1497_v18  ;;  %416 = vmatpush.bf16.msrb.mxu1 %v1501_v21  ;;  %v1432_v18 = vld [vmem:[#allocation2 + $0x8] sm:$0xf] }
  0x3d   :  { %v1433_v21 = vor.u32 %v1969_v19, %v1432_v18  ;;  %v2008_v18 = vld [vmem:[#allocation4 + $0x50] sm:$0xff]  ;;  %v2022_v19 = vld [vmem:[#allocation4 + $0xc0] sm:$0xff] }
  0x3f   :  { %394 = vmatpush.bf16.msra.mxu3 %v1429_v14  ;;  %v2000_v14 = vld [vmem:[#allocation4 + $0x10] sm:$0xff] }
  0xac   :  { %v127_v30 = vpop.f32.mrf.mxu0 }
  0xad   :  { %v2404_v31 = vsub.f32 %v2396_v17, %v127_v30  ;;  %v1481_v30 = vor.u32 %v1981_v28, %v1480_v27  ;;  %v2013_v27 = vld [vmem:[#allocation4 + $0x78] sm:$0xff] }
  0xae   :  { %703 = vmatpush.bf16.msrb.mxu3 %v2013_v27 }
  0xaf   :  { %v131_v32 = vmul.f32 %v2404_v31, %v2404_v31  ;;  %404 = vmatpush.bf16.msrb.mxu0 %v1481_v30  ;;  %v2028_v30 = vld [vmem:[#allocation4 + $0xf0] sm:$0xff] }
  0xb1   :  { %148 = vmatmul.f32.vlgmr.msra.gmra.mxu1 %v131_v32  ;;  %v1979_v32 = vld [vmem:[#allocation2 + $0x6c] sm:$0xf] }
  0xb2   :  { %v1485_v34 = vor.u32 %v1979_v32, %v1482_v33  ;;  %v2004_v33 = vld [vmem:[#allocation4 + $0x30] sm:$0xff] }
  0xb3   :  { %405 = vmatpush.bf16.msrb.mxu0 %v1465_v43  ;;  %691 = vmatpush.bf16.msrb.mxu2 %v2004_v33  ;;  %v2010_v43 = vld [vmem:[#allocation4 + $0x60] sm:$0xff] }
  0xb4   :  { %417 = vmatpush.bf16.msrb.mxu1 %v1485_v34  ;;  %v2012_v34 = vld [vmem:[#allocation4 + $0x70] sm:$0xff] }
  0xb5   :  { %704 = vmatpush.bf16.msrb.mxu3 %v2012_v34 }
  0xb7   :  { %406 = vmatpush.bf16.msrb.mxu0 %v1449_v55  ;;  %692 = vmatpush.bf16.msrb.mxu2 %v2003_v37  ;;  %v2111_v55 = vld [vmem:[%s2497_s2] ss:$0 sm:$0xff] }
  0xb8   :  { %418 = vmatpush.bf16.msrb.mxu1 %v1469_v46  ;;  %v2017_v46 = vld [vmem:[#allocation4 + $0x98] sm:$0xff] }
  0xb9   :  { %705 = vmatpush.bf16.msrb.mxu3 %v2011_v38 }
  0xbb   :  { %407 = vmatpush.bf16.msrb.mxu0 %v1433_v21  ;;  %693 = vmatpush.bf16.msrb.mxu2 %v2002_v42  ;;  %v2007_v21 = vld [vmem:[#allocation4 + $0x48] sm:$0xff] }
  0xbc   :  { %419 = vmatpush.bf16.msrb.mxu1 %v1453_v59 }
  0xbd   :  { %706 = vmatpush.bf16.msrb.mxu3 %v2010_v43 }
  0xbf   :  { %716 = vmatpush.bf16.msra.mxu0 %v2021_v24  ;;  %694 = vmatpush.bf16.msrb.mxu2 %v2001_v48 }
  0xc0   :  { %420 = vmatpush.bf16.msrb.mxu1 %v1437_v23  ;;  %v2006_v23 = vld [vmem:[#allocation4 + $0x40] sm:$0xff] }
  0xc1   :  { %707 = vmatpush.bf16.msrb.mxu3 %v2009_v49  ;;  %v1932_v49 = vld [vmem:[#allocation6 + $0x1f8] sm:$0xf] }
  0xc3   :  { %717 = vmatpush.bf16.msra.mxu0 %v2020_v29  ;;  %695 = vmatpush.bf16.msrb.mxu2 %v2000_v14 }
  0xc4   :  { %729 = vmatpush.bf16.msra.mxu1 %v2029_v25 }
  0xc5   :  { %708 = vmatpush.bf16.msrb.mxu3 %v2008_v18  ;;  %v2084_v18 = vld [vmem:[#allocation6 + $0x1b4] sm:$0xf] }
  0xc7   :  { %718 = vmatpush.bf16.msra.mxu0 %v2019_v35  ;;  %696 = vmatpush.bf16.msrb.mxu2 %v1999_v20  ;;  %v1904_v20 = vld [vmem:[#allocation6 + $0x1b8] sm:$0xf] }
  0xc8   :  { %730 = vmatpush.bf16.msra.mxu1 %v2028_v30 }
  0xc9   :  { %709 = vmatpush.bf16.msrb.mxu3 %v2007_v21  ;;  %v2089_v21 = vld [vmem:[#allocation6 + $0x1d8] sm:$0xf0] }
  0xcb   :  { %719 = vmatpush.bf16.msra.mxu0 %v2018_v39  ;;  %697 = vmatpush.bf16.msrb.mxu2 %v1998_v22  ;;  %v2085_v22 = vld [vmem:[#allocation6 + $0x1bc] sm:$0xf] }
  0xcc   :  { %731 = vmatpush.bf16.msra.mxu1 %v2027_v36 }
  0xcd   :  { %710 = vmatpush.bf16.msrb.mxu3 %v2006_v23 }
  0xcf   :  { %720 = vmatpush.bf16.msra.mxu0 %v2017_v46 }
  0xd0   :  { %732 = vmatpush.bf16.msra.mxu1 %v2026_v40 }
  0xd3   :  { %721 = vmatpush.bf16.msra.mxu0 %v2016_v52 }
  0xd4   :  { %733 = vmatpush.bf16.msra.mxu1 %v2025_v47 }
  0xd7   :  { %722 = vmatpush.bf16.msra.mxu0 %v2015_v62  ;;  %v2094_v62 = vld [vmem:[#allocation6 + $0x204] sm:$0xf] }
  0xd8   :  { %734 = vmatpush.bf16.msra.mxu1 %v2024_v53  ;;  %v2088_v53 = vld [vmem:[#allocation6 + $0x1d0] sm:$0xf0] }
  0xdc   :  { %735 = vmatpush.bf16.msra.mxu1 %v2023_v63  ;;  %v1942_v63 = vld [vmem:[#allocation6 + $0x224] sm:$0xf0] }
  0xdd   :  { %v1945_v14 = vor.u32 %v2094_v62, %v1942_v63  ;;  %v2053_v63 = vld [vmem:[#allocation6 + $0xb8] sm:$0xf0] }
  0xe0   :  { %736 = vmatpush.bf16.msra.mxu1 %v2022_v19 }
 0x12e   :  { %v149_v28 = vpop.f32.mrf.mxu1 }
 0x12f   :  { %v150_v32 = vadd.f32 1e-05, %v149_v28 }
 0x131   :  { %2117 = vrsqrt.f32 %v150_v32  ;;  %vm158_vm1 = vweird.f32 %v150_v32 }
 0x137   :  { %v2118_v41 = vpop.eup %2117 }
 0x138   :  { %v153_v44 = vmul.f32 %v2118_v41, %v150_v32  ;;  %vm159_vm0 = vweird.f32 %v2118_v41 }
 0x139   :  { %vm160_vm2 = vmor %vm158_vm1, %vm159_vm0 }
 0x13a   :  { %v154_v45 = vmul.f32 %v2118_v41, %v153_v44 }
 0x13c   :  { %v155_v50 = vmul.f32 0.5, %v154_v45 }
 0x13e   :  { %v156_v51 = vsub.f32 1.5, %v155_v50  ;;  %v2097_v50 = vld [vmem:[#allocation6 + $0x218] sm:$0xf0] }
 0x13f   :  { %v1933_v52 = vor.u32 %v2097_v50, %v1932_v49  ;;  %v2057_v49 = vld [vmem:[#allocation6 + $0xdc] sm:$0xf]  ;;  %v1790_v50 = vld [vmem:[#allocation6 + $0xfc] sm:$0xf0] }
 0x140   :  { %v157_v54 = vmul.f32 %v2118_v41, %v156_v51  ;;  %v1896_v51 = vld [vmem:[#allocation6 + $0x1b0] sm:$0xf] }
 0x142   :  { %v161_v56 = vsel %vm160_vm2, %v2118_v41, %v157_v54  ;;  %v1860_v54 = vld [vmem:[#allocation6 + $0x168] sm:$0xf] }
 0x143   :  { %v162_v57 = vmul.f32 %v161_v56, %v2404_v31  ;;  %v2014_v31 = vld [vmem:[#allocation4 + $0x80] sm:$0xff] }
 0x144   :  { %723 = vmatpush.bf16.msra.mxu0 %v2014_v31  ;;  %v1934_v56 = vld [vmem:[#allocation6 + $0x21c] sm:$0xf0]  ;;  %v1898_v31 = vld [vmem:[#allocation6 + $0x1d4] sm:$0xf0] }
 0x145   :  { %v166_v59 = vmul.f32 %v2111_v55, %v162_v57  ;;  %v1897_v55 = vor.u32 %v2088_v53, %v1896_v51  ;;  %v1940_v57 = vld [vmem:[#allocation6 + $0x200] sm:$0xf]  ;;  %v1901_v19 = vor.u32 %v2084_v18, %v1898_v31  ;;  %v2062_v53 = vld [vmem:[#allocation6 + $0x100] sm:$0xf0] }
 0x146   :  { %v1796_v51 = vld [vmem:[#allocation6 + $0xe0] sm:$0xf] }
 0x147   :  { %v170_v60 = vadd.f32 %v2112_v58, %v166_v59  ;;  %v2098_v58 = vld [vmem:[#allocation6 + $0x220] sm:$0xf0]  ;;  %v2079_v59 = vld [vmem:[#allocation6 + $0x188] sm:$0xf0]  ;;  %v1762_v18 = vld [vmem:[#allocation6 + $0xbc] sm:$0xf0] }
 0x148   :  { %v1861_v23 = vor.u32 %v2079_v59, %v1860_v54  ;;  %v2058_v54 = vld [vmem:[#allocation6 + $0xe4] sm:$0xf]  ;;  %v2048_v59 = vld [vmem:[#allocation6 + $0x94] sm:$0xf] }
 0x149   :  { %v171_v61 = vpack.c.bf16 %v170_v60, %v170_v60 }
 0x14b   :  { %382 = vmatmul.bf16.vlgmr.msra.gmra.mxu2 %v171_v61  ;;  %395 = vmatmul.bf16.vlgmr.msra.gmra.mxu3 %v171_v61 }
 0x14c   :  { %408 = vmatmul.bf16.vlgmr.msrb.gmra.mxu0 %v171_v61  ;;  %421 = vmatmul.bf16.vlgmr.msrb.gmra.mxu1 %v171_v61  ;;  %v1941_v61 = vor.u32 %v2098_v58, %v1940_v57  ;;  %v1948_v57 = vld [vmem:[#allocation6 + $0x208] sm:$0xf] }
 0x14d   :  { %752 = vmatpush.msra.mxu2 %v2288_v0  ;;  %774 = vmatpush.msra.mxu3 %v2288_v0  ;;  %v204_v0 = vld [vmem:[%s2500_s5] sm:$0xf] }
 0x14e   :  { %1284 = vmatpush.bf16.msrb.mxu0 %v1933_v52  ;;  %v1793_v52 = vor.u32 %v2057_v49, %v1790_v50  ;;  %v1920_v49 = vld [vmem:[#allocation6 + $0x1c8] sm:$0xf]  ;;  %v2091_v50 = vld [vmem:[#allocation6 + $0x1e8] sm:$0xf0] }
 0x14f   :  { %753 = vmatpush.msra.mxu2 %v2293_v1  ;;  %775 = vmatpush.msra.mxu3 %v2293_v1  ;;  %v208_v1 = vperm.slane %v204_v0, 2 }
 0x151   :  { %754 = vmatpush.msra.mxu2 %v2300_v2  ;;  %776 = vmatpush.msra.mxu3 %v2300_v2  ;;  %v209_v2 = vperm.slane %v204_v0, 3 }
 0x152   :  { %1285 = vmatpush.bf16.msrb.mxu0 %v1897_v55  ;;  %v1797_v55 = vor.u32 %v2062_v53, %v1796_v51  ;;  %v2087_v51 = vld [vmem:[#allocation6 + $0x1cc] sm:$0xf]  ;;  %v1922_v53 = vld [vmem:[#allocation6 + $0x1ec] sm:$0xf0] }
 0x153   :  { %755 = vmatpush.msra.mxu2 %v2307_v3  ;;  %777 = vmatpush.msra.mxu3 %v2307_v3 }
 0x155   :  { %756 = vmatpush.msra.mxu2 %v2313_v4  ;;  %778 = vmatpush.msra.mxu3 %v2313_v4 }
 0x156   :  { %1286 = vmatpush.bf16.msrb.mxu0 %v1861_v23  ;;  %v2039_v23 = vld [vmem:[#allocation6 + $0x4c] sm:$0xf] }
 0x157   :  { %757 = vmatpush.msra.mxu2 %v2321_v5  ;;  %779 = vmatpush.msra.mxu3 %v2321_v5 }
 0x159   :  { %758 = vmatpush.msra.mxu2 %v2328_v6  ;;  %780 = vmatpush.msra.mxu3 %v2328_v6 }
 0x15b   :  { %759 = vmatpush.msra.mxu2 %v2335_v7  ;;  %781 = vmatpush.msra.mxu3 %v2335_v7  ;;  %v206_v7 = vperm.slane %v204_v0, 0 }
 0x15d   :  { %760 = vmatpush.msra.mxu2 %v2342_v8  ;;  %782 = vmatpush.msra.mxu3 %v2342_v8  ;;  %v207_v8 = vperm.slane %v204_v0, 1  ;;  %v1824_v0 = vld [vmem:[#allocation6 + $0x120] sm:$0xf] }
 0x15f   :  { %761 = vmatpush.msra.mxu2 %v2349_v9  ;;  %783 = vmatpush.msra.mxu3 %v2349_v9 }
 0x161   :  { %762 = vmatpush.msra.mxu2 %v2356_v10  ;;  %784 = vmatpush.msra.mxu3 %v2356_v10 }
 0x163   :  { %763 = vmatpush.msra.mxu2 %v2363_v11  ;;  %785 = vmatpush.msra.mxu3 %v2363_v11 }
 0x165   :  { %764 = vmatpush.msra.mxu2 %v2370_v12  ;;  %786 = vmatpush.msra.mxu3 %v2370_v12 }
 0x167   :  { %765 = vmatpush.msra.mxu2 %v2377_v13  ;;  %787 = vmatpush.msra.mxu3 %v2377_v13 }
 0x169   :  { %766 = vmatpush.msra.mxu2 %v2387_v15  ;;  %788 = vmatpush.msra.mxu3 %v2387_v15  ;;  %v2113_v15 = vld [vmem:[%s2502_s7] ss:$0 sm:$0xff] }
 0x16b   :  { %767 = vmatpush.msra.mxu2 %v2394_v16  ;;  %789 = vmatpush.msra.mxu3 %v2394_v16 }
 0x1c9   :  { %v409_v3 = vpop.f32.mrf.mxu0  ;;  %v422_v4 = vpop.f32.mrf.mxu1 }
 0x1ca   :  { %v410_v5 = vadd.f32 %v409_v3, %v208_v1  ;;  %v423_v6 = vadd.f32 %v422_v4, %v209_v2  ;;  %v2070_v1 = vld [vmem:[#allocation6 + $0x140] sm:$0xf0]  ;;  %v1905_v2 = vor.u32 %v2089_v21, %v1904_v20  ;;  %v1906_v3 = vld [vmem:[#allocation6 + $0x1dc] sm:$0xf0] }
 0x1cb   :  { %v1909_v4 = vor.u32 %v2085_v22, %v1906_v3  ;;  %v1912_v20 = vld [vmem:[#allocation6 + $0x1c0] sm:$0xf]  ;;  %v2090_v21 = vld [vmem:[#allocation6 + $0x1e0] sm:$0xf0]  ;;  %v2044_v3 = vld [vmem:[#allocation6 + $0x70] sm:$0xf0] }
 0x1cc   :  { %v428_v24 = vmax.f32 %v410_v5, 0.0  ;;  %v429_v25 = vmax.f32 %v423_v6, 0.0  ;;  %v2075_v5 = vld [vmem:[#allocation6 + $0x16c] sm:$0xf]  ;;  %v1862_v6 = vld [vmem:[#allocation6 + $0x18c] sm:$0xf0]  ;;  %v1913_v22 = vor.u32 %v2090_v21, %v1912_v20 }
 0x1cd   :  { %v2068_v20 = vld [vmem:[#allocation6 + $0x134] sm:$0xf]  ;;  %v1842_v21 = vld [vmem:[#allocation6 + $0x154] sm:$0xf0] }
 0x1ce   :  { %v432_v9 = vpack.c.bf16 %v428_v24, %v428_v24  ;;  %v433_v26 = vpack.c.bf16 %v429_v25, %v429_v25  ;;  %v383_v27 = vpop.f32.mrf.mxu2  ;;  %v396_v10 = vpop.f32.mrf.mxu3  ;;  %v2076_v24 = vld [vmem:[#allocation6 + $0x174] sm:$0xf]  ;;  %v1870_v25 = vld [vmem:[#allocation6 + $0x194] sm:$0xf0] }
 0x1cf   :  { %v384_v28 = vadd.f32 %v383_v27, %v206_v7  ;;  %v397_v29 = vadd.f32 %v396_v10, %v207_v8  ;;  %v1868_v7 = vld [vmem:[#allocation6 + $0x170] sm:$0xf]  ;;  %v2080_v8 = vld [vmem:[#allocation6 + $0x190] sm:$0xf0]  ;;  %v2066_v10 = vld [vmem:[#allocation6 + $0x124] sm:$0xf] }
 0x1d0   :  { %724 = vmatmul.bf16.vlgmr.msra.gmra.mxu0 %v432_v9  ;;  %737 = vmatmul.bf16.vlgmr.msra.gmra.mxu1 %v433_v26  ;;  %v1788_v9 = vld [vmem:[#allocation6 + $0xd8] sm:$0xf]  ;;  %v1865_v26 = vor.u32 %v2075_v5, %v1862_v6  ;;  %v1869_v27 = vor.u32 %v2080_v8, %v1868_v7 }
 0x1d1   :  { %v426_v11 = vmax.f32 %v384_v28, 0.0  ;;  %v427_v30 = vmax.f32 %v397_v29, 0.0  ;;  %v411_v32 = vpop.f32.mrf.mxu0  ;;  %v424_v33 = vpop.f32.mrf.mxu1  ;;  %v1825_v28 = vor.u32 %v2070_v1, %v1824_v0  ;;  %v1873_v29 = vor.u32 %v2076_v24, %v1870_v25  ;;  %v1718_v0 = vld [vmem:[#allocation6 + $0x6c] sm:$0xf0]  ;;  %v1726_v5 = vld [vmem:[#allocation6 + $0x74] sm:$0xf0] }
 0x1d2   :  { %v2071_v32 = vld [vmem:[#allocation6 + $0x148] sm:$0xf0]  ;;  %v2061_v33 = vld [vmem:[#allocation6 + $0xf8] sm:$0xf0]  ;;  %v1724_v1 = vld [vmem:[#allocation6 + $0x50] sm:$0xf] }
 0x1d3   :  { %v430_v12 = vpack.c.bf16 %v426_v11, %v426_v11  ;;  %v431_v34 = vpack.c.bf16 %v427_v30, %v427_v30  ;;  %v1826_v11 = vld [vmem:[#allocation6 + $0x144] sm:$0xf0]  ;;  %1287 = vmatpush.bf16.msrb.mxu0 %v1825_v28  ;;  %v1725_v6 = vor.u32 %v2044_v3, %v1724_v1  ;;  %v1876_v8 = vld [vmem:[#allocation6 + $0x178] sm:$0xf]  ;;  %v2081_v24 = vld [vmem:[#allocation6 + $0x198] sm:$0xf0] }
 0x1d4   :  { %v1832_v30 = vld [vmem:[#allocation6 + $0x128] sm:$0xf]  ;;  %v1877_v25 = vor.u32 %v2081_v24, %v1876_v8  ;;  %v2035_v28 = vld [vmem:[#allocation6 + $0x28] sm:$0xf0]  ;;  %v2069_v1 = vld [vmem:[#allocation6 + $0x13c] sm:$0xf] }
 0x1d5   :  { %698 = vmatmul.bf16.vlgmr.msrb.gmra.mxu2 %v430_v12  ;;  %711 = vmatmul.bf16.vlgmr.msrb.gmra.mxu3 %v431_v34  ;;  %v2067_v12 = vld [vmem:[#allocation6 + $0x12c] sm:$0xf]  ;;  %v1834_v34 = vld [vmem:[#allocation6 + $0x14c] sm:$0xf0] }
 0x1d6   :  { %v385_v13 = vpop.f32.mrf.mxu2  ;;  %v398_v35 = vpop.f32.mrf.mxu3  ;;  %1310 = vmatpush.bf16.msrb.mxu2 %v1941_v61  ;;  %1323 = vmatpush.bf16.msrb.mxu3 %v1945_v14  ;;  %v1760_v61 = vld [vmem:[#allocation6 + $0x98] sm:$0xf]  ;;  %v2049_v14 = vld [vmem:[#allocation6 + $0x9c] sm:$0xf]  ;;  %v2059_v8 = vld [vmem:[#allocation6 + $0xec] sm:$0xf] }
 0x1d7   :  { %v1829_v13 = vor.u32 %v2066_v10, %v1826_v11  ;;  %v1833_v35 = vor.u32 %v2071_v32, %v1832_v30  ;;  %v1761_v31 = vor.u32 %v2053_v63, %v1760_v61  ;;  %v1690_v11 = vld [vmem:[#allocation6 + $0x2c] sm:$0xf0]  ;;  %v2078_v61 = vld [vmem:[#allocation6 + $0x184] sm:$0xf]  ;;  %v1886_v63 = vld [vmem:[#allocation6 + $0x1a4] sm:$0xf0] }
 0x1d8   :  { %v1806_v24 = vld [vmem:[#allocation6 + $0x10c] sm:$0xf0] }
 0x1da   :  { %1311 = vmatpush.bf16.msrb.mxu2 %v1905_v2  ;;  %1324 = vmatpush.bf16.msrb.mxu3 %v1909_v4  ;;  %v1721_v2 = vor.u32 %v2039_v23, %v1718_v0  ;;  %v2040_v4 = vld [vmem:[#allocation6 + $0x54] sm:$0xf]  ;;  %v1845_v23 = vor.u32 %v2068_v20, %v1842_v21  ;;  %v2073_v0 = vld [vmem:[#allocation6 + $0x158] sm:$0xf0] }
 0x1db   :  { %v1729_v7 = vor.u32 %v2040_v4, %v1726_v5  ;;  %v1696_v5 = vld [vmem:[#allocation6 + $0x10] sm:$0xf] }
 0x1de   :  { %1312 = vmatpush.bf16.msrb.mxu2 %v1869_v27  ;;  %1325 = vmatpush.bf16.msrb.mxu3 %v1873_v29  ;;  %v1688_v27 = vld [vmem:[#allocation6 + $0x8] sm:$0xf]  ;;  %v2031_v29 = vld [vmem:[#allocation6 + $0xc] sm:$0xf] }
 0x1df   :  { %v1689_v30 = vor.u32 %v2035_v28, %v1688_v27  ;;  %v1693_v32 = vor.u32 %v2031_v29, %v1690_v11  ;;  %v2060_v27 = vld [vmem:[#allocation6 + $0xf4] sm:$0xf]  ;;  %v2050_v11 = vld [vmem:[#allocation6 + $0xa4] sm:$0xf] }
 0x1e2   :  { %1313 = vmatpush.bf16.msrb.mxu2 %v1833_v35  ;;  %v1950_v35 = vld [vmem:[#allocation6 + $0x22c] sm:$0xf0] }
 0x1e6   :  { %1314 = vmatpush.bf16.msrb.mxu2 %v1797_v55  ;;  %v2054_v55 = vld [vmem:[#allocation6 + $0xc0] sm:$0xf0] }
 0x1ea   :  { %1315 = vmatpush.bf16.msrb.mxu2 %v1761_v31  ;;  %v2045_v31 = vld [vmem:[#allocation6 + $0x78] sm:$0xf0] }
 0x1ee   :  { %1316 = vmatpush.bf16.msrb.mxu2 %v1725_v6  ;;  %v2036_v6 = vld [vmem:[#allocation6 + $0x30] sm:$0xf0] }
 0x1f2   :  { %1317 = vmatpush.bf16.msrb.mxu2 %v1689_v30  ;;  %v1770_v30 = vld [vmem:[#allocation6 + $0xc4] sm:$0xf0] }
 0x24d   :  { %v725_v36 = vpop.f32.mrf.mxu0  ;;  %v738_v37 = vpop.f32.mrf.mxu1 }
 0x255   :  { %v727_v38 = vpop.f32.mrf.mxu0  ;;  %v740_v39 = vpop.f32.mrf.mxu1 }
 0x256   :  { %v1752_v38 = vld [vmem:[#allocation6 + $0x90] sm:$0xf]  ;;  %v2052_v39 = vld [vmem:[#allocation6 + $0xb0] sm:$0xf0] }
 0x258   :  { %v699_v40 = vpop.f32.mrf.mxu2  ;;  %v712_v41 = vpop.f32.mrf.mxu3 }
 0x259   :  { %v713_v42 = vadd.f32 %v712_v41, %v699_v40  ;;  %v1753_v40 = vor.u32 %v2052_v39, %v1752_v38  ;;  %v1716_v41 = vld [vmem:[#allocation6 + $0x48] sm:$0xf] }
 0x25b   :  { %v726_v43 = vadd.f32 %v725_v36, %v713_v42  ;;  %v1789_v36 = vor.u32 %v2061_v33, %v1788_v9  ;;  %v2043_v42 = vld [vmem:[#allocation6 + $0x68] sm:$0xf0]  ;;  %v2030_v9 = vld [vmem:[#allocation6 + $0x4] sm:$0xf]  ;;  %v1840_v33 = vld [vmem:[#allocation6 + $0x130] sm:$0xf] }
 0x25d   :  { %v739_v44 = vadd.f32 %v738_v37, %v726_v43  ;;  %v1837_v37 = vor.u32 %v2067_v12, %v1834_v34  ;;  %1288 = vmatpush.bf16.msrb.mxu0 %v1789_v36  ;;  %v1717_v43 = vor.u32 %v2043_v42, %v1716_v41  ;;  %v2072_v12 = vld [vmem:[#allocation6 + $0x150] sm:$0xf0]  ;;  %v2095_v34 = vld [vmem:[#allocation6 + $0x20c] sm:$0xf]  ;;  %v1956_v36 = vld [vmem:[#allocation6 + $0x210] sm:$0xf] }
 0x25e   :  { %v1953_v38 = vor.u32 %v2095_v34, %v1950_v35  ;;  %v1958_v41 = vld [vmem:[#allocation6 + $0x234] sm:$0xf0]  ;;  %v1804_v42 = vld [vmem:[#allocation6 + $0xe8] sm:$0xf]  ;;  %v2051_v34 = vld [vmem:[#allocation6 + $0xac] sm:$0xf] }
 0x25f   :  { %v742_v45 = vadd.f32 %v739_v44, %v2396_v17  ;;  %v2093_v17 = vld [vmem:[#allocation6 + $0x1fc] sm:$0xf]  ;;  %1326 = vmatpush.bf16.msrb.mxu3 %v1837_v37  ;;  %v2100_v37 = vld [vmem:[#allocation6 + $0x230] sm:$0xf0] }
 0x260   :  { %v701_v16 = vpop.f32.mrf.mxu2  ;;  %v714_v46 = vpop.f32.mrf.mxu3  ;;  %v1937_v60 = vor.u32 %v2093_v17, %v1934_v56  ;;  %v1798_v17 = vld [vmem:[#allocation6 + $0x104] sm:$0xf0]  ;;  %v1957_v39 = vor.u32 %v2100_v37, %v1956_v36  ;;  %v1773_v36 = vor.u32 %v2050_v11, %v1770_v30  ;;  %v2038_v11 = vld [vmem:[#allocation6 + $0x40] sm:$0xf0] }
 0x261   :  { %v2454_v47 = vadd.f32 %v2113_v15, %v742_v45  ;;  %1289 = vmatpush.bf16.msrb.mxu0 %v1753_v40  ;;  %v1680_v16 = vld [vmem:[#allocation6] sm:$0xf]  ;;  %v2034_v46 = vld [vmem:[#allocation6 + $0x20] sm:$0xf0]  ;;  %v1801_v56 = vor.u32 %v2058_v54, %v1798_v17  ;;  %v2096_v40 = vld [vmem:[#allocation6 + $0x214] sm:$0xf]  ;;  %v1925_v54 = vor.u32 %v2087_v51, %v1922_v53 }
 0x262   :  { %1297 = vmatpush.bf16.msrb.mxu1 %v1937_v60  ;;  %v1754_v60 = vld [vmem:[#allocation6 + $0xb4] sm:$0xf0]  ;;  %v1768_v17 = vld [vmem:[#allocation6 + $0xa0] sm:$0xf]  ;;  %v2037_v51 = vld [vmem:[#allocation6 + $0x38] sm:$0xf0] }
 0x263   :  { %v748_v48 = vpack.c.bf16 %v2454_v47, %v2454_v47  ;;  %768 = vmatmul.f32.vlgmr.msra.gmra.mxu2 %v2454_v47  ;;  %1327 = vmatpush.bf16.msrb.mxu3 %v1801_v56  ;;  %v1757_v62 = vor.u32 %v2048_v59, %v1754_v60  ;;  %v1769_v56 = vor.u32 %v2054_v55, %v1768_v17  ;;  %v2082_v60 = vld [vmem:[#allocation6 + $0x1a0] sm:$0xf0]  ;;  %v1706_v53 = vld [vmem:[#allocation6 + $0x3c] sm:$0xf0] }
 0x264   :  { %1362 = vmatpush.bf16.msra.mxu2 %v1957_v39  ;;  %v2041_v39 = vld [vmem:[#allocation6 + $0x5c] sm:$0xf] }
 0x265   :  { %749 = vst [vmem:[%s2507_s12] sm:$0xf] %v748_v48  ;;  %1290 = vmatpush.bf16.msrb.mxu0 %v1717_v43  ;;  %v1681_v48 = vor.u32 %v2034_v46, %v1680_v16  ;;  %v1961_v43 = vor.u32 %v2096_v40, %v1958_v41  ;;  %v1914_v16 = vld [vmem:[#allocation6 + $0x1e4] sm:$0xf0]  ;;  %v1734_v40 = vld [vmem:[#allocation6 + $0x7c] sm:$0xf0] }
 0x266   :  { %1298 = vmatpush.bf16.msrb.mxu1 %v1901_v19  ;;  %v1765_v19 = vor.u32 %v2049_v14, %v1762_v18  ;;  %v1889_v14 = vor.u32 %v2078_v61, %v1886_v63  ;;  %v1732_v18 = vld [vmem:[#allocation6 + $0x58] sm:$0xf]  ;;  %v1740_v41 = vld [vmem:[#allocation6 + $0x60] sm:$0xf] }
 0x267   :  { %v2114_v61 = vld [vmem:[%s2503_s8] ss:$0 sm:$0xff] }
 0x268   :  { %1328 = vmatpush.bf16.msrb.mxu3 %v1765_v19  ;;  %v1733_v19 = vor.u32 %v2045_v31, %v1732_v18  ;;  %v1964_v31 = vld [vmem:[#allocation6 + $0x218] sm:$0xf] }
 0x269   :  { %1291 = vmatpush.bf16.msrb.mxu0 %v1681_v48 }
 0x26a   :  { %1299 = vmatpush.bf16.msrb.mxu1 %v1865_v26  ;;  %v1682_v26 = vld [vmem:[#allocation6 + $0x24] sm:$0xf0] }
 0x26b   :  { %v1685_v10 = vor.u32 %v2030_v9, %v1682_v26  ;;  %v1809_v9 = vor.u32 %v2059_v8, %v1806_v24  ;;  %v2064_v26 = vld [vmem:[#allocation6 + $0x110] sm:$0xf0]  ;;  %v2065_v8 = vld [vmem:[#allocation6 + $0x118] sm:$0xf0] }
 0x26c   :  { %1329 = vmatpush.bf16.msrb.mxu3 %v1729_v7  ;;  %v1697_v7 = vor.u32 %v2036_v6, %v1696_v5  ;;  %v2074_v5 = vld [vmem:[#allocation6 + $0x160] sm:$0xf0] }
 0x26e   :  { %1300 = vmatpush.bf16.msrb.mxu1 %v1829_v13  ;;  %v1841_v13 = vor.u32 %v2072_v12, %v1840_v33  ;;  %v2055_v12 = vld [vmem:[#allocation6 + $0xc8] sm:$0xf0] }
 0x270   :  { %1330 = vmatpush.bf16.msrb.mxu3 %v1693_v32  ;;  %v1776_v32 = vld [vmem:[#allocation6 + $0xa8] sm:$0xf] }
 0x271   :  { %v1777_v37 = vor.u32 %v2055_v12, %v1776_v32  ;;  %v894_v32 = vld [vmem:[%s2506_s11] sm:$0xff] }
 0x272   :  { %1301 = vmatpush.bf16.msrb.mxu1 %v1793_v52  ;;  %v1921_v52 = vor.u32 %v2091_v50, %v1920_v49  ;;  %v1698_v49 = vld [vmem:[#allocation6 + $0x34] sm:$0xf0]  ;;  %v899_v12 = vperm.slane %v894_v32, 1 }
 0x273   :  { %v1704_v50 = vld [vmem:[#allocation6 + $0x18] sm:$0xf] }
 0x274   :  { %1363 = vmatpush.bf16.msra.mxu2 %v1921_v52  ;;  %v2033_v52 = vld [vmem:[#allocation6 + $0x1c] sm:$0xf]  ;;  %v1705_v55 = vor.u32 %v2037_v51, %v1704_v50 }
 0x276   :  { %1302 = vmatpush.bf16.msrb.mxu1 %v1757_v62 }
 0x27a   :  { %1303 = vmatpush.bf16.msrb.mxu1 %v1721_v2  ;;  %v1850_v2 = vld [vmem:[#allocation6 + $0x15c] sm:$0xf0] }
 0x27b   :  { %v1853_v4 = vor.u32 %v2069_v1, %v1850_v2  ;;  %v1892_v2 = vld [vmem:[#allocation6 + $0x188] sm:$0xf] }
 0x27e   :  { %1304 = vmatpush.bf16.msrb.mxu1 %v1685_v10  ;;  %v1814_v10 = vld [vmem:[#allocation6 + $0x114] sm:$0xf0] }
 0x27f   :  { %v1817_v29 = vor.u32 %v2060_v27, %v1814_v10  ;;  %v1748_v27 = vld [vmem:[#allocation6 + $0x68] sm:$0xf]  ;;  %v2047_v10 = vld [vmem:[#allocation6 + $0x88] sm:$0xf0] }
 0x282   :  { %1349 = vmatpush.bf16.msra.mxu1 %v1953_v38 }
 0x2e6   :  { %v769_v44 = vpop.f32.mrf.mxu2 }
 0x2e7   :  { %v2463_v15 = vsub.f32 %v2454_v47, %v769_v44  ;;  %v2099_v47 = vld [vmem:[#allocation6 + $0x228] sm:$0xf0] }
 0x2e8   :  { %v1949_v58 = vor.u32 %v2099_v47, %v1948_v57  ;;  %v2063_v44 = vld [vmem:[#allocation6 + $0x108] sm:$0xf0]  ;;  %v2077_v57 = vld [vmem:[#allocation6 + $0x17c] sm:$0xf]  ;;  %v1878_v47 = vld [vmem:[#allocation6 + $0x19c] sm:$0xf0] }
 0x2e9   :  { %v773_v45 = vmul.f32 %v2463_v15, %v2463_v15  ;;  %v1805_v46 = vor.u32 %v2063_v44, %v1804_v42  ;;  %v1881_v59 = vor.u32 %v2077_v57, %v1878_v47  ;;  %v2046_v42 = vld [vmem:[#allocation6 + $0x80] sm:$0xf0]  ;;  %v1742_v44 = vld [vmem:[#allocation6 + $0x84] sm:$0xf0]  ;;  %v1709_v57 = vor.u32 %v2033_v52, %v1706_v53 }
 0x2ea   :  { %1336 = vmatpush.bf16.msra.mxu0 %v1949_v58  ;;  %v1884_v58 = vld [vmem:[#allocation6 + $0x180] sm:$0xf] }
 0x2eb   :  { %790 = vmatmul.f32.vlgmr.msra.gmra.mxu3 %v773_v45  ;;  %v2086_v45 = vld [vmem:[#allocation6 + $0x1c4] sm:$0xf]  ;;  %v1885_v62 = vor.u32 %v2082_v60, %v1884_v58 }
 0x2ec   :  { %v1917_v48 = vor.u32 %v2086_v45, %v1914_v16  ;;  %1375 = vmatpush.bf16.msra.mxu3 %v1961_v43  ;;  %v2042_v43 = vld [vmem:[#allocation6 + $0x64] sm:$0xf]  ;;  %v1737_v45 = vor.u32 %v2041_v39, %v1734_v40  ;;  %v1741_v16 = vor.u32 %v2046_v42, %v1740_v41  ;;  %v901_v39 = vperm.slane %v894_v32, 3 }
 0x2ed   :  { %1364 = vmatpush.bf16.msra.mxu2 %v1885_v62 }
 0x2ee   :  { %1337 = vmatpush.bf16.msra.mxu0 %v1913_v22  ;;  %1350 = vmatpush.bf16.msra.mxu1 %v1917_v48  ;;  %v1848_v22 = vld [vmem:[#allocation6 + $0x138] sm:$0xf]  ;;  %v2032_v48 = vld [vmem:[#allocation6 + $0x14] sm:$0xf] }
 0x2ef   :  { %v1849_v3 = vor.u32 %v2073_v0, %v1848_v22  ;;  %v1701_v17 = vor.u32 %v2032_v48, %v1698_v49  ;;  %v2092_v0 = vld [vmem:[#allocation6 + $0x1f0] sm:$0xf0]  ;;  %v903_v48 = vperm.slane %v894_v32, 5 }
 0x2f0   :  { %1376 = vmatpush.bf16.msra.mxu3 %v1925_v54 }
 0x2f1   :  { %1365 = vmatpush.bf16.msra.mxu2 %v1849_v3 }
 0x2f2   :  { %1338 = vmatpush.bf16.msra.mxu0 %v1877_v25  ;;  %1351 = vmatpush.bf16.msra.mxu1 %v1881_v59  ;;  %v1812_v25 = vld [vmem:[#allocation6 + $0xf0] sm:$0xf] }
 0x2f3   :  { %v1813_v28 = vor.u32 %v2064_v26, %v1812_v25  ;;  %v1784_v25 = vld [vmem:[#allocation6 + $0xb0] sm:$0xf] }
 0x2f4   :  { %1377 = vmatpush.bf16.msra.mxu3 %v1889_v14  ;;  %v2115_v14 = vld [vmem:[%s2504_s9] ss:$0 sm:$0xff] }
 0x2f5   :  { %1366 = vmatpush.bf16.msra.mxu2 %v1813_v28  ;;  %v1749_v28 = vor.u32 %v2047_v10, %v1748_v27 }
 0x2f6   :  { %1339 = vmatpush.bf16.msra.mxu0 %v1841_v13  ;;  %1352 = vmatpush.bf16.msra.mxu1 %v1845_v23  ;;  %v1778_v13 = vld [vmem:[#allocation6 + $0xcc] sm:$0xf0] }
 0x2f7   :  { %v1781_v38 = vor.u32 %v2051_v34, %v1778_v13  ;;  %v1928_v23 = vld [vmem:[#allocation6 + $0x1d0] sm:$0xf] }
 0x2f8   :  { %1378 = vmatpush.bf16.msra.mxu3 %v1853_v4  ;;  %v1929_v1 = vor.u32 %v2092_v0, %v1928_v23  ;;  %v1856_v4 = vld [vmem:[#allocation6 + $0x140] sm:$0xf] }
 0x2f9   :  { %1367 = vmatpush.bf16.msra.mxu2 %v1777_v37  ;;  %v1857_v6 = vor.u32 %v2074_v5, %v1856_v4 }
 0x2fa   :  { %1340 = vmatpush.bf16.msra.mxu0 %v1805_v46  ;;  %1353 = vmatpush.bf16.msra.mxu1 %v1809_v9  ;;  %v1745_v46 = vor.u32 %v2042_v43, %v1742_v44  ;;  %v2056_v9 = vld [vmem:[#allocation6 + $0xd0] sm:$0xf0] }
 0x2fb   :  { %v1785_v26 = vor.u32 %v2056_v9, %v1784_v25 }
 0x2fc   :  { %1379 = vmatpush.bf16.msra.mxu3 %v1817_v29  ;;  %v1712_v29 = vld [vmem:[#allocation6 + $0x20] sm:$0xf] }
 0x2fd   :  { %1368 = vmatpush.bf16.msra.mxu2 %v1741_v16  ;;  %v1713_v30 = vor.u32 %v2038_v11, %v1712_v29 }
 0x2fe   :  { %1341 = vmatpush.bf16.msra.mxu0 %v1769_v56  ;;  %1354 = vmatpush.bf16.msra.mxu1 %v1773_v36 }
 0x300   :  { %1380 = vmatpush.bf16.msra.mxu3 %v1781_v38  ;;  %v900_v38 = vperm.slane %v894_v32, 2 }
 0x301   :  { %1369 = vmatpush.bf16.msra.mxu2 %v1705_v55  ;;  %v904_v55 = vperm.slane %v894_v32, 6 }
 0x302   :  { %1342 = vmatpush.bf16.msra.mxu0 %v1733_v19  ;;  %1355 = vmatpush.bf16.msra.mxu1 %v1737_v45  ;;  %v2101_v19 = vld [vmem:[#allocation6 + $0x238] sm:$0xf0] }
 0x303   :  { %v1965_v22 = vor.u32 %v2101_v19, %v1964_v31 }
 0x304   :  { %1381 = vmatpush.bf16.msra.mxu3 %v1745_v46  ;;  %v902_v46 = vperm.slane %v894_v32, 4 }
 0x306   :  { %1343 = vmatpush.bf16.msra.mxu0 %v1697_v7  ;;  %1356 = vmatpush.bf16.msra.mxu1 %v1701_v17  ;;  %v1820_v7 = vld [vmem:[#allocation6 + $0xf8] sm:$0xf] }
 0x307   :  { %v1821_v24 = vor.u32 %v2065_v8, %v1820_v7 }
 0x308   :  { %1382 = vmatpush.bf16.msra.mxu3 %v1709_v57 }
 0x36e   :  { %v791_v33 = vpop.f32.mrf.mxu3 }
 0x36f   :  { %v792_v35 = vadd.f32 1e-05, %v791_v33  ;;  %v898_v33 = vperm.slane %v894_v32, 0 }
 0x371   :  { %2119 = vrsqrt.f32 %v792_v35  ;;  %vm800_vm4 = vweird.f32 %v792_v35 }
 0x377   :  { %v2120_v54 = vpop.eup %2119 }
 0x378   :  { %v795_v56 = vmul.f32 %v2120_v54, %v792_v35  ;;  %vm801_vm3 = vweird.f32 %v2120_v54 }
 0x379   :  { %vm802_vm5 = vmor %vm800_vm4, %vm801_vm3 }
 0x37a   :  { %v796_v47 = vmul.f32 %v2120_v54, %v795_v56  ;;  %v905_v56 = vperm.slane %v894_v32, 7 }
 0x37c   :  { %v797_v58 = vmul.f32 0.5, %v796_v47 }
 0x37e   :  { %v798_v59 = vsub.f32 1.5, %v797_v58 }
 0x380   :  { %v799_v60 = vmul.f32 %v2120_v54, %v798_v59 }
 0x382   :  { %v803_v62 = vsel %vm802_vm5, %v2120_v54, %v799_v60 }
 0x383   :  { %v804_v63 = vmul.f32 %v803_v62, %v2463_v15  ;;  %v2083_v15 = vld [vmem:[#allocation6 + $0x1a8] sm:$0xf0] }
 0x384   :  { %v1893_v3 = vor.u32 %v2083_v15, %v1892_v2 }
 0x385   :  { %v808_v18 = vmul.f32 %v2114_v61, %v804_v63  ;;  %v2116_v63 = vld [vmem:[%s2506_s11 + $0x8] ss:$0 sm:$0xff] }
 0x387   :  { %v812_v20 = vadd.f32 %v2115_v14, %v808_v18 }
 0x389   :  { %v813_v21 = vpack.c.bf16 %v812_v20, %v812_v20 }
 0x38b   :  { %1292 = vmatmul.bf16.vlgmr.msrb.gmra.mxu0 %v813_v21  ;;  %1305 = vmatmul.bf16.vlgmr.msrb.gmra.mxu1 %v813_v21 }
 0x38c   :  { %1318 = vmatmul.bf16.vlgmr.msrb.gmra.mxu2 %v813_v21  ;;  %1331 = vmatmul.bf16.vlgmr.msrb.gmra.mxu3 %v813_v21 }
 0x38d   :  { %1388 = vmatpush.bf16.msrb.mxu0 %v1965_v22 }
 0x391   :  { %1389 = vmatpush.bf16.msrb.mxu0 %v1929_v1 }
 0x395   :  { %1390 = vmatpush.bf16.msrb.mxu0 %v1893_v3 }
 0x399   :  { %1391 = vmatpush.bf16.msrb.mxu0 %v1857_v6 }
 0x39b   :  { %1344 = vmatmul.bf16.vlgmr.msra.gmra.mxu0 %v813_v21  ;;  %1357 = vmatmul.bf16.vlgmr.msra.gmra.mxu1 %v813_v21 }
 0x39c   :  { %1370 = vmatmul.bf16.vlgmr.msra.gmra.mxu2 %v813_v21  ;;  %1383 = vmatmul.bf16.vlgmr.msra.gmra.mxu3 %v813_v21 }
 0x39d   :  { %1392 = vmatpush.bf16.msrb.mxu0 %v1821_v24 }
 0x3a1   :  { %1393 = vmatpush.bf16.msrb.mxu0 %v1785_v26 }
 0x3a5   :  { %1394 = vmatpush.bf16.msrb.mxu0 %v1749_v28 }
 0x3a9   :  { %1395 = vmatpush.bf16.msrb.mxu0 %v1713_v30 }
 0x3ac   :  { %1396 = vmatmul.bf16.vlgmr.msrb.gmra.mxu0 %v813_v21 }
 0x408   :  { %v1293_v34 = vpop.f32.mrf.mxu0  ;;  %v1306_v13 = vpop.f32.mrf.mxu1 }
 0x409   :  { %v1294_v35 = vadd.f32 %v1293_v34, %v898_v33  ;;  %v1307_v36 = vadd.f32 %v1306_v13, %v899_v12 }
 0x40b   :  { %v1401_v37 = vpack.c.bf16 %v1307_v36, %v1294_v35 }
 0x40d   :  { %1406 = vst [vmem:[%s2508_s13] sm:$0xff] %v1401_v37 }
 0x40f   :  { %v1319_v40 = vpop.f32.mrf.mxu2  ;;  %v1332_v41 = vpop.f32.mrf.mxu3 }
 0x410   :  { %v1320_v42 = vadd.f32 %v1319_v40, %v900_v38  ;;  %v1333_v43 = vadd.f32 %v1332_v41, %v901_v39  ;;  %v1295_v44 = vpop.f32.mrf.mxu0  ;;  %v1308_v45 = vpop.f32.mrf.mxu1 }
 0x412   :  { %v1402_v16 = vpack.c.bf16 %v1333_v43, %v1320_v42 }
 0x414   :  { %1407 = vst [vmem:[%s2508_s13 + $0x8] sm:$0xff] %v1402_v16 }
 0x417   :  { %v1321_v49 = vpop.f32.mrf.mxu2  ;;  %v1334_v50 = vpop.f32.mrf.mxu3 }
 0x418   :  { %v1345_v51 = vpop.f32.mrf.mxu0  ;;  %v1358_v52 = vpop.f32.mrf.mxu1 }
 0x419   :  { %v1346_v53 = vadd.f32 %v1345_v51, %v902_v46  ;;  %v1359_v54 = vadd.f32 %v1358_v52, %v903_v48 }
 0x41b   :  { %v1403_v17 = vpack.c.bf16 %v1359_v54, %v1346_v53 }
 0x41d   :  { %1408 = vst [vmem:[%s2508_s13 + $0x10] sm:$0xff] %v1403_v17 }
 0x41f   :  { %v1371_v57 = vpop.f32.mrf.mxu2  ;;  %v1384_v47 = vpop.f32.mrf.mxu3 }
 0x420   :  { %v1372_v58 = vadd.f32 %v1371_v57, %v904_v55  ;;  %v1385_v59 = vadd.f32 %v1384_v47, %v905_v56  ;;  %v1347_v60 = vpop.f32.mrf.mxu0  ;;  %v1360_v61 = vpop.f32.mrf.mxu1 }
 0x422   :  { %v1404_v62 = vpack.c.bf16 %v1385_v59, %v1372_v58 }
 0x424   :  { %1409 = vst [vmem:[%s2508_s13 + $0x18] sm:$0xff] %v1404_v62 }
 0x427   :  { %v1373_v14 = vpop.f32.mrf.mxu2  ;;  %v1386_v18 = vpop.f32.mrf.mxu3 }
 0x429   :  { %v1397_v31 = vpop.f32.mrf.mxu0 }
 0x42a   :  { %v1398_v19 = vadd.f32 %v2116_v63, %v1397_v31 }
 0x42c   :  { %v1405_v20 = vpack.c.bf16 %v1398_v19, %v1398_v19 }
 0x42e   :  { %1411 = vst.msk [vmem:[%s2508_s13 + $0x20] sm:$0xf] %vm1410_vm6, %v1405_v20 }
 0x431   :  { %v1399_v21 = vpop.f32.mrf.mxu0 }
 0x432   :  { %1420 = vsyncpa [#allocation3], 1 }
 0x433   :  { %1421 = vsyncpa [#allocation5], 1 }

// kernel: _lambda_.23
= control target key start
LH: loop header
LB: loop body
LE: loop exit
PB: predicated region body
PF: predicated region fallthrough
CT: control target
= control target key end

     0   :  { %19 = vsyncpa [#allocation3], 0  ;;  %s2543_s0 = inlined_call_operand.vmem [shape: bf16[8,128], index: 0, kind: input, shape index: {}, may-alias: {0,12}]   ;;  %s2544_s1 = inlined_call_operand.vmem [shape: f32[128,128], index: 1, kind: input, shape index: {}]   ;;  %s2545_s2 = inlined_call_operand.vmem [shape: f32[1,128], index: 2, kind: input, shape index: {}, may-alias: {2,8}]   ;;  %s2546_s3 = inlined_call_operand.vmem [shape: f32[1,128], index: 3, kind: input, shape index: {}, may-alias: {3,7,9}]   ;;  %s2547_s4 = inlined_call_operand.hbm [shape: bf16[128,512], index: 4, kind: input, shape index: {}]   ;;  %s2548_s5 = inlined_call_operand.vmem [shape: f32[1,512], index: 5, kind: input, shape index: {}]   ;;  %s2549_s6 = inlined_call_operand.vmem [shape: bf16[512,128], index: 6, kind: input, shape index: {}]   ;;  %s2550_s7 = inlined_call_operand.vmem [shape: f32[1,128], index: 7, kind: input, shape index: {}, may-alias: {3,7,9}]   ;;  %s2551_s8 = inlined_call_operand.vmem [shape: f32[1,128], index: 8, kind: input, shape index: {}, may-alias: {2,8}]   ;;  %s2552_s9 = inlined_call_operand.vmem [shape: f32[1,128], index: 9, kind: input, shape index: {}, may-alias: {3,7,9}]   ;;  %s2553_s10 = inlined_call_operand.hbm [shape: bf16[128,1056], index: 10, kind: input, shape index: {}]   ;;  %s2554_s11 = inlined_call_operand.vmem [shape: f32[1,1056], index: 11, kind: input, shape index: {}]   ;;  %s2555_s12 = inlined_call_operand.vmem [shape: bf16[8,128], index: 12, kind: output, shape index: {0}, may-alias: {0,12}]   ;;  %s2556_s13 = inlined_call_operand.vmem [shape: bf16[8,1056], index: 13, kind: output, shape index: {1}]  }
   0x1   :  { %s33_s27 = sshll.u32 %s2547_s4, 4  ;;  %s34_s27 = int_to_ptr.hbm [resolvable:$true] %s33_s27 }
   0x2   :  { %20 = vsyncpa [#allocation5], 0  ;;  %s2155_s28 = smov [#allocation2]   ;;  %s56_s15 = sshll.u32 %s2553_s10, 4  ;;  %s57_s15 = int_to_ptr.hbm [resolvable:$true] %s56_s15 }
   0x3   :  { %s35_s29 = sshll.u32 %s2155_s28, 4  ;;  %s2156_s16 = smov 256   ;;  %s36_s29 = int_to_ptr.vmem [resolvable:$true] %s35_s29 }
   0x4   :  { %s2157_s17 = smov 16   ;;  %s2158_s18 = smov [#allocation4]  }
   0x5   :  { %41 = dma.hbm_to_vmem [thread:$0]  %s34_s27, 4096, %s36_s29, [#allocation3], %s2156_s16, %s2156_s16, %s2157_s17  }
   0x6   :  { %s58_s19 = sshll.u32 %s2158_s18, 4  ;;  %s2159_s20 = smov 576   ;;  %s59_s19 = int_to_ptr.vmem [resolvable:$true] %s58_s19 }
   0x7   :  { %s2160_s21 = smov 36  }
   0x8   :  { %64 = dma.hbm_to_vmem [thread:$0]  %s57_s15, 9216, %s59_s19, [#allocation5], %s2159_s20, %s2159_s20, %s2160_s21  }
   0x9   :  { %2151 = dma.done.wait [#allocation3], 4096  }
   0xa   :  { %2152 = vsyncadd [#allocation3], 4294963200 }
   0xb   :  { %2153 = dma.done.wait [#allocation5], 9216  }
   0xc   :  { %2154 = vsyncadd [#allocation5], 4294958080  ;;  %v2240_v0 = vld [vmem:[%s2544_s1 + $0x78] sm:$0xff]  ;;  %v2245_v1 = vld [vmem:[%s2544_s1 + $0x70] sm:$0xff]  ;;  %vm1395_vm6 = vcmask 257024  }
   0xd   :  { %95 = vmatpush.msra.mxu0 %v2240_v0  ;;  %117 = vmatpush.msra.mxu1 %v2240_v0  ;;  %v2252_v2 = vld [vmem:[%s2544_s1 + $0x68] sm:$0xff]  ;;  %v2259_v3 = vld [vmem:[%s2544_s1 + $0x60] sm:$0xff]  ;;  %v2265_v4 = vld [vmem:[%s2544_s1 + $0x58] sm:$0xff] }
   0xe   :  { %v2273_v5 = vld [vmem:[%s2544_s1 + $0x50] sm:$0xff]  ;;  %v2280_v6 = vld [vmem:[%s2544_s1 + $0x48] sm:$0xff]  ;;  %v2287_v7 = vld [vmem:[%s2544_s1 + $0x40] sm:$0xff] }
   0xf   :  { %96 = vmatpush.msra.mxu0 %v2245_v1  ;;  %118 = vmatpush.msra.mxu1 %v2245_v1  ;;  %v2294_v8 = vld [vmem:[%s2544_s1 + $0x38] sm:$0xff]  ;;  %v2301_v9 = vld [vmem:[%s2544_s1 + $0x30] sm:$0xff]  ;;  %v2308_v10 = vld [vmem:[%s2544_s1 + $0x28] sm:$0xff] }
  0x10   :  { %v2315_v11 = vld [vmem:[%s2544_s1 + $0x20] sm:$0xff]  ;;  %v2322_v12 = vld [vmem:[%s2544_s1 + $0x18] sm:$0xff]  ;;  %v2329_v13 = vld [vmem:[%s2544_s1 + $0x10] sm:$0xff] }
  0x11   :  { %97 = vmatpush.msra.mxu0 %v2252_v2  ;;  %119 = vmatpush.msra.mxu1 %v2252_v2  ;;  %v75_v14 = vld [vmem:[%s2543_s0] sm:$0xf]  ;;  %v2339_v15 = vld [vmem:[%s2544_s1 + $0x8] sm:$0xff]  ;;  %v1981_v19 = vld [vmem:[#allocation2 + $0xec] sm:$0xf0] }
  0x12   :  { %v2346_v16 = vld [vmem:[%s2544_s1] sm:$0xff]  ;;  %v2348_v17 = vunpack.c.l.bf16 %v75_v14  ;;  %v1523_v22 = vld [vmem:[#allocation2 + $0xf0] sm:$0xf0]  ;;  %v1529_v23 = vld [vmem:[#allocation2 + $0xe8] sm:$0xf] }
  0x13   :  { %98 = vmatpush.msra.mxu0 %v2259_v3  ;;  %120 = vmatpush.msra.mxu1 %v2259_v3  ;;  %v1521_v18 = vld [vmem:[#allocation2 + $0xe0] sm:$0xf]  ;;  %v1979_v20 = vld [vmem:[#allocation2 + $0xe4] sm:$0xf]  ;;  %v1982_v24 = vld [vmem:[#allocation2 + $0xf4] sm:$0xf0] }
  0x14   :  { %v1522_v21 = vor.u32 %v1981_v19, %v1521_v18  ;;  %v1526_v25 = vor.u32 %v1979_v20, %v1523_v22  ;;  %v1530_v26 = vor.u32 %v1982_v24, %v1529_v23  ;;  %v1980_v27 = vld [vmem:[#allocation2 + $0xec] sm:$0xf]  ;;  %v1531_v28 = vld [vmem:[#allocation2 + $0xf8] sm:$0xf0]  ;;  %v1505_v33 = vld [vmem:[#allocation2 + $0xc0] sm:$0xf] }
  0x15   :  { %99 = vmatpush.msra.mxu0 %v2265_v4  ;;  %121 = vmatpush.msra.mxu1 %v2265_v4  ;;  %v1534_v29 = vor.u32 %v1980_v27, %v1531_v28  ;;  %v1977_v34 = vld [vmem:[#allocation2 + $0xcc] sm:$0xf0]  ;;  %v1975_v35 = vld [vmem:[#allocation2 + $0xc4] sm:$0xf]  ;;  %v1507_v37 = vld [vmem:[#allocation2 + $0xd0] sm:$0xf0] }
  0x16   :  { %359 = vmatpush.bf16.msra.mxu2 %v1522_v21  ;;  %372 = vmatpush.bf16.msra.mxu3 %v1526_v25  ;;  %v1506_v36 = vor.u32 %v1977_v34, %v1505_v33  ;;  %v1513_v38 = vld [vmem:[#allocation2 + $0xc8] sm:$0xf]  ;;  %v1978_v39 = vld [vmem:[#allocation2 + $0xd4] sm:$0xf0]  ;;  %v1510_v40 = vor.u32 %v1975_v35, %v1507_v37  ;;  %v1976_v42 = vld [vmem:[#allocation2 + $0xcc] sm:$0xf] }
  0x17   :  { %100 = vmatpush.msra.mxu0 %v2273_v5  ;;  %122 = vmatpush.msra.mxu1 %v2273_v5  ;;  %v1514_v41 = vor.u32 %v1978_v39, %v1513_v38  ;;  %v1515_v43 = vld [vmem:[#allocation2 + $0xd8] sm:$0xf0]  ;;  %v1489_v45 = vld [vmem:[#allocation2 + $0xa0] sm:$0xf]  ;;  %v1973_v46 = vld [vmem:[#allocation2 + $0xac] sm:$0xf0] }
  0x18   :  { %v1518_v44 = vor.u32 %v1976_v42, %v1515_v43  ;;  %v1971_v47 = vld [vmem:[#allocation2 + $0xa4] sm:$0xf]  ;;  %v1490_v48 = vor.u32 %v1973_v46, %v1489_v45  ;;  %v1491_v49 = vld [vmem:[#allocation2 + $0xb0] sm:$0xf0]  ;;  %v1497_v50 = vld [vmem:[#allocation2 + $0xa8] sm:$0xf] }
  0x19   :  { %101 = vmatpush.msra.mxu0 %v2280_v6  ;;  %123 = vmatpush.msra.mxu1 %v2280_v6  ;;  %v1974_v51 = vld [vmem:[#allocation2 + $0xb4] sm:$0xf0]  ;;  %v1494_v52 = vor.u32 %v1971_v47, %v1491_v49  ;;  %v1972_v54 = vld [vmem:[#allocation2 + $0xac] sm:$0xf]  ;;  %v1499_v55 = vld [vmem:[#allocation2 + $0xb8] sm:$0xf0] }
  0x1a   :  { %360 = vmatpush.bf16.msra.mxu2 %v1506_v36  ;;  %373 = vmatpush.bf16.msra.mxu3 %v1510_v40  ;;  %v1498_v53 = vor.u32 %v1974_v51, %v1497_v50  ;;  %v1502_v56 = vor.u32 %v1972_v54, %v1499_v55  ;;  %v1473_v57 = vld [vmem:[#allocation2 + $0x80] sm:$0xf]  ;;  %v1969_v58 = vld [vmem:[#allocation2 + $0x8c] sm:$0xf0]  ;;  %v1967_v59 = vld [vmem:[#allocation2 + $0x84] sm:$0xf] }
  0x1b   :  { %102 = vmatpush.msra.mxu0 %v2287_v7  ;;  %124 = vmatpush.msra.mxu1 %v2287_v7  ;;  %v1474_v60 = vor.u32 %v1969_v58, %v1473_v57  ;;  %v1475_v61 = vld [vmem:[#allocation2 + $0x90] sm:$0xf0]  ;;  %v1481_v62 = vld [vmem:[#allocation2 + $0x88] sm:$0xf]  ;;  %v1970_v63 = vld [vmem:[#allocation2 + $0x94] sm:$0xf0] }
  0x1c   :  { %v1478_v14 = vor.u32 %v1967_v59, %v1475_v61  ;;  %v1482_v18 = vor.u32 %v1970_v63, %v1481_v62  ;;  %v1968_v19 = vld [vmem:[#allocation2 + $0x8c] sm:$0xf]  ;;  %v1483_v20 = vld [vmem:[#allocation2 + $0x98] sm:$0xf0]  ;;  %v1457_v22 = vld [vmem:[#allocation2 + $0x60] sm:$0xf] }
  0x1d   :  { %103 = vmatpush.msra.mxu0 %v2294_v8  ;;  %125 = vmatpush.msra.mxu1 %v2294_v8  ;;  %v1486_v21 = vor.u32 %v1968_v19, %v1483_v20  ;;  %v1965_v23 = vld [vmem:[#allocation2 + $0x6c] sm:$0xf0]  ;;  %v1963_v24 = vld [vmem:[#allocation2 + $0x64] sm:$0xf]  ;;  %v1465_v27 = vld [vmem:[#allocation2 + $0x68] sm:$0xf] }
  0x1e   :  { %361 = vmatpush.bf16.msra.mxu2 %v1490_v48  ;;  %374 = vmatpush.bf16.msra.mxu3 %v1494_v52  ;;  %v1458_v25 = vor.u32 %v1965_v23, %v1457_v22  ;;  %v1966_v28 = vld [vmem:[#allocation2 + $0x74] sm:$0xf0]  ;;  %v1467_v33 = vld [vmem:[#allocation2 + $0x78] sm:$0xf0]  ;;  %v1441_v35 = vld [vmem:[#allocation2 + $0x40] sm:$0xf] }
  0x1f   :  { %104 = vmatpush.msra.mxu0 %v2301_v9  ;;  %126 = vmatpush.msra.mxu1 %v2301_v9  ;;  %v1961_v36 = vld [vmem:[#allocation2 + $0x4c] sm:$0xf0]  ;;  %v1959_v37 = vld [vmem:[#allocation2 + $0x44] sm:$0xf]  ;;  %v1443_v39 = vld [vmem:[#allocation2 + $0x50] sm:$0xf0] }
  0x20   :  { %v1442_v38 = vor.u32 %v1961_v36, %v1441_v35  ;;  %v1449_v40 = vld [vmem:[#allocation2 + $0x48] sm:$0xf]  ;;  %v1446_v42 = vor.u32 %v1959_v37, %v1443_v39  ;;  %v1451_v45 = vld [vmem:[#allocation2 + $0x58] sm:$0xf0]  ;;  %v1425_v47 = vld [vmem:[#allocation2 + $0x20] sm:$0xf] }
  0x21   :  { %105 = vmatpush.msra.mxu0 %v2308_v10  ;;  %127 = vmatpush.msra.mxu1 %v2308_v10  ;;  %v1957_v48 = vld [vmem:[#allocation2 + $0x2c] sm:$0xf0]  ;;  %v1955_v49 = vld [vmem:[#allocation2 + $0x24] sm:$0xf]  ;;  %v1427_v51 = vld [vmem:[#allocation2 + $0x30] sm:$0xf0] }
  0x22   :  { %362 = vmatpush.bf16.msra.mxu2 %v1474_v60  ;;  %375 = vmatpush.bf16.msra.mxu3 %v1478_v14  ;;  %v1426_v50 = vor.u32 %v1957_v48, %v1425_v47  ;;  %v1433_v52 = vld [vmem:[#allocation2 + $0x28] sm:$0xf]  ;;  %v1430_v54 = vor.u32 %v1955_v49, %v1427_v51  ;;  %v1435_v57 = vld [vmem:[#allocation2 + $0x38] sm:$0xf0]  ;;  %v1409_v58 = vld [vmem:[#allocation2] sm:$0xf] }
  0x23   :  { %106 = vmatpush.msra.mxu0 %v2315_v11  ;;  %128 = vmatpush.msra.mxu1 %v2315_v11  ;;  %v1953_v60 = vld [vmem:[#allocation2 + $0xc] sm:$0xf0]  ;;  %v1951_v61 = vld [vmem:[#allocation2 + $0x4] sm:$0xf]  ;;  %v1411_v62 = vld [vmem:[#allocation2 + $0x10] sm:$0xf0] }
  0x24   :  { %v1410_v63 = vor.u32 %v1953_v60, %v1409_v58  ;;  %v1414_v14 = vor.u32 %v1951_v61, %v1411_v62  ;;  %v1954_v19 = vld [vmem:[#allocation2 + $0x14] sm:$0xf0]  ;;  %v1952_v20 = vld [vmem:[#allocation2 + $0xc] sm:$0xf]  ;;  %v1419_v22 = vld [vmem:[#allocation2 + $0x18] sm:$0xf0] }
  0x25   :  { %107 = vmatpush.msra.mxu0 %v2322_v12  ;;  %129 = vmatpush.msra.mxu1 %v2322_v12  ;;  %v1422_v23 = vor.u32 %v1952_v20, %v1419_v22  ;;  %v2004_v35 = vld [vmem:[%s2549_s6 + $0xa8] sm:$0xff]  ;;  %v2003_v39 = vld [vmem:[%s2549_s6 + $0xa0] sm:$0xff]  ;;  %v2010_v47 = vld [vmem:[%s2549_s6 + $0xd8] sm:$0xff] }
  0x26   :  { %363 = vmatpush.bf16.msra.mxu2 %v1458_v25  ;;  %v2014_v25 = vld [vmem:[%s2549_s6 + $0xf8] sm:$0xff]  ;;  %v2012_v36 = vld [vmem:[%s2549_s6 + $0xe8] sm:$0xff]  ;;  %v2094_v58 = vld [vmem:[%s2546_s3] ss:$0 sm:$0xff] }
  0x27   :  { %108 = vmatpush.msra.mxu0 %v2329_v13  ;;  %130 = vmatpush.msra.mxu1 %v2329_v13  ;;  %v1988_v37 = vld [vmem:[%s2549_s6 + $0x28] sm:$0xff]  ;;  %v1986_v48 = vld [vmem:[%s2549_s6 + $0x18] sm:$0xff]  ;;  %v1983_v22 = vld [vmem:[%s2549_s6] sm:$0xff] }
  0x28   :  { %v1994_v49 = vld [vmem:[%s2549_s6 + $0x58] sm:$0xff]  ;;  %v2000_v62 = vld [vmem:[%s2549_s6 + $0x88] sm:$0xff] }
  0x29   :  { %109 = vmatpush.msra.mxu0 %v2339_v15  ;;  %131 = vmatpush.msra.mxu1 %v2339_v15  ;;  %v1984_v20 = vld [vmem:[%s2549_s6 + $0x8] sm:$0xff] }
  0x2a   :  { %364 = vmatpush.bf16.msra.mxu2 %v1442_v38  ;;  %v1996_v38 = vld [vmem:[%s2549_s6 + $0x68] sm:$0xff] }
  0x2b   :  { %110 = vmatpush.msra.mxu0 %v2346_v16  ;;  %132 = vmatpush.msra.mxu1 %v2346_v16 }
  0x2c   :  { %111 = vmatmul.f32.vlgmr.msra.gmra.mxu0 %v2348_v17 }
  0x2d   :  { %385 = vmatpush.bf16.msrb.mxu0 %v1530_v26  ;;  %398 = vmatpush.bf16.msrb.mxu1 %v1534_v29  ;;  %v1459_v26 = vld [vmem:[#allocation2 + $0x70] sm:$0xf0] }
  0x2e   :  { %v1462_v29 = vor.u32 %v1963_v24, %v1459_v26  ;;  %365 = vmatpush.bf16.msra.mxu2 %v1426_v50  ;;  %v2006_v24 = vld [vmem:[%s2549_s6 + $0xb8] sm:$0xff] }
  0x2f   :  { %v1990_v26 = vld [vmem:[%s2549_s6 + $0x38] sm:$0xff] }
  0x30   :  { %376 = vmatpush.bf16.msra.mxu3 %v1462_v29  ;;  %v2005_v29 = vld [vmem:[%s2549_s6 + $0xb0] sm:$0xff] }
  0x31   :  { %386 = vmatpush.bf16.msrb.mxu0 %v1514_v41  ;;  %399 = vmatpush.bf16.msrb.mxu1 %v1518_v44  ;;  %v1962_v41 = vld [vmem:[#allocation2 + $0x54] sm:$0xf0]  ;;  %v1960_v44 = vld [vmem:[#allocation2 + $0x4c] sm:$0xf] }
  0x32   :  { %v1450_v43 = vor.u32 %v1962_v41, %v1449_v40  ;;  %v1454_v46 = vor.u32 %v1960_v44, %v1451_v45  ;;  %366 = vmatpush.bf16.msra.mxu2 %v1410_v63  ;;  %v2011_v40 = vld [vmem:[%s2549_s6 + $0xe0] sm:$0xff]  ;;  %v2008_v63 = vld [vmem:[%s2549_s6 + $0xc8] sm:$0xff] }
  0x34   :  { %377 = vmatpush.bf16.msra.mxu3 %v1446_v42  ;;  %v1987_v42 = vld [vmem:[%s2549_s6 + $0x20] sm:$0xff] }
  0x35   :  { %387 = vmatpush.bf16.msrb.mxu0 %v1498_v53  ;;  %400 = vmatpush.bf16.msrb.mxu1 %v1502_v56  ;;  %v1958_v53 = vld [vmem:[#allocation2 + $0x34] sm:$0xf0]  ;;  %v1956_v56 = vld [vmem:[#allocation2 + $0x2c] sm:$0xf] }
  0x36   :  { %v1434_v55 = vor.u32 %v1958_v53, %v1433_v52  ;;  %v1438_v59 = vor.u32 %v1956_v56, %v1435_v57  ;;  %675 = vmatpush.bf16.msrb.mxu2 %v1990_v26  ;;  %v2001_v52 = vld [vmem:[%s2549_s6 + $0x90] sm:$0xff] }
  0x37   :  { %v2009_v53 = vld [vmem:[%s2549_s6 + $0xd0] sm:$0xff] }
  0x38   :  { %378 = vmatpush.bf16.msra.mxu3 %v1430_v54 }
  0x39   :  { %388 = vmatpush.bf16.msrb.mxu0 %v1482_v18  ;;  %401 = vmatpush.bf16.msrb.mxu1 %v1486_v21  ;;  %v1417_v18 = vld [vmem:[#allocation2 + $0x8] sm:$0xf] }
  0x3a   :  { %v1418_v21 = vor.u32 %v1954_v19, %v1417_v18  ;;  %v1999_v18 = vld [vmem:[%s2549_s6 + $0x80] sm:$0xff] }
  0x3b   :  { %v2007_v19 = vld [vmem:[%s2549_s6 + $0xc0] sm:$0xff] }
  0x3c   :  { %379 = vmatpush.bf16.msra.mxu3 %v1414_v14  ;;  %v1993_v14 = vld [vmem:[%s2549_s6 + $0x50] sm:$0xff] }
  0xa9   :  { %v112_v30 = vpop.f32.mrf.mxu0 }
  0xaa   :  { %v2356_v31 = vsub.f32 %v2348_v17, %v112_v30  ;;  %v1466_v30 = vor.u32 %v1966_v28, %v1465_v27  ;;  %v1998_v27 = vld [vmem:[%s2549_s6 + $0x78] sm:$0xff] }
  0xab   :  { %688 = vmatpush.bf16.msrb.mxu3 %v1998_v27 }
  0xac   :  { %v116_v32 = vmul.f32 %v2356_v31, %v2356_v31  ;;  %389 = vmatpush.bf16.msrb.mxu0 %v1466_v30  ;;  %v2013_v30 = vld [vmem:[%s2549_s6 + $0xf0] sm:$0xff] }
  0xae   :  { %133 = vmatmul.f32.vlgmr.msra.gmra.mxu1 %v116_v32  ;;  %v1964_v32 = vld [vmem:[#allocation2 + $0x6c] sm:$0xf] }
  0xaf   :  { %v1470_v34 = vor.u32 %v1964_v32, %v1467_v33  ;;  %v1989_v33 = vld [vmem:[%s2549_s6 + $0x30] sm:$0xff] }
  0xb0   :  { %390 = vmatpush.bf16.msrb.mxu0 %v1450_v43  ;;  %676 = vmatpush.bf16.msrb.mxu2 %v1989_v33  ;;  %v1995_v43 = vld [vmem:[%s2549_s6 + $0x60] sm:$0xff] }
  0xb1   :  { %402 = vmatpush.bf16.msrb.mxu1 %v1470_v34  ;;  %v1997_v34 = vld [vmem:[%s2549_s6 + $0x70] sm:$0xff] }
  0xb2   :  { %689 = vmatpush.bf16.msrb.mxu3 %v1997_v34 }
  0xb4   :  { %391 = vmatpush.bf16.msrb.mxu0 %v1434_v55  ;;  %677 = vmatpush.bf16.msrb.mxu2 %v1988_v37  ;;  %v2093_v55 = vld [vmem:[%s2545_s2] ss:$0 sm:$0xff] }
  0xb5   :  { %403 = vmatpush.bf16.msrb.mxu1 %v1454_v46  ;;  %v2002_v46 = vld [vmem:[%s2549_s6 + $0x98] sm:$0xff] }
  0xb6   :  { %690 = vmatpush.bf16.msrb.mxu3 %v1996_v38 }
  0xb8   :  { %392 = vmatpush.bf16.msrb.mxu0 %v1418_v21  ;;  %678 = vmatpush.bf16.msrb.mxu2 %v1987_v42  ;;  %v1992_v21 = vld [vmem:[%s2549_s6 + $0x48] sm:$0xff] }
  0xb9   :  { %404 = vmatpush.bf16.msrb.mxu1 %v1438_v59 }
  0xba   :  { %691 = vmatpush.bf16.msrb.mxu3 %v1995_v43 }
  0xbc   :  { %701 = vmatpush.bf16.msra.mxu0 %v2006_v24  ;;  %679 = vmatpush.bf16.msrb.mxu2 %v1986_v48 }
  0xbd   :  { %405 = vmatpush.bf16.msrb.mxu1 %v1422_v23  ;;  %v1991_v23 = vld [vmem:[%s2549_s6 + $0x40] sm:$0xff] }
  0xbe   :  { %692 = vmatpush.bf16.msrb.mxu3 %v1994_v49  ;;  %v1917_v49 = vld [vmem:[#allocation4 + $0x1f8] sm:$0xf] }
  0xc0   :  { %702 = vmatpush.bf16.msra.mxu0 %v2005_v29 }
  0xc1   :  { %714 = vmatpush.bf16.msra.mxu1 %v2014_v25 }
  0xc2   :  { %693 = vmatpush.bf16.msrb.mxu3 %v1993_v14  ;;  %v2069_v14 = vld [vmem:[#allocation4 + $0x1b4] sm:$0xf] }
  0xc4   :  { %703 = vmatpush.bf16.msra.mxu0 %v2004_v35 }
  0xc5   :  { %715 = vmatpush.bf16.msra.mxu1 %v2013_v30 }
  0xc6   :  { %694 = vmatpush.bf16.msrb.mxu3 %v1992_v21  ;;  %v2074_v21 = vld [vmem:[#allocation4 + $0x1d8] sm:$0xf0] }
  0xc8   :  { %704 = vmatpush.bf16.msra.mxu0 %v2003_v39 }
  0xc9   :  { %716 = vmatpush.bf16.msra.mxu1 %v2012_v36 }
  0xca   :  { %695 = vmatpush.bf16.msrb.mxu3 %v1991_v23 }
  0xcc   :  { %705 = vmatpush.bf16.msra.mxu0 %v2002_v46 }
  0xcd   :  { %717 = vmatpush.bf16.msra.mxu1 %v2011_v40 }
  0xd0   :  { %706 = vmatpush.bf16.msra.mxu0 %v2001_v52 }
  0xd1   :  { %718 = vmatpush.bf16.msra.mxu1 %v2010_v47 }
  0xd4   :  { %707 = vmatpush.bf16.msra.mxu0 %v2000_v62  ;;  %v2079_v62 = vld [vmem:[#allocation4 + $0x204] sm:$0xf] }
  0xd5   :  { %719 = vmatpush.bf16.msra.mxu1 %v2009_v53  ;;  %v2073_v53 = vld [vmem:[#allocation4 + $0x1d0] sm:$0xf0] }
  0xd8   :  { %708 = vmatpush.bf16.msra.mxu0 %v1999_v18  ;;  %v1883_v18 = vld [vmem:[#allocation4 + $0x1d4] sm:$0xf0] }
  0xd9   :  { %720 = vmatpush.bf16.msra.mxu1 %v2008_v63  ;;  %v1927_v63 = vld [vmem:[#allocation4 + $0x224] sm:$0xf0] }
  0xdd   :  { %721 = vmatpush.bf16.msra.mxu1 %v2007_v19  ;;  %v1886_v19 = vor.u32 %v2069_v14, %v1883_v18  ;;  %v1747_v14 = vld [vmem:[#allocation4 + $0xbc] sm:$0xf0] }
 0x12b   :  { %v134_v28 = vpop.f32.mrf.mxu1 }
 0x12c   :  { %v135_v32 = vadd.f32 1e-05, %v134_v28 }
 0x12e   :  { %2099 = vrsqrt.f32 %v135_v32  ;;  %vm143_vm1 = vweird.f32 %v135_v32 }
 0x134   :  { %v2100_v41 = vpop.eup %2099 }
 0x135   :  { %v138_v44 = vmul.f32 %v2100_v41, %v135_v32  ;;  %vm144_vm0 = vweird.f32 %v2100_v41 }
 0x136   :  { %vm145_vm2 = vmor %vm143_vm1, %vm144_vm0 }
 0x137   :  { %v139_v45 = vmul.f32 %v2100_v41, %v138_v44 }
 0x139   :  { %v140_v50 = vmul.f32 0.5, %v139_v45 }
 0x13b   :  { %v141_v51 = vsub.f32 1.5, %v140_v50  ;;  %v2082_v50 = vld [vmem:[#allocation4 + $0x218] sm:$0xf0] }
 0x13c   :  { %v1918_v52 = vor.u32 %v2082_v50, %v1917_v49  ;;  %v2042_v49 = vld [vmem:[#allocation4 + $0xdc] sm:$0xf]  ;;  %v1775_v50 = vld [vmem:[#allocation4 + $0xfc] sm:$0xf0] }
 0x13d   :  { %v142_v54 = vmul.f32 %v2100_v41, %v141_v51  ;;  %v1881_v51 = vld [vmem:[#allocation4 + $0x1b0] sm:$0xf] }
 0x13f   :  { %v146_v56 = vsel %vm145_vm2, %v2100_v41, %v142_v54  ;;  %v1845_v54 = vld [vmem:[#allocation4 + $0x168] sm:$0xf] }
 0x140   :  { %v147_v57 = vmul.f32 %v146_v56, %v2356_v31  ;;  %v1985_v31 = vld [vmem:[%s2549_s6 + $0x10] sm:$0xff]  ;;  %v1919_v56 = vld [vmem:[#allocation4 + $0x21c] sm:$0xf0] }
 0x141   :  { %680 = vmatpush.bf16.msrb.mxu2 %v1985_v31  ;;  %v1930_v31 = vor.u32 %v2079_v62, %v1927_v63  ;;  %v2038_v63 = vld [vmem:[#allocation4 + $0xb8] sm:$0xf0] }
 0x142   :  { %v151_v59 = vmul.f32 %v2093_v55, %v147_v57  ;;  %v1882_v55 = vor.u32 %v2073_v53, %v1881_v51  ;;  %v1925_v57 = vld [vmem:[#allocation4 + $0x200] sm:$0xf]  ;;  %v2047_v53 = vld [vmem:[#allocation4 + $0x100] sm:$0xf0] }
 0x143   :  { %v1781_v51 = vld [vmem:[#allocation4 + $0xe0] sm:$0xf] }
 0x144   :  { %v155_v60 = vadd.f32 %v2094_v58, %v151_v59  ;;  %v2083_v58 = vld [vmem:[#allocation4 + $0x220] sm:$0xf0]  ;;  %v2064_v59 = vld [vmem:[#allocation4 + $0x188] sm:$0xf0] }
 0x145   :  { %681 = vmatpush.bf16.msrb.mxu2 %v1984_v20  ;;  %v1889_v20 = vld [vmem:[#allocation4 + $0x1b8] sm:$0xf]  ;;  %v1846_v23 = vor.u32 %v2064_v59, %v1845_v54  ;;  %v2043_v54 = vld [vmem:[#allocation4 + $0xe4] sm:$0xf]  ;;  %v2033_v59 = vld [vmem:[#allocation4 + $0x94] sm:$0xf] }
 0x146   :  { %v156_v61 = vpack.c.bf16 %v155_v60, %v155_v60 }
 0x148   :  { %367 = vmatmul.bf16.vlgmr.msra.gmra.mxu2 %v156_v61  ;;  %380 = vmatmul.bf16.vlgmr.msra.gmra.mxu3 %v156_v61 }
 0x149   :  { %393 = vmatmul.bf16.vlgmr.msrb.gmra.mxu0 %v156_v61  ;;  %406 = vmatmul.bf16.vlgmr.msrb.gmra.mxu1 %v156_v61  ;;  %v1926_v61 = vor.u32 %v2083_v58, %v1925_v57  ;;  %v1933_v57 = vld [vmem:[#allocation4 + $0x208] sm:$0xf] }
 0x14a   :  { %682 = vmatpush.bf16.msrb.mxu2 %v1983_v22  ;;  %759 = vmatpush.msra.mxu3 %v2240_v0  ;;  %v2070_v22 = vld [vmem:[#allocation4 + $0x1bc] sm:$0xf] }
 0x14b   :  { %1269 = vmatpush.bf16.msrb.mxu0 %v1918_v52  ;;  %v1778_v52 = vor.u32 %v2042_v49, %v1775_v50  ;;  %v1905_v49 = vld [vmem:[#allocation4 + $0x1c8] sm:$0xf]  ;;  %v2076_v50 = vld [vmem:[#allocation4 + $0x1e8] sm:$0xf0] }
 0x14c   :  { %760 = vmatpush.msra.mxu3 %v2245_v1 }
 0x14e   :  { %737 = vmatpush.msra.mxu2 %v2240_v0  ;;  %761 = vmatpush.msra.mxu3 %v2252_v2  ;;  %v189_v0 = vld [vmem:[%s2548_s5] sm:$0xf] }
 0x14f   :  { %1270 = vmatpush.bf16.msrb.mxu0 %v1882_v55  ;;  %v1782_v55 = vor.u32 %v2047_v53, %v1781_v51  ;;  %v2072_v51 = vld [vmem:[#allocation4 + $0x1cc] sm:$0xf]  ;;  %v1907_v53 = vld [vmem:[#allocation4 + $0x1ec] sm:$0xf0] }
 0x150   :  { %738 = vmatpush.msra.mxu2 %v2245_v1  ;;  %762 = vmatpush.msra.mxu3 %v2259_v3  ;;  %v193_v1 = vperm.slane %v189_v0, 2 }
 0x152   :  { %739 = vmatpush.msra.mxu2 %v2252_v2  ;;  %763 = vmatpush.msra.mxu3 %v2265_v4  ;;  %v194_v2 = vperm.slane %v189_v0, 3 }
 0x153   :  { %1271 = vmatpush.bf16.msrb.mxu0 %v1846_v23  ;;  %v2024_v23 = vld [vmem:[#allocation4 + $0x4c] sm:$0xf] }
 0x154   :  { %740 = vmatpush.msra.mxu2 %v2259_v3  ;;  %764 = vmatpush.msra.mxu3 %v2273_v5 }
 0x156   :  { %741 = vmatpush.msra.mxu2 %v2265_v4  ;;  %765 = vmatpush.msra.mxu3 %v2280_v6 }
 0x158   :  { %742 = vmatpush.msra.mxu2 %v2273_v5  ;;  %766 = vmatpush.msra.mxu3 %v2287_v7 }
 0x15a   :  { %743 = vmatpush.msra.mxu2 %v2280_v6  ;;  %767 = vmatpush.msra.mxu3 %v2294_v8 }
 0x15c   :  { %744 = vmatpush.msra.mxu2 %v2287_v7  ;;  %768 = vmatpush.msra.mxu3 %v2301_v9  ;;  %v191_v7 = vperm.slane %v189_v0, 0 }
 0x15e   :  { %745 = vmatpush.msra.mxu2 %v2294_v8  ;;  %769 = vmatpush.msra.mxu3 %v2308_v10  ;;  %v192_v8 = vperm.slane %v189_v0, 1  ;;  %v1809_v0 = vld [vmem:[#allocation4 + $0x120] sm:$0xf] }
 0x160   :  { %746 = vmatpush.msra.mxu2 %v2301_v9  ;;  %770 = vmatpush.msra.mxu3 %v2315_v11 }
 0x162   :  { %747 = vmatpush.msra.mxu2 %v2308_v10  ;;  %771 = vmatpush.msra.mxu3 %v2322_v12 }
 0x164   :  { %748 = vmatpush.msra.mxu2 %v2315_v11  ;;  %772 = vmatpush.msra.mxu3 %v2329_v13 }
 0x166   :  { %749 = vmatpush.msra.mxu2 %v2322_v12  ;;  %773 = vmatpush.msra.mxu3 %v2339_v15 }
 0x168   :  { %750 = vmatpush.msra.mxu2 %v2329_v13  ;;  %774 = vmatpush.msra.mxu3 %v2346_v16 }
 0x16a   :  { %751 = vmatpush.msra.mxu2 %v2339_v15  ;;  %v2095_v15 = vld [vmem:[%s2550_s7] ss:$0 sm:$0xff] }
 0x16c   :  { %752 = vmatpush.msra.mxu2 %v2346_v16 }
 0x1c6   :  { %v394_v3 = vpop.f32.mrf.mxu0  ;;  %v407_v4 = vpop.f32.mrf.mxu1 }
 0x1c7   :  { %v395_v5 = vadd.f32 %v394_v3, %v193_v1  ;;  %v408_v6 = vadd.f32 %v407_v4, %v194_v2  ;;  %v2055_v1 = vld [vmem:[#allocation4 + $0x140] sm:$0xf0]  ;;  %v1890_v2 = vor.u32 %v2074_v21, %v1889_v20  ;;  %v1891_v3 = vld [vmem:[#allocation4 + $0x1dc] sm:$0xf0] }
 0x1c8   :  { %v1894_v4 = vor.u32 %v2070_v22, %v1891_v3  ;;  %v1897_v20 = vld [vmem:[#allocation4 + $0x1c0] sm:$0xf]  ;;  %v2075_v21 = vld [vmem:[#allocation4 + $0x1e0] sm:$0xf0]  ;;  %v2029_v3 = vld [vmem:[#allocation4 + $0x70] sm:$0xf0] }
 0x1c9   :  { %v413_v24 = vmax.f32 %v395_v5, 0.0  ;;  %v414_v25 = vmax.f32 %v408_v6, 0.0  ;;  %v2060_v5 = vld [vmem:[#allocation4 + $0x16c] sm:$0xf]  ;;  %v1847_v6 = vld [vmem:[#allocation4 + $0x18c] sm:$0xf0]  ;;  %v1898_v22 = vor.u32 %v2075_v21, %v1897_v20 }
 0x1ca   :  { %v2053_v20 = vld [vmem:[#allocation4 + $0x134] sm:$0xf]  ;;  %v1827_v21 = vld [vmem:[#allocation4 + $0x154] sm:$0xf0] }
 0x1cb   :  { %v417_v9 = vpack.c.bf16 %v413_v24, %v413_v24  ;;  %v418_v26 = vpack.c.bf16 %v414_v25, %v414_v25  ;;  %v368_v27 = vpop.f32.mrf.mxu2  ;;  %v381_v10 = vpop.f32.mrf.mxu3  ;;  %v2061_v24 = vld [vmem:[#allocation4 + $0x174] sm:$0xf]  ;;  %v1855_v25 = vld [vmem:[#allocation4 + $0x194] sm:$0xf0] }
 0x1cc   :  { %v369_v28 = vadd.f32 %v368_v27, %v191_v7  ;;  %v382_v29 = vadd.f32 %v381_v10, %v192_v8  ;;  %v1853_v7 = vld [vmem:[#allocation4 + $0x170] sm:$0xf]  ;;  %v2065_v8 = vld [vmem:[#allocation4 + $0x190] sm:$0xf0]  ;;  %v2051_v10 = vld [vmem:[#allocation4 + $0x124] sm:$0xf] }
 0x1cd   :  { %709 = vmatmul.bf16.vlgmr.msra.gmra.mxu0 %v417_v9  ;;  %722 = vmatmul.bf16.vlgmr.msra.gmra.mxu1 %v418_v26  ;;  %v1773_v9 = vld [vmem:[#allocation4 + $0xd8] sm:$0xf]  ;;  %v1850_v26 = vor.u32 %v2060_v5, %v1847_v6  ;;  %v1854_v27 = vor.u32 %v2065_v8, %v1853_v7 }
 0x1ce   :  { %v411_v11 = vmax.f32 %v369_v28, 0.0  ;;  %v412_v30 = vmax.f32 %v382_v29, 0.0  ;;  %v396_v32 = vpop.f32.mrf.mxu0  ;;  %v409_v33 = vpop.f32.mrf.mxu1  ;;  %v1810_v28 = vor.u32 %v2055_v1, %v1809_v0  ;;  %v1858_v29 = vor.u32 %v2061_v24, %v1855_v25  ;;  %v1703_v0 = vld [vmem:[#allocation4 + $0x6c] sm:$0xf0]  ;;  %v1711_v5 = vld [vmem:[#allocation4 + $0x74] sm:$0xf0] }
 0x1cf   :  { %v2056_v32 = vld [vmem:[#allocation4 + $0x148] sm:$0xf0]  ;;  %v2046_v33 = vld [vmem:[#allocation4 + $0xf8] sm:$0xf0]  ;;  %v1709_v1 = vld [vmem:[#allocation4 + $0x50] sm:$0xf] }
 0x1d0   :  { %v415_v12 = vpack.c.bf16 %v411_v11, %v411_v11  ;;  %v416_v34 = vpack.c.bf16 %v412_v30, %v412_v30  ;;  %v1811_v11 = vld [vmem:[#allocation4 + $0x144] sm:$0xf0]  ;;  %1272 = vmatpush.bf16.msrb.mxu0 %v1810_v28  ;;  %v1710_v6 = vor.u32 %v2029_v3, %v1709_v1  ;;  %v1861_v8 = vld [vmem:[#allocation4 + $0x178] sm:$0xf]  ;;  %v2066_v24 = vld [vmem:[#allocation4 + $0x198] sm:$0xf0] }
 0x1d1   :  { %v1817_v30 = vld [vmem:[#allocation4 + $0x128] sm:$0xf]  ;;  %v1862_v25 = vor.u32 %v2066_v24, %v1861_v8  ;;  %v2020_v28 = vld [vmem:[#allocation4 + $0x28] sm:$0xf0]  ;;  %v2054_v1 = vld [vmem:[#allocation4 + $0x13c] sm:$0xf] }
 0x1d2   :  { %683 = vmatmul.bf16.vlgmr.msrb.gmra.mxu2 %v415_v12  ;;  %696 = vmatmul.bf16.vlgmr.msrb.gmra.mxu3 %v416_v34  ;;  %v2052_v12 = vld [vmem:[#allocation4 + $0x12c] sm:$0xf]  ;;  %v1819_v34 = vld [vmem:[#allocation4 + $0x14c] sm:$0xf0] }
 0x1d3   :  { %v370_v13 = vpop.f32.mrf.mxu2  ;;  %v383_v35 = vpop.f32.mrf.mxu3  ;;  %1295 = vmatpush.bf16.msrb.mxu2 %v1926_v61  ;;  %1308 = vmatpush.bf16.msrb.mxu3 %v1930_v31  ;;  %v1745_v61 = vld [vmem:[#allocation4 + $0x98] sm:$0xf]  ;;  %v2034_v31 = vld [vmem:[#allocation4 + $0x9c] sm:$0xf]  ;;  %v2044_v8 = vld [vmem:[#allocation4 + $0xec] sm:$0xf] }
 0x1d4   :  { %v1814_v13 = vor.u32 %v2051_v10, %v1811_v11  ;;  %v1818_v35 = vor.u32 %v2056_v32, %v1817_v30  ;;  %v1746_v18 = vor.u32 %v2038_v63, %v1745_v61  ;;  %v1675_v11 = vld [vmem:[#allocation4 + $0x2c] sm:$0xf0]  ;;  %v2063_v61 = vld [vmem:[#allocation4 + $0x184] sm:$0xf]  ;;  %v1871_v63 = vld [vmem:[#allocation4 + $0x1a4] sm:$0xf0] }
 0x1d5   :  { %v1791_v24 = vld [vmem:[#allocation4 + $0x10c] sm:$0xf0] }
 0x1d7   :  { %1296 = vmatpush.bf16.msrb.mxu2 %v1890_v2  ;;  %1309 = vmatpush.bf16.msrb.mxu3 %v1894_v4  ;;  %v1706_v2 = vor.u32 %v2024_v23, %v1703_v0  ;;  %v2025_v4 = vld [vmem:[#allocation4 + $0x54] sm:$0xf]  ;;  %v1830_v23 = vor.u32 %v2053_v20, %v1827_v21  ;;  %v2058_v0 = vld [vmem:[#allocation4 + $0x158] sm:$0xf0] }
 0x1d8   :  { %v1714_v7 = vor.u32 %v2025_v4, %v1711_v5  ;;  %v1681_v5 = vld [vmem:[#allocation4 + $0x10] sm:$0xf] }
 0x1db   :  { %1297 = vmatpush.bf16.msrb.mxu2 %v1854_v27  ;;  %1310 = vmatpush.bf16.msrb.mxu3 %v1858_v29  ;;  %v1673_v27 = vld [vmem:[#allocation4 + $0x8] sm:$0xf]  ;;  %v2016_v29 = vld [vmem:[#allocation4 + $0xc] sm:$0xf] }
 0x1dc   :  { %v1674_v30 = vor.u32 %v2020_v28, %v1673_v27  ;;  %v1678_v32 = vor.u32 %v2016_v29, %v1675_v11  ;;  %v2045_v27 = vld [vmem:[#allocation4 + $0xf4] sm:$0xf]  ;;  %v2035_v11 = vld [vmem:[#allocation4 + $0xa4] sm:$0xf] }
 0x1df   :  { %1298 = vmatpush.bf16.msrb.mxu2 %v1818_v35  ;;  %v1935_v35 = vld [vmem:[#allocation4 + $0x22c] sm:$0xf0] }
 0x1e3   :  { %1299 = vmatpush.bf16.msrb.mxu2 %v1782_v55  ;;  %v2039_v55 = vld [vmem:[#allocation4 + $0xc0] sm:$0xf0] }
 0x1e7   :  { %1300 = vmatpush.bf16.msrb.mxu2 %v1746_v18  ;;  %v2030_v18 = vld [vmem:[#allocation4 + $0x78] sm:$0xf0] }
 0x1eb   :  { %1301 = vmatpush.bf16.msrb.mxu2 %v1710_v6  ;;  %v2021_v6 = vld [vmem:[#allocation4 + $0x30] sm:$0xf0] }
 0x1ef   :  { %1302 = vmatpush.bf16.msrb.mxu2 %v1674_v30  ;;  %v1755_v30 = vld [vmem:[#allocation4 + $0xc4] sm:$0xf0] }
 0x24a   :  { %v710_v36 = vpop.f32.mrf.mxu0  ;;  %v723_v37 = vpop.f32.mrf.mxu1 }
 0x252   :  { %v712_v38 = vpop.f32.mrf.mxu0  ;;  %v725_v39 = vpop.f32.mrf.mxu1 }
 0x253   :  { %v1737_v38 = vld [vmem:[#allocation4 + $0x90] sm:$0xf]  ;;  %v2037_v39 = vld [vmem:[#allocation4 + $0xb0] sm:$0xf0] }
 0x255   :  { %v684_v40 = vpop.f32.mrf.mxu2  ;;  %v697_v41 = vpop.f32.mrf.mxu3 }
 0x256   :  { %v698_v42 = vadd.f32 %v697_v41, %v684_v40  ;;  %v1738_v40 = vor.u32 %v2037_v39, %v1737_v38  ;;  %v1701_v41 = vld [vmem:[#allocation4 + $0x48] sm:$0xf] }
 0x258   :  { %v711_v43 = vadd.f32 %v710_v36, %v698_v42  ;;  %v1774_v36 = vor.u32 %v2046_v33, %v1773_v9  ;;  %v2028_v42 = vld [vmem:[#allocation4 + $0x68] sm:$0xf0]  ;;  %v2015_v9 = vld [vmem:[#allocation4 + $0x4] sm:$0xf]  ;;  %v1825_v33 = vld [vmem:[#allocation4 + $0x130] sm:$0xf] }
 0x25a   :  { %v724_v44 = vadd.f32 %v723_v37, %v711_v43  ;;  %v1822_v37 = vor.u32 %v2052_v12, %v1819_v34  ;;  %1273 = vmatpush.bf16.msrb.mxu0 %v1774_v36  ;;  %v1702_v43 = vor.u32 %v2028_v42, %v1701_v41  ;;  %v2057_v12 = vld [vmem:[#allocation4 + $0x150] sm:$0xf0]  ;;  %v2080_v34 = vld [vmem:[#allocation4 + $0x20c] sm:$0xf]  ;;  %v1941_v36 = vld [vmem:[#allocation4 + $0x210] sm:$0xf] }
 0x25b   :  { %v1938_v38 = vor.u32 %v2080_v34, %v1935_v35  ;;  %v1943_v41 = vld [vmem:[#allocation4 + $0x234] sm:$0xf0]  ;;  %v1789_v42 = vld [vmem:[#allocation4 + $0xe8] sm:$0xf]  ;;  %v2036_v34 = vld [vmem:[#allocation4 + $0xac] sm:$0xf] }
 0x25c   :  { %v727_v45 = vadd.f32 %v724_v44, %v2348_v17  ;;  %v2078_v17 = vld [vmem:[#allocation4 + $0x1fc] sm:$0xf]  ;;  %1311 = vmatpush.bf16.msrb.mxu3 %v1822_v37  ;;  %v2085_v37 = vld [vmem:[#allocation4 + $0x230] sm:$0xf0] }
 0x25d   :  { %v686_v16 = vpop.f32.mrf.mxu2  ;;  %v699_v46 = vpop.f32.mrf.mxu3  ;;  %v1922_v60 = vor.u32 %v2078_v17, %v1919_v56  ;;  %v1783_v17 = vld [vmem:[#allocation4 + $0x104] sm:$0xf0]  ;;  %v1942_v39 = vor.u32 %v2085_v37, %v1941_v36  ;;  %v1758_v36 = vor.u32 %v2035_v11, %v1755_v30  ;;  %v2023_v11 = vld [vmem:[#allocation4 + $0x40] sm:$0xf0] }
 0x25e   :  { %v2502_v47 = vadd.f32 %v2095_v15, %v727_v45  ;;  %1274 = vmatpush.bf16.msrb.mxu0 %v1738_v40  ;;  %v1665_v16 = vld [vmem:[#allocation4] sm:$0xf]  ;;  %v2019_v46 = vld [vmem:[#allocation4 + $0x20] sm:$0xf0]  ;;  %v1786_v56 = vor.u32 %v2043_v54, %v1783_v17  ;;  %v2081_v40 = vld [vmem:[#allocation4 + $0x214] sm:$0xf]  ;;  %v1910_v54 = vor.u32 %v2072_v51, %v1907_v53 }
 0x25f   :  { %1282 = vmatpush.bf16.msrb.mxu1 %v1922_v60  ;;  %v1739_v60 = vld [vmem:[#allocation4 + $0xb4] sm:$0xf0]  ;;  %v1753_v17 = vld [vmem:[#allocation4 + $0xa0] sm:$0xf]  ;;  %v2022_v51 = vld [vmem:[#allocation4 + $0x38] sm:$0xf0] }
 0x260   :  { %v733_v48 = vpack.c.bf16 %v2502_v47, %v2502_v47  ;;  %753 = vmatmul.f32.vlgmr.msra.gmra.mxu2 %v2502_v47  ;;  %1312 = vmatpush.bf16.msrb.mxu3 %v1786_v56  ;;  %v1742_v62 = vor.u32 %v2033_v59, %v1739_v60  ;;  %v1754_v56 = vor.u32 %v2039_v55, %v1753_v17  ;;  %v2067_v60 = vld [vmem:[#allocation4 + $0x1a0] sm:$0xf0]  ;;  %v1691_v53 = vld [vmem:[#allocation4 + $0x3c] sm:$0xf0] }
 0x261   :  { %1347 = vmatpush.bf16.msra.mxu2 %v1942_v39  ;;  %v2026_v39 = vld [vmem:[#allocation4 + $0x5c] sm:$0xf] }
 0x262   :  { %734 = vst [vmem:[%s2555_s12] sm:$0xf] %v733_v48  ;;  %1275 = vmatpush.bf16.msrb.mxu0 %v1702_v43  ;;  %v1666_v48 = vor.u32 %v2019_v46, %v1665_v16  ;;  %v1946_v43 = vor.u32 %v2081_v40, %v1943_v41  ;;  %v1899_v16 = vld [vmem:[#allocation4 + $0x1e4] sm:$0xf0]  ;;  %v1719_v40 = vld [vmem:[#allocation4 + $0x7c] sm:$0xf0] }
 0x263   :  { %1283 = vmatpush.bf16.msrb.mxu1 %v1886_v19  ;;  %v1750_v19 = vor.u32 %v2034_v31, %v1747_v14  ;;  %v1874_v31 = vor.u32 %v2063_v61, %v1871_v63  ;;  %v1717_v14 = vld [vmem:[#allocation4 + $0x58] sm:$0xf]  ;;  %v1725_v41 = vld [vmem:[#allocation4 + $0x60] sm:$0xf] }
 0x264   :  { %v2096_v61 = vld [vmem:[%s2551_s8] ss:$0 sm:$0xff] }
 0x265   :  { %1313 = vmatpush.bf16.msrb.mxu3 %v1750_v19  ;;  %v1718_v19 = vor.u32 %v2030_v18, %v1717_v14  ;;  %v1949_v18 = vld [vmem:[#allocation4 + $0x218] sm:$0xf] }
 0x266   :  { %1276 = vmatpush.bf16.msrb.mxu0 %v1666_v48 }
 0x267   :  { %1284 = vmatpush.bf16.msrb.mxu1 %v1850_v26  ;;  %v1667_v26 = vld [vmem:[#allocation4 + $0x24] sm:$0xf0] }
 0x268   :  { %v1670_v10 = vor.u32 %v2015_v9, %v1667_v26  ;;  %v1794_v9 = vor.u32 %v2044_v8, %v1791_v24  ;;  %v2049_v26 = vld [vmem:[#allocation4 + $0x110] sm:$0xf0]  ;;  %v2050_v8 = vld [vmem:[#allocation4 + $0x118] sm:$0xf0] }
 0x269   :  { %1314 = vmatpush.bf16.msrb.mxu3 %v1714_v7  ;;  %v1682_v7 = vor.u32 %v2021_v6, %v1681_v5  ;;  %v2059_v5 = vld [vmem:[#allocation4 + $0x160] sm:$0xf0] }
 0x26b   :  { %1285 = vmatpush.bf16.msrb.mxu1 %v1814_v13  ;;  %v1826_v13 = vor.u32 %v2057_v12, %v1825_v33  ;;  %v2040_v12 = vld [vmem:[#allocation4 + $0xc8] sm:$0xf0] }
 0x26d   :  { %1315 = vmatpush.bf16.msrb.mxu3 %v1678_v32  ;;  %v1761_v32 = vld [vmem:[#allocation4 + $0xa8] sm:$0xf] }
 0x26e   :  { %v1762_v37 = vor.u32 %v2040_v12, %v1761_v32  ;;  %v879_v32 = vld [vmem:[%s2554_s11] sm:$0xff] }
 0x26f   :  { %1286 = vmatpush.bf16.msrb.mxu1 %v1778_v52  ;;  %v1906_v52 = vor.u32 %v2076_v50, %v1905_v49  ;;  %v1683_v49 = vld [vmem:[#allocation4 + $0x34] sm:$0xf0]  ;;  %v884_v12 = vperm.slane %v879_v32, 1 }
 0x270   :  { %v1689_v50 = vld [vmem:[#allocation4 + $0x18] sm:$0xf] }
 0x271   :  { %1348 = vmatpush.bf16.msra.mxu2 %v1906_v52  ;;  %v2018_v52 = vld [vmem:[#allocation4 + $0x1c] sm:$0xf]  ;;  %v1690_v55 = vor.u32 %v2022_v51, %v1689_v50 }
 0x273   :  { %1287 = vmatpush.bf16.msrb.mxu1 %v1742_v62 }
 0x277   :  { %1288 = vmatpush.bf16.msrb.mxu1 %v1706_v2  ;;  %v1835_v2 = vld [vmem:[#allocation4 + $0x15c] sm:$0xf0] }
 0x278   :  { %v1838_v4 = vor.u32 %v2054_v1, %v1835_v2  ;;  %v1877_v2 = vld [vmem:[#allocation4 + $0x188] sm:$0xf] }
 0x27b   :  { %1289 = vmatpush.bf16.msrb.mxu1 %v1670_v10  ;;  %v1799_v10 = vld [vmem:[#allocation4 + $0x114] sm:$0xf0] }
 0x27c   :  { %v1802_v29 = vor.u32 %v2045_v27, %v1799_v10  ;;  %v1733_v27 = vld [vmem:[#allocation4 + $0x68] sm:$0xf]  ;;  %v2032_v10 = vld [vmem:[#allocation4 + $0x88] sm:$0xf0] }
 0x27f   :  { %1334 = vmatpush.bf16.msra.mxu1 %v1938_v38 }
 0x2e3   :  { %v754_v44 = vpop.f32.mrf.mxu2 }
 0x2e4   :  { %v2511_v15 = vsub.f32 %v2502_v47, %v754_v44  ;;  %v2084_v47 = vld [vmem:[#allocation4 + $0x228] sm:$0xf0] }
 0x2e5   :  { %v1934_v58 = vor.u32 %v2084_v47, %v1933_v57  ;;  %v2048_v44 = vld [vmem:[#allocation4 + $0x108] sm:$0xf0]  ;;  %v2062_v57 = vld [vmem:[#allocation4 + $0x17c] sm:$0xf]  ;;  %v1863_v47 = vld [vmem:[#allocation4 + $0x19c] sm:$0xf0] }
 0x2e6   :  { %v758_v45 = vmul.f32 %v2511_v15, %v2511_v15  ;;  %v1790_v46 = vor.u32 %v2048_v44, %v1789_v42  ;;  %v1866_v59 = vor.u32 %v2062_v57, %v1863_v47  ;;  %v2031_v42 = vld [vmem:[#allocation4 + $0x80] sm:$0xf0]  ;;  %v1727_v44 = vld [vmem:[#allocation4 + $0x84] sm:$0xf0]  ;;  %v1694_v57 = vor.u32 %v2018_v52, %v1691_v53 }
 0x2e7   :  { %1321 = vmatpush.bf16.msra.mxu0 %v1934_v58  ;;  %v1869_v58 = vld [vmem:[#allocation4 + $0x180] sm:$0xf] }
 0x2e8   :  { %775 = vmatmul.f32.vlgmr.msra.gmra.mxu3 %v758_v45  ;;  %v2071_v45 = vld [vmem:[#allocation4 + $0x1c4] sm:$0xf]  ;;  %v1870_v62 = vor.u32 %v2067_v60, %v1869_v58 }
 0x2e9   :  { %v1902_v48 = vor.u32 %v2071_v45, %v1899_v16  ;;  %1360 = vmatpush.bf16.msra.mxu3 %v1946_v43  ;;  %v2027_v43 = vld [vmem:[#allocation4 + $0x64] sm:$0xf]  ;;  %v1722_v45 = vor.u32 %v2026_v39, %v1719_v40  ;;  %v1726_v16 = vor.u32 %v2031_v42, %v1725_v41  ;;  %v886_v39 = vperm.slane %v879_v32, 3 }
 0x2ea   :  { %1349 = vmatpush.bf16.msra.mxu2 %v1870_v62 }
 0x2eb   :  { %1322 = vmatpush.bf16.msra.mxu0 %v1898_v22  ;;  %1335 = vmatpush.bf16.msra.mxu1 %v1902_v48  ;;  %v1833_v22 = vld [vmem:[#allocation4 + $0x138] sm:$0xf]  ;;  %v2017_v48 = vld [vmem:[#allocation4 + $0x14] sm:$0xf] }
 0x2ec   :  { %v1834_v3 = vor.u32 %v2058_v0, %v1833_v22  ;;  %v1686_v17 = vor.u32 %v2017_v48, %v1683_v49  ;;  %v2077_v0 = vld [vmem:[#allocation4 + $0x1f0] sm:$0xf0]  ;;  %v888_v48 = vperm.slane %v879_v32, 5 }
 0x2ed   :  { %1361 = vmatpush.bf16.msra.mxu3 %v1910_v54 }
 0x2ee   :  { %1350 = vmatpush.bf16.msra.mxu2 %v1834_v3 }
 0x2ef   :  { %1323 = vmatpush.bf16.msra.mxu0 %v1862_v25  ;;  %1336 = vmatpush.bf16.msra.mxu1 %v1866_v59  ;;  %v1797_v25 = vld [vmem:[#allocation4 + $0xf0] sm:$0xf] }
 0x2f0   :  { %v1798_v28 = vor.u32 %v2049_v26, %v1797_v25  ;;  %v1769_v25 = vld [vmem:[#allocation4 + $0xb0] sm:$0xf] }
 0x2f1   :  { %1362 = vmatpush.bf16.msra.mxu3 %v1874_v31  ;;  %v2097_v31 = vld [vmem:[%s2552_s9] ss:$0 sm:$0xff] }
 0x2f2   :  { %1351 = vmatpush.bf16.msra.mxu2 %v1798_v28  ;;  %v1734_v28 = vor.u32 %v2032_v10, %v1733_v27 }
 0x2f3   :  { %1324 = vmatpush.bf16.msra.mxu0 %v1826_v13  ;;  %1337 = vmatpush.bf16.msra.mxu1 %v1830_v23  ;;  %v1763_v13 = vld [vmem:[#allocation4 + $0xcc] sm:$0xf0] }
 0x2f4   :  { %v1766_v38 = vor.u32 %v2036_v34, %v1763_v13  ;;  %v1913_v23 = vld [vmem:[#allocation4 + $0x1d0] sm:$0xf] }
 0x2f5   :  { %1363 = vmatpush.bf16.msra.mxu3 %v1838_v4  ;;  %v1914_v1 = vor.u32 %v2077_v0, %v1913_v23  ;;  %v1841_v4 = vld [vmem:[#allocation4 + $0x140] sm:$0xf] }
 0x2f6   :  { %1352 = vmatpush.bf16.msra.mxu2 %v1762_v37  ;;  %v1842_v6 = vor.u32 %v2059_v5, %v1841_v4 }
 0x2f7   :  { %1325 = vmatpush.bf16.msra.mxu0 %v1790_v46  ;;  %1338 = vmatpush.bf16.msra.mxu1 %v1794_v9  ;;  %v1730_v46 = vor.u32 %v2027_v43, %v1727_v44  ;;  %v2041_v9 = vld [vmem:[#allocation4 + $0xd0] sm:$0xf0] }
 0x2f8   :  { %v1770_v26 = vor.u32 %v2041_v9, %v1769_v25 }
 0x2f9   :  { %1364 = vmatpush.bf16.msra.mxu3 %v1802_v29  ;;  %v1697_v29 = vld [vmem:[#allocation4 + $0x20] sm:$0xf] }
 0x2fa   :  { %1353 = vmatpush.bf16.msra.mxu2 %v1726_v16  ;;  %v1698_v30 = vor.u32 %v2023_v11, %v1697_v29 }
 0x2fb   :  { %1326 = vmatpush.bf16.msra.mxu0 %v1754_v56  ;;  %1339 = vmatpush.bf16.msra.mxu1 %v1758_v36 }
 0x2fd   :  { %1365 = vmatpush.bf16.msra.mxu3 %v1766_v38  ;;  %v885_v38 = vperm.slane %v879_v32, 2 }
 0x2fe   :  { %1354 = vmatpush.bf16.msra.mxu2 %v1690_v55  ;;  %v889_v55 = vperm.slane %v879_v32, 6 }
 0x2ff   :  { %1327 = vmatpush.bf16.msra.mxu0 %v1718_v19  ;;  %1340 = vmatpush.bf16.msra.mxu1 %v1722_v45  ;;  %v2086_v19 = vld [vmem:[#allocation4 + $0x238] sm:$0xf0] }
 0x300   :  { %v1950_v22 = vor.u32 %v2086_v19, %v1949_v18 }
 0x301   :  { %1366 = vmatpush.bf16.msra.mxu3 %v1730_v46  ;;  %v887_v46 = vperm.slane %v879_v32, 4 }
 0x303   :  { %1328 = vmatpush.bf16.msra.mxu0 %v1682_v7  ;;  %1341 = vmatpush.bf16.msra.mxu1 %v1686_v17  ;;  %v1805_v7 = vld [vmem:[#allocation4 + $0xf8] sm:$0xf] }
 0x304   :  { %v1806_v24 = vor.u32 %v2050_v8, %v1805_v7 }
 0x305   :  { %1367 = vmatpush.bf16.msra.mxu3 %v1694_v57 }
 0x36b   :  { %v776_v33 = vpop.f32.mrf.mxu3 }
 0x36c   :  { %v777_v35 = vadd.f32 1e-05, %v776_v33  ;;  %v883_v33 = vperm.slane %v879_v32, 0 }
 0x36e   :  { %2101 = vrsqrt.f32 %v777_v35  ;;  %vm785_vm4 = vweird.f32 %v777_v35 }
 0x374   :  { %v2102_v54 = vpop.eup %2101 }
 0x375   :  { %v780_v56 = vmul.f32 %v2102_v54, %v777_v35  ;;  %vm786_vm3 = vweird.f32 %v2102_v54 }
 0x376   :  { %vm787_vm5 = vmor %vm785_vm4, %vm786_vm3 }
 0x377   :  { %v781_v47 = vmul.f32 %v2102_v54, %v780_v56  ;;  %v890_v56 = vperm.slane %v879_v32, 7 }
 0x379   :  { %v782_v58 = vmul.f32 0.5, %v781_v47 }
 0x37b   :  { %v783_v59 = vsub.f32 1.5, %v782_v58 }
 0x37d   :  { %v784_v60 = vmul.f32 %v2102_v54, %v783_v59 }
 0x37f   :  { %v788_v62 = vsel %vm787_vm5, %v2102_v54, %v784_v60 }
 0x380   :  { %v789_v63 = vmul.f32 %v788_v62, %v2511_v15  ;;  %v2068_v15 = vld [vmem:[#allocation4 + $0x1a8] sm:$0xf0] }
 0x381   :  { %v1878_v3 = vor.u32 %v2068_v15, %v1877_v2 }
 0x382   :  { %v793_v14 = vmul.f32 %v2096_v61, %v789_v63  ;;  %v2098_v63 = vld [vmem:[%s2554_s11 + $0x8] ss:$0 sm:$0xff] }
 0x384   :  { %v797_v20 = vadd.f32 %v2097_v31, %v793_v14 }
 0x386   :  { %v798_v21 = vpack.c.bf16 %v797_v20, %v797_v20 }
 0x388   :  { %1277 = vmatmul.bf16.vlgmr.msrb.gmra.mxu0 %v798_v21  ;;  %1290 = vmatmul.bf16.vlgmr.msrb.gmra.mxu1 %v798_v21 }
 0x389   :  { %1303 = vmatmul.bf16.vlgmr.msrb.gmra.mxu2 %v798_v21  ;;  %1316 = vmatmul.bf16.vlgmr.msrb.gmra.mxu3 %v798_v21 }
 0x38a   :  { %1373 = vmatpush.bf16.msrb.mxu0 %v1950_v22 }
 0x38e   :  { %1374 = vmatpush.bf16.msrb.mxu0 %v1914_v1 }
 0x392   :  { %1375 = vmatpush.bf16.msrb.mxu0 %v1878_v3 }
 0x396   :  { %1376 = vmatpush.bf16.msrb.mxu0 %v1842_v6 }
 0x398   :  { %1329 = vmatmul.bf16.vlgmr.msra.gmra.mxu0 %v798_v21  ;;  %1342 = vmatmul.bf16.vlgmr.msra.gmra.mxu1 %v798_v21 }
 0x399   :  { %1355 = vmatmul.bf16.vlgmr.msra.gmra.mxu2 %v798_v21  ;;  %1368 = vmatmul.bf16.vlgmr.msra.gmra.mxu3 %v798_v21 }
 0x39a   :  { %1377 = vmatpush.bf16.msrb.mxu0 %v1806_v24 }
 0x39e   :  { %1378 = vmatpush.bf16.msrb.mxu0 %v1770_v26 }
 0x3a2   :  { %1379 = vmatpush.bf16.msrb.mxu0 %v1734_v28 }
 0x3a6   :  { %1380 = vmatpush.bf16.msrb.mxu0 %v1698_v30 }
 0x3a9   :  { %1381 = vmatmul.bf16.vlgmr.msrb.gmra.mxu0 %v798_v21 }
 0x405   :  { %v1278_v34 = vpop.f32.mrf.mxu0  ;;  %v1291_v13 = vpop.f32.mrf.mxu1 }
 0x406   :  { %v1279_v35 = vadd.f32 %v1278_v34, %v883_v33  ;;  %v1292_v36 = vadd.f32 %v1291_v13, %v884_v12 }
 0x408   :  { %v1386_v37 = vpack.c.bf16 %v1292_v36, %v1279_v35 }
 0x40a   :  { %1391 = vst [vmem:[%s2556_s13] sm:$0xff] %v1386_v37 }
 0x40c   :  { %v1304_v40 = vpop.f32.mrf.mxu2  ;;  %v1317_v41 = vpop.f32.mrf.mxu3 }
 0x40d   :  { %v1305_v42 = vadd.f32 %v1304_v40, %v885_v38  ;;  %v1318_v43 = vadd.f32 %v1317_v41, %v886_v39  ;;  %v1280_v44 = vpop.f32.mrf.mxu0  ;;  %v1293_v45 = vpop.f32.mrf.mxu1 }
 0x40f   :  { %v1387_v16 = vpack.c.bf16 %v1318_v43, %v1305_v42 }
 0x411   :  { %1392 = vst [vmem:[%s2556_s13 + $0x8] sm:$0xff] %v1387_v16 }
 0x414   :  { %v1306_v49 = vpop.f32.mrf.mxu2  ;;  %v1319_v50 = vpop.f32.mrf.mxu3 }
 0x415   :  { %v1330_v51 = vpop.f32.mrf.mxu0  ;;  %v1343_v52 = vpop.f32.mrf.mxu1 }
 0x416   :  { %v1331_v53 = vadd.f32 %v1330_v51, %v887_v46  ;;  %v1344_v54 = vadd.f32 %v1343_v52, %v888_v48 }
 0x418   :  { %v1388_v17 = vpack.c.bf16 %v1344_v54, %v1331_v53 }
 0x41a   :  { %1393 = vst [vmem:[%s2556_s13 + $0x10] sm:$0xff] %v1388_v17 }
 0x41c   :  { %v1356_v57 = vpop.f32.mrf.mxu2  ;;  %v1369_v47 = vpop.f32.mrf.mxu3 }
 0x41d   :  { %v1357_v58 = vadd.f32 %v1356_v57, %v889_v55  ;;  %v1370_v59 = vadd.f32 %v1369_v47, %v890_v56  ;;  %v1332_v60 = vpop.f32.mrf.mxu0  ;;  %v1345_v61 = vpop.f32.mrf.mxu1 }
 0x41f   :  { %v1389_v62 = vpack.c.bf16 %v1370_v59, %v1357_v58 }
 0x421   :  { %1394 = vst [vmem:[%s2556_s13 + $0x18] sm:$0xff] %v1389_v62 }
 0x424   :  { %v1358_v31 = vpop.f32.mrf.mxu2  ;;  %v1371_v14 = vpop.f32.mrf.mxu3 }
 0x426   :  { %v1382_v18 = vpop.f32.mrf.mxu0 }
 0x427   :  { %v1383_v19 = vadd.f32 %v2098_v63, %v1382_v18 }
 0x429   :  { %v1390_v20 = vpack.c.bf16 %v1383_v19, %v1383_v19 }
 0x42b   :  { %1396 = vst.msk [vmem:[%s2556_s13 + $0x20] sm:$0xf] %vm1395_vm6, %v1390_v20 }
 0x42e   :  { %v1384_v21 = vpop.f32.mrf.mxu0 }
 0x42f   :  { %1405 = vsyncpa [#allocation3], 1 }
 0x430   :  { %1406 = vsyncpa [#allocation5], 1 }

// kernel: _lambda_.27
= control target key start
LH: loop header
LB: loop body
LE: loop exit
PB: predicated region body
PF: predicated region fallthrough
CT: control target
= control target key end

     0   :  { %s612_s0 = inlined_call_operand.vmem [shape: bf16[8,32], index: 0, kind: input, shape index: {}]   ;;  %s613_s1 = inlined_call_operand.vmem [shape: f32[1,32], index: 1, kind: input, shape index: {}]   ;;  %s614_s2 = inlined_call_operand.vmem [shape: f32[1,32], index: 2, kind: input, shape index: {}, may-alias: {2,4,6,10}]   ;;  %s615_s3 = inlined_call_operand.vmem [shape: bf16[32,32], index: 3, kind: input, shape index: {}]   ;;  %s616_s4 = inlined_call_operand.vmem [shape: f32[1,32], index: 4, kind: input, shape index: {}, may-alias: {2,4,6,10}]   ;;  %s617_s5 = inlined_call_operand.vmem [shape: bf16[32,32], index: 5, kind: input, shape index: {}]   ;;  %s618_s6 = inlined_call_operand.vmem [shape: f32[1,32], index: 6, kind: input, shape index: {}, may-alias: {2,4,6,10}]   ;;  %s619_s7 = inlined_call_operand.vmem [shape: bf16[32,8], index: 7, kind: input, shape index: {}]   ;;  %s620_s8 = inlined_call_operand.vmem [shape: f32[1,8], index: 8, kind: input, shape index: {}]   ;;  %s621_s9 = inlined_call_operand.vmem [shape: bf16[32,32], index: 9, kind: input, shape index: {}]   ;;  %s622_s10 = inlined_call_operand.vmem [shape: f32[1,32], index: 10, kind: input, shape index: {}, may-alias: {2,4,6,10}]   ;;  %s623_s11 = inlined_call_operand.vmem [shape: bf16[32,50], index: 11, kind: input, shape index: {}]   ;;  %s624_s12 = inlined_call_operand.vmem [shape: f32[1,50], index: 12, kind: input, shape index: {}]   ;;  %s625_s13 = inlined_call_operand.vmem [shape: f32[1,50], index: 13, kind: input, shape index: {}]   ;;  %s626_s14 = inlined_call_operand.vmem [shape: f32[1,8], index: 14, kind: input, shape index: {}]   ;;  %s627_s15 = inlined_call_operand.hbm [shape: f32[8,32], index: 15, kind: output, shape index: {0}]   ;;  %s628_s16 = inlined_call_operand.vmem [shape: f32[8,8], index: 16, kind: output, shape index: {1}]  }
   0x1   :  { %629 = sst [smem:[#allocation5_spill]] %s612_s0 }
   0x2   :  { %s630_s23 = sld [smem:[#allocation5_spill]]  ;;  %vm58_vm0 = vcmask 261120  }
   0x8   :  { %v54_v0 = vld [vmem:[%s630_s23] sm:$0xf] }
   0x9   :  { %v533_v1 = vunpack.c.l.bf16 %v54_v0 }
   0xb   :  { %v59_v2 = vsel %vm58_vm0, %v533_v1, 0.0 }
   0xc   :  { %60 = vadd.xlane.f32.xlu0 %v59_v2 }
   0xd   :  { %22 = vsyncpa [#allocation3], 0  ;;  %v443_v3 = vmov 32.0   ;;  %v389_v15 = vld [vmem:[%s615_s3 + $0x8] sm:$0xff]  ;;  %v388_v16 = vld [vmem:[%s615_s3] sm:$0xff]  ;;  %vm281_vm5 = vcmask 408576  }
   0xe   :  { %409 = vrcp.f32 %v443_v3  ;;  %126 = vmatpush.bf16.msra.mxu0 %v389_v15  ;;  %v400_v26 = vld [vmem:[%s613_s1] ss:$0 sm:$0xff]  ;;  %v391_v33 = vld [vmem:[%s617_s5 + $0x8] sm:$0xff]  ;;  %s330_s18 = sshll.u32 %s627_s15, 4  ;;  %vm321_vm10 = vcmask 64512   ;;  %s331_s18 = int_to_ptr.hbm [resolvable:$true] %s330_s18 }
   0xf   :  { %v401_v29 = vld [vmem:[%s614_s2] ss:$0 sm:$0xff]  ;;  %160 = vmatpush.bf16.msra.mxu1 %v391_v33  ;;  %v393_v41 = vld [vmem:[%s619_s7 + $0x8] sm:$0xff] }
  0x10   :  { %v390_v34 = vld [vmem:[%s617_s5] sm:$0xff]  ;;  %v395_v42 = vld [vmem:[%s621_s9 + $0x8] sm:$0xff]  ;;  %203 = vmatpush.bf16.msra.mxu2 %v393_v41 }
  0x11   :  { %v402_v35 = vld [vmem:[%s616_s4] ss:$0 sm:$0xff]  ;;  %236 = vmatpush.bf16.msra.mxu3 %v395_v42  ;;  %v397_v45 = vld [vmem:[%s623_s11 + $0x8] sm:$0xff] }
  0x12   :  { %127 = vmatpush.bf16.msra.mxu0 %v388_v16  ;;  %v392_v43 = vld [vmem:[%s619_s7] sm:$0xff] }
  0x13   :  { %161 = vmatpush.bf16.msra.mxu1 %v390_v34  ;;  %v394_v44 = vld [vmem:[%s621_s9] sm:$0xff] }
  0x14   :  { %v410_v4 = vpop.eup %409  ;;  %204 = vmatpush.bf16.msra.mxu2 %v392_v43  ;;  %v396_v46 = vld [vmem:[%s623_s11] sm:$0xff] }
  0x15   :  { %v63_v5 = vmul.f32 32.0, %v410_v4  ;;  %vm67_vm1 = vweird.f32 %v410_v4  ;;  %237 = vmatpush.bf16.msra.mxu3 %v394_v44  ;;  %v403_v47 = vld [vmem:[%s618_s6] ss:$0 sm:$0xff] }
  0x16   :  { %274 = vmatpush.bf16.msrb.mxu0 %v397_v45  ;;  %v405_v53 = vld [vmem:[%s622_s10] ss:$0 sm:$0xff]  ;;  %s444_s10 = smov [#allocation2]  }
  0x17   :  { %v64_v6 = vsub.f32 1.0, %v63_v5  ;;  %v406_v61 = vld [vmem:[%s624_s12] ss:$0 sm:$0xff]  ;;  %s328_s12 = sshll.u32 %s444_s10, 4  ;;  %s329_s12 = int_to_ptr.vmem [resolvable:$true] %s328_s12 }
  0x19   :  { %v65_v7 = vmul.f32 %v410_v4, %v64_v6 }
  0x1a   :  { %275 = vmatpush.bf16.msrb.mxu0 %v396_v46 }
  0x1b   :  { %v66_v8 = vadd.f32 %v410_v4, %v65_v7 }
  0x1d   :  { %v68_v9 = vsel %vm67_vm1, %v410_v4, %v66_v8 }
  0x7f   :  { %v61_v10 = vpop.xlane.xlu0 %60 }
  0x80   :  { %v69_v11 = vmul.f32 %v68_v9, %v61_v10 }
  0x82   :  { %v70_v12 = vsub.f32 %v533_v1, %v69_v11 }
  0x84   :  { %v71_v13 = vmul.f32 %v70_v12, %v70_v12 }
  0x86   :  { %v72_v14 = vsel %vm58_vm0, %v71_v13, 0.0 }
  0x87   :  { %73 = vadd.xlane.f32.xlu0 %v72_v14 }
  0xfa   :  { %v74_v17 = vpop.xlane.xlu0 %73 }
  0xfb   :  { %v75_v18 = vmul.f32 %v74_v17, %v68_v9  ;;  %v407_v17 = vld [vmem:[%s625_s13] ss:$0 sm:$0xff] }
  0xfd   :  { %v76_v19 = vadd.f32 1e-05, %v75_v18 }
  0xff   :  { %411 = vrsqrt.f32 %v76_v19  ;;  %vm83_vm3 = vweird.f32 %v76_v19 }
 0x105   :  { %v412_v20 = vpop.eup %411 }
 0x106   :  { %v78_v21 = vmul.f32 %v412_v20, %v76_v19  ;;  %vm84_vm2 = vweird.f32 %v412_v20 }
 0x107   :  { %vm85_vm4 = vmor %vm83_vm3, %vm84_vm2 }
 0x108   :  { %v79_v22 = vmul.f32 %v412_v20, %v78_v21 }
 0x10a   :  { %v80_v23 = vmul.f32 0.5, %v79_v22  ;;  %v404_v22 = vld [vmem:[%s620_s8] ss:$0 sm:$0xff] }
 0x10c   :  { %v81_v24 = vsub.f32 1.5, %v80_v23  ;;  %v408_v23 = vld [vmem:[%s626_s14] ss:$0 sm:$0xff] }
 0x10e   :  { %v82_v25 = vmul.f32 %v412_v20, %v81_v24 }
 0x110   :  { %v86_v27 = vsel %vm85_vm4, %v412_v20, %v82_v25 }
 0x111   :  { %v87_v28 = vmul.f32 %v86_v27, %v70_v12 }
 0x113   :  { %v91_v30 = vmul.f32 %v400_v26, %v87_v28 }
 0x115   :  { %v95_v31 = vadd.f32 %v401_v29, %v91_v30 }
 0x117   :  { %v96_v32 = vpack.c.bf16 %v95_v31, %v95_v31 }
 0x119   :  { %351 = vmatmul.msk.bf16.vlgmr.msra.gmra.mxu0 %vm58_vm0, %v96_v32 }
 0x196   :  { %v129_v36 = vpop.f32.mrf.mxu0 }
 0x197   :  { %v130_v37 = vadd.f32 %v402_v35, %v129_v36 }
 0x199   :  { %v133_v38 = vmax.f32 %v130_v37, 0.0 }
 0x19b   :  { %v134_v39 = vpack.c.bf16 %v133_v38, %v133_v38 }
 0x19d   :  { %360 = vmatmul.msk.bf16.vlgmr.msra.gmra.mxu1 %vm58_vm0, %v134_v39 }
 0x19e   :  { %v131_v40 = vpop.f32.mrf.mxu0 }
 0x21a   :  { %v163_v48 = vpop.f32.mrf.mxu1 }
 0x21b   :  { %v167_v49 = vadd.f32 %v163_v48, %v533_v1 }
 0x21d   :  { %v172_v50 = vadd.f32 %v403_v47, %v167_v49 }
 0x21f   :  { %314 = vst.msk [vmem:[#allocation2] sm:$0xff] %vm58_vm0, %v172_v50  ;;  %v173_v51 = vpack.c.bf16 %v172_v50, %v172_v50 }
 0x220   :  { %333 = dma.vmem_to_hbm [thread:$0]  %s329_s12, 128, %s331_s18, [#allocation3]  }
 0x221   :  { %369 = vmatmul.msk.bf16.vlgmr.msra.gmra.mxu2 %vm58_vm0, %v173_v51  ;;  %378 = vmatmul.msk.bf16.vlgmr.msra.gmra.mxu3 %vm58_vm0, %v173_v51 }
 0x222   :  { %v165_v52 = vpop.f32.mrf.mxu1 }
 0x2a4   :  { %v206_v54 = vpop.f32.mrf.mxu2  ;;  %v239_v55 = vpop.f32.mrf.mxu3 }
 0x2a5   :  { %v240_v56 = vadd.f32 %v405_v53, %v239_v55  ;;  %v207_v25 = vadd.f32 %v404_v22, %v206_v54 }
 0x2a7   :  { %v243_v57 = vmax.f32 %v240_v56, 0.0 }
 0x2a9   :  { %v244_v58 = vpack.c.bf16 %v243_v57, %v243_v57 }
 0x2ab   :  { %387 = vmatmul.msk.bf16.vlgmr.msrb.gmra.mxu0 %vm58_vm0, %v244_v58 }
 0x2ac   :  { %v208_v59 = vpop.f32.mrf.mxu2  ;;  %v241_v60 = vpop.f32.mrf.mxu3 }
 0x328   :  { %v277_v62 = vpop.f32.mrf.mxu0 }
 0x329   :  { %v278_v63 = vadd.f32 %v406_v61, %v277_v62 }
 0x32b   :  { %v282_v0 = vsel %vm281_vm5, %v278_v63, -inf }
 0x32c   :  { %283 = vmax.xlane.f32.xlu1 %v282_v0 }
 0x330   :  { %v279_v1 = vpop.f32.mrf.mxu0 }
 0x39f   :  { %v284_v2 = vpop.xlane.xlu1 %283 }
 0x3a0   :  { %v285_v3 = vsub.f32 %v278_v63, %v284_v2 }
 0x3a2   :  { %v286_v4 = vmul.f32 1.442695, %v285_v3 }
 0x3a4   :  { %413 = vpow2.f32 %v286_v4 }
 0x3aa   :  { %v414_v5 = vpop.eup %413 }
 0x3ab   :  { %v288_v6 = vsel %vm281_vm5, %v414_v5, 0.0 }
 0x3ac   :  { %289 = vadd.xlane.f32.xlu1 %v288_v6 }
 0x41f   :  { %v290_v7 = vpop.xlane.xlu1 %289 }
 0x420   :  { %415 = vrcp.f32 %v290_v7  ;;  %v302_v11 = vand.u32 2147483648, %v290_v7  ;;  %v300_v13 = vand.u32 2147483647, %v290_v7  ;;  %vm296_vm7 = vweird.f32 %v290_v7 }
 0x422   :  { %v303_v15 = vor.u32 1.1754944e-38, %v302_v11  ;;  %vm301_vm9 = vcmp.eq.f32.partialorder %v300_v13, 8.507059e+37 }
 0x426   :  { %v416_v8 = vpop.eup %415 }
 0x427   :  { %v292_v9 = vmul.f32 %v416_v8, %v290_v7  ;;  %vm297_vm6 = vweird.f32 %v416_v8 }
 0x428   :  { %vm298_vm8 = vmor %vm296_vm7, %vm297_vm6 }
 0x429   :  { %v293_v10 = vsub.f32 1.0, %v292_v9 }
 0x42b   :  { %v294_v12 = vmul.f32 %v416_v8, %v293_v10 }
 0x42d   :  { %v295_v14 = vadd.f32 %v416_v8, %v294_v12 }
 0x42f   :  { %v299_v16 = vsel %vm298_vm8, %v416_v8, %v295_v14 }
 0x430   :  { %v304_v18 = vsel %vm301_vm9, %v303_v15, %v299_v16 }
 0x431   :  { %v305_v19 = vmul.f32 %v414_v5, %v304_v18 }
 0x433   :  { %v310_v20 = vmul.f32 %v407_v17, %v305_v19 }
 0x435   :  { %v311_v21 = vsel %vm281_vm5, %v310_v20, 0.0 }
 0x436   :  { %312 = vadd.xlane.f32.xlu2 %v311_v21 }
 0x4a9   :  { %v313_v24 = vpop.xlane.xlu2 %312 }
 0x4aa   :  { %v319_v26 = vmul.f32 %v408_v23, %v313_v24 }
 0x4ac   :  { %v320_v27 = vadd.f32 %v319_v26, %v207_v25 }
 0x4ae   :  { %322 = vst.msk [vmem:[%s628_s16] sm:$0xff] %vm321_vm10, %v320_v27 }
 0x4af   :  { %441 = dma.done.wait [#allocation3], 128  }
 0x4b0   :  { %442 = vsyncadd [#allocation3], 4294967168 }
 0x4b1   :  { %342 = vsyncpa [#allocation3], 1 }

// kernel: _lambda_.21
= control target key start
LH: loop header
LB: loop body
LE: loop exit
PB: predicated region body
PF: predicated region fallthrough
CT: control target
= control target key end

     0   :  { %vm43_vm0 = vcmask 261120   ;;  %s177_s1 = inlined_call_operand.vmem [shape: bf16[1,32,256], index: 1, kind: input, shape index: {}]   ;;  %s178_s0 = inlined_call_operand.vmem [shape: bf16[1,8,32], index: 0, kind: input, shape index: {}]   ;;  %s179_s3 = inlined_call_operand.vmem [shape: bf16[1,8,256], index: 3, kind: input, shape index: {}, may-alias: {3,4}]   ;;  %s180_s2 = inlined_call_operand.vmem [shape: f32[1,256], index: 2, kind: input, shape index: {}]   ;;  %s181_s4 = inlined_call_operand.vmem [shape: bf16[1,8,256], index: 4, kind: output, shape index: {}, may-alias: {3,4}]  }
   0x1   :  { %v104_v0 = vld [vmem:[%s177_s1 + $0x10] sm:$0xf]  ;;  %v115_v1 = vld [vmem:[%s177_s1 + $0x14] sm:$0xf0]  ;;  %v114_v2 = vld [vmem:[%s177_s1 + $0x14] sm:$0xf] }
   0x2   :  { %v105_v3 = vor.u32 %v115_v1, %v104_v0  ;;  %v106_v4 = vld [vmem:[%s177_s1 + $0x18] sm:$0xf0]  ;;  %v96_v5 = vld [vmem:[%s177_s1] sm:$0xf]  ;;  %v113_v6 = vld [vmem:[%s177_s1 + $0x4] sm:$0xf0] }
   0x3   :  { %v109_v7 = vor.u32 %v114_v2, %v106_v4  ;;  %v112_v8 = vld [vmem:[%s177_s1 + $0x4] sm:$0xf]  ;;  %v98_v9 = vld [vmem:[%s177_s1 + $0x8] sm:$0xf0]  ;;  %v97_v10 = vor.u32 %v113_v6, %v96_v5  ;;  %v18_v12 = vld [vmem:[%s178_s0] sm:$0xf] }
   0x4   :  { %53 = vmatpush.bf16.msra.mxu0 %v105_v3  ;;  %v101_v11 = vor.u32 %v112_v8, %v98_v9  ;;  %v73_v13 = vld [vmem:[%s179_s3] sm:$0xff] }
   0x5   :  { %66 = vmatpush.bf16.msra.mxu1 %v109_v7  ;;  %v80_v14 = vld [vmem:[%s180_s2] sm:$0x3]  ;;  %v74_v15 = vunpack.c.l.bf16 %v73_v13  ;;  %v75_v17 = vunpack.c.h.bf16 %v73_v13 }
   0x6   :  { %v82_v19 = vperm.slane %v80_v14, 0  ;;  %v83_v22 = vperm.slane %v80_v14, 1 }
   0x8   :  { %54 = vmatpush.bf16.msra.mxu0 %v97_v10 }
   0x9   :  { %67 = vmatpush.bf16.msra.mxu1 %v101_v11 }
   0xb   :  { %110 = vmatmul.msk.bf16.vlgmr.msra.gmra.mxu0 %vm43_vm0, %v18_v12 }
   0xc   :  { %111 = vmatmul.msk.bf16.vlgmr.msra.gmra.mxu1 %vm43_vm0, %v18_v12 }
  0x88   :  { %v56_v16 = vpop.f32.mrf.mxu0 }
  0x89   :  { %v76_v18 = vmul.f32 0.25, %v56_v16  ;;  %v69_v20 = vpop.f32.mrf.mxu1 }
  0x8a   :  { %v77_v21 = vmul.f32 0.25, %v69_v20 }
  0x8b   :  { %v78_v23 = vadd.f32 %v76_v18, %v74_v15 }
  0x8c   :  { %v79_v24 = vadd.f32 %v77_v21, %v75_v17 }
  0x8d   :  { %v86_v25 = vadd.f32 %v82_v19, %v78_v23 }
  0x8e   :  { %v87_v26 = vadd.f32 %v83_v22, %v79_v24 }
  0x90   :  { %v88_v27 = vpack.c.bf16 %v87_v26, %v86_v25  ;;  %v58_v28 = vpop.f32.mrf.mxu0 }
  0x91   :  { %v71_v29 = vpop.f32.mrf.mxu1 }
  0x92   :  { %89 = vst [vmem:[%s181_s4] sm:$0xff] %v88_v27 }

// kernel: _lambda_.30
= control target key start
LH: loop header
LB: loop body
LE: loop exit
PB: predicated region body
PF: predicated region fallthrough
CT: control target
= control target key end

     0   :  { %s513_s21 = smov 0   ;;  %s600_s0 = inlined_call_operand.vmem [shape: bf16[16,128], index: 0, kind: input, shape index: {}, may-alias: {0,6}]   ;;  %s601_s1 = inlined_call_operand.vmem [shape: bf16[16,128], index: 1, kind: input, shape index: {}]   ;;  %s602_s2 = inlined_call_operand.vmem [shape: bf16[16,128], index: 2, kind: input, shape index: {}]   ;;  %s603_s3 = inlined_call_operand.vmem [shape: f32[128,128], index: 3, kind: input, shape index: {}]   ;;  %s604_s4 = inlined_call_operand.vmem [shape: f32[1,128], index: 4, kind: input, shape index: {}]   ;;  %s605_s5 = inlined_call_operand.vmem [shape: f32[1,128], index: 5, kind: input, shape index: {}]   ;;  %s606_s6 = inlined_call_operand.vmem [shape: bf16[16,128], index: 6, kind: output, shape index: {}, may-alias: {0,6}]  }
   0x1 LB: > { %s447_s22 = sadd.s32 4294967295, %s476_s21   ;;  %p451_p0 = scmp.ge.s32.totalorder %s476_s21, 1  ;;  %s476_s21 = sphi %s513_s21, %s16_s21  }
   0x2   : > { %p229_p1 = scmp.lt.s32.totalorder %s476_s21, 3 }
   0x4   : > { %p230_p2 = pnand %p451_p0, %p229_p1 }
   0x5   : > { %p265_p3 = scmp.lt.s32.totalorder (!%p230_p2), %s447_s22, 1 }
   0x6   : > { %233 = sbr.rel (%p230_p2) target bundleno = 332 (0x14c), region = 44 }
   0xb   : > { %v298_v0 = vld [vmem:[%s603_s3 + $0x78] sm:$0xff]  ;;  %v297_v1 = vld [vmem:[%s603_s3 + $0x70] sm:$0xff]  ;;  %v296_v2 = vld [vmem:[%s603_s3 + $0x68] sm:$0xff]  ;;  %s608_s22 = smov (!%p265_p3, %s447_s22), 1 }
   0xc   : > { %301 = vmatpush.msra.mxu0 %v298_v0  ;;  %323 = vmatpush.msra.mxu1 %v298_v0  ;;  %v295_v3 = vld [vmem:[%s603_s3 + $0x60] sm:$0xff]  ;;  %v294_v4 = vld [vmem:[%s603_s3 + $0x58] sm:$0xff]  ;;  %v293_v5 = vld [vmem:[%s603_s3 + $0x50] sm:$0xff]  ;;  %s558_s23 = sshll.u32 %s608_s22, 2 }
   0xd   : > { %v292_v6 = vld [vmem:[%s603_s3 + $0x48] sm:$0xff]  ;;  %v291_v7 = vld [vmem:[%s603_s3 + $0x40] sm:$0xff]  ;;  %v290_v8 = vld [vmem:[%s603_s3 + $0x38] sm:$0xff]  ;;  %s272_s30 = scalar_lea.vmem %s601_s1, %s558_s23  ;;  %s268_s14 = scalar_lea.vmem %s600_s0, %s558_s23 }
   0xe   : > { %302 = vmatpush.msra.mxu0 %v297_v1  ;;  %324 = vmatpush.msra.mxu1 %v297_v1  ;;  %v289_v9 = vld [vmem:[%s603_s3 + $0x30] sm:$0xff]  ;;  %v288_v10 = vld [vmem:[%s603_s3 + $0x28] sm:$0xff]  ;;  %v287_v11 = vld [vmem:[%s603_s3 + $0x20] sm:$0xff]  ;;  %s276_s17 = scalar_lea.vmem %s602_s2, %s558_s23  ;;  %s280_s27 = scalar_lea.vmem %s606_s6, %s558_s23 }
   0xf   : > { %v286_v12 = vld [vmem:[%s603_s3 + $0x18] sm:$0xff]  ;;  %v285_v13 = vld [vmem:[%s603_s3 + $0x10] sm:$0xff]  ;;  %v281_v14 = vld [vmem:[%s272_s30] sm:$0xf] }
  0x10   : > { %303 = vmatpush.msra.mxu0 %v296_v2  ;;  %325 = vmatpush.msra.mxu1 %v296_v2  ;;  %v284_v15 = vld [vmem:[%s603_s3 + $0x8] sm:$0xff]  ;;  %v283_v16 = vld [vmem:[%s603_s3] sm:$0xff]  ;;  %v282_v17 = vunpack.c.l.bf16 %v281_v14 }
  0x11   : > { %v466_v29 = vld [vmem:[%s604_s4] ss:$0 sm:$0xff] }
  0x12   : > { %304 = vmatpush.msra.mxu0 %v295_v3  ;;  %326 = vmatpush.msra.mxu1 %v295_v3  ;;  %v362_v30 = vld [vmem:[%s268_s14] sm:$0xf] }
  0x13   : > { %v467_v33 = vld [vmem:[%s605_s5] ss:$0 sm:$0xff]  ;;  %v363_v35 = vunpack.c.l.bf16 %v362_v30 }
  0x14   : > { %305 = vmatpush.msra.mxu0 %v294_v4  ;;  %327 = vmatpush.msra.mxu1 %v294_v4  ;;  %v365_v34 = vld [vmem:[%s276_s17] sm:$0xf] }
  0x15   : > { %v366_v37 = vunpack.c.l.bf16 %v365_v34 }
  0x16   : > { %306 = vmatpush.msra.mxu0 %v293_v5  ;;  %328 = vmatpush.msra.mxu1 %v293_v5 }
  0x18   : > { %307 = vmatpush.msra.mxu0 %v292_v6  ;;  %329 = vmatpush.msra.mxu1 %v292_v6 }
  0x1a   : > { %308 = vmatpush.msra.mxu0 %v291_v7  ;;  %330 = vmatpush.msra.mxu1 %v291_v7 }
  0x1c   : > { %309 = vmatpush.msra.mxu0 %v290_v8  ;;  %331 = vmatpush.msra.mxu1 %v290_v8 }
  0x1e   : > { %310 = vmatpush.msra.mxu0 %v289_v9  ;;  %332 = vmatpush.msra.mxu1 %v289_v9 }
  0x20   : > { %311 = vmatpush.msra.mxu0 %v288_v10  ;;  %333 = vmatpush.msra.mxu1 %v288_v10 }
  0x22   : > { %312 = vmatpush.msra.mxu0 %v287_v11  ;;  %334 = vmatpush.msra.mxu1 %v287_v11 }
  0x24   : > { %313 = vmatpush.msra.mxu0 %v286_v12  ;;  %335 = vmatpush.msra.mxu1 %v286_v12 }
  0x26   : > { %314 = vmatpush.msra.mxu0 %v285_v13  ;;  %336 = vmatpush.msra.mxu1 %v285_v13 }
  0x28   : > { %315 = vmatpush.msra.mxu0 %v284_v15  ;;  %337 = vmatpush.msra.mxu1 %v284_v15 }
  0x2a   : > { %316 = vmatpush.msra.mxu0 %v283_v16  ;;  %338 = vmatpush.msra.mxu1 %v283_v16 }
  0x2b   : > { %317 = vmatmul.f32.vlgmr.msra.gmra.mxu0 %v282_v17 }
  0xa8   : > { %v318_v18 = vpop.f32.mrf.mxu0 }
  0xa9   : > { %v321_v19 = vsub.f32 %v282_v17, %v318_v18 }
  0xab   : > { %v322_v20 = vmul.f32 %v321_v19, %v321_v19 }
  0xad   : > { %339 = vmatmul.f32.vlgmr.msra.gmra.mxu1 %v322_v20 }
 0x12a   : > { %v340_v21 = vpop.f32.mrf.mxu1 }
 0x12b   : > { %v341_v22 = vadd.f32 1e-05, %v340_v21 }
 0x12d   : > { %468 = vrsqrt.f32 %v341_v22  ;;  %vm349_vm1 = vweird.f32 %v341_v22 }
 0x133   : > { %v469_v23 = vpop.eup %468 }
 0x134   : > { %v344_v24 = vmul.f32 %v469_v23, %v341_v22  ;;  %vm350_vm0 = vweird.f32 %v469_v23 }
 0x135   : > { %vm351_vm2 = vmor %vm349_vm1, %vm350_vm0 }
 0x136   : > { %v345_v25 = vmul.f32 %v469_v23, %v344_v24 }
 0x138   : > { %v346_v26 = vmul.f32 0.5, %v345_v25 }
 0x13a   : > { %v347_v27 = vsub.f32 1.5, %v346_v26 }
 0x13c   : > { %v348_v28 = vmul.f32 %v469_v23, %v347_v27 }
 0x13e   : > { %v352_v31 = vsel %vm351_vm2, %v469_v23, %v348_v28 }
 0x13f   : > { %v353_v32 = vmul.f32 %v352_v31, %v321_v19 }
 0x141   : > { %v357_v36 = vmul.f32 %v466_v29, %v353_v32 }
 0x143   : > { %v361_v38 = vadd.f32 %v467_v33, %v357_v36 }
 0x145   : > { %v364_v39 = vadd.f32 %v363_v35, %v361_v38 }
 0x147   : > { %v367_v40 = vadd.f32 %v366_v37, %v364_v39 }
 0x149   : > { %v368_v41 = vpack.c.bf16 %v367_v40, %v367_v40 }
 0x14b   : > { %369 = vst [vmem:[%s280_s27] sm:$0xf] %v368_v41 }
 0x14c PF: > { %s16_s21 = sadd.s32 1, %s476_s21  }
 0x14d   : > { %p13_p4 = scmp.ge.s32.totalorder %s16_s21, 4  }
 0x14f   :  { %15 = sbr.rel (!%p13_p4) target bundleno = 1 (0x1), region = 80 }

// kernel: _lambda_.22
= control target key start
LH: loop header
LB: loop body
LE: loop exit
PB: predicated region body
PF: predicated region fallthrough
CT: control target
= control target key end

     0   :  { %s1408_s27 = smov 0   ;;  %s1794_s0 = inlined_call_operand.vmem [shape: bf16[16,128], index: 0, kind: input, shape index: {}, may-alias: {0,8}]   ;;  %s1795_s1 = inlined_call_operand.vmem [shape: f32[128,128], index: 1, kind: input, shape index: {}]   ;;  %s1796_s2 = inlined_call_operand.vmem [shape: f32[1,128], index: 2, kind: input, shape index: {}]   ;;  %s1797_s3 = inlined_call_operand.vmem [shape: f32[1,128], index: 3, kind: input, shape index: {}, may-alias: {3,7}]   ;;  %s1798_s4 = inlined_call_operand.vmem [shape: bf16[128,512], index: 4, kind: input, shape index: {}]   ;;  %s1799_s5 = inlined_call_operand.vmem [shape: f32[1,512], index: 5, kind: input, shape index: {}]   ;;  %s1800_s6 = inlined_call_operand.vmem [shape: bf16[512,128], index: 6, kind: input, shape index: {}]   ;;  %s1801_s7 = inlined_call_operand.vmem [shape: f32[1,128], index: 7, kind: input, shape index: {}, may-alias: {3,7}]   ;;  %s1802_s8 = inlined_call_operand.vmem [shape: bf16[16,128], index: 8, kind: output, shape index: {}, may-alias: {0,8}]  }
   0x1 LB: > { %s1013_s28 = sadd.s32 4294967295, %s1361_s27   ;;  %p1017_p0 = scmp.ge.s32.totalorder %s1361_s27, 1  ;;  %s1361_s27 = sphi %s1408_s27, %s18_s27  }
   0x2   : > { %p261_p1 = scmp.lt.s32.totalorder %s1361_s27, 3 }
   0x4   : > { %p262_p2 = pnand %p1017_p0, %p261_p1 }
   0x5   : > { %p293_p3 = scmp.lt.s32.totalorder (!%p262_p2), %s1013_s28, 1 }
   0x6   : > { %265 = sbr.rel (%p262_p2) target bundleno = 610 (0x262), region = 52 }
   0xb   : > { %v318_v0 = vld [vmem:[%s1795_s1 + $0x78] sm:$0xff]  ;;  %v317_v1 = vld [vmem:[%s1795_s1 + $0x70] sm:$0xff]  ;;  %v316_v2 = vld [vmem:[%s1795_s1 + $0x68] sm:$0xff]  ;;  %s1804_s28 = smov (!%p293_p3, %s1013_s28), 1 }
   0xc   : > { %321 = vmatpush.msra.mxu0 %v318_v0  ;;  %343 = vmatpush.msra.mxu1 %v318_v0  ;;  %v315_v3 = vld [vmem:[%s1795_s1 + $0x60] sm:$0xff]  ;;  %v314_v4 = vld [vmem:[%s1795_s1 + $0x58] sm:$0xff]  ;;  %v313_v5 = vld [vmem:[%s1795_s1 + $0x50] sm:$0xff]  ;;  %s1018_s9 = sshll.u32 %s1804_s28, 2 }
   0xd   : > { %v312_v6 = vld [vmem:[%s1795_s1 + $0x48] sm:$0xff]  ;;  %v311_v7 = vld [vmem:[%s1795_s1 + $0x40] sm:$0xff]  ;;  %v310_v8 = vld [vmem:[%s1795_s1 + $0x38] sm:$0xff]  ;;  %s296_s16 = scalar_lea.vmem %s1794_s0, %s1018_s9 }
   0xe   : > { %322 = vmatpush.msra.mxu0 %v317_v1  ;;  %344 = vmatpush.msra.mxu1 %v317_v1  ;;  %v309_v9 = vld [vmem:[%s1795_s1 + $0x30] sm:$0xff]  ;;  %v308_v10 = vld [vmem:[%s1795_s1 + $0x28] sm:$0xff]  ;;  %v307_v11 = vld [vmem:[%s1795_s1 + $0x20] sm:$0xff] }
   0xf   : > { %v306_v12 = vld [vmem:[%s1795_s1 + $0x18] sm:$0xff]  ;;  %v305_v13 = vld [vmem:[%s1795_s1 + $0x10] sm:$0xff]  ;;  %v301_v14 = vld [vmem:[%s296_s16] sm:$0xf]  ;;  %s300_s16 = scalar_lea.vmem %s1802_s8, %s1018_s9 }
  0x10   : > { %323 = vmatpush.msra.mxu0 %v316_v2  ;;  %345 = vmatpush.msra.mxu1 %v316_v2  ;;  %v304_v15 = vld [vmem:[%s1795_s1 + $0x8] sm:$0xff]  ;;  %v303_v16 = vld [vmem:[%s1795_s1] sm:$0xff]  ;;  %v1476_v17 = vunpack.c.l.bf16 %v301_v14  ;;  %v1308_v19 = vld [vmem:[%s1798_s4 + $0xec] sm:$0xf0] }
  0x11   : > { %v1134_v18 = vld [vmem:[%s1798_s4 + $0xe0] sm:$0xf]  ;;  %v1306_v20 = vld [vmem:[%s1798_s4 + $0xe4] sm:$0xf]  ;;  %v1136_v22 = vld [vmem:[%s1798_s4 + $0xf0] sm:$0xf0] }
  0x12   : > { %324 = vmatpush.msra.mxu0 %v315_v3  ;;  %346 = vmatpush.msra.mxu1 %v315_v3  ;;  %v1135_v21 = vor.u32 %v1308_v19, %v1134_v18  ;;  %v1142_v23 = vld [vmem:[%s1798_s4 + $0xe8] sm:$0xf]  ;;  %v1309_v24 = vld [vmem:[%s1798_s4 + $0xf4] sm:$0xf0]  ;;  %v1139_v25 = vor.u32 %v1306_v20, %v1136_v22  ;;  %v1307_v27 = vld [vmem:[%s1798_s4 + $0xec] sm:$0xf] }
  0x13   : > { %v1143_v26 = vor.u32 %v1309_v24, %v1142_v23  ;;  %v1144_v28 = vld [vmem:[%s1798_s4 + $0xf8] sm:$0xf0]  ;;  %v1118_v33 = vld [vmem:[%s1798_s4 + $0xc0] sm:$0xf]  ;;  %v1304_v34 = vld [vmem:[%s1798_s4 + $0xcc] sm:$0xf0] }
  0x14   : > { %325 = vmatpush.msra.mxu0 %v314_v4  ;;  %347 = vmatpush.msra.mxu1 %v314_v4  ;;  %v1147_v29 = vor.u32 %v1307_v27, %v1144_v28  ;;  %v1302_v35 = vld [vmem:[%s1798_s4 + $0xc4] sm:$0xf]  ;;  %v1119_v36 = vor.u32 %v1304_v34, %v1118_v33  ;;  %v1120_v37 = vld [vmem:[%s1798_s4 + $0xd0] sm:$0xf0]  ;;  %v1126_v38 = vld [vmem:[%s1798_s4 + $0xc8] sm:$0xf] }
  0x15   : > { %585 = vmatpush.bf16.msra.mxu2 %v1135_v21  ;;  %598 = vmatpush.bf16.msra.mxu3 %v1139_v25  ;;  %v1305_v39 = vld [vmem:[%s1798_s4 + $0xd4] sm:$0xf0]  ;;  %v1123_v40 = vor.u32 %v1302_v35, %v1120_v37  ;;  %v1303_v42 = vld [vmem:[%s1798_s4 + $0xcc] sm:$0xf]  ;;  %v1128_v43 = vld [vmem:[%s1798_s4 + $0xd8] sm:$0xf0] }
  0x16   : > { %326 = vmatpush.msra.mxu0 %v313_v5  ;;  %348 = vmatpush.msra.mxu1 %v313_v5  ;;  %v1127_v41 = vor.u32 %v1305_v39, %v1126_v38  ;;  %v1131_v44 = vor.u32 %v1303_v42, %v1128_v43  ;;  %v1102_v45 = vld [vmem:[%s1798_s4 + $0xa0] sm:$0xf]  ;;  %v1300_v46 = vld [vmem:[%s1798_s4 + $0xac] sm:$0xf0]  ;;  %v1298_v47 = vld [vmem:[%s1798_s4 + $0xa4] sm:$0xf] }
  0x17   : > { %v1103_v48 = vor.u32 %v1300_v46, %v1102_v45  ;;  %v1104_v49 = vld [vmem:[%s1798_s4 + $0xb0] sm:$0xf0]  ;;  %v1110_v50 = vld [vmem:[%s1798_s4 + $0xa8] sm:$0xf]  ;;  %v1301_v51 = vld [vmem:[%s1798_s4 + $0xb4] sm:$0xf0] }
  0x18   : > { %327 = vmatpush.msra.mxu0 %v312_v6  ;;  %349 = vmatpush.msra.mxu1 %v312_v6  ;;  %v1107_v52 = vor.u32 %v1298_v47, %v1104_v49  ;;  %v1111_v53 = vor.u32 %v1301_v51, %v1110_v50  ;;  %v1299_v54 = vld [vmem:[%s1798_s4 + $0xac] sm:$0xf]  ;;  %v1112_v55 = vld [vmem:[%s1798_s4 + $0xb8] sm:$0xf0]  ;;  %v1086_v57 = vld [vmem:[%s1798_s4 + $0x80] sm:$0xf] }
  0x19   : > { %586 = vmatpush.bf16.msra.mxu2 %v1119_v36  ;;  %599 = vmatpush.bf16.msra.mxu3 %v1123_v40  ;;  %v1115_v56 = vor.u32 %v1299_v54, %v1112_v55  ;;  %v1296_v58 = vld [vmem:[%s1798_s4 + $0x8c] sm:$0xf0]  ;;  %v1294_v59 = vld [vmem:[%s1798_s4 + $0x84] sm:$0xf]  ;;  %v1088_v61 = vld [vmem:[%s1798_s4 + $0x90] sm:$0xf0] }
  0x1a   : > { %328 = vmatpush.msra.mxu0 %v311_v7  ;;  %350 = vmatpush.msra.mxu1 %v311_v7  ;;  %v1087_v60 = vor.u32 %v1296_v58, %v1086_v57  ;;  %v1094_v62 = vld [vmem:[%s1798_s4 + $0x88] sm:$0xf]  ;;  %v1297_v63 = vld [vmem:[%s1798_s4 + $0x94] sm:$0xf0]  ;;  %v1091_v0 = vor.u32 %v1294_v59, %v1088_v61  ;;  %v1295_v2 = vld [vmem:[%s1798_s4 + $0x8c] sm:$0xf] }
  0x1b   : > { %v1095_v1 = vor.u32 %v1297_v63, %v1094_v62  ;;  %v1096_v3 = vld [vmem:[%s1798_s4 + $0x98] sm:$0xf0]  ;;  %v1070_v5 = vld [vmem:[%s1798_s4 + $0x60] sm:$0xf]  ;;  %v1292_v6 = vld [vmem:[%s1798_s4 + $0x6c] sm:$0xf0] }
  0x1c   : > { %329 = vmatpush.msra.mxu0 %v310_v8  ;;  %351 = vmatpush.msra.mxu1 %v310_v8  ;;  %v1099_v4 = vor.u32 %v1295_v2, %v1096_v3  ;;  %v1290_v7 = vld [vmem:[%s1798_s4 + $0x64] sm:$0xf]  ;;  %v1071_v8 = vor.u32 %v1292_v6, %v1070_v5  ;;  %v1291_v14 = vld [vmem:[%s1798_s4 + $0x6c] sm:$0xf]  ;;  %v1054_v18 = vld [vmem:[%s1798_s4 + $0x40] sm:$0xf] }
  0x1d   : > { %587 = vmatpush.bf16.msra.mxu2 %v1103_v48  ;;  %600 = vmatpush.bf16.msra.mxu3 %v1107_v52  ;;  %v1288_v19 = vld [vmem:[%s1798_s4 + $0x4c] sm:$0xf0]  ;;  %v1286_v20 = vld [vmem:[%s1798_s4 + $0x44] sm:$0xf]  ;;  %v1056_v22 = vld [vmem:[%s1798_s4 + $0x50] sm:$0xf0] }
  0x1e   : > { %330 = vmatpush.msra.mxu0 %v309_v9  ;;  %352 = vmatpush.msra.mxu1 %v309_v9  ;;  %v1072_v9 = vld [vmem:[%s1798_s4 + $0x70] sm:$0xf0]  ;;  %v1055_v21 = vor.u32 %v1288_v19, %v1054_v18  ;;  %v1062_v23 = vld [vmem:[%s1798_s4 + $0x48] sm:$0xf]  ;;  %v1289_v24 = vld [vmem:[%s1798_s4 + $0x54] sm:$0xf0]  ;;  %v1059_v25 = vor.u32 %v1286_v20, %v1056_v22 }
  0x1f   : > { %v1287_v27 = vld [vmem:[%s1798_s4 + $0x4c] sm:$0xf]  ;;  %v1064_v28 = vld [vmem:[%s1798_s4 + $0x58] sm:$0xf0]  ;;  %v1282_v33 = vld [vmem:[%s1798_s4 + $0x24] sm:$0xf] }
  0x20   : > { %331 = vmatpush.msra.mxu0 %v308_v10  ;;  %353 = vmatpush.msra.mxu1 %v308_v10  ;;  %v1078_v10 = vld [vmem:[%s1798_s4 + $0x68] sm:$0xf]  ;;  %v1040_v35 = vld [vmem:[%s1798_s4 + $0x30] sm:$0xf0]  ;;  %v1285_v37 = vld [vmem:[%s1798_s4 + $0x34] sm:$0xf0] }
  0x21   : > { %588 = vmatpush.bf16.msra.mxu2 %v1087_v60  ;;  %601 = vmatpush.bf16.msra.mxu3 %v1091_v0  ;;  %v1046_v36 = vld [vmem:[%s1798_s4 + $0x28] sm:$0xf]  ;;  %v1043_v38 = vor.u32 %v1282_v33, %v1040_v35  ;;  %v1283_v40 = vld [vmem:[%s1798_s4 + $0x2c] sm:$0xf]  ;;  %v1022_v42 = vld [vmem:[%s1798_s4] sm:$0xf] }
  0x22   : > { %332 = vmatpush.msra.mxu0 %v307_v11  ;;  %354 = vmatpush.msra.mxu1 %v307_v11  ;;  %v1293_v11 = vld [vmem:[%s1798_s4 + $0x74] sm:$0xf0]  ;;  %v1047_v39 = vor.u32 %v1285_v37, %v1046_v36  ;;  %v1278_v45 = vld [vmem:[%s1798_s4 + $0x4] sm:$0xf]  ;;  %v1024_v46 = vld [vmem:[%s1798_s4 + $0x10] sm:$0xf0] }
  0x23   : > { %v1027_v48 = vor.u32 %v1278_v45, %v1024_v46  ;;  %v1030_v49 = vld [vmem:[%s1798_s4 + $0x8] sm:$0xf]  ;;  %v1281_v50 = vld [vmem:[%s1798_s4 + $0x14] sm:$0xf0]  ;;  %v1279_v51 = vld [vmem:[%s1798_s4 + $0xc] sm:$0xf] }
  0x24   : > { %333 = vmatpush.msra.mxu0 %v306_v12  ;;  %355 = vmatpush.msra.mxu1 %v306_v12  ;;  %v1075_v12 = vor.u32 %v1290_v7, %v1072_v9  ;;  %v1031_v52 = vor.u32 %v1281_v50, %v1030_v49  ;;  %v1333_v55 = vld [vmem:[%s1800_s6 + $0xb8] sm:$0xff]  ;;  %v1332_v60 = vld [vmem:[%s1800_s6 + $0xb0] sm:$0xff]  ;;  %v1339_v2 = vld [vmem:[%s1800_s6 + $0xe8] sm:$0xff] }
  0x25   : > { %589 = vmatpush.bf16.msra.mxu2 %v1071_v8  ;;  %v1317_v57 = vld [vmem:[%s1800_s6 + $0x38] sm:$0xff]  ;;  %v1340_v61 = vld [vmem:[%s1800_s6 + $0xf0] sm:$0xff]  ;;  %v1315_v3 = vld [vmem:[%s1800_s6 + $0x28] sm:$0xff] }
  0x26   : > { %334 = vmatpush.msra.mxu0 %v305_v13  ;;  %356 = vmatpush.msra.mxu1 %v305_v13  ;;  %v1079_v13 = vor.u32 %v1293_v11, %v1078_v10  ;;  %v1325_v58 = vld [vmem:[%s1800_s6 + $0x78] sm:$0xff]  ;;  %v1316_v63 = vld [vmem:[%s1800_s6 + $0x30] sm:$0xff]  ;;  %v1330_v5 = vld [vmem:[%s1800_s6 + $0xa0] sm:$0xff] }
  0x27   : > { %602 = vmatpush.bf16.msra.mxu3 %v1075_v12  ;;  %v1324_v0 = vld [vmem:[%s1800_s6 + $0x70] sm:$0xff]  ;;  %v1338_v6 = vld [vmem:[%s1800_s6 + $0xe0] sm:$0xff]  ;;  %v1329_v12 = vld [vmem:[%s1800_s6 + $0x98] sm:$0xff] }
  0x28   : > { %335 = vmatpush.msra.mxu0 %v304_v15  ;;  %357 = vmatpush.msra.mxu1 %v304_v15  ;;  %v1080_v15 = vld [vmem:[%s1798_s4 + $0x78] sm:$0xf0]  ;;  %v1314_v8 = vld [vmem:[%s1800_s6 + $0x20] sm:$0xff]  ;;  %v1328_v19 = vld [vmem:[%s1800_s6 + $0x90] sm:$0xff] }
  0x29   : > { %590 = vmatpush.bf16.msra.mxu2 %v1055_v21  ;;  %v1322_v9 = vld [vmem:[%s1800_s6 + $0x60] sm:$0xff]  ;;  %v1336_v20 = vld [vmem:[%s1800_s6 + $0xd0] sm:$0xff]  ;;  %v1311_v35 = vld [vmem:[%s1800_s6 + $0x8] sm:$0xff] }
  0x2a   : > { %336 = vmatpush.msra.mxu0 %v303_v16  ;;  %358 = vmatpush.msra.mxu1 %v303_v16  ;;  %v1083_v16 = vor.u32 %v1291_v14, %v1080_v15  ;;  %v1313_v14 = vld [vmem:[%s1800_s6 + $0x18] sm:$0xff]  ;;  %v1350_v22 = vld [vmem:[%s1796_s2] ss:$0 sm:$0xff]  ;;  %v1319_v36 = vld [vmem:[%s1800_s6 + $0x48] sm:$0xff] }
  0x2b   : > { %337 = vmatmul.f32.vlgmr.msra.gmra.mxu0 %v1476_v17  ;;  %603 = vmatpush.bf16.msra.mxu3 %v1059_v25  ;;  %v1321_v15 = vld [vmem:[%s1800_s6 + $0x58] sm:$0xff]  ;;  %v1351_v25 = vld [vmem:[%s1797_s3] ss:$0 sm:$0xff] }
  0x2c   : > { %611 = vmatpush.bf16.msrb.mxu0 %v1143_v26  ;;  %624 = vmatpush.bf16.msrb.mxu1 %v1147_v29  ;;  %v1063_v26 = vor.u32 %v1289_v24, %v1062_v23  ;;  %v1067_v29 = vor.u32 %v1287_v27, %v1064_v28  ;;  %v1326_v33 = vld [vmem:[%s1800_s6 + $0x80] sm:$0xff] }
  0x2d   : > { %v1310_v37 = vld [vmem:[%s1800_s6] sm:$0xff] }
  0x2f   : > { %604 = vmatpush.bf16.msra.mxu3 %v1043_v38  ;;  %v1318_v38 = vld [vmem:[%s1800_s6 + $0x40] sm:$0xff] }
  0x30   : > { %612 = vmatpush.bf16.msrb.mxu0 %v1127_v41  ;;  %625 = vmatpush.bf16.msrb.mxu1 %v1131_v44  ;;  %v1048_v41 = vld [vmem:[%s1798_s4 + $0x38] sm:$0xf0]  ;;  %v1280_v44 = vld [vmem:[%s1798_s4 + $0xc] sm:$0xf0] }
  0x31   : > { %v1051_v43 = vor.u32 %v1283_v40, %v1048_v41  ;;  %v1023_v47 = vor.u32 %v1280_v44, %v1022_v42 }
  0x33   : > { %605 = vmatpush.bf16.msra.mxu3 %v1027_v48 }
  0x34   : > { %613 = vmatpush.bf16.msrb.mxu0 %v1111_v53  ;;  %626 = vmatpush.bf16.msrb.mxu1 %v1115_v56  ;;  %v1032_v53 = vld [vmem:[%s1798_s4 + $0x18] sm:$0xf0] }
  0x35   : > { %v1035_v54 = vor.u32 %v1279_v51, %v1032_v53  ;;  %v1341_v56 = vld [vmem:[%s1800_s6 + $0xf8] sm:$0xff] }
  0x37   : > { %918 = vmatpush.bf16.msrb.mxu3 %v1325_v58 }
  0x38   : > { %614 = vmatpush.bf16.msrb.mxu0 %v1095_v1  ;;  %627 = vmatpush.bf16.msrb.mxu1 %v1099_v4  ;;  %v1331_v1 = vld [vmem:[%s1800_s6 + $0xa8] sm:$0xff] }
  0x39   : > { %v1323_v4 = vld [vmem:[%s1800_s6 + $0x68] sm:$0xff] }
  0x3b   : > { %919 = vmatpush.bf16.msrb.mxu3 %v1324_v0 }
  0x3c   : > { %615 = vmatpush.bf16.msrb.mxu0 %v1079_v13  ;;  %628 = vmatpush.bf16.msrb.mxu1 %v1083_v16  ;;  %v1337_v13 = vld [vmem:[%s1800_s6 + $0xd8] sm:$0xff] }
  0x3f   : > { %920 = vmatpush.bf16.msrb.mxu3 %v1323_v4  ;;  %v1352_v4 = vld [vmem:[%s1801_s7] ss:$0 sm:$0xff] }
  0x40   : > { %616 = vmatpush.bf16.msrb.mxu0 %v1063_v26  ;;  %629 = vmatpush.bf16.msrb.mxu1 %v1067_v29  ;;  %v1327_v29 = vld [vmem:[%s1800_s6 + $0x88] sm:$0xff] }
  0x43   : > { %921 = vmatpush.bf16.msrb.mxu3 %v1322_v9 }
  0x44   : > { %617 = vmatpush.bf16.msrb.mxu0 %v1047_v39  ;;  %630 = vmatpush.bf16.msrb.mxu1 %v1051_v43  ;;  %v415_v39 = vld [vmem:[%s1799_s5] sm:$0xf] }
  0x45   : > { %v419_v40 = vperm.slane %v415_v39, 2  ;;  %v420_v41 = vperm.slane %v415_v39, 3  ;;  %v417_v46 = vperm.slane %v415_v39, 0 }
  0x47   : > { %922 = vmatpush.bf16.msrb.mxu3 %v1321_v15 }
  0x48   : > { %618 = vmatpush.bf16.msrb.mxu0 %v1031_v52  ;;  %631 = vmatpush.bf16.msrb.mxu1 %v1035_v54 }
  0x4c   : > { %931 = vmatpush.bf16.msra.mxu0 %v1333_v55 }
  0x50   : > { %932 = vmatpush.bf16.msra.mxu0 %v1332_v60 }
  0x54   : > { %933 = vmatpush.bf16.msra.mxu0 %v1331_v1 }
  0x58   : > { %934 = vmatpush.bf16.msra.mxu0 %v1330_v5 }
  0x5c   : > { %935 = vmatpush.bf16.msra.mxu0 %v1329_v12 }
  0x60   : > { %936 = vmatpush.bf16.msra.mxu0 %v1328_v19 }
  0x64   : > { %937 = vmatpush.bf16.msra.mxu0 %v1327_v29 }
  0x68   : > { %938 = vmatpush.bf16.msra.mxu0 %v1326_v33 }
  0xa8   : > { %v338_v30 = vpop.f32.mrf.mxu0 }
  0xa9   : > { %v1504_v31 = vsub.f32 %v1476_v17, %v338_v30  ;;  %v1038_v30 = vld [vmem:[%s1798_s4 + $0x20] sm:$0xf] }
  0xab   : > { %v342_v32 = vmul.f32 %v1504_v31, %v1504_v31 }
  0xad   : > { %359 = vmatmul.f32.vlgmr.msra.gmra.mxu1 %v342_v32  ;;  %v1284_v32 = vld [vmem:[%s1798_s4 + $0x2c] sm:$0xf0] }
  0xae   : > { %v1039_v34 = vor.u32 %v1284_v32, %v1038_v30  ;;  %944 = vmatpush.bf16.msra.mxu1 %v1341_v56  ;;  %v1335_v30 = vld [vmem:[%s1800_s6 + $0xc8] sm:$0xff]  ;;  %v1320_v32 = vld [vmem:[%s1800_s6 + $0x50] sm:$0xff] }
  0xaf   : > { %923 = vmatpush.bf16.msrb.mxu3 %v1320_v32 }
  0xb0   : > { %591 = vmatpush.bf16.msra.mxu2 %v1039_v34  ;;  %v1334_v34 = vld [vmem:[%s1800_s6 + $0xc0] sm:$0xff] }
  0xb2   : > { %945 = vmatpush.bf16.msra.mxu1 %v1340_v61 }
  0xb3   : > { %924 = vmatpush.bf16.msrb.mxu3 %v1319_v36 }
  0xb4   : > { %592 = vmatpush.bf16.msra.mxu2 %v1023_v47  ;;  %v418_v47 = vperm.slane %v415_v39, 1 }
  0xb6   : > { %946 = vmatpush.bf16.msra.mxu1 %v1339_v2 }
  0xb7   : > { %925 = vmatpush.bf16.msrb.mxu3 %v1318_v38 }
  0xb8   : > { %905 = vmatpush.bf16.msrb.mxu2 %v1317_v57 }
  0xba   : > { %947 = vmatpush.bf16.msra.mxu1 %v1338_v6 }
  0xbc   : > { %906 = vmatpush.bf16.msrb.mxu2 %v1316_v63 }
  0xbe   : > { %948 = vmatpush.bf16.msra.mxu1 %v1337_v13 }
  0xc0   : > { %907 = vmatpush.bf16.msrb.mxu2 %v1315_v3 }
  0xc2   : > { %949 = vmatpush.bf16.msra.mxu1 %v1336_v20 }
  0xc4   : > { %908 = vmatpush.bf16.msrb.mxu2 %v1314_v8 }
  0xc6   : > { %950 = vmatpush.bf16.msra.mxu1 %v1335_v30 }
  0xc8   : > { %909 = vmatpush.bf16.msrb.mxu2 %v1313_v14 }
  0xca   : > { %951 = vmatpush.bf16.msra.mxu1 %v1334_v34 }
 0x12a   : > { %v360_v59 = vpop.f32.mrf.mxu1 }
 0x12b   : > { %v361_v62 = vadd.f32 1e-05, %v360_v59 }
 0x12d   : > { %1353 = vrsqrt.f32 %v361_v62  ;;  %vm369_vm1 = vweird.f32 %v361_v62 }
 0x133   : > { %v1354_v7 = vpop.eup %1353 }
 0x134   : > { %v364_v10 = vmul.f32 %v1354_v7, %v361_v62  ;;  %vm370_vm0 = vweird.f32 %v1354_v7 }
 0x135   : > { %vm371_vm2 = vmor %vm369_vm1, %vm370_vm0 }
 0x136   : > { %v365_v11 = vmul.f32 %v1354_v7, %v364_v10 }
 0x138   : > { %v366_v16 = vmul.f32 0.5, %v365_v11 }
 0x13a   : > { %v367_v18 = vsub.f32 1.5, %v366_v16 }
 0x13c   : > { %v368_v21 = vmul.f32 %v1354_v7, %v367_v18 }
 0x13e   : > { %v372_v23 = vsel %vm371_vm2, %v1354_v7, %v368_v21 }
 0x13f   : > { %v373_v24 = vmul.f32 %v372_v23, %v1504_v31  ;;  %v1312_v31 = vld [vmem:[%s1800_s6 + $0x10] sm:$0xff] }
 0x140   : > { %910 = vmatpush.bf16.msrb.mxu2 %v1312_v31 }
 0x141   : > { %v377_v26 = vmul.f32 %v1350_v22, %v373_v24 }
 0x143   : > { %v381_v27 = vadd.f32 %v1351_v25, %v377_v26 }
 0x144   : > { %911 = vmatpush.bf16.msrb.mxu2 %v1311_v35 }
 0x145   : > { %v382_v28 = vpack.c.bf16 %v381_v27, %v381_v27 }
 0x147   : > { %593 = vmatmul.bf16.vlgmr.msra.gmra.mxu2 %v382_v28  ;;  %606 = vmatmul.bf16.vlgmr.msra.gmra.mxu3 %v382_v28 }
 0x148   : > { %619 = vmatmul.bf16.vlgmr.msrb.gmra.mxu0 %v382_v28  ;;  %632 = vmatmul.bf16.vlgmr.msrb.gmra.mxu1 %v382_v28 }
 0x149   : > { %912 = vmatpush.bf16.msrb.mxu2 %v1310_v37 }
 0x1c5   : > { %v620_v42 = vpop.f32.mrf.mxu0  ;;  %v633_v43 = vpop.f32.mrf.mxu1 }
 0x1c6   : > { %v621_v44 = vadd.f32 %v620_v42, %v419_v40  ;;  %v634_v45 = vadd.f32 %v633_v43, %v420_v41 }
 0x1c8   : > { %v639_v48 = vmax.f32 %v621_v44, 0.0  ;;  %v640_v49 = vmax.f32 %v634_v45, 0.0 }
 0x1ca   : > { %v643_v50 = vpack.c.bf16 %v639_v48, %v639_v48  ;;  %v644_v51 = vpack.c.bf16 %v640_v49, %v640_v49  ;;  %v594_v52 = vpop.f32.mrf.mxu2  ;;  %v607_v53 = vpop.f32.mrf.mxu3 }
 0x1cb   : > { %v595_v54 = vadd.f32 %v594_v52, %v417_v46  ;;  %v608_v55 = vadd.f32 %v607_v53, %v418_v47 }
 0x1cc   : > { %939 = vmatmul.bf16.vlgmr.msra.gmra.mxu0 %v643_v50  ;;  %952 = vmatmul.bf16.vlgmr.msra.gmra.mxu1 %v644_v51 }
 0x1cd   : > { %v637_v56 = vmax.f32 %v595_v54, 0.0  ;;  %v638_v57 = vmax.f32 %v608_v55, 0.0  ;;  %v622_v58 = vpop.f32.mrf.mxu0  ;;  %v635_v59 = vpop.f32.mrf.mxu1 }
 0x1cf   : > { %v641_v60 = vpack.c.bf16 %v637_v56, %v637_v56  ;;  %v642_v61 = vpack.c.bf16 %v638_v57, %v638_v57 }
 0x1d1   : > { %913 = vmatmul.bf16.vlgmr.msrb.gmra.mxu2 %v641_v60  ;;  %926 = vmatmul.bf16.vlgmr.msrb.gmra.mxu3 %v642_v61 }
 0x1d2   : > { %v596_v62 = vpop.f32.mrf.mxu2  ;;  %v609_v63 = vpop.f32.mrf.mxu3 }
 0x249   : > { %v940_v0 = vpop.f32.mrf.mxu0  ;;  %v953_v1 = vpop.f32.mrf.mxu1 }
 0x251   : > { %v942_v2 = vpop.f32.mrf.mxu0  ;;  %v955_v3 = vpop.f32.mrf.mxu1 }
 0x254   : > { %v914_v5 = vpop.f32.mrf.mxu2  ;;  %v927_v6 = vpop.f32.mrf.mxu3 }
 0x255   : > { %v915_v7 = vadd.f32 %v1352_v4, %v914_v5 }
 0x257   : > { %v928_v8 = vadd.f32 %v927_v6, %v915_v7 }
 0x259   : > { %v941_v9 = vadd.f32 %v940_v0, %v928_v8 }
 0x25b   : > { %v954_v10 = vadd.f32 %v953_v1, %v941_v9 }
 0x25c   : > { %v916_v11 = vpop.f32.mrf.mxu2  ;;  %v929_v12 = vpop.f32.mrf.mxu3 }
 0x25d   : > { %v957_v13 = vadd.f32 %v954_v10, %v1476_v17 }
 0x25f   : > { %v958_v14 = vpack.c.bf16 %v957_v13, %v957_v13 }
 0x261   : > { %959 = vst [vmem:[%s300_s16] sm:$0xf] %v958_v14 }
 0x262 PF: > { %s18_s27 = sadd.s32 1, %s1361_s27  }
 0x263   : > { %p15_p4 = scmp.ge.s32.totalorder %s18_s27, 4  }
 0x265   :  { %17 = sbr.rel (!%p15_p4) target bundleno = 1 (0x1), region = 82 }

// kernel: _lambda_.34
= control target key start
LH: loop header
LB: loop body
LE: loop exit
PB: predicated region body
PF: predicated region fallthrough
CT: control target
= control target key end

     0   :  { %vm1363_vm6 = vcmask 257024   ;;  %s3063_s1 = inlined_call_operand.vmem [shape: f32[128,128], index: 1, kind: input, shape index: {}]   ;;  %s3064_s0 = inlined_call_operand.vmem [shape: bf16[8,128], index: 0, kind: input, shape index: {}, may-alias: {0,12}]   ;;  %s3065_s4 = inlined_call_operand.vmem [shape: bf16[128,512], index: 4, kind: input, shape index: {}]   ;;  %s3066_s2 = inlined_call_operand.vmem [shape: f32[1,128], index: 2, kind: input, shape index: {}, may-alias: {2,8}]   ;;  %s3067_s3 = inlined_call_operand.vmem [shape: f32[1,128], index: 3, kind: input, shape index: {}, may-alias: {3,7,9}]   ;;  %s3068_s6 = inlined_call_operand.vmem [shape: bf16[512,128], index: 6, kind: input, shape index: {}]   ;;  %s3069_s5 = inlined_call_operand.vmem [shape: f32[1,512], index: 5, kind: input, shape index: {}]   ;;  %s3070_s7 = inlined_call_operand.vmem [shape: f32[1,128], index: 7, kind: input, shape index: {}, may-alias: {3,7,9}]   ;;  %s3071_s12 = inlined_call_operand.vmem [shape: bf16[8,128], index: 12, kind: output, shape index: {0}, may-alias: {0,12}]   ;;  %s3072_s8 = inlined_call_operand.vmem [shape: f32[1,128], index: 8, kind: input, shape index: {}, may-alias: {2,8}]   ;;  %s3073_s9 = inlined_call_operand.vmem [shape: f32[1,128], index: 9, kind: input, shape index: {}, may-alias: {3,7,9}]   ;;  %s3074_s10 = inlined_call_operand.vmem [shape: bf16[128,1056], index: 10, kind: input, shape index: {}]   ;;  %s3075_s11 = inlined_call_operand.vmem [shape: f32[1,1056], index: 11, kind: input, shape index: {}]   ;;  %s3076_s13 = inlined_call_operand.vmem [shape: bf16[8,1056], index: 13, kind: output, shape index: {1}]  }
   0x1   :  { %v2136_v0 = vld [vmem:[%s3063_s1 + $0x78] sm:$0xff]  ;;  %v2141_v1 = vld [vmem:[%s3063_s1 + $0x70] sm:$0xff]  ;;  %v2148_v2 = vld [vmem:[%s3063_s1 + $0x68] sm:$0xff] }
   0x2   :  { %63 = vmatpush.msra.mxu0 %v2136_v0  ;;  %85 = vmatpush.msra.mxu1 %v2136_v0  ;;  %v2155_v3 = vld [vmem:[%s3063_s1 + $0x60] sm:$0xff]  ;;  %v2162_v4 = vld [vmem:[%s3063_s1 + $0x58] sm:$0xff]  ;;  %v2169_v5 = vld [vmem:[%s3063_s1 + $0x50] sm:$0xff] }
   0x3   :  { %v2176_v6 = vld [vmem:[%s3063_s1 + $0x48] sm:$0xff]  ;;  %v2183_v7 = vld [vmem:[%s3063_s1 + $0x40] sm:$0xff]  ;;  %v2190_v8 = vld [vmem:[%s3063_s1 + $0x38] sm:$0xff] }
   0x4   :  { %64 = vmatpush.msra.mxu0 %v2141_v1  ;;  %86 = vmatpush.msra.mxu1 %v2141_v1  ;;  %v2197_v9 = vld [vmem:[%s3063_s1 + $0x30] sm:$0xff]  ;;  %v2204_v10 = vld [vmem:[%s3063_s1 + $0x28] sm:$0xff]  ;;  %v2211_v11 = vld [vmem:[%s3063_s1 + $0x20] sm:$0xff] }
   0x5   :  { %v2218_v12 = vld [vmem:[%s3063_s1 + $0x18] sm:$0xff]  ;;  %v2225_v13 = vld [vmem:[%s3063_s1 + $0x10] sm:$0xff]  ;;  %v43_v14 = vld [vmem:[%s3064_s0] sm:$0xf] }
   0x6   :  { %65 = vmatpush.msra.mxu0 %v2148_v2  ;;  %87 = vmatpush.msra.mxu1 %v2148_v2  ;;  %v2235_v15 = vld [vmem:[%s3063_s1 + $0x8] sm:$0xff]  ;;  %v2242_v16 = vld [vmem:[%s3063_s1] sm:$0xff]  ;;  %v2244_v17 = vunpack.c.l.bf16 %v43_v14  ;;  %v1947_v19 = vld [vmem:[%s3065_s4 + $0xec] sm:$0xf0] }
   0x7   :  { %v1487_v18 = vld [vmem:[%s3065_s4 + $0xe0] sm:$0xf]  ;;  %v1945_v20 = vld [vmem:[%s3065_s4 + $0xe4] sm:$0xf]  ;;  %v1489_v22 = vld [vmem:[%s3065_s4 + $0xf0] sm:$0xf0] }
   0x8   :  { %66 = vmatpush.msra.mxu0 %v2155_v3  ;;  %88 = vmatpush.msra.mxu1 %v2155_v3  ;;  %v1488_v21 = vor.u32 %v1947_v19, %v1487_v18  ;;  %v1495_v23 = vld [vmem:[%s3065_s4 + $0xe8] sm:$0xf]  ;;  %v1948_v24 = vld [vmem:[%s3065_s4 + $0xf4] sm:$0xf0]  ;;  %v1492_v25 = vor.u32 %v1945_v20, %v1489_v22  ;;  %v1946_v27 = vld [vmem:[%s3065_s4 + $0xec] sm:$0xf] }
   0x9   :  { %v1496_v26 = vor.u32 %v1948_v24, %v1495_v23  ;;  %v1497_v28 = vld [vmem:[%s3065_s4 + $0xf8] sm:$0xf0]  ;;  %v1471_v33 = vld [vmem:[%s3065_s4 + $0xc0] sm:$0xf]  ;;  %v1943_v34 = vld [vmem:[%s3065_s4 + $0xcc] sm:$0xf0] }
   0xa   :  { %67 = vmatpush.msra.mxu0 %v2162_v4  ;;  %89 = vmatpush.msra.mxu1 %v2162_v4  ;;  %v1500_v29 = vor.u32 %v1946_v27, %v1497_v28  ;;  %v1941_v35 = vld [vmem:[%s3065_s4 + $0xc4] sm:$0xf]  ;;  %v1472_v36 = vor.u32 %v1943_v34, %v1471_v33  ;;  %v1473_v37 = vld [vmem:[%s3065_s4 + $0xd0] sm:$0xf0]  ;;  %v1479_v38 = vld [vmem:[%s3065_s4 + $0xc8] sm:$0xf] }
   0xb   :  { %327 = vmatpush.bf16.msra.mxu2 %v1488_v21  ;;  %340 = vmatpush.bf16.msra.mxu3 %v1492_v25  ;;  %v1944_v39 = vld [vmem:[%s3065_s4 + $0xd4] sm:$0xf0]  ;;  %v1476_v40 = vor.u32 %v1941_v35, %v1473_v37  ;;  %v1942_v42 = vld [vmem:[%s3065_s4 + $0xcc] sm:$0xf]  ;;  %v1481_v43 = vld [vmem:[%s3065_s4 + $0xd8] sm:$0xf0] }
   0xc   :  { %68 = vmatpush.msra.mxu0 %v2169_v5  ;;  %90 = vmatpush.msra.mxu1 %v2169_v5  ;;  %v1480_v41 = vor.u32 %v1944_v39, %v1479_v38  ;;  %v1484_v44 = vor.u32 %v1942_v42, %v1481_v43  ;;  %v1455_v45 = vld [vmem:[%s3065_s4 + $0xa0] sm:$0xf]  ;;  %v1939_v46 = vld [vmem:[%s3065_s4 + $0xac] sm:$0xf0]  ;;  %v1937_v47 = vld [vmem:[%s3065_s4 + $0xa4] sm:$0xf] }
   0xd   :  { %v1456_v48 = vor.u32 %v1939_v46, %v1455_v45  ;;  %v1457_v49 = vld [vmem:[%s3065_s4 + $0xb0] sm:$0xf0]  ;;  %v1463_v50 = vld [vmem:[%s3065_s4 + $0xa8] sm:$0xf]  ;;  %v1940_v51 = vld [vmem:[%s3065_s4 + $0xb4] sm:$0xf0] }
   0xe   :  { %69 = vmatpush.msra.mxu0 %v2176_v6  ;;  %91 = vmatpush.msra.mxu1 %v2176_v6  ;;  %v1460_v52 = vor.u32 %v1937_v47, %v1457_v49  ;;  %v1464_v53 = vor.u32 %v1940_v51, %v1463_v50  ;;  %v1938_v54 = vld [vmem:[%s3065_s4 + $0xac] sm:$0xf]  ;;  %v1465_v55 = vld [vmem:[%s3065_s4 + $0xb8] sm:$0xf0]  ;;  %v1439_v57 = vld [vmem:[%s3065_s4 + $0x80] sm:$0xf] }
   0xf   :  { %328 = vmatpush.bf16.msra.mxu2 %v1472_v36  ;;  %341 = vmatpush.bf16.msra.mxu3 %v1476_v40  ;;  %v1468_v56 = vor.u32 %v1938_v54, %v1465_v55  ;;  %v1935_v58 = vld [vmem:[%s3065_s4 + $0x8c] sm:$0xf0]  ;;  %v1933_v59 = vld [vmem:[%s3065_s4 + $0x84] sm:$0xf]  ;;  %v1441_v61 = vld [vmem:[%s3065_s4 + $0x90] sm:$0xf0] }
  0x10   :  { %70 = vmatpush.msra.mxu0 %v2183_v7  ;;  %92 = vmatpush.msra.mxu1 %v2183_v7  ;;  %v1440_v60 = vor.u32 %v1935_v58, %v1439_v57  ;;  %v1447_v62 = vld [vmem:[%s3065_s4 + $0x88] sm:$0xf]  ;;  %v1936_v63 = vld [vmem:[%s3065_s4 + $0x94] sm:$0xf0]  ;;  %v1444_v14 = vor.u32 %v1933_v59, %v1441_v61  ;;  %v1934_v19 = vld [vmem:[%s3065_s4 + $0x8c] sm:$0xf] }
  0x11   :  { %v1448_v18 = vor.u32 %v1936_v63, %v1447_v62  ;;  %v1449_v20 = vld [vmem:[%s3065_s4 + $0x98] sm:$0xf0]  ;;  %v1423_v22 = vld [vmem:[%s3065_s4 + $0x60] sm:$0xf]  ;;  %v1931_v23 = vld [vmem:[%s3065_s4 + $0x6c] sm:$0xf0] }
  0x12   :  { %71 = vmatpush.msra.mxu0 %v2190_v8  ;;  %93 = vmatpush.msra.mxu1 %v2190_v8  ;;  %v1452_v21 = vor.u32 %v1934_v19, %v1449_v20  ;;  %v1929_v24 = vld [vmem:[%s3065_s4 + $0x64] sm:$0xf]  ;;  %v1424_v25 = vor.u32 %v1931_v23, %v1423_v22  ;;  %v1431_v27 = vld [vmem:[%s3065_s4 + $0x68] sm:$0xf]  ;;  %v1932_v28 = vld [vmem:[%s3065_s4 + $0x74] sm:$0xf0] }
  0x13   :  { %329 = vmatpush.bf16.msra.mxu2 %v1456_v48  ;;  %342 = vmatpush.bf16.msra.mxu3 %v1460_v52  ;;  %v1433_v33 = vld [vmem:[%s3065_s4 + $0x78] sm:$0xf0]  ;;  %v1407_v35 = vld [vmem:[%s3065_s4 + $0x40] sm:$0xf]  ;;  %v1927_v36 = vld [vmem:[%s3065_s4 + $0x4c] sm:$0xf0] }
  0x14   :  { %72 = vmatpush.msra.mxu0 %v2197_v9  ;;  %94 = vmatpush.msra.mxu1 %v2197_v9  ;;  %v1925_v37 = vld [vmem:[%s3065_s4 + $0x44] sm:$0xf]  ;;  %v1408_v38 = vor.u32 %v1927_v36, %v1407_v35  ;;  %v1409_v39 = vld [vmem:[%s3065_s4 + $0x50] sm:$0xf0]  ;;  %v1415_v40 = vld [vmem:[%s3065_s4 + $0x48] sm:$0xf] }
  0x15   :  { %v1412_v42 = vor.u32 %v1925_v37, %v1409_v39  ;;  %v1417_v45 = vld [vmem:[%s3065_s4 + $0x58] sm:$0xf0]  ;;  %v1391_v47 = vld [vmem:[%s3065_s4 + $0x20] sm:$0xf]  ;;  %v1923_v48 = vld [vmem:[%s3065_s4 + $0x2c] sm:$0xf0] }
  0x16   :  { %73 = vmatpush.msra.mxu0 %v2204_v10  ;;  %95 = vmatpush.msra.mxu1 %v2204_v10  ;;  %v1921_v49 = vld [vmem:[%s3065_s4 + $0x24] sm:$0xf]  ;;  %v1392_v50 = vor.u32 %v1923_v48, %v1391_v47  ;;  %v1393_v51 = vld [vmem:[%s3065_s4 + $0x30] sm:$0xf0]  ;;  %v1399_v52 = vld [vmem:[%s3065_s4 + $0x28] sm:$0xf] }
  0x17   :  { %330 = vmatpush.bf16.msra.mxu2 %v1440_v60  ;;  %343 = vmatpush.bf16.msra.mxu3 %v1444_v14  ;;  %v1396_v54 = vor.u32 %v1921_v49, %v1393_v51  ;;  %v1401_v57 = vld [vmem:[%s3065_s4 + $0x38] sm:$0xf0]  ;;  %v1375_v58 = vld [vmem:[%s3065_s4] sm:$0xf]  ;;  %v1919_v60 = vld [vmem:[%s3065_s4 + $0xc] sm:$0xf0] }
  0x18   :  { %74 = vmatpush.msra.mxu0 %v2211_v11  ;;  %96 = vmatpush.msra.mxu1 %v2211_v11  ;;  %v1917_v61 = vld [vmem:[%s3065_s4 + $0x4] sm:$0xf]  ;;  %v1377_v62 = vld [vmem:[%s3065_s4 + $0x10] sm:$0xf0]  ;;  %v1376_v63 = vor.u32 %v1919_v60, %v1375_v58  ;;  %v1920_v19 = vld [vmem:[%s3065_s4 + $0x14] sm:$0xf0] }
  0x19   :  { %v1380_v14 = vor.u32 %v1917_v61, %v1377_v62  ;;  %v1918_v20 = vld [vmem:[%s3065_s4 + $0xc] sm:$0xf]  ;;  %v1385_v22 = vld [vmem:[%s3065_s4 + $0x18] sm:$0xf0]  ;;  %v1969_v39 = vld [vmem:[%s3068_s6 + $0xa0] sm:$0xff] }
  0x1a   :  { %75 = vmatpush.msra.mxu0 %v2218_v12  ;;  %97 = vmatpush.msra.mxu1 %v2218_v12  ;;  %v1388_v23 = vor.u32 %v1918_v20, %v1385_v22  ;;  %v1970_v35 = vld [vmem:[%s3068_s6 + $0xa8] sm:$0xff]  ;;  %v1976_v47 = vld [vmem:[%s3068_s6 + $0xd8] sm:$0xff]  ;;  %v2054_v58 = vld [vmem:[%s3067_s3] ss:$0 sm:$0xff] }
  0x1b   :  { %331 = vmatpush.bf16.msra.mxu2 %v1424_v25  ;;  %v1980_v25 = vld [vmem:[%s3068_s6 + $0xf8] sm:$0xff]  ;;  %v1978_v36 = vld [vmem:[%s3068_s6 + $0xe8] sm:$0xff]  ;;  %v1949_v22 = vld [vmem:[%s3068_s6] sm:$0xff] }
  0x1c   :  { %76 = vmatpush.msra.mxu0 %v2225_v13  ;;  %98 = vmatpush.msra.mxu1 %v2225_v13  ;;  %v1954_v37 = vld [vmem:[%s3068_s6 + $0x28] sm:$0xff]  ;;  %v1952_v48 = vld [vmem:[%s3068_s6 + $0x18] sm:$0xff] }
  0x1d   :  { %v1960_v49 = vld [vmem:[%s3068_s6 + $0x58] sm:$0xff]  ;;  %v1966_v62 = vld [vmem:[%s3068_s6 + $0x88] sm:$0xff] }
  0x1e   :  { %77 = vmatpush.msra.mxu0 %v2235_v15  ;;  %99 = vmatpush.msra.mxu1 %v2235_v15  ;;  %v1950_v20 = vld [vmem:[%s3068_s6 + $0x8] sm:$0xff] }
  0x1f   :  { %332 = vmatpush.bf16.msra.mxu2 %v1408_v38  ;;  %v1962_v38 = vld [vmem:[%s3068_s6 + $0x68] sm:$0xff] }
  0x20   :  { %78 = vmatpush.msra.mxu0 %v2242_v16  ;;  %100 = vmatpush.msra.mxu1 %v2242_v16 }
  0x21   :  { %79 = vmatmul.f32.vlgmr.msra.gmra.mxu0 %v2244_v17 }
  0x22   :  { %353 = vmatpush.bf16.msrb.mxu0 %v1496_v26  ;;  %366 = vmatpush.bf16.msrb.mxu1 %v1500_v29  ;;  %v1425_v26 = vld [vmem:[%s3065_s4 + $0x70] sm:$0xf0] }
  0x23   :  { %v1428_v29 = vor.u32 %v1929_v24, %v1425_v26  ;;  %333 = vmatpush.bf16.msra.mxu2 %v1392_v50  ;;  %v1972_v24 = vld [vmem:[%s3068_s6 + $0xb8] sm:$0xff] }
  0x24   :  { %v1956_v26 = vld [vmem:[%s3068_s6 + $0x38] sm:$0xff] }
  0x25   :  { %344 = vmatpush.bf16.msra.mxu3 %v1428_v29  ;;  %v1971_v29 = vld [vmem:[%s3068_s6 + $0xb0] sm:$0xff] }
  0x26   :  { %354 = vmatpush.bf16.msrb.mxu0 %v1480_v41  ;;  %367 = vmatpush.bf16.msrb.mxu1 %v1484_v44  ;;  %v1928_v41 = vld [vmem:[%s3065_s4 + $0x54] sm:$0xf0]  ;;  %v1926_v44 = vld [vmem:[%s3065_s4 + $0x4c] sm:$0xf] }
  0x27   :  { %v1416_v43 = vor.u32 %v1928_v41, %v1415_v40  ;;  %v1420_v46 = vor.u32 %v1926_v44, %v1417_v45  ;;  %334 = vmatpush.bf16.msra.mxu2 %v1376_v63  ;;  %v1977_v40 = vld [vmem:[%s3068_s6 + $0xe0] sm:$0xff]  ;;  %v1974_v63 = vld [vmem:[%s3068_s6 + $0xc8] sm:$0xff] }
  0x29   :  { %345 = vmatpush.bf16.msra.mxu3 %v1412_v42  ;;  %v1953_v42 = vld [vmem:[%s3068_s6 + $0x20] sm:$0xff] }
  0x2a   :  { %355 = vmatpush.bf16.msrb.mxu0 %v1464_v53  ;;  %368 = vmatpush.bf16.msrb.mxu1 %v1468_v56  ;;  %v1924_v53 = vld [vmem:[%s3065_s4 + $0x34] sm:$0xf0]  ;;  %v1922_v56 = vld [vmem:[%s3065_s4 + $0x2c] sm:$0xf] }
  0x2b   :  { %v1400_v55 = vor.u32 %v1924_v53, %v1399_v52  ;;  %v1404_v59 = vor.u32 %v1922_v56, %v1401_v57  ;;  %643 = vmatpush.bf16.msrb.mxu2 %v1956_v26  ;;  %v1967_v52 = vld [vmem:[%s3068_s6 + $0x90] sm:$0xff] }
  0x2c   :  { %v1975_v53 = vld [vmem:[%s3068_s6 + $0xd0] sm:$0xff] }
  0x2d   :  { %346 = vmatpush.bf16.msra.mxu3 %v1396_v54 }
  0x2e   :  { %356 = vmatpush.bf16.msrb.mxu0 %v1448_v18  ;;  %369 = vmatpush.bf16.msrb.mxu1 %v1452_v21  ;;  %v1383_v18 = vld [vmem:[%s3065_s4 + $0x8] sm:$0xf] }
  0x2f   :  { %v1384_v21 = vor.u32 %v1920_v19, %v1383_v18  ;;  %v1965_v18 = vld [vmem:[%s3068_s6 + $0x80] sm:$0xff] }
  0x30   :  { %v1973_v19 = vld [vmem:[%s3068_s6 + $0xc0] sm:$0xff] }
  0x31   :  { %347 = vmatpush.bf16.msra.mxu3 %v1380_v14  ;;  %v1959_v14 = vld [vmem:[%s3068_s6 + $0x50] sm:$0xff] }
  0x9e   :  { %v80_v30 = vpop.f32.mrf.mxu0 }
  0x9f   :  { %v2276_v31 = vsub.f32 %v2244_v17, %v80_v30  ;;  %v1432_v30 = vor.u32 %v1932_v28, %v1431_v27  ;;  %v1964_v27 = vld [vmem:[%s3068_s6 + $0x78] sm:$0xff] }
  0xa0   :  { %656 = vmatpush.bf16.msrb.mxu3 %v1964_v27 }
  0xa1   :  { %v84_v32 = vmul.f32 %v2276_v31, %v2276_v31  ;;  %357 = vmatpush.bf16.msrb.mxu0 %v1432_v30  ;;  %v1979_v30 = vld [vmem:[%s3068_s6 + $0xf0] sm:$0xff] }
  0xa3   :  { %101 = vmatmul.f32.vlgmr.msra.gmra.mxu1 %v84_v32  ;;  %v1930_v32 = vld [vmem:[%s3065_s4 + $0x6c] sm:$0xf] }
  0xa4   :  { %v1436_v34 = vor.u32 %v1930_v32, %v1433_v33  ;;  %v1955_v33 = vld [vmem:[%s3068_s6 + $0x30] sm:$0xff] }
  0xa5   :  { %358 = vmatpush.bf16.msrb.mxu0 %v1416_v43  ;;  %644 = vmatpush.bf16.msrb.mxu2 %v1955_v33  ;;  %v1961_v43 = vld [vmem:[%s3068_s6 + $0x60] sm:$0xff] }
  0xa6   :  { %370 = vmatpush.bf16.msrb.mxu1 %v1436_v34  ;;  %v1963_v34 = vld [vmem:[%s3068_s6 + $0x70] sm:$0xff] }
  0xa7   :  { %657 = vmatpush.bf16.msrb.mxu3 %v1963_v34 }
  0xa9   :  { %359 = vmatpush.bf16.msrb.mxu0 %v1400_v55  ;;  %645 = vmatpush.bf16.msrb.mxu2 %v1954_v37  ;;  %v2053_v55 = vld [vmem:[%s3066_s2] ss:$0 sm:$0xff] }
  0xaa   :  { %371 = vmatpush.bf16.msrb.mxu1 %v1420_v46  ;;  %v1968_v46 = vld [vmem:[%s3068_s6 + $0x98] sm:$0xff] }
  0xab   :  { %658 = vmatpush.bf16.msrb.mxu3 %v1962_v38 }
  0xad   :  { %360 = vmatpush.bf16.msrb.mxu0 %v1384_v21  ;;  %646 = vmatpush.bf16.msrb.mxu2 %v1953_v42  ;;  %v1958_v21 = vld [vmem:[%s3068_s6 + $0x48] sm:$0xff] }
  0xae   :  { %372 = vmatpush.bf16.msrb.mxu1 %v1404_v59 }
  0xaf   :  { %659 = vmatpush.bf16.msrb.mxu3 %v1961_v43 }
  0xb1   :  { %669 = vmatpush.bf16.msra.mxu0 %v1972_v24  ;;  %647 = vmatpush.bf16.msrb.mxu2 %v1952_v48 }
  0xb2   :  { %373 = vmatpush.bf16.msrb.mxu1 %v1388_v23  ;;  %v1957_v23 = vld [vmem:[%s3068_s6 + $0x40] sm:$0xff] }
  0xb3   :  { %660 = vmatpush.bf16.msrb.mxu3 %v1960_v49  ;;  %v1883_v49 = vld [vmem:[%s3074_s10 + $0x1f8] sm:$0xf] }
  0xb5   :  { %670 = vmatpush.bf16.msra.mxu0 %v1971_v29 }
  0xb6   :  { %682 = vmatpush.bf16.msra.mxu1 %v1980_v25 }
  0xb7   :  { %661 = vmatpush.bf16.msrb.mxu3 %v1959_v14  ;;  %v2035_v14 = vld [vmem:[%s3074_s10 + $0x1b4] sm:$0xf] }
  0xb9   :  { %671 = vmatpush.bf16.msra.mxu0 %v1970_v35 }
  0xba   :  { %683 = vmatpush.bf16.msra.mxu1 %v1979_v30 }
  0xbb   :  { %662 = vmatpush.bf16.msrb.mxu3 %v1958_v21  ;;  %v2040_v21 = vld [vmem:[%s3074_s10 + $0x1d8] sm:$0xf0] }
  0xbd   :  { %672 = vmatpush.bf16.msra.mxu0 %v1969_v39 }
  0xbe   :  { %684 = vmatpush.bf16.msra.mxu1 %v1978_v36 }
  0xbf   :  { %663 = vmatpush.bf16.msrb.mxu3 %v1957_v23 }
  0xc1   :  { %673 = vmatpush.bf16.msra.mxu0 %v1968_v46 }
  0xc2   :  { %685 = vmatpush.bf16.msra.mxu1 %v1977_v40 }
  0xc5   :  { %674 = vmatpush.bf16.msra.mxu0 %v1967_v52  ;;  %v2039_v52 = vld [vmem:[%s3074_s10 + $0x1d0] sm:$0xf0] }
  0xc6   :  { %686 = vmatpush.bf16.msra.mxu1 %v1976_v47 }
  0xc9   :  { %675 = vmatpush.bf16.msra.mxu0 %v1966_v62  ;;  %v2045_v62 = vld [vmem:[%s3074_s10 + $0x204] sm:$0xf] }
  0xca   :  { %687 = vmatpush.bf16.msra.mxu1 %v1975_v53  ;;  %v1811_v53 = vld [vmem:[%s3074_s10 + $0x168] sm:$0xf] }
  0xcd   :  { %676 = vmatpush.bf16.msra.mxu0 %v1965_v18  ;;  %v1849_v18 = vld [vmem:[%s3074_s10 + $0x1d4] sm:$0xf0] }
  0xce   :  { %688 = vmatpush.bf16.msra.mxu1 %v1974_v63  ;;  %v1893_v63 = vld [vmem:[%s3074_s10 + $0x224] sm:$0xf0] }
  0xd2   :  { %689 = vmatpush.bf16.msra.mxu1 %v1973_v19  ;;  %v1852_v19 = vor.u32 %v2035_v14, %v1849_v18  ;;  %v1713_v14 = vld [vmem:[%s3074_s10 + $0xbc] sm:$0xf0] }
 0x120   :  { %v102_v28 = vpop.f32.mrf.mxu1 }
 0x121   :  { %v103_v32 = vadd.f32 1e-05, %v102_v28 }
 0x123   :  { %2059 = vrsqrt.f32 %v103_v32  ;;  %vm111_vm1 = vweird.f32 %v103_v32 }
 0x129   :  { %v2060_v41 = vpop.eup %2059 }
 0x12a   :  { %v106_v44 = vmul.f32 %v2060_v41, %v103_v32  ;;  %vm112_vm0 = vweird.f32 %v2060_v41 }
 0x12b   :  { %vm113_vm2 = vmor %vm111_vm1, %vm112_vm0 }
 0x12c   :  { %v107_v45 = vmul.f32 %v2060_v41, %v106_v44 }
 0x12e   :  { %v108_v50 = vmul.f32 0.5, %v107_v45 }
 0x130   :  { %v109_v51 = vsub.f32 1.5, %v108_v50  ;;  %v1847_v50 = vld [vmem:[%s3074_s10 + $0x1b0] sm:$0xf] }
 0x132   :  { %v110_v54 = vmul.f32 %v2060_v41, %v109_v51 }
 0x134   :  { %v114_v56 = vsel %vm113_vm2, %v2060_v41, %v110_v54  ;;  %v2044_v54 = vld [vmem:[%s3074_s10 + $0x1fc] sm:$0xf] }
 0x135   :  { %v115_v57 = vmul.f32 %v114_v56, %v2276_v31  ;;  %v1951_v31 = vld [vmem:[%s3068_s6 + $0x10] sm:$0xff]  ;;  %v1885_v56 = vld [vmem:[%s3074_s10 + $0x21c] sm:$0xf0] }
 0x136   :  { %648 = vmatpush.bf16.msrb.mxu2 %v1951_v31  ;;  %v1896_v31 = vor.u32 %v2045_v62, %v1893_v63  ;;  %v2004_v63 = vld [vmem:[%s3074_s10 + $0xb8] sm:$0xf0] }
 0x137   :  { %v119_v59 = vmul.f32 %v2053_v55, %v115_v57  ;;  %v1848_v55 = vor.u32 %v2039_v52, %v1847_v50  ;;  %v1891_v57 = vld [vmem:[%s3074_s10 + $0x200] sm:$0xf]  ;;  %v2009_v52 = vld [vmem:[%s3074_s10 + $0xe4] sm:$0xf] }
 0x139   :  { %v123_v60 = vadd.f32 %v2054_v58, %v119_v59  ;;  %v2049_v58 = vld [vmem:[%s3074_s10 + $0x220] sm:$0xf0]  ;;  %v2030_v59 = vld [vmem:[%s3074_s10 + $0x188] sm:$0xf0] }
 0x13a   :  { %649 = vmatpush.bf16.msrb.mxu2 %v1950_v20  ;;  %v1855_v20 = vld [vmem:[%s3074_s10 + $0x1b8] sm:$0xf]  ;;  %v1812_v23 = vor.u32 %v2030_v59, %v1811_v53  ;;  %v1749_v53 = vld [vmem:[%s3074_s10 + $0x104] sm:$0xf0]  ;;  %v1999_v59 = vld [vmem:[%s3074_s10 + $0x94] sm:$0xf] }
 0x13b   :  { %v124_v61 = vpack.c.bf16 %v123_v60, %v123_v60  ;;  %v1888_v60 = vor.u32 %v2044_v54, %v1885_v56  ;;  %v1899_v56 = vld [vmem:[%s3074_s10 + $0x208] sm:$0xf] }
 0x13d   :  { %335 = vmatmul.bf16.vlgmr.msra.gmra.mxu2 %v124_v61  ;;  %348 = vmatmul.bf16.vlgmr.msra.gmra.mxu3 %v124_v61 }
 0x13e   :  { %361 = vmatmul.bf16.vlgmr.msrb.gmra.mxu0 %v124_v61  ;;  %374 = vmatmul.bf16.vlgmr.msrb.gmra.mxu1 %v124_v61  ;;  %v1892_v61 = vor.u32 %v2049_v58, %v1891_v57  ;;  %v2050_v57 = vld [vmem:[%s3074_s10 + $0x228] sm:$0xf0] }
 0x13f   :  { %650 = vmatpush.bf16.msrb.mxu2 %v1949_v22  ;;  %727 = vmatpush.msra.mxu3 %v2136_v0  ;;  %v2036_v22 = vld [vmem:[%s3074_s10 + $0x1bc] sm:$0xf]  ;;  %v1900_v58 = vor.u32 %v2050_v57, %v1899_v56  ;;  %v1829_v57 = vld [vmem:[%s3074_s10 + $0x19c] sm:$0xf0] }
 0x140   :  { %1250 = vmatpush.bf16.msrb.mxu1 %v1888_v60  ;;  %v1705_v60 = vld [vmem:[%s3074_s10 + $0xb4] sm:$0xf0]  ;;  %v2028_v56 = vld [vmem:[%s3074_s10 + $0x17c] sm:$0xf] }
 0x141   :  { %728 = vmatpush.msra.mxu3 %v2141_v1  ;;  %v1708_v62 = vor.u32 %v1999_v59, %v1705_v60  ;;  %v1832_v59 = vor.u32 %v2028_v56, %v1829_v57  ;;  %v2033_v60 = vld [vmem:[%s3074_s10 + $0x1a0] sm:$0xf0] }
 0x143   :  { %705 = vmatpush.msra.mxu2 %v2136_v0  ;;  %729 = vmatpush.msra.mxu3 %v2148_v2  ;;  %v157_v0 = vld [vmem:[%s3069_s5] sm:$0xf] }
 0x144   :  { %1251 = vmatpush.bf16.msrb.mxu1 %v1852_v19 }
 0x145   :  { %706 = vmatpush.msra.mxu2 %v2141_v1  ;;  %730 = vmatpush.msra.mxu3 %v2155_v3  ;;  %v161_v1 = vperm.slane %v157_v0, 2 }
 0x147   :  { %707 = vmatpush.msra.mxu2 %v2148_v2  ;;  %731 = vmatpush.msra.mxu3 %v2162_v4  ;;  %v162_v2 = vperm.slane %v157_v0, 3 }
 0x149   :  { %708 = vmatpush.msra.mxu2 %v2155_v3  ;;  %732 = vmatpush.msra.mxu3 %v2169_v5 }
 0x14b   :  { %709 = vmatpush.msra.mxu2 %v2162_v4  ;;  %733 = vmatpush.msra.mxu3 %v2176_v6 }
 0x14d   :  { %710 = vmatpush.msra.mxu2 %v2169_v5  ;;  %734 = vmatpush.msra.mxu3 %v2183_v7 }
 0x14f   :  { %711 = vmatpush.msra.mxu2 %v2176_v6  ;;  %735 = vmatpush.msra.mxu3 %v2190_v8 }
 0x151   :  { %712 = vmatpush.msra.mxu2 %v2183_v7  ;;  %736 = vmatpush.msra.mxu3 %v2197_v9  ;;  %v159_v7 = vperm.slane %v157_v0, 0 }
 0x153   :  { %713 = vmatpush.msra.mxu2 %v2190_v8  ;;  %737 = vmatpush.msra.mxu3 %v2204_v10  ;;  %v160_v8 = vperm.slane %v157_v0, 1  ;;  %v1775_v0 = vld [vmem:[%s3074_s10 + $0x120] sm:$0xf] }
 0x155   :  { %714 = vmatpush.msra.mxu2 %v2197_v9  ;;  %738 = vmatpush.msra.mxu3 %v2211_v11 }
 0x157   :  { %715 = vmatpush.msra.mxu2 %v2204_v10  ;;  %739 = vmatpush.msra.mxu3 %v2218_v12 }
 0x159   :  { %716 = vmatpush.msra.mxu2 %v2211_v11  ;;  %740 = vmatpush.msra.mxu3 %v2225_v13 }
 0x15b   :  { %717 = vmatpush.msra.mxu2 %v2218_v12  ;;  %741 = vmatpush.msra.mxu3 %v2235_v15 }
 0x15d   :  { %718 = vmatpush.msra.mxu2 %v2225_v13  ;;  %742 = vmatpush.msra.mxu3 %v2242_v16 }
 0x15f   :  { %719 = vmatpush.msra.mxu2 %v2235_v15  ;;  %v2055_v15 = vld [vmem:[%s3070_s7] ss:$0 sm:$0xff] }
 0x161   :  { %720 = vmatpush.msra.mxu2 %v2242_v16 }
 0x1bb   :  { %v362_v3 = vpop.f32.mrf.mxu0  ;;  %v375_v4 = vpop.f32.mrf.mxu1 }
 0x1bc   :  { %v363_v5 = vadd.f32 %v362_v3, %v161_v1  ;;  %v376_v6 = vadd.f32 %v375_v4, %v162_v2  ;;  %v2021_v1 = vld [vmem:[%s3074_s10 + $0x140] sm:$0xf0]  ;;  %v1856_v2 = vor.u32 %v2040_v21, %v1855_v20  ;;  %v1857_v3 = vld [vmem:[%s3074_s10 + $0x1dc] sm:$0xf0] }
 0x1bd   :  { %v1860_v4 = vor.u32 %v2036_v22, %v1857_v3  ;;  %v1863_v20 = vld [vmem:[%s3074_s10 + $0x1c0] sm:$0xf]  ;;  %v2041_v21 = vld [vmem:[%s3074_s10 + $0x1e0] sm:$0xf0]  ;;  %v1995_v3 = vld [vmem:[%s3074_s10 + $0x70] sm:$0xf0] }
 0x1be   :  { %v381_v24 = vmax.f32 %v363_v5, 0.0  ;;  %v382_v25 = vmax.f32 %v376_v6, 0.0  ;;  %v2026_v5 = vld [vmem:[%s3074_s10 + $0x16c] sm:$0xf]  ;;  %v1813_v6 = vld [vmem:[%s3074_s10 + $0x18c] sm:$0xf0]  ;;  %v1864_v22 = vor.u32 %v2041_v21, %v1863_v20 }
 0x1bf   :  { %v2019_v20 = vld [vmem:[%s3074_s10 + $0x134] sm:$0xf]  ;;  %v1793_v21 = vld [vmem:[%s3074_s10 + $0x154] sm:$0xf0] }
 0x1c0   :  { %v385_v9 = vpack.c.bf16 %v381_v24, %v381_v24  ;;  %v386_v26 = vpack.c.bf16 %v382_v25, %v382_v25  ;;  %v336_v27 = vpop.f32.mrf.mxu2  ;;  %v349_v10 = vpop.f32.mrf.mxu3  ;;  %v2027_v24 = vld [vmem:[%s3074_s10 + $0x174] sm:$0xf]  ;;  %v1821_v25 = vld [vmem:[%s3074_s10 + $0x194] sm:$0xf0] }
 0x1c1   :  { %v337_v28 = vadd.f32 %v336_v27, %v159_v7  ;;  %v350_v29 = vadd.f32 %v349_v10, %v160_v8  ;;  %v1819_v7 = vld [vmem:[%s3074_s10 + $0x170] sm:$0xf]  ;;  %v2031_v8 = vld [vmem:[%s3074_s10 + $0x190] sm:$0xf0]  ;;  %v2017_v10 = vld [vmem:[%s3074_s10 + $0x124] sm:$0xf] }
 0x1c2   :  { %677 = vmatmul.bf16.vlgmr.msra.gmra.mxu0 %v385_v9  ;;  %690 = vmatmul.bf16.vlgmr.msra.gmra.mxu1 %v386_v26  ;;  %v1739_v9 = vld [vmem:[%s3074_s10 + $0xd8] sm:$0xf]  ;;  %v1816_v26 = vor.u32 %v2026_v5, %v1813_v6  ;;  %v1820_v27 = vor.u32 %v2031_v8, %v1819_v7 }
 0x1c3   :  { %v379_v11 = vmax.f32 %v337_v28, 0.0  ;;  %v380_v30 = vmax.f32 %v350_v29, 0.0  ;;  %v364_v32 = vpop.f32.mrf.mxu0  ;;  %v377_v33 = vpop.f32.mrf.mxu1  ;;  %v1776_v28 = vor.u32 %v2021_v1, %v1775_v0  ;;  %v1824_v29 = vor.u32 %v2027_v24, %v1821_v25  ;;  %v1669_v0 = vld [vmem:[%s3074_s10 + $0x6c] sm:$0xf0]  ;;  %v1677_v5 = vld [vmem:[%s3074_s10 + $0x74] sm:$0xf0] }
 0x1c4   :  { %v2022_v32 = vld [vmem:[%s3074_s10 + $0x148] sm:$0xf0]  ;;  %v2012_v33 = vld [vmem:[%s3074_s10 + $0xf8] sm:$0xf0]  ;;  %1252 = vmatpush.bf16.msrb.mxu1 %v1816_v26  ;;  %v1675_v1 = vld [vmem:[%s3074_s10 + $0x50] sm:$0xf] }
 0x1c5   :  { %v383_v12 = vpack.c.bf16 %v379_v11, %v379_v11  ;;  %v384_v34 = vpack.c.bf16 %v380_v30, %v380_v30  ;;  %v1777_v11 = vld [vmem:[%s3074_s10 + $0x144] sm:$0xf0]  ;;  %v1676_v6 = vor.u32 %v1995_v3, %v1675_v1  ;;  %v1827_v8 = vld [vmem:[%s3074_s10 + $0x178] sm:$0xf]  ;;  %v2032_v24 = vld [vmem:[%s3074_s10 + $0x198] sm:$0xf0] }
 0x1c6   :  { %v1783_v30 = vld [vmem:[%s3074_s10 + $0x128] sm:$0xf]  ;;  %v1828_v25 = vor.u32 %v2032_v24, %v1827_v8  ;;  %v2020_v1 = vld [vmem:[%s3074_s10 + $0x13c] sm:$0xf]  ;;  %v2010_v8 = vld [vmem:[%s3074_s10 + $0xec] sm:$0xf] }
 0x1c7   :  { %651 = vmatmul.bf16.vlgmr.msrb.gmra.mxu2 %v383_v12  ;;  %664 = vmatmul.bf16.vlgmr.msrb.gmra.mxu3 %v384_v34  ;;  %v2018_v12 = vld [vmem:[%s3074_s10 + $0x12c] sm:$0xf]  ;;  %v1785_v34 = vld [vmem:[%s3074_s10 + $0x14c] sm:$0xf0]  ;;  %v1633_v26 = vld [vmem:[%s3074_s10 + $0x24] sm:$0xf0] }
 0x1c8   :  { %v338_v13 = vpop.f32.mrf.mxu2  ;;  %v351_v35 = vpop.f32.mrf.mxu3  ;;  %1263 = vmatpush.bf16.msrb.mxu2 %v1892_v61  ;;  %1276 = vmatpush.bf16.msrb.mxu3 %v1896_v31  ;;  %v1711_v61 = vld [vmem:[%s3074_s10 + $0x98] sm:$0xf]  ;;  %v2000_v31 = vld [vmem:[%s3074_s10 + $0x9c] sm:$0xf]  ;;  %v1757_v24 = vld [vmem:[%s3074_s10 + $0x10c] sm:$0xf0] }
 0x1c9   :  { %v1780_v13 = vor.u32 %v2017_v10, %v1777_v11  ;;  %v1784_v35 = vor.u32 %v2022_v32, %v1783_v30  ;;  %v1712_v18 = vor.u32 %v2004_v63, %v1711_v61  ;;  %v1716_v19 = vor.u32 %v2000_v31, %v1713_v14  ;;  %v1641_v11 = vld [vmem:[%s3074_s10 + $0x2c] sm:$0xf0]  ;;  %v2029_v61 = vld [vmem:[%s3074_s10 + $0x184] sm:$0xf]  ;;  %v1837_v63 = vld [vmem:[%s3074_s10 + $0x1a4] sm:$0xf0] }
 0x1ca   :  { %v1840_v31 = vor.u32 %v2029_v61, %v1837_v63  ;;  %v1683_v14 = vld [vmem:[%s3074_s10 + $0x58] sm:$0xf]  ;;  %v2056_v61 = vld [vmem:[%s3072_s8] ss:$0 sm:$0xff] }
 0x1cb   :  { %1253 = vmatpush.bf16.msrb.mxu1 %v1780_v13 }
 0x1cc   :  { %1264 = vmatpush.bf16.msrb.mxu2 %v1856_v2  ;;  %1277 = vmatpush.bf16.msrb.mxu3 %v1860_v4  ;;  %v1991_v4 = vld [vmem:[%s3074_s10 + $0x54] sm:$0xf] }
 0x1cd   :  { %v1680_v7 = vor.u32 %v1991_v4, %v1677_v5  ;;  %v1647_v5 = vld [vmem:[%s3074_s10 + $0x10] sm:$0xf] }
 0x1d0   :  { %1265 = vmatpush.bf16.msrb.mxu2 %v1820_v27  ;;  %1278 = vmatpush.bf16.msrb.mxu3 %v1824_v29  ;;  %v1639_v27 = vld [vmem:[%s3074_s10 + $0x8] sm:$0xf]  ;;  %v1982_v29 = vld [vmem:[%s3074_s10 + $0xc] sm:$0xf] }
 0x1d1   :  { %v1644_v32 = vor.u32 %v1982_v29, %v1641_v11  ;;  %v2001_v11 = vld [vmem:[%s3074_s10 + $0xa4] sm:$0xf] }
 0x1d4   :  { %1266 = vmatpush.bf16.msrb.mxu2 %v1784_v35  ;;  %v1901_v35 = vld [vmem:[%s3074_s10 + $0x22c] sm:$0xf0] }
 0x23f   :  { %v678_v36 = vpop.f32.mrf.mxu0  ;;  %v691_v37 = vpop.f32.mrf.mxu1 }
 0x247   :  { %v680_v38 = vpop.f32.mrf.mxu0  ;;  %v693_v39 = vpop.f32.mrf.mxu1 }
 0x248   :  { %v1703_v38 = vld [vmem:[%s3074_s10 + $0x90] sm:$0xf]  ;;  %v2003_v39 = vld [vmem:[%s3074_s10 + $0xb0] sm:$0xf0] }
 0x24a   :  { %v652_v40 = vpop.f32.mrf.mxu2  ;;  %v665_v41 = vpop.f32.mrf.mxu3 }
 0x24b   :  { %v666_v42 = vadd.f32 %v665_v41, %v652_v40  ;;  %v1704_v40 = vor.u32 %v2003_v39, %v1703_v38  ;;  %v1667_v41 = vld [vmem:[%s3074_s10 + $0x48] sm:$0xf] }
 0x24d   :  { %v679_v43 = vadd.f32 %v678_v36, %v666_v42  ;;  %v1740_v36 = vor.u32 %v2012_v33, %v1739_v9  ;;  %v1994_v42 = vld [vmem:[%s3074_s10 + $0x68] sm:$0xf0]  ;;  %v1981_v9 = vld [vmem:[%s3074_s10 + $0x4] sm:$0xf]  ;;  %v1791_v33 = vld [vmem:[%s3074_s10 + $0x130] sm:$0xf] }
 0x24e   :  { %v1636_v10 = vor.u32 %v1981_v9, %v1633_v26  ;;  %v1760_v9 = vor.u32 %v2010_v8, %v1757_v24  ;;  %v2015_v26 = vld [vmem:[%s3074_s10 + $0x110] sm:$0xf0]  ;;  %v2016_v8 = vld [vmem:[%s3074_s10 + $0x118] sm:$0xf0] }
 0x24f   :  { %v692_v44 = vadd.f32 %v691_v37, %v679_v43  ;;  %v1788_v37 = vor.u32 %v2018_v12, %v1785_v34  ;;  %v1668_v43 = vor.u32 %v1994_v42, %v1667_v41  ;;  %v2023_v12 = vld [vmem:[%s3074_s10 + $0x150] sm:$0xf0]  ;;  %v2046_v34 = vld [vmem:[%s3074_s10 + $0x20c] sm:$0xf]  ;;  %v1909_v41 = vld [vmem:[%s3074_s10 + $0x234] sm:$0xf0] }
 0x250   :  { %v1792_v13 = vor.u32 %v2023_v12, %v1791_v33  ;;  %v1904_v38 = vor.u32 %v2046_v34, %v1901_v35  ;;  %v1755_v42 = vld [vmem:[%s3074_s10 + $0xe8] sm:$0xf]  ;;  %v2006_v12 = vld [vmem:[%s3074_s10 + $0xc8] sm:$0xf0] }
 0x251   :  { %v695_v45 = vadd.f32 %v692_v44, %v2244_v17  ;;  %v2048_v17 = vld [vmem:[%s3074_s10 + $0x218] sm:$0xf0]  ;;  %1279 = vmatpush.bf16.msrb.mxu3 %v1788_v37  ;;  %v2051_v37 = vld [vmem:[%s3074_s10 + $0x230] sm:$0xf0]  ;;  %v2002_v34 = vld [vmem:[%s3074_s10 + $0xac] sm:$0xf] }
 0x252   :  { %v654_v16 = vpop.f32.mrf.mxu2  ;;  %v667_v46 = vpop.f32.mrf.mxu3  ;;  %v1884_v51 = vor.u32 %v2048_v17, %v1883_v49  ;;  %v2008_v49 = vld [vmem:[%s3074_s10 + $0xdc] sm:$0xf]  ;;  %v1747_v17 = vld [vmem:[%s3074_s10 + $0xe0] sm:$0xf] }
 0x253   :  { %v2590_v47 = vadd.f32 %v2055_v15, %v695_v45  ;;  %v1631_v16 = vld [vmem:[%s3074_s10] sm:$0xf]  ;;  %v1985_v46 = vld [vmem:[%s3074_s10 + $0x20] sm:$0xf0] }
 0x254   :  { %1237 = vmatpush.bf16.msrb.mxu0 %v1884_v51  ;;  %v2013_v51 = vld [vmem:[%s3074_s10 + $0x100] sm:$0xf0] }
 0x255   :  { %v701_v48 = vpack.c.bf16 %v2590_v47, %v2590_v47  ;;  %721 = vmatmul.f32.vlgmr.msra.gmra.mxu2 %v2590_v47  ;;  %v1748_v54 = vor.u32 %v2013_v51, %v1747_v17  ;;  %v2038_v17 = vld [vmem:[%s3074_s10 + $0x1cc] sm:$0xf]  ;;  %v1873_v51 = vld [vmem:[%s3074_s10 + $0x1ec] sm:$0xf0] }
 0x257   :  { %702 = vst [vmem:[%s3071_s12] sm:$0xf] %v701_v48  ;;  %v1632_v48 = vor.u32 %v1985_v46, %v1631_v16  ;;  %1267 = vmatpush.bf16.msrb.mxu2 %v1748_v54  ;;  %v1865_v16 = vld [vmem:[%s3074_s10 + $0x1e4] sm:$0xf0]  ;;  %v2005_v54 = vld [vmem:[%s3074_s10 + $0xc0] sm:$0xf0] }
 0x258   :  { %1238 = vmatpush.bf16.msrb.mxu0 %v1848_v55  ;;  %v1752_v55 = vor.u32 %v2009_v52, %v1749_v53  ;;  %v1876_v52 = vor.u32 %v2038_v17, %v1873_v51  ;;  %v1719_v53 = vld [vmem:[%s3074_s10 + $0xa0] sm:$0xf]  ;;  %v1988_v17 = vld [vmem:[%s3074_s10 + $0x38] sm:$0xf0] }
 0x259   :  { %v1657_v51 = vld [vmem:[%s3074_s10 + $0x3c] sm:$0xf0] }
 0x25a   :  { %1280 = vmatpush.bf16.msrb.mxu3 %v1752_v55  ;;  %v1720_v55 = vor.u32 %v2005_v54, %v1719_v53 }
 0x25b   :  { %1268 = vmatpush.bf16.msrb.mxu2 %v1712_v18  ;;  %v1996_v18 = vld [vmem:[%s3074_s10 + $0x78] sm:$0xf0] }
 0x25c   :  { %1239 = vmatpush.bf16.msrb.mxu0 %v1812_v23  ;;  %v1990_v23 = vld [vmem:[%s3074_s10 + $0x4c] sm:$0xf] }
 0x25d   :  { %v1672_v2 = vor.u32 %v1990_v23, %v1669_v0  ;;  %v1796_v23 = vor.u32 %v2019_v20, %v1793_v21  ;;  %v2024_v0 = vld [vmem:[%s3074_s10 + $0x158] sm:$0xf0] }
 0x25e   :  { %1281 = vmatpush.bf16.msrb.mxu3 %v1716_v19  ;;  %v1684_v19 = vor.u32 %v1996_v18, %v1683_v14  ;;  %v1915_v18 = vld [vmem:[%s3074_s10 + $0x218] sm:$0xf] }
 0x25f   :  { %1269 = vmatpush.bf16.msrb.mxu2 %v1676_v6  ;;  %v1987_v6 = vld [vmem:[%s3074_s10 + $0x30] sm:$0xf0] }
 0x260   :  { %1240 = vmatpush.bf16.msrb.mxu0 %v1776_v28  ;;  %v1986_v28 = vld [vmem:[%s3074_s10 + $0x28] sm:$0xf0] }
 0x261   :  { %v1640_v30 = vor.u32 %v1986_v28, %v1639_v27  ;;  %v2011_v27 = vld [vmem:[%s3074_s10 + $0xf4] sm:$0xf] }
 0x262   :  { %1282 = vmatpush.bf16.msrb.mxu3 %v1680_v7  ;;  %v1648_v7 = vor.u32 %v1987_v6, %v1647_v5  ;;  %v2025_v5 = vld [vmem:[%s3074_s10 + $0x160] sm:$0xf0] }
 0x263   :  { %1270 = vmatpush.bf16.msrb.mxu2 %v1640_v30  ;;  %v1721_v30 = vld [vmem:[%s3074_s10 + $0xc4] sm:$0xf0] }
 0x264   :  { %1241 = vmatpush.bf16.msrb.mxu0 %v1740_v36  ;;  %v1907_v36 = vld [vmem:[%s3074_s10 + $0x210] sm:$0xf] }
 0x265   :  { %v1908_v39 = vor.u32 %v2051_v37, %v1907_v36  ;;  %v1724_v36 = vor.u32 %v2001_v11, %v1721_v30  ;;  %v1989_v11 = vld [vmem:[%s3074_s10 + $0x40] sm:$0xf0] }
 0x266   :  { %1283 = vmatpush.bf16.msrb.mxu3 %v1644_v32  ;;  %v1727_v32 = vld [vmem:[%s3074_s10 + $0xa8] sm:$0xf] }
 0x267   :  { %1315 = vmatpush.bf16.msra.mxu2 %v1908_v39  ;;  %v1728_v37 = vor.u32 %v2006_v12, %v1727_v32  ;;  %v1992_v39 = vld [vmem:[%s3074_s10 + $0x5c] sm:$0xf]  ;;  %v847_v32 = vld [vmem:[%s3075_s11] sm:$0xff] }
 0x268   :  { %1242 = vmatpush.bf16.msrb.mxu0 %v1704_v40  ;;  %v2047_v40 = vld [vmem:[%s3074_s10 + $0x214] sm:$0xf]  ;;  %v852_v12 = vperm.slane %v847_v32, 1 }
 0x26c   :  { %1243 = vmatpush.bf16.msrb.mxu0 %v1668_v43  ;;  %v1912_v43 = vor.u32 %v2047_v40, %v1909_v41  ;;  %v1685_v40 = vld [vmem:[%s3074_s10 + $0x7c] sm:$0xf0] }
 0x26d   :  { %v1691_v41 = vld [vmem:[%s3074_s10 + $0x60] sm:$0xf] }
 0x270   :  { %1244 = vmatpush.bf16.msrb.mxu0 %v1632_v48 }
 0x274   :  { %1289 = vmatpush.bf16.msra.mxu0 %v1900_v58  ;;  %v1835_v58 = vld [vmem:[%s3074_s10 + $0x180] sm:$0xf] }
 0x278   :  { %1290 = vmatpush.bf16.msra.mxu0 %v1864_v22  ;;  %v1799_v22 = vld [vmem:[%s3074_s10 + $0x138] sm:$0xf] }
 0x279   :  { %v1800_v3 = vor.u32 %v2024_v0, %v1799_v22 }
 0x27c   :  { %1291 = vmatpush.bf16.msra.mxu0 %v1828_v25  ;;  %v1763_v25 = vld [vmem:[%s3074_s10 + $0xf0] sm:$0xf] }
 0x27d   :  { %v1764_v28 = vor.u32 %v2015_v26, %v1763_v25  ;;  %v1735_v25 = vld [vmem:[%s3074_s10 + $0xb0] sm:$0xf] }
 0x280   :  { %1292 = vmatpush.bf16.msra.mxu0 %v1792_v13  ;;  %v1729_v13 = vld [vmem:[%s3074_s10 + $0xcc] sm:$0xf0] }
 0x2d8   :  { %v722_v44 = vpop.f32.mrf.mxu2 }
 0x2d9   :  { %v2713_v15 = vsub.f32 %v2590_v47, %v722_v44  ;;  %v1741_v47 = vld [vmem:[%s3074_s10 + $0xfc] sm:$0xf0]  ;;  %v2014_v44 = vld [vmem:[%s3074_s10 + $0x108] sm:$0xf0] }
 0x2da   :  { %v1744_v50 = vor.u32 %v2008_v49, %v1741_v47  ;;  %v1756_v46 = vor.u32 %v2014_v44, %v1755_v42  ;;  %v1871_v49 = vld [vmem:[%s3074_s10 + $0x1c8] sm:$0xf]  ;;  %v2042_v47 = vld [vmem:[%s3074_s10 + $0x1e8] sm:$0xf0]  ;;  %v1997_v42 = vld [vmem:[%s3074_s10 + $0x80] sm:$0xf0] }
 0x2db   :  { %v726_v45 = vmul.f32 %v2713_v15, %v2713_v15  ;;  %v1693_v44 = vld [vmem:[%s3074_s10 + $0x84] sm:$0xf0] }
 0x2dc   :  { %1254 = vmatpush.bf16.msrb.mxu1 %v1744_v50  ;;  %v1872_v50 = vor.u32 %v2042_v47, %v1871_v49  ;;  %1293 = vmatpush.bf16.msra.mxu0 %v1756_v46  ;;  %v1649_v49 = vld [vmem:[%s3074_s10 + $0x34] sm:$0xf0] }
 0x2dd   :  { %743 = vmatmul.f32.vlgmr.msra.gmra.mxu3 %v726_v45  ;;  %v2037_v45 = vld [vmem:[%s3074_s10 + $0x1c4] sm:$0xf]  ;;  %v1655_v47 = vld [vmem:[%s3074_s10 + $0x18] sm:$0xf] }
 0x2de   :  { %v1868_v48 = vor.u32 %v2037_v45, %v1865_v16  ;;  %1328 = vmatpush.bf16.msra.mxu3 %v1912_v43  ;;  %1316 = vmatpush.bf16.msra.mxu2 %v1872_v50  ;;  %v1993_v43 = vld [vmem:[%s3074_s10 + $0x64] sm:$0xf]  ;;  %v1688_v45 = vor.u32 %v1992_v39, %v1685_v40  ;;  %v1692_v16 = vor.u32 %v1997_v42, %v1691_v41  ;;  %v1984_v50 = vld [vmem:[%s3074_s10 + $0x1c] sm:$0xf]  ;;  %v854_v39 = vperm.slane %v847_v32, 3 }
 0x2df   :  { %v1696_v46 = vor.u32 %v1993_v43, %v1693_v44  ;;  %v1656_v54 = vor.u32 %v1988_v17, %v1655_v47  ;;  %v1660_v56 = vor.u32 %v1984_v50, %v1657_v51 }
 0x2e0   :  { %1255 = vmatpush.bf16.msrb.mxu1 %v1708_v62  ;;  %v1836_v62 = vor.u32 %v2033_v60, %v1835_v58  ;;  %1294 = vmatpush.bf16.msra.mxu0 %v1720_v55 }
 0x2e2   :  { %1329 = vmatpush.bf16.msra.mxu3 %v1876_v52  ;;  %1317 = vmatpush.bf16.msra.mxu2 %v1836_v62 }
 0x2e4   :  { %1256 = vmatpush.bf16.msrb.mxu1 %v1672_v2  ;;  %v1801_v2 = vld [vmem:[%s3074_s10 + $0x15c] sm:$0xf0]  ;;  %1295 = vmatpush.bf16.msra.mxu0 %v1684_v19  ;;  %v2052_v19 = vld [vmem:[%s3074_s10 + $0x238] sm:$0xf0] }
 0x2e5   :  { %v1804_v4 = vor.u32 %v2020_v1, %v1801_v2  ;;  %v1916_v22 = vor.u32 %v2052_v19, %v1915_v18  ;;  %v1843_v1 = vld [vmem:[%s3074_s10 + $0x188] sm:$0xf]  ;;  %v2034_v2 = vld [vmem:[%s3074_s10 + $0x1a8] sm:$0xf0] }
 0x2e6   :  { %1330 = vmatpush.bf16.msra.mxu3 %v1840_v31  ;;  %1318 = vmatpush.bf16.msra.mxu2 %v1800_v3  ;;  %v2057_v31 = vld [vmem:[%s3073_s9] ss:$0 sm:$0xff]  ;;  %v1844_v3 = vor.u32 %v2034_v2, %v1843_v1 }
 0x2e8   :  { %1257 = vmatpush.bf16.msrb.mxu1 %v1636_v10  ;;  %v1765_v10 = vld [vmem:[%s3074_s10 + $0x114] sm:$0xf0]  ;;  %1296 = vmatpush.bf16.msra.mxu0 %v1648_v7 }
 0x2e9   :  { %v1768_v29 = vor.u32 %v2011_v27, %v1765_v10  ;;  %v1771_v7 = vld [vmem:[%s3074_s10 + $0xf8] sm:$0xf]  ;;  %v1699_v27 = vld [vmem:[%s3074_s10 + $0x68] sm:$0xf]  ;;  %v1998_v10 = vld [vmem:[%s3074_s10 + $0x88] sm:$0xf0] }
 0x2ea   :  { %1331 = vmatpush.bf16.msra.mxu3 %v1804_v4  ;;  %1319 = vmatpush.bf16.msra.mxu2 %v1764_v28  ;;  %v1807_v4 = vld [vmem:[%s3074_s10 + $0x140] sm:$0xf]  ;;  %v1772_v24 = vor.u32 %v2016_v8, %v1771_v7  ;;  %v1700_v28 = vor.u32 %v1998_v10, %v1699_v27 }
 0x2eb   :  { %v1808_v6 = vor.u32 %v2025_v5, %v1807_v4 }
 0x2ec   :  { %1302 = vmatpush.bf16.msra.mxu1 %v1904_v38  ;;  %v1732_v38 = vor.u32 %v2002_v34, %v1729_v13 }
 0x2ee   :  { %1332 = vmatpush.bf16.msra.mxu3 %v1768_v29  ;;  %1320 = vmatpush.bf16.msra.mxu2 %v1728_v37  ;;  %v1663_v29 = vld [vmem:[%s3074_s10 + $0x20] sm:$0xf] }
 0x2ef   :  { %v1664_v30 = vor.u32 %v1989_v11, %v1663_v29 }
 0x2f0   :  { %1303 = vmatpush.bf16.msra.mxu1 %v1868_v48  ;;  %v1983_v48 = vld [vmem:[%s3074_s10 + $0x14] sm:$0xf] }
 0x2f1   :  { %v1652_v53 = vor.u32 %v1983_v48, %v1649_v49  ;;  %v856_v48 = vperm.slane %v847_v32, 5 }
 0x2f2   :  { %1333 = vmatpush.bf16.msra.mxu3 %v1732_v38  ;;  %1321 = vmatpush.bf16.msra.mxu2 %v1692_v16  ;;  %v853_v38 = vperm.slane %v847_v32, 2 }
 0x2f4   :  { %1304 = vmatpush.bf16.msra.mxu1 %v1832_v59 }
 0x2f6   :  { %1334 = vmatpush.bf16.msra.mxu3 %v1696_v46  ;;  %1322 = vmatpush.bf16.msra.mxu2 %v1656_v54  ;;  %v855_v46 = vperm.slane %v847_v32, 4  ;;  %v857_v54 = vperm.slane %v847_v32, 6 }
 0x2f8   :  { %1305 = vmatpush.bf16.msra.mxu1 %v1796_v23  ;;  %v2043_v23 = vld [vmem:[%s3074_s10 + $0x1f0] sm:$0xf0] }
 0x2fa   :  { %1335 = vmatpush.bf16.msra.mxu3 %v1660_v56 }
 0x2fc   :  { %1306 = vmatpush.bf16.msra.mxu1 %v1760_v9  ;;  %v2007_v9 = vld [vmem:[%s3074_s10 + $0xd0] sm:$0xf0] }
 0x2fd   :  { %v1736_v26 = vor.u32 %v2007_v9, %v1735_v25 }
 0x300   :  { %1307 = vmatpush.bf16.msra.mxu1 %v1724_v36 }
 0x304   :  { %1308 = vmatpush.bf16.msra.mxu1 %v1688_v45 }
 0x308   :  { %1309 = vmatpush.bf16.msra.mxu1 %v1652_v53 }
 0x360   :  { %v744_v33 = vpop.f32.mrf.mxu3 }
 0x361   :  { %v745_v35 = vadd.f32 1e-05, %v744_v33  ;;  %v851_v33 = vperm.slane %v847_v32, 0 }
 0x363   :  { %2061 = vrsqrt.f32 %v745_v35  ;;  %vm753_vm4 = vweird.f32 %v745_v35 }
 0x369   :  { %v2062_v52 = vpop.eup %2061 }
 0x36a   :  { %v748_v55 = vmul.f32 %v2062_v52, %v745_v35  ;;  %vm754_vm3 = vweird.f32 %v2062_v52 }
 0x36b   :  { %vm755_vm5 = vmor %vm753_vm4, %vm754_vm3 }
 0x36c   :  { %v749_v57 = vmul.f32 %v2062_v52, %v748_v55  ;;  %v858_v55 = vperm.slane %v847_v32, 7 }
 0x36e   :  { %v750_v58 = vmul.f32 0.5, %v749_v57 }
 0x370   :  { %v751_v59 = vsub.f32 1.5, %v750_v58 }
 0x372   :  { %v752_v60 = vmul.f32 %v2062_v52, %v751_v59 }
 0x374   :  { %v756_v62 = vsel %vm755_vm5, %v2062_v52, %v752_v60 }
 0x375   :  { %v757_v63 = vmul.f32 %v756_v62, %v2713_v15  ;;  %v1879_v15 = vld [vmem:[%s3074_s10 + $0x1d0] sm:$0xf] }
 0x376   :  { %v1880_v0 = vor.u32 %v2043_v23, %v1879_v15 }
 0x377   :  { %v761_v14 = vmul.f32 %v2056_v61, %v757_v63  ;;  %v2058_v63 = vld [vmem:[%s3075_s11 + $0x8] ss:$0 sm:$0xff] }
 0x379   :  { %v765_v20 = vadd.f32 %v2057_v31, %v761_v14 }
 0x37b   :  { %v766_v21 = vpack.c.bf16 %v765_v20, %v765_v20 }
 0x37d   :  { %1245 = vmatmul.bf16.vlgmr.msrb.gmra.mxu0 %v766_v21  ;;  %1258 = vmatmul.bf16.vlgmr.msrb.gmra.mxu1 %v766_v21 }
 0x37e   :  { %1271 = vmatmul.bf16.vlgmr.msrb.gmra.mxu2 %v766_v21  ;;  %1284 = vmatmul.bf16.vlgmr.msrb.gmra.mxu3 %v766_v21 }
 0x37f   :  { %1341 = vmatpush.bf16.msrb.mxu0 %v1916_v22 }
 0x383   :  { %1342 = vmatpush.bf16.msrb.mxu0 %v1880_v0 }
 0x387   :  { %1343 = vmatpush.bf16.msrb.mxu0 %v1844_v3 }
 0x38b   :  { %1344 = vmatpush.bf16.msrb.mxu0 %v1808_v6 }
 0x38d   :  { %1297 = vmatmul.bf16.vlgmr.msra.gmra.mxu0 %v766_v21  ;;  %1310 = vmatmul.bf16.vlgmr.msra.gmra.mxu1 %v766_v21 }
 0x38e   :  { %1323 = vmatmul.bf16.vlgmr.msra.gmra.mxu2 %v766_v21  ;;  %1336 = vmatmul.bf16.vlgmr.msra.gmra.mxu3 %v766_v21 }
 0x38f   :  { %1345 = vmatpush.bf16.msrb.mxu0 %v1772_v24 }
 0x393   :  { %1346 = vmatpush.bf16.msrb.mxu0 %v1736_v26 }
 0x397   :  { %1347 = vmatpush.bf16.msrb.mxu0 %v1700_v28 }
 0x39b   :  { %1348 = vmatpush.bf16.msrb.mxu0 %v1664_v30 }
 0x39e   :  { %1349 = vmatmul.bf16.vlgmr.msrb.gmra.mxu0 %v766_v21 }
 0x3fa   :  { %v1246_v34 = vpop.f32.mrf.mxu0  ;;  %v1259_v13 = vpop.f32.mrf.mxu1 }
 0x3fb   :  { %v1247_v35 = vadd.f32 %v1246_v34, %v851_v33  ;;  %v1260_v36 = vadd.f32 %v1259_v13, %v852_v12 }
 0x3fd   :  { %v1354_v37 = vpack.c.bf16 %v1260_v36, %v1247_v35 }
 0x3ff   :  { %1359 = vst [vmem:[%s3076_s13] sm:$0xff] %v1354_v37 }
 0x401   :  { %v1272_v40 = vpop.f32.mrf.mxu2  ;;  %v1285_v41 = vpop.f32.mrf.mxu3 }
 0x402   :  { %v1273_v42 = vadd.f32 %v1272_v40, %v853_v38  ;;  %v1286_v43 = vadd.f32 %v1285_v41, %v854_v39  ;;  %v1248_v44 = vpop.f32.mrf.mxu0  ;;  %v1261_v45 = vpop.f32.mrf.mxu1 }
 0x404   :  { %v1355_v16 = vpack.c.bf16 %v1286_v43, %v1273_v42 }
 0x406   :  { %1360 = vst [vmem:[%s3076_s13 + $0x8] sm:$0xff] %v1355_v16 }
 0x409   :  { %v1274_v49 = vpop.f32.mrf.mxu2  ;;  %v1287_v47 = vpop.f32.mrf.mxu3 }
 0x40a   :  { %v1298_v17 = vpop.f32.mrf.mxu0  ;;  %v1311_v50 = vpop.f32.mrf.mxu1 }
 0x40b   :  { %v1299_v51 = vadd.f32 %v1298_v17, %v855_v46  ;;  %v1312_v52 = vadd.f32 %v1311_v50, %v856_v48 }
 0x40d   :  { %v1356_v53 = vpack.c.bf16 %v1312_v52, %v1299_v51 }
 0x40f   :  { %1361 = vst [vmem:[%s3076_s13 + $0x10] sm:$0xff] %v1356_v53 }
 0x411   :  { %v1324_v56 = vpop.f32.mrf.mxu2  ;;  %v1337_v57 = vpop.f32.mrf.mxu3 }
 0x412   :  { %v1325_v58 = vadd.f32 %v1324_v56, %v857_v54  ;;  %v1338_v59 = vadd.f32 %v1337_v57, %v858_v55  ;;  %v1300_v60 = vpop.f32.mrf.mxu0  ;;  %v1313_v61 = vpop.f32.mrf.mxu1 }
 0x414   :  { %v1357_v62 = vpack.c.bf16 %v1338_v59, %v1325_v58 }
 0x416   :  { %1362 = vst [vmem:[%s3076_s13 + $0x18] sm:$0xff] %v1357_v62 }
 0x419   :  { %v1326_v31 = vpop.f32.mrf.mxu2  ;;  %v1339_v14 = vpop.f32.mrf.mxu3 }
 0x41b   :  { %v1350_v18 = vpop.f32.mrf.mxu0 }
 0x41c   :  { %v1351_v19 = vadd.f32 %v2058_v63, %v1350_v18 }
 0x41e   :  { %v1358_v20 = vpack.c.bf16 %v1351_v19, %v1351_v19 }
 0x420   :  { %1364 = vst.msk [vmem:[%s3076_s13 + $0x20] sm:$0xf] %vm1363_vm6, %v1358_v20 }
 0x423   :  { %v1352_v21 = vpop.f32.mrf.mxu0 }

// kernel: _lambda_.39
= control target key start
LH: loop header
LB: loop body
LE: loop exit
PB: predicated region body
PF: predicated region fallthrough
CT: control target
= control target key end

     0   :  { %s870_s21 = smov 0   ;;  %s1149_s0 = inlined_call_operand.vmem [shape: bf16[16,128], index: 0, kind: input, shape index: {}]   ;;  %s1150_s1 = inlined_call_operand.vmem [shape: f32[128,128], index: 1, kind: input, shape index: {}]   ;;  %s1151_s2 = inlined_call_operand.vmem [shape: f32[1,128], index: 2, kind: input, shape index: {}]   ;;  %s1152_s3 = inlined_call_operand.vmem [shape: f32[1,128], index: 3, kind: input, shape index: {}]   ;;  %s1153_s4 = inlined_call_operand.vmem [shape: bf16[128,512], index: 4, kind: input, shape index: {}]   ;;  %s1154_s5 = inlined_call_operand.vmem [shape: f32[1,512], index: 5, kind: input, shape index: {}]   ;;  %s1155_s6 = inlined_call_operand.vmem [shape: f32[16,512], index: 6, kind: output, shape index: {}]  }
   0x1 LB: > { %s644_s22 = sadd.s32 4294967295, %s833_s21   ;;  %p648_p0 = scmp.ge.s32.totalorder %s833_s21, 1  ;;  %s833_s21 = sphi %s870_s21, %s16_s21  }
   0x2   : > { %p211_p1 = scmp.lt.s32.totalorder %s833_s21, 3 }
   0x4   : > { %p212_p2 = pnand %p648_p0, %p211_p1 }
   0x5   : > { %p240_p3 = scmp.lt.s32.totalorder (!%p212_p2), %s644_s22, 1 }
   0x6   : > { %215 = sbr.rel (%p212_p2) target bundleno = 467 (0x1d3), region = 44 }
   0xb   : > { %v266_v0 = vld [vmem:[%s1150_s1 + $0x78] sm:$0xff]  ;;  %v265_v1 = vld [vmem:[%s1150_s1 + $0x70] sm:$0xff]  ;;  %v264_v2 = vld [vmem:[%s1150_s1 + $0x68] sm:$0xff]  ;;  %s1157_s22 = smov (!%p240_p3, %s644_s22), 1 }
   0xc   : > { %269 = vmatpush.msra.mxu0 %v266_v0  ;;  %291 = vmatpush.msra.mxu1 %v266_v0  ;;  %v263_v3 = vld [vmem:[%s1150_s1 + $0x60] sm:$0xff]  ;;  %v262_v4 = vld [vmem:[%s1150_s1 + $0x58] sm:$0xff]  ;;  %v261_v5 = vld [vmem:[%s1150_s1 + $0x50] sm:$0xff]  ;;  %s649_s23 = sshll.u32 %s1157_s22, 2  ;;  %s782_s15 = sshll.u32 %s1157_s22, 5 }
   0xd   : > { %v260_v6 = vld [vmem:[%s1150_s1 + $0x48] sm:$0xff]  ;;  %v259_v7 = vld [vmem:[%s1150_s1 + $0x40] sm:$0xff]  ;;  %v258_v8 = vld [vmem:[%s1150_s1 + $0x38] sm:$0xff]  ;;  %s243_s30 = scalar_lea.vmem %s1149_s0, %s649_s23  ;;  %s248_s18 = scalar_lea.vmem %s1155_s6, %s782_s15 }
   0xe   : > { %270 = vmatpush.msra.mxu0 %v265_v1  ;;  %292 = vmatpush.msra.mxu1 %v265_v1  ;;  %v257_v9 = vld [vmem:[%s1150_s1 + $0x30] sm:$0xff]  ;;  %v256_v10 = vld [vmem:[%s1150_s1 + $0x28] sm:$0xff]  ;;  %v255_v11 = vld [vmem:[%s1150_s1 + $0x20] sm:$0xff] }
   0xf   : > { %v254_v12 = vld [vmem:[%s1150_s1 + $0x18] sm:$0xff]  ;;  %v253_v13 = vld [vmem:[%s1150_s1 + $0x10] sm:$0xff]  ;;  %v249_v14 = vld [vmem:[%s243_s30] sm:$0xf] }
  0x10   : > { %271 = vmatpush.msra.mxu0 %v264_v2  ;;  %293 = vmatpush.msra.mxu1 %v264_v2  ;;  %v252_v15 = vld [vmem:[%s1150_s1 + $0x8] sm:$0xff]  ;;  %v251_v16 = vld [vmem:[%s1150_s1] sm:$0xff]  ;;  %v250_v17 = vunpack.c.l.bf16 %v249_v14  ;;  %v813_v19 = vld [vmem:[%s1153_s4 + $0xec] sm:$0xf0] }
  0x11   : > { %v766_v18 = vld [vmem:[%s1153_s4 + $0xe0] sm:$0xf]  ;;  %v811_v20 = vld [vmem:[%s1153_s4 + $0xe4] sm:$0xf]  ;;  %v768_v22 = vld [vmem:[%s1153_s4 + $0xf0] sm:$0xf0] }
  0x12   : > { %272 = vmatpush.msra.mxu0 %v263_v3  ;;  %294 = vmatpush.msra.mxu1 %v263_v3  ;;  %v767_v21 = vor.u32 %v813_v19, %v766_v18  ;;  %v774_v23 = vld [vmem:[%s1153_s4 + $0xe8] sm:$0xf]  ;;  %v814_v24 = vld [vmem:[%s1153_s4 + $0xf4] sm:$0xf0]  ;;  %v771_v25 = vor.u32 %v811_v20, %v768_v22  ;;  %v812_v27 = vld [vmem:[%s1153_s4 + $0xec] sm:$0xf] }
  0x13   : > { %v775_v26 = vor.u32 %v814_v24, %v774_v23  ;;  %v776_v28 = vld [vmem:[%s1153_s4 + $0xf8] sm:$0xf0]  ;;  %v750_v33 = vld [vmem:[%s1153_s4 + $0xc0] sm:$0xf]  ;;  %v809_v34 = vld [vmem:[%s1153_s4 + $0xcc] sm:$0xf0] }
  0x14   : > { %273 = vmatpush.msra.mxu0 %v262_v4  ;;  %295 = vmatpush.msra.mxu1 %v262_v4  ;;  %v779_v29 = vor.u32 %v812_v27, %v776_v28  ;;  %v807_v35 = vld [vmem:[%s1153_s4 + $0xc4] sm:$0xf]  ;;  %v751_v36 = vor.u32 %v809_v34, %v750_v33  ;;  %v752_v37 = vld [vmem:[%s1153_s4 + $0xd0] sm:$0xf0]  ;;  %v758_v38 = vld [vmem:[%s1153_s4 + $0xc8] sm:$0xf] }
  0x15   : > { %533 = vmatpush.bf16.msra.mxu2 %v767_v21  ;;  %546 = vmatpush.bf16.msra.mxu3 %v771_v25  ;;  %v810_v39 = vld [vmem:[%s1153_s4 + $0xd4] sm:$0xf0]  ;;  %v755_v40 = vor.u32 %v807_v35, %v752_v37  ;;  %v808_v42 = vld [vmem:[%s1153_s4 + $0xcc] sm:$0xf]  ;;  %v760_v43 = vld [vmem:[%s1153_s4 + $0xd8] sm:$0xf0] }
  0x16   : > { %274 = vmatpush.msra.mxu0 %v261_v5  ;;  %296 = vmatpush.msra.mxu1 %v261_v5  ;;  %v759_v41 = vor.u32 %v810_v39, %v758_v38  ;;  %v763_v44 = vor.u32 %v808_v42, %v760_v43  ;;  %v734_v45 = vld [vmem:[%s1153_s4 + $0xa0] sm:$0xf]  ;;  %v805_v46 = vld [vmem:[%s1153_s4 + $0xac] sm:$0xf0]  ;;  %v803_v47 = vld [vmem:[%s1153_s4 + $0xa4] sm:$0xf] }
  0x17   : > { %v735_v48 = vor.u32 %v805_v46, %v734_v45  ;;  %v736_v49 = vld [vmem:[%s1153_s4 + $0xb0] sm:$0xf0]  ;;  %v742_v50 = vld [vmem:[%s1153_s4 + $0xa8] sm:$0xf]  ;;  %v806_v51 = vld [vmem:[%s1153_s4 + $0xb4] sm:$0xf0] }
  0x18   : > { %275 = vmatpush.msra.mxu0 %v260_v6  ;;  %297 = vmatpush.msra.mxu1 %v260_v6  ;;  %v739_v52 = vor.u32 %v803_v47, %v736_v49  ;;  %v743_v53 = vor.u32 %v806_v51, %v742_v50  ;;  %v804_v54 = vld [vmem:[%s1153_s4 + $0xac] sm:$0xf]  ;;  %v744_v55 = vld [vmem:[%s1153_s4 + $0xb8] sm:$0xf0]  ;;  %v718_v57 = vld [vmem:[%s1153_s4 + $0x80] sm:$0xf] }
  0x19   : > { %534 = vmatpush.bf16.msra.mxu2 %v751_v36  ;;  %547 = vmatpush.bf16.msra.mxu3 %v755_v40  ;;  %v747_v56 = vor.u32 %v804_v54, %v744_v55  ;;  %v801_v58 = vld [vmem:[%s1153_s4 + $0x8c] sm:$0xf0]  ;;  %v799_v59 = vld [vmem:[%s1153_s4 + $0x84] sm:$0xf]  ;;  %v720_v61 = vld [vmem:[%s1153_s4 + $0x90] sm:$0xf0] }
  0x1a   : > { %276 = vmatpush.msra.mxu0 %v259_v7  ;;  %298 = vmatpush.msra.mxu1 %v259_v7  ;;  %v719_v60 = vor.u32 %v801_v58, %v718_v57  ;;  %v726_v62 = vld [vmem:[%s1153_s4 + $0x88] sm:$0xf]  ;;  %v802_v63 = vld [vmem:[%s1153_s4 + $0x94] sm:$0xf0]  ;;  %v723_v0 = vor.u32 %v799_v59, %v720_v61  ;;  %v800_v2 = vld [vmem:[%s1153_s4 + $0x8c] sm:$0xf] }
  0x1b   : > { %v727_v1 = vor.u32 %v802_v63, %v726_v62  ;;  %v728_v3 = vld [vmem:[%s1153_s4 + $0x98] sm:$0xf0]  ;;  %v702_v5 = vld [vmem:[%s1153_s4 + $0x60] sm:$0xf]  ;;  %v797_v6 = vld [vmem:[%s1153_s4 + $0x6c] sm:$0xf0] }
  0x1c   : > { %277 = vmatpush.msra.mxu0 %v258_v8  ;;  %299 = vmatpush.msra.mxu1 %v258_v8  ;;  %v731_v4 = vor.u32 %v800_v2, %v728_v3  ;;  %v795_v7 = vld [vmem:[%s1153_s4 + $0x64] sm:$0xf]  ;;  %v703_v8 = vor.u32 %v797_v6, %v702_v5  ;;  %v796_v14 = vld [vmem:[%s1153_s4 + $0x6c] sm:$0xf]  ;;  %v793_v18 = vld [vmem:[%s1153_s4 + $0x4c] sm:$0xf0] }
  0x1d   : > { %535 = vmatpush.bf16.msra.mxu2 %v735_v48  ;;  %548 = vmatpush.bf16.msra.mxu3 %v739_v52  ;;  %v791_v19 = vld [vmem:[%s1153_s4 + $0x44] sm:$0xf]  ;;  %v688_v21 = vld [vmem:[%s1153_s4 + $0x50] sm:$0xf0]  ;;  %v694_v22 = vld [vmem:[%s1153_s4 + $0x48] sm:$0xf] }
  0x1e   : > { %278 = vmatpush.msra.mxu0 %v257_v9  ;;  %300 = vmatpush.msra.mxu1 %v257_v9  ;;  %v704_v9 = vld [vmem:[%s1153_s4 + $0x70] sm:$0xf0]  ;;  %v794_v23 = vld [vmem:[%s1153_s4 + $0x54] sm:$0xf0]  ;;  %v691_v24 = vor.u32 %v791_v19, %v688_v21  ;;  %v696_v27 = vld [vmem:[%s1153_s4 + $0x58] sm:$0xf0] }
  0x1f   : > { %v695_v25 = vor.u32 %v794_v23, %v694_v22  ;;  %v672_v34 = vld [vmem:[%s1153_s4 + $0x30] sm:$0xf0]  ;;  %v678_v35 = vld [vmem:[%s1153_s4 + $0x28] sm:$0xf]  ;;  %v790_v36 = vld [vmem:[%s1153_s4 + $0x34] sm:$0xf0] }
  0x20   : > { %279 = vmatpush.msra.mxu0 %v256_v10  ;;  %301 = vmatpush.msra.mxu1 %v256_v10  ;;  %v710_v10 = vld [vmem:[%s1153_s4 + $0x68] sm:$0xf]  ;;  %v679_v38 = vor.u32 %v790_v36, %v678_v35  ;;  %v788_v39 = vld [vmem:[%s1153_s4 + $0x2c] sm:$0xf]  ;;  %v680_v40 = vld [vmem:[%s1153_s4 + $0x38] sm:$0xf0] }
  0x21   : > { %536 = vmatpush.bf16.msra.mxu2 %v719_v60  ;;  %549 = vmatpush.bf16.msra.mxu3 %v723_v0  ;;  %v683_v42 = vor.u32 %v788_v39, %v680_v40  ;;  %v785_v43 = vld [vmem:[%s1153_s4 + $0xc] sm:$0xf0]  ;;  %v656_v45 = vld [vmem:[%s1153_s4 + $0x10] sm:$0xf0]  ;;  %v662_v48 = vld [vmem:[%s1153_s4 + $0x8] sm:$0xf] }
  0x22   : > { %280 = vmatpush.msra.mxu0 %v255_v11  ;;  %302 = vmatpush.msra.mxu1 %v255_v11  ;;  %v798_v11 = vld [vmem:[%s1153_s4 + $0x74] sm:$0xf0]  ;;  %v784_v50 = vld [vmem:[%s1153_s4 + $0xc] sm:$0xf]  ;;  %v664_v52 = vld [vmem:[%s1153_s4 + $0x18] sm:$0xf0] }
  0x23   : > { %v786_v49 = vld [vmem:[%s1153_s4 + $0x14] sm:$0xf0]  ;;  %v823_v62 = vld [vmem:[%s1151_s2] ss:$0 sm:$0xff] }
  0x24   : > { %281 = vmatpush.msra.mxu0 %v254_v12  ;;  %303 = vmatpush.msra.mxu1 %v254_v12  ;;  %v707_v12 = vor.u32 %v795_v7, %v704_v9  ;;  %v663_v51 = vor.u32 %v786_v49, %v662_v48  ;;  %v363_v5 = vld [vmem:[%s1154_s5] sm:$0xf] }
  0x25   : > { %537 = vmatpush.bf16.msra.mxu2 %v703_v8  ;;  %v367_v6 = vperm.slane %v363_v5, 2  ;;  %v368_v7 = vperm.slane %v363_v5, 3 }
  0x26   : > { %282 = vmatpush.msra.mxu0 %v253_v13  ;;  %304 = vmatpush.msra.mxu1 %v253_v13  ;;  %v711_v13 = vor.u32 %v798_v11, %v710_v10  ;;  %v365_v11 = vperm.slane %v363_v5, 0 }
  0x27   : > { %550 = vmatpush.bf16.msra.mxu3 %v707_v12  ;;  %v366_v12 = vperm.slane %v363_v5, 1 }
  0x28   : > { %283 = vmatpush.msra.mxu0 %v252_v15  ;;  %305 = vmatpush.msra.mxu1 %v252_v15  ;;  %v712_v15 = vld [vmem:[%s1153_s4 + $0x78] sm:$0xf0] }
  0x2a   : > { %284 = vmatpush.msra.mxu0 %v251_v16  ;;  %306 = vmatpush.msra.mxu1 %v251_v16  ;;  %v715_v16 = vor.u32 %v796_v14, %v712_v15 }
  0x2b   : > { %285 = vmatmul.f32.vlgmr.msra.gmra.mxu0 %v250_v17  ;;  %551 = vmatpush.bf16.msra.mxu3 %v691_v24 }
  0x2c   : > { %559 = vmatpush.bf16.msrb.mxu0 %v775_v26  ;;  %572 = vmatpush.bf16.msrb.mxu1 %v779_v29  ;;  %v792_v26 = vld [vmem:[%s1153_s4 + $0x4c] sm:$0xf]  ;;  %v670_v29 = vld [vmem:[%s1153_s4 + $0x20] sm:$0xf] }
  0x2d   : > { %v699_v28 = vor.u32 %v792_v26, %v696_v27 }
  0x30   : > { %560 = vmatpush.bf16.msrb.mxu0 %v759_v41  ;;  %573 = vmatpush.bf16.msrb.mxu1 %v763_v44  ;;  %v654_v41 = vld [vmem:[%s1153_s4] sm:$0xf]  ;;  %v783_v44 = vld [vmem:[%s1153_s4 + $0x4] sm:$0xf] }
  0x31   : > { %v655_v46 = vor.u32 %v785_v43, %v654_v41  ;;  %v659_v47 = vor.u32 %v783_v44, %v656_v45 }
  0x34   : > { %561 = vmatpush.bf16.msrb.mxu0 %v743_v53  ;;  %574 = vmatpush.bf16.msrb.mxu1 %v747_v56  ;;  %v667_v53 = vor.u32 %v784_v50, %v664_v52 }
  0x38   : > { %562 = vmatpush.bf16.msrb.mxu0 %v727_v1  ;;  %575 = vmatpush.bf16.msrb.mxu1 %v731_v4  ;;  %v824_v1 = vld [vmem:[%s1152_s3] ss:$0 sm:$0xff] }
  0x3c   : > { %563 = vmatpush.bf16.msrb.mxu0 %v711_v13  ;;  %576 = vmatpush.bf16.msrb.mxu1 %v715_v16 }
  0x40   : > { %564 = vmatpush.bf16.msrb.mxu0 %v695_v25  ;;  %577 = vmatpush.bf16.msrb.mxu1 %v699_v28 }
  0x44   : > { %565 = vmatpush.bf16.msrb.mxu0 %v679_v38  ;;  %578 = vmatpush.bf16.msrb.mxu1 %v683_v42 }
  0x48   : > { %566 = vmatpush.bf16.msrb.mxu0 %v663_v51  ;;  %579 = vmatpush.bf16.msrb.mxu1 %v667_v53 }
  0xa8   : > { %v286_v30 = vpop.f32.mrf.mxu0 }
  0xa9   : > { %v960_v31 = vsub.f32 %v250_v17, %v286_v30  ;;  %v686_v17 = vld [vmem:[%s1153_s4 + $0x40] sm:$0xf]  ;;  %v789_v30 = vld [vmem:[%s1153_s4 + $0x2c] sm:$0xf0] }
  0xaa   : > { %v687_v20 = vor.u32 %v793_v18, %v686_v17  ;;  %v671_v33 = vor.u32 %v789_v30, %v670_v29 }
  0xab   : > { %v290_v32 = vmul.f32 %v960_v31, %v960_v31 }
  0xac   : > { %538 = vmatpush.bf16.msra.mxu2 %v687_v20 }
  0xad   : > { %307 = vmatmul.f32.vlgmr.msra.gmra.mxu1 %v290_v32  ;;  %v787_v32 = vld [vmem:[%s1153_s4 + $0x24] sm:$0xf] }
  0xae   : > { %v675_v37 = vor.u32 %v787_v32, %v672_v34 }
  0xb0   : > { %539 = vmatpush.bf16.msra.mxu2 %v671_v33  ;;  %552 = vmatpush.bf16.msra.mxu3 %v675_v37 }
  0xb4   : > { %540 = vmatpush.bf16.msra.mxu2 %v655_v46  ;;  %553 = vmatpush.bf16.msra.mxu3 %v659_v47 }
 0x12a   : > { %v308_v54 = vpop.f32.mrf.mxu1 }
 0x12b   : > { %v309_v55 = vadd.f32 1e-05, %v308_v54 }
 0x12d   : > { %825 = vrsqrt.f32 %v309_v55  ;;  %vm317_vm1 = vweird.f32 %v309_v55 }
 0x133   : > { %v826_v56 = vpop.eup %825 }
 0x134   : > { %v312_v57 = vmul.f32 %v826_v56, %v309_v55  ;;  %vm318_vm0 = vweird.f32 %v826_v56 }
 0x135   : > { %vm319_vm2 = vmor %vm317_vm1, %vm318_vm0 }
 0x136   : > { %v313_v58 = vmul.f32 %v826_v56, %v312_v57 }
 0x138   : > { %v314_v59 = vmul.f32 0.5, %v313_v58 }
 0x13a   : > { %v315_v60 = vsub.f32 1.5, %v314_v59 }
 0x13c   : > { %v316_v61 = vmul.f32 %v826_v56, %v315_v60 }
 0x13e   : > { %v320_v63 = vsel %vm319_vm2, %v826_v56, %v316_v61 }
 0x13f   : > { %v321_v0 = vmul.f32 %v320_v63, %v960_v31 }
 0x141   : > { %v325_v2 = vmul.f32 %v823_v62, %v321_v0 }
 0x143   : > { %v329_v3 = vadd.f32 %v824_v1, %v325_v2 }
 0x145   : > { %v330_v4 = vpack.c.bf16 %v329_v3, %v329_v3 }
 0x147   : > { %541 = vmatmul.bf16.vlgmr.msra.gmra.mxu2 %v330_v4  ;;  %554 = vmatmul.bf16.vlgmr.msra.gmra.mxu3 %v330_v4 }
 0x148   : > { %567 = vmatmul.bf16.vlgmr.msrb.gmra.mxu0 %v330_v4  ;;  %580 = vmatmul.bf16.vlgmr.msrb.gmra.mxu1 %v330_v4 }
 0x1c5   : > { %v568_v31 = vpop.f32.mrf.mxu0  ;;  %v581_v8 = vpop.f32.mrf.mxu1 }
 0x1c6   : > { %v569_v9 = vadd.f32 %v568_v31, %v367_v6  ;;  %v582_v10 = vadd.f32 %v581_v8, %v368_v7 }
 0x1c8   : > { %587 = vst [vmem:[%s248_s18 + $0x10] sm:$0xff] %v569_v9 }
 0x1c9   : > { %588 = vst [vmem:[%s248_s18 + $0x18] sm:$0xff] %v582_v10 }
 0x1ca   : > { %v542_v13 = vpop.f32.mrf.mxu2  ;;  %v555_v14 = vpop.f32.mrf.mxu3 }
 0x1cb   : > { %v543_v15 = vadd.f32 %v542_v13, %v365_v11  ;;  %v556_v16 = vadd.f32 %v555_v14, %v366_v12 }
 0x1cd   : > { %585 = vst [vmem:[%s248_s18] sm:$0xff] %v543_v15  ;;  %v570_v17 = vpop.f32.mrf.mxu0  ;;  %v583_v18 = vpop.f32.mrf.mxu1 }
 0x1ce   : > { %586 = vst [vmem:[%s248_s18 + $0x8] sm:$0xff] %v556_v16 }
 0x1d2   : > { %v544_v19 = vpop.f32.mrf.mxu2  ;;  %v557_v20 = vpop.f32.mrf.mxu3 }
 0x1d3 PF: > { %s16_s21 = sadd.s32 1, %s833_s21  }
 0x1d4   : > { %p13_p4 = scmp.ge.s32.totalorder %s16_s21, 4  }
 0x1d6   :  { %15 = sbr.rel (!%p13_p4) target bundleno = 1 (0x1), region = 74 }

</bundles_post_ra>
